<compile_context>
chip_gen: v5e
topology: v5e:2x2
jax: 0.10.0
libtpu: 0.0.40
codegen_flags: <defaults>
</compile_context>

<pallas_src>
import functools
import math

import jax
import jax.numpy as jnp
from jax import lax
from jax.experimental import pallas as pl
from jax.experimental.pallas import tpu as pltpu

LANE = 128      # TPU lane width: channel dims are padded to a multiple of this.
_XOFF = 16      # interior column offset inside the pad scratches: bf16 uses
                # (16, 128) tiles, so offset 16 keeps the interior stores unmasked.


def _ceil_to(x, m):
    return ((x + m - 1) // m) * m


# ---------------------------------------------------------------------------
# Fused BasicBlockMULT3 forward for one image (one grid step).
# ---------------------------------------------------------------------------
def basic_block_kernel(x_ref, w1_ref, b1_ref, w2_ref, b2_ref, *rest,
                       H, W, Ho, Wo, stride, Cp, Co, sc_mode):
    # x_ref    : (H, W, Cp)            bf16  input image (original channels at [0, cin))
    # w1_ref   : (9*Cp, Co)            bf16  conv1 taps stacked (dy, dx, ci); BN1 scale folded
    # b1_ref   : (1, 1, Co)            f32   BN1 bias
    # w2_ref   : (9*Co, Co)            bf16  conv2 taps stacked; BN2 scale folded
    # b2_ref   : (1, 1, Co)            f32   BN2 bias
    # [sc_ref] : (Ho, Wo, Co)          bf16  shortcut (only when sc_mode == "input")
    # o_ref    : (Ho, Wo, Co)          bf16  block output
    # scratch  : xpad (H+2, W+2*XOFF, Cp) bf16 ; patch (H*W, 9*max(Cp,Co)) bf16 ;
    #            a1p  (Ho+2, Wo+2*XOFF, Co) bf16
    if sc_mode == "input":
        sc_ref, o_ref, xpad_ref, patch_ref, a1p_ref = rest
    else:
        o_ref, xpad_ref, patch_ref, a1p_ref = rest
        sc_ref = None

    # One-time zeroing of the pad scratches.  The grid axis is 'arbitrary'
    # (single TensorCore, sequential), so step 0 always runs first and the zero
    # borders persist; every later step only rewrites the interiors.
    # NOTE: do NOT mark the axis 'parallel' while keeping this -- a second core
    # would start on a step > 0 with an un-zeroed border.
    @pl.when(pl.program_id(0) == 0)
    def _init():
        xpad_ref[...] = jnp.zeros((H + 2, W + 2 * _XOFF, Cp), jnp.bfloat16)
        a1p_ref[...] = jnp.zeros((Ho + 2, Wo + 2 * _XOFF, Co), jnp.bfloat16)

    # ---- hmt1: 3x3 'same' conv as ONE im2col matmul (K = 9*Cp) ----
    # TODO(synk): swap in the exact MultLayer3 math once its definition exists.
    xpad_ref[1:H + 1, _XOFF:_XOFF + W, :] = x_ref[...]        # aligned interior store
    for dy in range(3):
        for dx in range(3):
            t = dy * 3 + dx
            slab = xpad_ref[dy:dy + H, _XOFF - 1 + dx:_XOFF - 1 + dx + W, :]
            patch_ref[:, t * Cp:(t + 1) * Cp] = slab.reshape(H * W, Cp)
    y1 = jnp.dot(patch_ref[:, :9 * Cp], w1_ref[...],
                 preferred_element_type=jnp.float32)          # (H*W, Co) f32, MXU

    # ---- pool1 = MaxPool2d(stride, stride), entirely in registers ----
    if stride > 1:
        r = jnp.max(y1.reshape(Ho, stride, W, Co), axis=1)        # pool rows
        p1 = jnp.max(r.reshape(Ho, Wo, stride, Co), axis=2)       # pool columns
    else:
        p1 = y1.reshape(Ho, Wo, Co)                               # MaxPool(1,1) == id

    # ---- bn1 (scale already folded into w1) + ReLU ----
    a1 = jnp.maximum(p1 + b1_ref[...], 0.0).astype(jnp.bfloat16)

    # ---- hmt2: second 3x3 'same' conv; padding done in VMEM ----
    a1p_ref[1:Ho + 1, _XOFF:_XOFF + Wo, :] = a1
    for dy in range(3):
        for dx in range(3):
            t = dy * 3 + dx
            slab = a1p_ref[dy:dy + Ho, _XOFF - 1 + dx:_XOFF - 1 + dx + Wo, :]
            patch_ref[:Ho * Wo, t * Co:(t + 1) * Co] = slab.reshape(Ho * Wo, Co)
    y2 = jnp.dot(patch_ref[:Ho * Wo, :9 * Co], w2_ref[...],
                 preferred_element_type=jnp.float32)          # (Ho*Wo, Co) f32
    y2 = y2.reshape(Ho, Wo, Co) + b2_ref[...]                 # bn2 bias

    # ---- residual shortcut + final ReLU ----
    if sc_mode == "identity":
        sc = x_ref[...].astype(jnp.float32)   # derived from VMEM: no extra HBM input
    else:
        sc = sc_ref[...].astype(jnp.float32)
    o_ref[...] = jnp.maximum(y2 + sc, 0.0).astype(jnp.bfloat16)


# ---------------------------------------------------------------------------
# Non-identity shortcut (tiny, off the critical path) -> plain XLA, bf16.
# ---------------------------------------------------------------------------
def _shortcut_bf16(x_nhwc_bf16, kp, stride, option, cin, cout, Co):
    if option == 'A':
        # Faithful to the PyTorch lambda: hard-coded ::2 subsample + channel pad.
        xs = x_nhwc_bf16[:, ::2, ::2, :]
        lo = (cout - cin) // 2
        return jnp.pad(xs, ((0, 0), (0, 0), (0, 0), (lo, Co - cin - lo)))
    # option 'B': strided 1x1 conv + folded BN.
    xs = x_nhwc_bf16[:, ::stride, ::stride, :].astype(jnp.float32)
    y = jnp.einsum('nhwc,cd->nhwd', xs, kp['w_sc']) * kp['s_sc'] + kp['b_sc']
    return jnp.pad(y, ((0, 0), (0, 0), (0, 0), (0, Co - cout))).astype(jnp.bfloat16)


# ---------------------------------------------------------------------------
# NHWC entry point (preferred when chaining blocks: no layout transposes).
# ---------------------------------------------------------------------------
@functools.partial(jax.jit, static_argnames=("cin", "cout", "stride", "option"))
def block_forward_nhwc(x_nhwc, kp, cin, cout, stride=1, option='A'):
    N, H, W, c = x_nhwc.shape
    assert c == cin and H % stride == 0 and W % stride == 0
    Cp, Co = _ceil_to(cin, LANE), _ceil_to(cout, LANE)
    Ho, Wo = H // stride, W // stride
    needs_proj = (stride != 1) or (cin != cout)
    sc_mode = "input" if needs_proj else "identity"
    if needs_proj and option == 'A':
        assert stride == 2, "PyTorch option-'A' lambda hard-codes ::2 subsampling"

    # cast + lane-pad channels in ONE fused XLA pass; conv1's spatial 'same'
    # padding happens inside the kernel, in VMEM.
    xb = x_nhwc.astype(jnp.bfloat16)
    x = jnp.pad(xb, ((0, 0), (0, 0), (0, 0), (0, Cp - cin)))

    inputs = [x, kp['w1p'], kp['b1p'], kp['w2p'], kp['b2p']]
    in_specs = [
        pl.BlockSpec((None, H, W, Cp), lambda n: (n, 0, 0, 0)),
        pl.BlockSpec((9 * Cp, Co), lambda n: (0, 0)),
        pl.BlockSpec((1, 1, Co), lambda n: (0, 0, 0)),
        pl.BlockSpec((9 * Co, Co), lambda n: (0, 0)),
        pl.BlockSpec((1, 1, Co), lambda n: (0, 0, 0)),
    ]
    if sc_mode == "input":
        sc = _shortcut_bf16(xb, kp, stride, option, cin, cout, Co)  # (N, Ho, Wo, Co) bf16
        inputs.append(sc)
        in_specs.append(pl.BlockSpec((None, Ho, Wo, Co), lambda n: (n, 0, 0, 0)))

    Cm = max(Cp, Co)
    kern = functools.partial(basic_block_kernel, H=H, W=W, Ho=Ho, Wo=Wo,
                             stride=stride, Cp=Cp, Co=Co, sc_mode=sc_mode)
    out = pl.pallas_call(
        kern,
        out_shape=jax.ShapeDtypeStruct((N, Ho, Wo, Co), jnp.bfloat16),
        grid=(N,),
        in_specs=in_specs,
        out_specs=pl.BlockSpec((None, Ho, Wo, Co), lambda n: (n, 0, 0, 0)),
        scratch_shapes=[
            pltpu.VMEM((H + 2, W + 2 * _XOFF, Cp), jnp.bfloat16),    # padded conv1 input
            pltpu.VMEM((H * W, 9 * Cm), jnp.bfloat16),               # shared im2col slab
            pltpu.VMEM((Ho + 2, Wo + 2 * _XOFF, Co), jnp.bfloat16),  # padded conv2 input
        ],
        compiler_params=pltpu.CompilerParams(
            dimension_semantics=("arbitrary",),        # see one-time init note above
            vmem_limit_bytes=32 * 1024 * 1024),
    )(*inputs)
    return out[..., :cout]                             # NHWC bf16


# ---------------------------------------------------------------------------
# PyTorch-layout compatibility wrapper: NCHW f32 in -> NCHW bf16 out.
# ---------------------------------------------------------------------------
@functools.partial(jax.jit, static_argnames=("cin", "cout", "stride", "option"))
def block_forward(x_nchw, kp, cin, cout, stride=1, option='A'):
    x = jnp.transpose(x_nchw, (0, 2, 3, 1))
    y = block_forward_nhwc(x, kp, cin=cin, cout=cout, stride=stride, option=option)
    return jnp.transpose(y, (0, 3, 1, 2))


# ---------------------------------------------------------------------------
# Parameters: kaiming-normal(fan_out) conv weights, eval-mode BN folded to
# per-channel scale/bias (matching the module at init time).
# ---------------------------------------------------------------------------
def init_params(key, cin, cout, stride=1, option='A', eps=1e-5):
    k1, k2, k3 = jax.random.split(key, 3)
    std = math.sqrt(2.0 / (cout * 9.0))
    s = 1.0 / math.sqrt(1.0 + eps)
    p = dict(
        w1=std * jax.random.normal(k1, (3, 3, cin, cout), jnp.float32),
        w2=std * jax.random.normal(k2, (3, 3, cout, cout), jnp.float32),
        s1=jnp.full((cout,), s, jnp.float32), b1=jnp.zeros((cout,), jnp.float32),
        s2=jnp.full((cout,), s, jnp.float32), b2=jnp.zeros((cout,), jnp.float32),
    )
    if option == 'B' and (stride != 1 or cin != cout):
        p.update(w_sc=math.sqrt(2.0 / cout) *
                      jax.random.normal(k3, (cin, cout), jnp.float32),
                 s_sc=jnp.full((cout,), s, jnp.float32),
                 b_sc=jnp.zeros((cout,), jnp.float32))
    return p


def prepare_kernel_params(p, cin, cout):
    """Fold BN scales into the conv weights, lane-pad channels, and stack the
    3x3 taps into (9*Cin_pad, Cout_pad) bf16 matrices for the im2col matmul."""
    Cp, Co = _ceil_to(cin, LANE), _ceil_to(cout, LANE)
    # Folding the scale *before* the max-pool is exact only for positive scales
    # (true for eval-mode BN at init: gamma = 1, var = 1).
    assert float(jnp.min(p['s1'])) > 0.0 and float(jnp.min(p['s2'])) > 0.0
    w1f = p['w1'] * p['s1'][None, None, None, :]
    w2f = p['w2'] * p['s2'][None, None, None, :]
    w1p = jnp.zeros((3, 3, Cp, Co), jnp.float32).at[:, :, :cin, :cout].set(w1f)
    w2p = jnp.zeros((3, 3, Co, Co), jnp.float32).at[:, :, :cout, :cout].set(w2f)
    kp = dict(
        w1p=w1p.reshape(9 * Cp, Co).astype(jnp.bfloat16),
        w2p=w2p.reshape(9 * Co, Co).astype(jnp.bfloat16),
        b1p=jnp.zeros((1, 1, Co), jnp.float32).at[0, 0, :cout].set(p['b1']),
        b2p=jnp.zeros((1, 1, Co), jnp.float32).at[0, 0, :cout].set(p['b2']),
    )
    for k in ('w_sc', 's_sc', 'b_sc'):
        if k in p:
            kp[k] = p[k]
    return kp


# ---------------------------------------------------------------------------
# Pure-XLA reference (same bf16 roundings at the matmul inputs / shortcut).
# ---------------------------------------------------------------------------
def block_forward_ref(x_nchw, p, kp, cin, cout, stride=1, option='A'):
    x = jnp.transpose(x_nchw, (0, 2, 3, 1)).astype(jnp.float32)
    N, H, W, _ = x.shape
    Cp, Co = _ceil_to(cin, LANE), _ceil_to(cout, LANE)
    Ho, Wo = H // stride, W // stride
    dn = ('NHWC', 'HWIO', 'NHWC')
    xb = x.astype(jnp.bfloat16).astype(jnp.float32)
    w1 = kp['w1p'].astype(jnp.float32).reshape(3, 3, Cp, Co)[:, :, :cin, :cout]
    w2 = kp['w2p'].astype(jnp.float32).reshape(3, 3, Co, Co)[:, :, :cout, :cout]
    y1 = lax.conv_general_dilated(xb, w1, (1, 1), 'SAME', dimension_numbers=dn,
                                  precision=lax.Precision.HIGHEST)
    if stride > 1:
        y1 = jnp.max(y1.reshape(N, Ho, stride, Wo, stride, cout), axis=(2, 4))
    a1 = jnp.maximum(y1 + p['b1'], 0.0)
    a1 = a1.astype(jnp.bfloat16).astype(jnp.float32)
    y2 = lax.conv_general_dilated(a1, w2, (1, 1), 'SAME', dimension_numbers=dn,
                                  precision=lax.Precision.HIGHEST) + p['b2']
    if stride == 1 and cin == cout:
        sc = xb
    elif option == 'A':
        lo = (cout - cin) // 2
        sc = jnp.pad(xb[:, ::2, ::2, :],
                     ((0, 0), (0, 0), (0, 0), (lo, cout - cin - lo)))
    else:
        xs = xb[:, ::stride, ::stride, :]
        sc = jnp.einsum('nhwc,cd->nhwd', xs, p['w_sc']) * p['s_sc'] + p['b_sc']
        sc = sc.astype(jnp.bfloat16).astype(jnp.float32)
    out = jnp.maximum(y2 + sc, 0.0)
    return jnp.transpose(out, (0, 3, 1, 2))


def _check(out, ref, tag):
    out = out.astype(jnp.float32)
    err = float(jnp.max(jnp.abs(out - ref)))
    tol = 2e-2 * max(1.0, float(jnp.max(jnp.abs(ref))))
    assert err <= tol, f"{tag}: mismatch vs XLA reference max|diff|={err} tol={tol}"


if __name__ == "__main__":
    key = jax.random.PRNGKey(0)
    kp1, kp2, kx1, kx2 = jax.random.split(key, 4)

    # Config A: downsampling block 16 -> 32 channels, stride 2, option-'A'
    # shortcut (::2 subsample + channel pad).  Exercises channel lane-padding,
    # the in-register fused maxpool and the bf16 "input"-mode shortcut.
    p_a = init_params(kp1, 16, 32, stride=2, option='A')
    kpar_a = prepare_kernel_params(p_a, 16, 32)
    x_a = jax.random.normal(kx1, (2, 16, 16, 16), dtype=jnp.float32)      # NCHW
    out_a = jax.block_until_ready(
        block_forward(x_a, kpar_a, cin=16, cout=32, stride=2, option='A'))
    assert out_a.shape == (2, 32, 8, 8), out_a.shape
    assert bool(jnp.all(jnp.isfinite(out_a.astype(jnp.float32))))
    _check(out_a, block_forward_ref(x_a, p_a, kpar_a, 16, 32, stride=2, option='A'),
           "stride2")

    # Config B: identity-shortcut block at lane-dense channels (128): the
    # shortcut is derived in-kernel from the input already resident in VMEM,
    # and both convs take the single K=9*128 im2col MXU matmul path.
    p_b = init_params(kp2, 128, 128, stride=1, option='A')
    kpar_b = prepare_kernel_params(p_b, 128, 128)
    x_b = jax.random.normal(kx2, (2, 128, 16, 16), dtype=jnp.float32)     # NCHW
    out_b = jax.block_until_ready(
        block_forward(x_b, kpar_b, cin=128, cout=128, stride=1, option='A'))
    assert out_b.shape == (2, 128, 16, 16), out_b.shape
    assert bool(jnp.all(jnp.isfinite(out_b.astype(jnp.float32))))
    _check(out_b, block_forward_ref(x_b, p_b, kpar_b, 128, 128, stride=1, option='A'),
           "stride1")

    print("KERNEL_OK")
</pallas_src>

<mosaic_0001>
module attributes {stable_mosaic.version = 11 : i64} {
  func.func @basic_block_kernel(%arg0: i32, %arg1: memref<1x16x16x128xbf16, #tpu.memory_space<vmem>>, %arg2: memref<1152x128xbf16, #tpu.memory_space<vmem>>, %arg3: memref<1x1x128xf32, #tpu.memory_space<vmem>>, %arg4: memref<1152x128xbf16, #tpu.memory_space<vmem>>, %arg5: memref<1x1x128xf32, #tpu.memory_space<vmem>>, %arg6: memref<1x8x8x128xbf16, #tpu.memory_space<vmem>>, %arg7: memref<1x8x8x128xbf16, #tpu.memory_space<vmem>>, %arg8: memref<18x48x128xbf16, #tpu.memory_space<vmem>>, %arg9: memref<256x1152xbf16, #tpu.memory_space<vmem>>, %arg10: memref<10x40x128xbf16, #tpu.memory_space<vmem>>) attributes {dimension_semantics = [#tpu.dimension_semantics<arbitrary>], iteration_bounds = array<i64: 2>, scalar_prefetch = 0 : i64, scratch_operands = 3 : i64, tpu.core_type = #tpu.core_type<tc>, window_params = [{transform_indices = @transform_0, window_bounds = array<i64: 1, 16, 16, 128>}, {pipeline_mode = #tpu.pipeline_mode<synchronous>, transform_indices = @transform_1, window_bounds = array<i64: 1152, 128>}, {pipeline_mode = #tpu.pipeline_mode<synchronous>, transform_indices = @transform_2, window_bounds = array<i64: 1, 1, 128>}, {pipeline_mode = #tpu.pipeline_mode<synchronous>, transform_indices = @transform_3, window_bounds = array<i64: 1152, 128>}, {pipeline_mode = #tpu.pipeline_mode<synchronous>, transform_indices = @transform_4, window_bounds = array<i64: 1, 1, 128>}, {transform_indices = @transform_5, window_bounds = array<i64: 1, 8, 8, 128>}, {transform_indices = @transform_6, window_bounds = array<i64: 1, 8, 8, 128>}]} {
    %c0_i32 = arith.constant 0 : i32
    %0 = arith.cmpi eq, %arg0, %c0_i32 : i32
    %1 = arith.extui %0 : i1 to i32
    %c0_i32_0 = arith.constant 0 : i32
    %2 = arith.cmpi ne, %1, %c0_i32_0 : i32
    scf.if %2 {
      %cst_114 = arith.constant 0.000000e+00 : bf16
      %91 = vector.broadcast %cst_114 : bf16 to vector<18x48x128xbf16>
      %c0_115 = arith.constant 0 : index
      %c0_116 = arith.constant 0 : index
      %c0_117 = arith.constant 0 : index
      %92 = vector.load %arg8[%c0_115, %c0_116, %c0_117] : memref<18x48x128xbf16, #tpu.memory_space<vmem>>, vector<18x48x128xbf16>
      tpu.vector_store %arg8[%c0_115, %c0_116, %c0_117], %91 {strides = array<i32>} : memref<18x48x128xbf16, #tpu.memory_space<vmem>>, vector<18x48x128xbf16>,
      %cst_118 = arith.constant 0.000000e+00 : bf16
      %93 = vector.broadcast %cst_118 : bf16 to vector<10x40x128xbf16>
      %c0_119 = arith.constant 0 : index
      %c0_120 = arith.constant 0 : index
      %c0_121 = arith.constant 0 : index
      %94 = vector.load %arg10[%c0_119, %c0_120, %c0_121] : memref<10x40x128xbf16, #tpu.memory_space<vmem>>, vector<10x40x128xbf16>
      tpu.vector_store %arg10[%c0_119, %c0_120, %c0_121], %93 {strides = array<i32>} : memref<10x40x128xbf16, #tpu.memory_space<vmem>>, vector<10x40x128xbf16>,
    } else {
    }
    %c0 = arith.constant 0 : index
    %c0_1 = arith.constant 0 : index
    %c0_2 = arith.constant 0 : index
    %c0_3 = arith.constant 0 : index
    %3 = vector.load %arg1[%c0, %c0_1, %c0_2, %c0_3] : memref<1x16x16x128xbf16, #tpu.memory_space<vmem>>, vector<1x16x16x128xbf16>
    %4 = vector.shape_cast %3 : vector<1x16x16x128xbf16> to vector<16x16x128xbf16>
    %c1 = arith.constant 1 : index
    %c16 = arith.constant 16 : index
    %c0_4 = arith.constant 0 : index
    %5 = vector.load %arg8[%c1, %c16, %c0_4] : memref<18x48x128xbf16, #tpu.memory_space<vmem>>, vector<16x16x128xbf16>
    tpu.vector_store %arg8[%c1, %c16, %c0_4], %4 {strides = array<i32>} : memref<18x48x128xbf16, #tpu.memory_space<vmem>>, vector<16x16x128xbf16>,
    %c0_5 = arith.constant 0 : index
    %c15 = arith.constant 15 : index
    %c0_6 = arith.constant 0 : index
    %6 = vector.load %arg8[%c0_5, %c15, %c0_6] : memref<18x48x128xbf16, #tpu.memory_space<vmem>>, vector<16x16x128xbf16>
    %7 = vector.shape_cast %6 : vector<16x16x128xbf16> to vector<256x128xbf16>
    %c0_7 = arith.constant 0 : index
    %c0_8 = arith.constant 0 : index
    %8 = vector.load %arg9[%c0_7, %c0_8] : memref<256x1152xbf16, #tpu.memory_space<vmem>>, vector<256x128xbf16>
    tpu.vector_store %arg9[%c0_7, %c0_8], %7 {strides = array<i32>} : memref<256x1152xbf16, #tpu.memory_space<vmem>>, vector<256x128xbf16>,
    %c0_9 = arith.constant 0 : index
    %c16_10 = arith.constant 16 : index
    %c0_11 = arith.constant 0 : index
    %9 = vector.load %arg8[%c0_9, %c16_10, %c0_11] : memref<18x48x128xbf16, #tpu.memory_space<vmem>>, vector<16x16x128xbf16>
    %10 = vector.shape_cast %9 : vector<16x16x128xbf16> to vector<256x128xbf16>
    %c0_12 = arith.constant 0 : index
    %c128 = arith.constant 128 : index
    %11 = vector.load %arg9[%c0_12, %c128] : memref<256x1152xbf16, #tpu.memory_space<vmem>>, vector<256x128xbf16>
    tpu.vector_store %arg9[%c0_12, %c128], %10 {strides = array<i32>} : memref<256x1152xbf16, #tpu.memory_space<vmem>>, vector<256x128xbf16>,
    %c0_13 = arith.constant 0 : index
    %c17 = arith.constant 17 : index
    %c0_14 = arith.constant 0 : index
    %12 = vector.load %arg8[%c0_13, %c17, %c0_14] : memref<18x48x128xbf16, #tpu.memory_space<vmem>>, vector<16x16x128xbf16>
    %13 = vector.shape_cast %12 : vector<16x16x128xbf16> to vector<256x128xbf16>
    %c0_15 = arith.constant 0 : index
    %c256 = arith.constant 256 : index
    %14 = vector.load %arg9[%c0_15, %c256] : memref<256x1152xbf16, #tpu.memory_space<vmem>>, vector<256x128xbf16>
    tpu.vector_store %arg9[%c0_15, %c256], %13 {strides = array<i32>} : memref<256x1152xbf16, #tpu.memory_space<vmem>>, vector<256x128xbf16>,
    %c1_16 = arith.constant 1 : index
    %c15_17 = arith.constant 15 : index
    %c0_18 = arith.constant 0 : index
    %15 = vector.load %arg8[%c1_16, %c15_17, %c0_18] : memref<18x48x128xbf16, #tpu.memory_space<vmem>>, vector<16x16x128xbf16>
    %16 = vector.shape_cast %15 : vector<16x16x128xbf16> to vector<256x128xbf16>
    %c0_19 = arith.constant 0 : index
    %c384 = arith.constant 384 : index
    %17 = vector.load %arg9[%c0_19, %c384] : memref<256x1152xbf16, #tpu.memory_space<vmem>>, vector<256x128xbf16>
    tpu.vector_store %arg9[%c0_19, %c384], %16 {strides = array<i32>} : memref<256x1152xbf16, #tpu.memory_space<vmem>>, vector<256x128xbf16>,
    %c1_20 = arith.constant 1 : index
    %c16_21 = arith.constant 16 : index
    %c0_22 = arith.constant 0 : index
    %18 = vector.load %arg8[%c1_20, %c16_21, %c0_22] : memref<18x48x128xbf16, #tpu.memory_space<vmem>>, vector<16x16x128xbf16>
    %19 = vector.shape_cast %18 : vector<16x16x128xbf16> to vector<256x128xbf16>
    %c0_23 = arith.constant 0 : index
    %c512 = arith.constant 512 : index
    %20 = vector.load %arg9[%c0_23, %c512] : memref<256x1152xbf16, #tpu.memory_space<vmem>>, vector<256x128xbf16>
    tpu.vector_store %arg9[%c0_23, %c512], %19 {strides = array<i32>} : memref<256x1152xbf16, #tpu.memory_space<vmem>>, vector<256x128xbf16>,
    %c1_24 = arith.constant 1 : index
    %c17_25 = arith.constant 17 : index
    %c0_26 = arith.constant 0 : index
    %21 = vector.load %arg8[%c1_24, %c17_25, %c0_26] : memref<18x48x128xbf16, #tpu.memory_space<vmem>>, vector<16x16x128xbf16>
    %22 = vector.shape_cast %21 : vector<16x16x128xbf16> to vector<256x128xbf16>
    %c0_27 = arith.constant 0 : index
    %c640 = arith.constant 640 : index
    %23 = vector.load %arg9[%c0_27, %c640] : memref<256x1152xbf16, #tpu.memory_space<vmem>>, vector<256x128xbf16>
    tpu.vector_store %arg9[%c0_27, %c640], %22 {strides = array<i32>} : memref<256x1152xbf16, #tpu.memory_space<vmem>>, vector<256x128xbf16>,
    %c2 = arith.constant 2 : index
    %c15_28 = arith.constant 15 : index
    %c0_29 = arith.constant 0 : index
    %24 = vector.load %arg8[%c2, %c15_28, %c0_29] : memref<18x48x128xbf16, #tpu.memory_space<vmem>>, vector<16x16x128xbf16>
    %25 = vector.shape_cast %24 : vector<16x16x128xbf16> to vector<256x128xbf16>
    %c0_30 = arith.constant 0 : index
    %c768 = arith.constant 768 : index
    %26 = vector.load %arg9[%c0_30, %c768] : memref<256x1152xbf16, #tpu.memory_space<vmem>>, vector<256x128xbf16>
    tpu.vector_store %arg9[%c0_30, %c768], %25 {strides = array<i32>} : memref<256x1152xbf16, #tpu.memory_space<vmem>>, vector<256x128xbf16>,
    %c2_31 = arith.constant 2 : index
    %c16_32 = arith.constant 16 : index
    %c0_33 = arith.constant 0 : index
    %27 = vector.load %arg8[%c2_31, %c16_32, %c0_33] : memref<18x48x128xbf16, #tpu.memory_space<vmem>>, vector<16x16x128xbf16>
    %28 = vector.shape_cast %27 : vector<16x16x128xbf16> to vector<256x128xbf16>
    %c0_34 = arith.constant 0 : index
    %c896 = arith.constant 896 : index
    %29 = vector.load %arg9[%c0_34, %c896] : memref<256x1152xbf16, #tpu.memory_space<vmem>>, vector<256x128xbf16>
    tpu.vector_store %arg9[%c0_34, %c896], %28 {strides = array<i32>} : memref<256x1152xbf16, #tpu.memory_space<vmem>>, vector<256x128xbf16>,
    %c2_35 = arith.constant 2 : index
    %c17_36 = arith.constant 17 : index
    %c0_37 = arith.constant 0 : index
    %30 = vector.load %arg8[%c2_35, %c17_36, %c0_37] : memref<18x48x128xbf16, #tpu.memory_space<vmem>>, vector<16x16x128xbf16>
    %31 = vector.shape_cast %30 : vector<16x16x128xbf16> to vector<256x128xbf16>
    %c0_38 = arith.constant 0 : index
    %c1024 = arith.constant 1024 : index
    %32 = vector.load %arg9[%c0_38, %c1024] : memref<256x1152xbf16, #tpu.memory_space<vmem>>, vector<256x128xbf16>
    tpu.vector_store %arg9[%c0_38, %c1024], %31 {strides = array<i32>} : memref<256x1152xbf16, #tpu.memory_space<vmem>>, vector<256x128xbf16>,
    %c0_39 = arith.constant 0 : index
    %c0_40 = arith.constant 0 : index
    %33 = vector.load %arg9[%c0_39, %c0_40] : memref<256x1152xbf16, #tpu.memory_space<vmem>>, vector<256x1152xbf16>
    %c0_41 = arith.constant 0 : index
    %c0_42 = arith.constant 0 : index
    %34 = vector.load %arg2[%c0_41, %c0_42] : memref<1152x128xbf16, #tpu.memory_space<vmem>>, vector<1152x128xbf16>
    %cst = arith.constant dense<0.000000e+00> : vector<256x128xf32>
    %35 = tpu.matmul %33, %34, %cst {dimension_numbers = #tpu.dot_dimension_numbers<[1], [0], [0], [1], [0, 0, 1, 1], [], []>} : vector<256x1152xbf16>, vector<1152x128xbf16>, vector<256x128xf32> -> vector<256x128xf32>
    %36 = vector.shape_cast %35 : vector<256x128xf32> to vector<8x2x16x128xf32>
    %cst_43 = arith.constant dense<0xFF800000> : vector<8x16x128xf32>
    %37 = vector.multi_reduction <maximumf>, %36, %cst_43 [1] : vector<8x2x16x128xf32> to vector<8x16x128xf32>
    %38 = vector.shape_cast %37 : vector<8x16x128xf32> to vector<8x8x2x128xf32>
    %cst_44 = arith.constant dense<0xFF800000> : vector<8x8x128xf32>
    %39 = vector.multi_reduction <maximumf>, %38, %cst_44 [2] : vector<8x8x2x128xf32> to vector<8x8x128xf32>
    %c0_45 = arith.constant 0 : index
    %c0_46 = arith.constant 0 : index
    %c0_47 = arith.constant 0 : index
    %40 = vector.load %arg3[%c0_45, %c0_46, %c0_47] : memref<1x1x128xf32, #tpu.memory_space<vmem>>, vector<1x1x128xf32>
    %41 = vector.broadcast %40 : vector<1x1x128xf32> to vector<8x8x128xf32>
    %42 = arith.addf %39, %41 : vector<8x8x128xf32>
    %cst_48 = arith.constant 0.000000e+00 : f32
    %43 = vector.broadcast %cst_48 : f32 to vector<8x8x128xf32>
    %44 = arith.maximumf %42, %43 : vector<8x8x128xf32>
    %45 = arith.truncf %44 : vector<8x8x128xf32> to vector<8x8x128xbf16>
    %c1_49 = arith.constant 1 : index
    %c16_50 = arith.constant 16 : index
    %c0_51 = arith.constant 0 : index
    %46 = vector.load %arg10[%c1_49, %c16_50, %c0_51] : memref<10x40x128xbf16, #tpu.memory_space<vmem>>, vector<8x8x128xbf16>
    tpu.vector_store %arg10[%c1_49, %c16_50, %c0_51], %45 {strides = array<i32>} : memref<10x40x128xbf16, #tpu.memory_space<vmem>>, vector<8x8x128xbf16>,
    %c0_52 = arith.constant 0 : index
    %c15_53 = arith.constant 15 : index
    %c0_54 = arith.constant 0 : index
    %47 = vector.load %arg10[%c0_52, %c15_53, %c0_54] : memref<10x40x128xbf16, #tpu.memory_space<vmem>>, vector<8x8x128xbf16>
    %48 = vector.shape_cast %47 : vector<8x8x128xbf16> to vector<64x128xbf16>
    %c0_55 = arith.constant 0 : index
    %c0_56 = arith.constant 0 : index
    %49 = vector.load %arg9[%c0_55, %c0_56] : memref<256x1152xbf16, #tpu.memory_space<vmem>>, vector<64x128xbf16>
    tpu.vector_store %arg9[%c0_55, %c0_56], %48 {strides = array<i32>} : memref<256x1152xbf16, #tpu.memory_space<vmem>>, vector<64x128xbf16>,
    %c0_57 = arith.constant 0 : index
    %c16_58 = arith.constant 16 : index
    %c0_59 = arith.constant 0 : index
    %50 = vector.load %arg10[%c0_57, %c16_58, %c0_59] : memref<10x40x128xbf16, #tpu.memory_space<vmem>>, vector<8x8x128xbf16>
    %51 = vector.shape_cast %50 : vector<8x8x128xbf16> to vector<64x128xbf16>
    %c0_60 = arith.constant 0 : index
    %c128_61 = arith.constant 128 : index
    %52 = vector.load %arg9[%c0_60, %c128_61] : memref<256x1152xbf16, #tpu.memory_space<vmem>>, vector<64x128xbf16>
    tpu.vector_store %arg9[%c0_60, %c128_61], %51 {strides = array<i32>} : memref<256x1152xbf16, #tpu.memory_space<vmem>>, vector<64x128xbf16>,
    %c0_62 = arith.constant 0 : index
    %c17_63 = arith.constant 17 : index
    %c0_64 = arith.constant 0 : index
    %53 = vector.load %arg10[%c0_62, %c17_63, %c0_64] : memref<10x40x128xbf16, #tpu.memory_space<vmem>>, vector<8x8x128xbf16>
    %54 = vector.shape_cast %53 : vector<8x8x128xbf16> to vector<64x128xbf16>
    %c0_65 = arith.constant 0 : index
    %c256_66 = arith.constant 256 : index
    %55 = vector.load %arg9[%c0_65, %c256_66] : memref<256x1152xbf16, #tpu.memory_space<vmem>>, vector<64x128xbf16>
    tpu.vector_store %arg9[%c0_65, %c256_66], %54 {strides = array<i32>} : memref<256x1152xbf16, #tpu.memory_space<vmem>>, vector<64x128xbf16>,
    %c1_67 = arith.constant 1 : index
    %c15_68 = arith.constant 15 : index
    %c0_69 = arith.constant 0 : index
    %56 = vector.load %arg10[%c1_67, %c15_68, %c0_69] : memref<10x40x128xbf16, #tpu.memory_space<vmem>>, vector<8x8x128xbf16>
    %57 = vector.shape_cast %56 : vector<8x8x128xbf16> to vector<64x128xbf16>
    %c0_70 = arith.constant 0 : index
    %c384_71 = arith.constant 384 : index
    %58 = vector.load %arg9[%c0_70, %c384_71] : memref<256x1152xbf16, #tpu.memory_space<vmem>>, vector<64x128xbf16>
    tpu.vector_store %arg9[%c0_70, %c384_71], %57 {strides = array<i32>} : memref<256x1152xbf16, #tpu.memory_space<vmem>>, vector<64x128xbf16>,
    %c1_72 = arith.constant 1 : index
    %c16_73 = arith.constant 16 : index
    %c0_74 = arith.constant 0 : index
    %59 = vector.load %arg10[%c1_72, %c16_73, %c0_74] : memref<10x40x128xbf16, #tpu.memory_space<vmem>>, vector<8x8x128xbf16>
    %60 = vector.shape_cast %59 : vector<8x8x128xbf16> to vector<64x128xbf16>
    %c0_75 = arith.constant 0 : index
    %c512_76 = arith.constant 512 : index
    %61 = vector.load %arg9[%c0_75, %c512_76] : memref<256x1152xbf16, #tpu.memory_space<vmem>>, vector<64x128xbf16>
    tpu.vector_store %arg9[%c0_75, %c512_76], %60 {strides = array<i32>} : memref<256x1152xbf16, #tpu.memory_space<vmem>>, vector<64x128xbf16>,
    %c1_77 = arith.constant 1 : index
    %c17_78 = arith.constant 17 : index
    %c0_79 = arith.constant 0 : index
    %62 = vector.load %arg10[%c1_77, %c17_78, %c0_79] : memref<10x40x128xbf16, #tpu.memory_space<vmem>>, vector<8x8x128xbf16>
    %63 = vector.shape_cast %62 : vector<8x8x128xbf16> to vector<64x128xbf16>
    %c0_80 = arith.constant 0 : index
    %c640_81 = arith.constant 640 : index
    %64 = vector.load %arg9[%c0_80, %c640_81] : memref<256x1152xbf16, #tpu.memory_space<vmem>>, vector<64x128xbf16>
    tpu.vector_store %arg9[%c0_80, %c640_81], %63 {strides = array<i32>} : memref<256x1152xbf16, #tpu.memory_space<vmem>>, vector<64x128xbf16>,
    %c2_82 = arith.constant 2 : index
    %c15_83 = arith.constant 15 : index
    %c0_84 = arith.constant 0 : index
    %65 = vector.load %arg10[%c2_82, %c15_83, %c0_84] : memref<10x40x128xbf16, #tpu.memory_space<vmem>>, vector<8x8x128xbf16>
    %66 = vector.shape_cast %65 : vector<8x8x128xbf16> to vector<64x128xbf16>
    %c0_85 = arith.constant 0 : index
    %c768_86 = arith.constant 768 : index
    %67 = vector.load %arg9[%c0_85, %c768_86] : memref<256x1152xbf16, #tpu.memory_space<vmem>>, vector<64x128xbf16>
    tpu.vector_store %arg9[%c0_85, %c768_86], %66 {strides = array<i32>} : memref<256x1152xbf16, #tpu.memory_space<vmem>>, vector<64x128xbf16>,
    %c2_87 = arith.constant 2 : index
    %c16_88 = arith.constant 16 : index
    %c0_89 = arith.constant 0 : index
    %68 = vector.load %arg10[%c2_87, %c16_88, %c0_89] : memref<10x40x128xbf16, #tpu.memory_space<vmem>>, vector<8x8x128xbf16>
    %69 = vector.shape_cast %68 : vector<8x8x128xbf16> to vector<64x128xbf16>
    %c0_90 = arith.constant 0 : index
    %c896_91 = arith.constant 896 : index
    %70 = vector.load %arg9[%c0_90, %c896_91] : memref<256x1152xbf16, #tpu.memory_space<vmem>>, vector<64x128xbf16>
    tpu.vector_store %arg9[%c0_90, %c896_91], %69 {strides = array<i32>} : memref<256x1152xbf16, #tpu.memory_space<vmem>>, vector<64x128xbf16>,
    %c2_92 = arith.constant 2 : index
    %c17_93 = arith.constant 17 : index
    %c0_94 = arith.constant 0 : index
    %71 = vector.load %arg10[%c2_92, %c17_93, %c0_94] : memref<10x40x128xbf16, #tpu.memory_space<vmem>>, vector<8x8x128xbf16>
    %72 = vector.shape_cast %71 : vector<8x8x128xbf16> to vector<64x128xbf16>
    %c0_95 = arith.constant 0 : index
    %c1024_96 = arith.constant 1024 : index
    %73 = vector.load %arg9[%c0_95, %c1024_96] : memref<256x1152xbf16, #tpu.memory_space<vmem>>, vector<64x128xbf16>
    tpu.vector_store %arg9[%c0_95, %c1024_96], %72 {strides = array<i32>} : memref<256x1152xbf16, #tpu.memory_space<vmem>>, vector<64x128xbf16>,
    %c0_97 = arith.constant 0 : index
    %c0_98 = arith.constant 0 : index
    %74 = vector.load %arg9[%c0_97, %c0_98] : memref<256x1152xbf16, #tpu.memory_space<vmem>>, vector<64x1152xbf16>
    %c0_99 = arith.constant 0 : index
    %c0_100 = arith.constant 0 : index
    %75 = vector.load %arg4[%c0_99, %c0_100] : memref<1152x128xbf16, #tpu.memory_space<vmem>>, vector<1152x128xbf16>
    %cst_101 = arith.constant dense<0.000000e+00> : vector<64x128xf32>
    %76 = tpu.matmul %74, %75, %cst_101 {dimension_numbers = #tpu.dot_dimension_numbers<[1], [0], [0], [1], [0, 0, 1, 1], [], []>} : vector<64x1152xbf16>, vector<1152x128xbf16>, vector<64x128xf32> -> vector<64x128xf32>
    %77 = vector.shape_cast %76 : vector<64x128xf32> to vector<8x8x128xf32>
    %c0_102 = arith.constant 0 : index
    %c0_103 = arith.constant 0 : index
    %c0_104 = arith.constant 0 : index
    %78 = vector.load %arg5[%c0_102, %c0_103, %c0_104] : memref<1x1x128xf32, #tpu.memory_space<vmem>>, vector<1x1x128xf32>
    %79 = vector.broadcast %78 : vector<1x1x128xf32> to vector<8x8x128xf32>
    %80 = arith.addf %77, %79 : vector<8x8x128xf32>
    %c0_105 = arith.constant 0 : index
    %c0_106 = arith.constant 0 : index
    %c0_107 = arith.constant 0 : index
    %c0_108 = arith.constant 0 : index
    %81 = vector.load %arg6[%c0_105, %c0_106, %c0_107, %c0_108] : memref<1x8x8x128xbf16, #tpu.memory_space<vmem>>, vector<1x8x8x128xbf16>
    %82 = vector.shape_cast %81 : vector<1x8x8x128xbf16> to vector<8x8x128xbf16>
    %83 = arith.extf %82 : vector<8x8x128xbf16> to vector<8x8x128xf32>
    %84 = arith.addf %80, %83 : vector<8x8x128xf32>
    %cst_109 = arith.constant 0.000000e+00 : f32
    %85 = vector.broadcast %cst_109 : f32 to vector<8x8x128xf32>
    %86 = arith.maximumf %84, %85 : vector<8x8x128xf32>
    %87 = arith.truncf %86 : vector<8x8x128xf32> to vector<8x8x128xbf16>
    %c0_110 = arith.constant 0 : index
    %c0_111 = arith.constant 0 : index
    %c0_112 = arith.constant 0 : index
    %c0_113 = arith.constant 0 : index
    %88 = vector.load %arg7[%c0_110, %c0_111, %c0_112, %c0_113] : memref<1x8x8x128xbf16, #tpu.memory_space<vmem>>, vector<1x8x8x128xbf16>
    %89 = vector.shape_cast %88 : vector<1x8x8x128xbf16> to vector<8x8x128xbf16>
    %90 = vector.shape_cast %87 : vector<8x8x128xbf16> to vector<1x8x8x128xbf16>
    tpu.vector_store %arg7[%c0_110, %c0_111, %c0_112, %c0_113], %90 {strides = array<i32>} : memref<1x8x8x128xbf16, #tpu.memory_space<vmem>>, vector<1x8x8x128xbf16>,
    return
  }
  func.func @transform_0(%arg0: i32) -> (i32, i32, i32, i32) {
    %c0_i32 = arith.constant 0 : i32
    %c0_i32_0 = arith.constant 0 : i32
    %c0_i32_1 = arith.constant 0 : i32
    %c0_i32_2 = arith.constant 0 : i32
    return %arg0, %c0_i32, %c0_i32_0, %c0_i32_1 : i32, i32, i32, i32
  }
  func.func @transform_1(%arg0: i32) -> (i32, i32) {
    %c0_i32 = arith.constant 0 : i32
    %c0_i32_0 = arith.constant 0 : i32
    %c0_i32_1 = arith.constant 0 : i32
    return %c0_i32, %c0_i32_0 : i32, i32
  }
  func.func @transform_2(%arg0: i32) -> (i32, i32, i32) {
    %c0_i32 = arith.constant 0 : i32
    %c0_i32_0 = arith.constant 0 : i32
    %c0_i32_1 = arith.constant 0 : i32
    %c0_i32_2 = arith.constant 0 : i32
    return %c0_i32, %c0_i32_0, %c0_i32_1 : i32, i32, i32
  }
  func.func @transform_3(%arg0: i32) -> (i32, i32) {
    %c0_i32 = arith.constant 0 : i32
    %c0_i32_0 = arith.constant 0 : i32
    %c0_i32_1 = arith.constant 0 : i32
    return %c0_i32, %c0_i32_0 : i32, i32
  }
  func.func @transform_4(%arg0: i32) -> (i32, i32, i32) {
    %c0_i32 = arith.constant 0 : i32
    %c0_i32_0 = arith.constant 0 : i32
    %c0_i32_1 = arith.constant 0 : i32
    %c0_i32_2 = arith.constant 0 : i32
    return %c0_i32, %c0_i32_0, %c0_i32_1 : i32, i32, i32
  }
  func.func @transform_5(%arg0: i32) -> (i32, i32, i32, i32) {
    %c0_i32 = arith.constant 0 : i32
    %c0_i32_0 = arith.constant 0 : i32
    %c0_i32_1 = arith.constant 0 : i32
    %c0_i32_2 = arith.constant 0 : i32
    return %arg0, %c0_i32, %c0_i32_0, %c0_i32_1 : i32, i32, i32, i32
  }
  func.func @transform_6(%arg0: i32) -> (i32, i32, i32, i32) {
    %c0_i32 = arith.constant 0 : i32
    %c0_i32_0 = arith.constant 0 : i32
    %c0_i32_1 = arith.constant 0 : i32
    %c0_i32_2 = arith.constant 0 : i32
    return %arg0, %c0_i32, %c0_i32_0, %c0_i32_1 : i32, i32, i32, i32
  }
}

</mosaic_0001>

<bundles_post_ra>
// kernel: block_forward_nhwc.1
= control target key start
LH: loop header
LB: loop body
LE: loop exit
PB: predicated region body
PF: predicated region fallthrough
CT: control target
= control target key end

     0   :  { %11 = vsyncpa [#allocation6], 0  ;;  %s13140_s0 = inlined_call_operand.vmem [shape: bf16[2,16,16,128], index: 0, kind: input, shape index: {}]   ;;  %s13141_s1 = inlined_call_operand.vmem [shape: bf16[1152,128], index: 1, kind: input, shape index: {}]   ;;  %s13142_s2 = inlined_call_operand.vmem [shape: f32[1,1,128], index: 2, kind: input, shape index: {}]   ;;  %s13143_s3 = inlined_call_operand.vmem [shape: bf16[1152,128], index: 3, kind: input, shape index: {}]   ;;  %s13144_s4 = inlined_call_operand.vmem [shape: f32[1,1,128], index: 4, kind: input, shape index: {}]   ;;  %s13145_s5 = inlined_call_operand.vmem [shape: bf16[2,8,8,128], index: 5, kind: input, shape index: {}]   ;;  %s13146_s6 = inlined_call_operand.hbm [shape: bf16[2,8,8,128], index: 6, kind: output, shape index: {}]  }
   0x1   :  { %13 = vsyncpa [#allocation6 + $0x1], 0  ;;  %s10911_s21 = smov 0   ;;  %s10913_s22 = smov 0  }
   0x2   :  { %s10915_s23 = smov 0   ;;  %s10917_s24 = smov 0  }
   0x3 LB: > { %s10932_s25 = sadd.s32 4294967295, %s10871_s24   ;;  %s8995_s26 = sadd.s32 4294967294, %s10871_s24   ;;  %s10871_s24 = sphi %s10917_s24, %s13226_s24   ;;  %s10867_s23 = sphi %s10915_s23, %s13225_s23   ;;  %s10863_s22 = sphi %s10913_s22, %s13224_s22   ;;  %s10859_s21 = sphi %s10911_s21, %s13223_s21  }
   0x4   : > { %s10936_s27 = sadd.s32 1, %s10871_s24   ;;  %s162_s28 = sadd.s32 1, %s10867_s23 }
   0x5   : > { %s159_s29 = ssub.s32 %s10871_s24, %s10936_s27  ;;  %p172_p0 = scmp.ne.s32.totalorder %s10867_s23, %s10863_s22 }
   0x6   : > { %p160_p1 = scmp.eq.s32.totalorder %s159_s29, 0  ;;  %p173_p2 = scmp.eq.s32.totalorder %s10932_s25, 1 }
   0x7   : > { %p178_p3 = scmp.ne.s32.totalorder %s10863_s22, %s10859_s21  ;;  %p179_p4 = scmp.eq.s32.totalorder %s8995_s26, 1 }
   0x8   : > { %s10947_s30 = scalar_select %p160_p1, %s10867_s23, %s162_s28  }
   0x9   : > { %p10949_p5 = por %p173_p2, %p172_p0  ;;  %p10953_p6 = por %p179_p4, %p178_p3 }
   0xa   : > { %p8998_p7 = scmp.ge.s32.totalorder %s10871_s24, 1  ;;  %p225_p8 = scmp.lt.s32.totalorder %s10871_s24, 3 }
   0xc   : > { %p226_p9 = pnand %p8998_p7, %p225_p8 }
   0xe   : > { %229 = sbr.rel (%p226_p9) target bundleno = 1371 (0x55b), region = 44 }
  0x13   : > { %s257_s9 = sand.u32 1, %s10863_s22   ;;  %p260_p10 = scmp.lt.s32.totalorder %s10932_s25, 1 }
  0x14   : > { %s8999_s10 = sshll.u32 %s257_s9, 5  ;;  %p9004_p11 = scmp.ne.s32.totalorder %s10932_s25, 0 }
  0x15   : > { %s261_s11 = scalar_select %p260_p10, %s10932_s25, 1 }
  0x16   : > { %s10974_s20 = scalar_lea.vmem [#allocation5], %s8999_s10  ;;  %274 = sbr.rel (%p9004_p11) target bundleno = 130 (0x82), region = 48 }
  0x17   : > { %s10378_s12 = sshll.u32 %s261_s11, 7  ;;  %s10379_s13 = sshll.u32 %s261_s11, 5 }
  0x18   : > { %s10967_s16 = scalar_lea.vmem %s13140_s0, %s10378_s12  ;;  %s10972_s19 = scalar_lea.vmem %s13145_s5, %s10379_s13 }
  0x1b   : > { %v10873_v0 = vmov 0  }
  0x1c   : > { %276 = vst [vmem:[#allocation2 + $0x4] sm:$0xf] %v10873_v0 }
  0x1d   : > { %277 = vst [vmem:[#allocation2 + $0x8] sm:$0xf] %v10873_v0 }
  0x1e   : > { %278 = vst [vmem:[#allocation2 + $0xc] sm:$0xf] %v10873_v0 }
  0x1f   : > { %279 = vst [vmem:[#allocation2 + $0x10] sm:$0xf] %v10873_v0 }
  0x20   : > { %282 = vst [vmem:[#allocation2 + $0x1c] sm:$0xf] %v10873_v0 }
  0x21   : > { %283 = vst [vmem:[#allocation2 + $0x20] sm:$0xf] %v10873_v0 }
  0x22   : > { %284 = vst [vmem:[#allocation2 + $0x24] sm:$0xf] %v10873_v0 }
  0x23   : > { %285 = vst [vmem:[#allocation2 + $0x28] sm:$0xf] %v10873_v0 }
  0x24   : > { %288 = vst [vmem:[#allocation2 + $0x34] sm:$0xf] %v10873_v0 }
  0x25   : > { %289 = vst [vmem:[#allocation2 + $0x38] sm:$0xf] %v10873_v0 }
  0x26   : > { %290 = vst [vmem:[#allocation2 + $0x3c] sm:$0xf] %v10873_v0 }
  0x27   : > { %291 = vst [vmem:[#allocation2 + $0x40] sm:$0xf] %v10873_v0 }
  0x28   : > { %294 = vst [vmem:[#allocation2 + $0x4c] sm:$0xf] %v10873_v0 }
  0x29   : > { %295 = vst [vmem:[#allocation2 + $0x50] sm:$0xf] %v10873_v0 }
  0x2a   : > { %296 = vst [vmem:[#allocation2 + $0x54] sm:$0xf] %v10873_v0 }
  0x2b   : > { %297 = vst [vmem:[#allocation2 + $0x58] sm:$0xf] %v10873_v0 }
  0x2c   : > { %300 = vst [vmem:[#allocation2 + $0x64] sm:$0xf] %v10873_v0 }
  0x2d   : > { %301 = vst [vmem:[#allocation2 + $0x68] sm:$0xf] %v10873_v0 }
  0x2e   : > { %302 = vst [vmem:[#allocation2 + $0x6c] sm:$0xf] %v10873_v0 }
  0x2f   : > { %303 = vst [vmem:[#allocation2 + $0x70] sm:$0xf] %v10873_v0 }
  0x30   : > { %306 = vst [vmem:[#allocation2 + $0x7c] sm:$0xf] %v10873_v0 }
  0x31   : > { %307 = vst [vmem:[#allocation2 + $0x80] sm:$0xf] %v10873_v0 }
  0x32   : > { %308 = vst [vmem:[#allocation2 + $0x84] sm:$0xf] %v10873_v0 }
  0x33   : > { %309 = vst [vmem:[#allocation2 + $0x88] sm:$0xf] %v10873_v0 }
  0x34   : > { %312 = vst [vmem:[#allocation2 + $0x94] sm:$0xf] %v10873_v0 }
  0x35   : > { %313 = vst [vmem:[#allocation2 + $0x98] sm:$0xf] %v10873_v0 }
  0x36   : > { %314 = vst [vmem:[#allocation2 + $0x9c] sm:$0xf] %v10873_v0 }
  0x37   : > { %315 = vst [vmem:[#allocation2 + $0xa0] sm:$0xf] %v10873_v0 }
  0x38   : > { %318 = vst [vmem:[#allocation2 + $0xac] sm:$0xf] %v10873_v0 }
  0x39   : > { %319 = vst [vmem:[#allocation2 + $0xb0] sm:$0xf] %v10873_v0 }
  0x3a   : > { %320 = vst [vmem:[#allocation2 + $0xb4] sm:$0xf] %v10873_v0 }
  0x3b   : > { %321 = vst [vmem:[#allocation2 + $0xb8] sm:$0xf] %v10873_v0 }
  0x3c   : > { %324 = vst [vmem:[#allocation2 + $0xc4] sm:$0xf] %v10873_v0 }
  0x3d   : > { %325 = vst [vmem:[#allocation2 + $0xc8] sm:$0xf] %v10873_v0 }
  0x3e   : > { %326 = vst [vmem:[#allocation2 + $0xcc] sm:$0xf] %v10873_v0 }
  0x3f   : > { %327 = vst [vmem:[#allocation2 + $0xd0] sm:$0xf] %v10873_v0 }
  0x40   : > { %330 = vst [vmem:[#allocation2 + $0xdc] sm:$0xf] %v10873_v0 }
  0x41   : > { %331 = vst [vmem:[#allocation2 + $0xe0] sm:$0xf] %v10873_v0 }
  0x42   : > { %332 = vst [vmem:[#allocation2 + $0xe4] sm:$0xf] %v10873_v0 }
  0x43   : > { %333 = vst [vmem:[#allocation2 + $0xe8] sm:$0xf] %v10873_v0 }
  0x44   : > { %336 = vst [vmem:[#allocation2 + $0xf4] sm:$0xf] %v10873_v0 }
  0x45   : > { %337 = vst [vmem:[#allocation2 + $0xf8] sm:$0xf] %v10873_v0 }
  0x46   : > { %338 = vst [vmem:[#allocation2 + $0xfc] sm:$0xf] %v10873_v0 }
  0x47   : > { %339 = vst [vmem:[#allocation2 + $0x100] sm:$0xf] %v10873_v0 }
  0x48   : > { %342 = vst [vmem:[#allocation2 + $0x10c] sm:$0xf] %v10873_v0 }
  0x49   : > { %343 = vst [vmem:[#allocation2 + $0x110] sm:$0xf] %v10873_v0 }
  0x4a   : > { %344 = vst [vmem:[#allocation2 + $0x114] sm:$0xf] %v10873_v0 }
  0x4b   : > { %345 = vst [vmem:[#allocation2 + $0x118] sm:$0xf] %v10873_v0 }
  0x4c   : > { %348 = vst [vmem:[#allocation2 + $0x124] sm:$0xf] %v10873_v0 }
  0x4d   : > { %349 = vst [vmem:[#allocation2 + $0x128] sm:$0xf] %v10873_v0 }
  0x4e   : > { %350 = vst [vmem:[#allocation2 + $0x12c] sm:$0xf] %v10873_v0 }
  0x4f   : > { %351 = vst [vmem:[#allocation2 + $0x130] sm:$0xf] %v10873_v0 }
  0x50   : > { %354 = vst [vmem:[#allocation2 + $0x13c] sm:$0xf] %v10873_v0 }
  0x51   : > { %355 = vst [vmem:[#allocation2 + $0x140] sm:$0xf] %v10873_v0 }
  0x52   : > { %356 = vst [vmem:[#allocation2 + $0x144] sm:$0xf] %v10873_v0 }
  0x53   : > { %357 = vst [vmem:[#allocation2 + $0x148] sm:$0xf] %v10873_v0 }
  0x54   : > { %360 = vst [vmem:[#allocation2 + $0x154] sm:$0xf] %v10873_v0 }
  0x55   : > { %361 = vst [vmem:[#allocation2 + $0x158] sm:$0xf] %v10873_v0 }
  0x56   : > { %362 = vst [vmem:[#allocation2 + $0x15c] sm:$0xf] %v10873_v0 }
  0x57   : > { %363 = vst [vmem:[#allocation2 + $0x160] sm:$0xf] %v10873_v0 }
  0x58   : > { %366 = vst [vmem:[#allocation2 + $0x16c] sm:$0xf] %v10873_v0 }
  0x59   : > { %367 = vst [vmem:[#allocation2 + $0x170] sm:$0xf] %v10873_v0 }
  0x5a   : > { %368 = vst [vmem:[#allocation2 + $0x174] sm:$0xf] %v10873_v0 }
  0x5b   : > { %369 = vst [vmem:[#allocation2 + $0x178] sm:$0xf] %v10873_v0 }
  0x5c   : > { %372 = vst [vmem:[#allocation2 + $0x184] sm:$0xf] %v10873_v0 }
  0x5d   : > { %373 = vst [vmem:[#allocation2 + $0x188] sm:$0xf] %v10873_v0 }
  0x5e   : > { %374 = vst [vmem:[#allocation2 + $0x18c] sm:$0xf] %v10873_v0 }
  0x5f   : > { %375 = vst [vmem:[#allocation2 + $0x190] sm:$0xf] %v10873_v0 }
  0x60   : > { %378 = vst [vmem:[#allocation2 + $0x19c] sm:$0xf] %v10873_v0 }
  0x61   : > { %379 = vst [vmem:[#allocation2 + $0x1a0] sm:$0xf] %v10873_v0 }
  0x62   : > { %380 = vst [vmem:[#allocation2 + $0x1a4] sm:$0xf] %v10873_v0 }
  0x63   : > { %381 = vst [vmem:[#allocation2 + $0x1a8] sm:$0xf] %v10873_v0 }
  0x64   : > { %384 = vst [vmem:[#allocation4 + $0x4] sm:$0xf] %v10873_v0 }
  0x65   : > { %385 = vst [vmem:[#allocation4 + $0x8] sm:$0xf] %v10873_v0 }
  0x66   : > { %386 = vst [vmem:[#allocation4 + $0xc] sm:$0xf] %v10873_v0 }
  0x67   : > { %389 = vst [vmem:[#allocation4 + $0x18] sm:$0xf] %v10873_v0 }
  0x68   : > { %390 = vst [vmem:[#allocation4 + $0x1c] sm:$0xf] %v10873_v0 }
  0x69   : > { %391 = vst [vmem:[#allocation4 + $0x20] sm:$0xf] %v10873_v0 }
  0x6a   : > { %394 = vst [vmem:[#allocation4 + $0x2c] sm:$0xf] %v10873_v0 }
  0x6b   : > { %395 = vst [vmem:[#allocation4 + $0x30] sm:$0xf] %v10873_v0 }
  0x6c   : > { %396 = vst [vmem:[#allocation4 + $0x34] sm:$0xf] %v10873_v0 }
  0x6d   : > { %399 = vst [vmem:[#allocation4 + $0x40] sm:$0xf] %v10873_v0 }
  0x6e   : > { %400 = vst [vmem:[#allocation4 + $0x44] sm:$0xf] %v10873_v0 }
  0x6f   : > { %401 = vst [vmem:[#allocation4 + $0x48] sm:$0xf] %v10873_v0 }
  0x70   : > { %404 = vst [vmem:[#allocation4 + $0x54] sm:$0xf] %v10873_v0 }
  0x71   : > { %405 = vst [vmem:[#allocation4 + $0x58] sm:$0xf] %v10873_v0 }
  0x72   : > { %406 = vst [vmem:[#allocation4 + $0x5c] sm:$0xf] %v10873_v0 }
  0x73   : > { %409 = vst [vmem:[#allocation4 + $0x68] sm:$0xf] %v10873_v0 }
  0x74   : > { %410 = vst [vmem:[#allocation4 + $0x6c] sm:$0xf] %v10873_v0 }
  0x75   : > { %411 = vst [vmem:[#allocation4 + $0x70] sm:$0xf] %v10873_v0 }
  0x76   : > { %414 = vst [vmem:[#allocation4 + $0x7c] sm:$0xf] %v10873_v0 }
  0x77   : > { %415 = vst [vmem:[#allocation4 + $0x80] sm:$0xf] %v10873_v0 }
  0x78   : > { %416 = vst [vmem:[#allocation4 + $0x84] sm:$0xf] %v10873_v0 }
  0x79   : > { %419 = vst [vmem:[#allocation4 + $0x90] sm:$0xf] %v10873_v0 }
  0x7a   : > { %420 = vst [vmem:[#allocation4 + $0x94] sm:$0xf] %v10873_v0 }
  0x7b   : > { %421 = vst [vmem:[#allocation4 + $0x98] sm:$0xf] %v10873_v0 }
  0x7c   : > { %424 = vst [vmem:[#allocation4 + $0xa4] sm:$0xf] %v10873_v0 }
  0x7d   : > { %425 = vst [vmem:[#allocation4 + $0xa8] sm:$0xf] %v10873_v0 }
  0x7e   : > { %426 = vst [vmem:[#allocation4 + $0xac] sm:$0xf] %v10873_v0 }
  0x7f   : > { %429 = vst [vmem:[#allocation4 + $0xb8] sm:$0xf] %v10873_v0 }
  0x80   : > { %430 = vst [vmem:[#allocation4 + $0xbc] sm:$0xf] %v10873_v0 }
  0x81   : > { %431 = vst [vmem:[#allocation4 + $0xc0] sm:$0xf] %v10873_v0 }
  0x82 PF: > { %v10531_v1 = vld [vmem:[%s13141_s1 + $0x38] sm:$0xff]  ;;  %v10530_v2 = vld [vmem:[%s13141_s1 + $0x30] sm:$0xff]  ;;  %vm546_vm0 = vsmask.f32 256  ;;  %vm547_vm1 = vsmask.f32 4368 }
  0x83   : > { %5049 = vmatpush.bf16.msra.mxu0 %v10531_v1  ;;  %10747 = vmatpush.bf16.msra.mxu1 %v10531_v1  ;;  %v498_v3 = vld [vmem:[#allocation2 + $0x4] sm:$0x8]  ;;  %v499_v4 = vld [vmem:[#allocation2 + $0x8] sm:$0xf]  ;;  %v500_v5 = vld [vmem:[#allocation2 + $0xc] sm:$0xf] }
  0x84   : > { %10748 = vmatpush.bf16.msra.mxu2 %v10531_v1  ;;  %v550_v6 = vshrl.u32 %v498_v3, 16  ;;  %v555_v7 = vshrl.u32 %v499_v4, 16  ;;  %v558_v8 = vshll.u32 %v499_v4, 16  ;;  %v564_v9 = vshrl.u32 %v500_v5, 16  ;;  %v6895_v10 = vld [vmem:[#allocation4 + $0x4] sm:$0x8]  ;;  %vm11094_vm2 = vmor %vm546_vm0, %vm547_vm1 }
  0x85   : > { %v567_v11 = vshll.u32 %v500_v5, 16  ;;  %v6896_v12 = vld [vmem:[#allocation4 + $0x8] sm:$0xf]  ;;  %v457_v13 = vld [vmem:[%s10967_s16 + $0x60] sm:$0xff]   ;;  %v10529_v15 = vld [vmem:[%s13141_s1 + $0x28] sm:$0xff]  ;;  %v13151_v20 = vmov 0 }
  0x86   : > { %v10555_v14 = vld [vmem:[%s13141_s1 + $0xf8] sm:$0xff]  ;;  %v9005_v16 = vrot.slane %v550_v6, 11  ;;  %v557_v17 = vrot.slane %v555_v7, 7  ;;  %v566_v18 = vrot.slane %v564_v9, 7  ;;  %v6917_v19 = vshrl.u32 %v6896_v12, 16  ;;  %490 = vst [vmem:[#allocation2 + $0x140] sm:$0xff] %v457_v13  }
  0x87   : > { %5050 = vmatpush.bf16.msra.mxu0 %v10530_v2  ;;  %10749 = vmatpush.bf16.msra.mxu1 %v10530_v2  ;;  %v13152_v20 = vsel %vm11094_vm2, 4294967295, %v13151_v20  ;;  %v6912_v21 = vshrl.u32 %v6895_v10, 16  ;;  %v6920_v22 = vshll.u32 %v6896_v12, 16  ;;  %v537_v23 = vld [vmem:[#allocation2 + $0x13c] sm:$0x8]  ;;  %v10554_v28 = vld [vmem:[%s13141_s1 + $0xf0] sm:$0xff] }
  0x88   : > { %10750 = vmatpush.bf16.msra.mxu2 %v10530_v2  ;;  %13153 = vst [vmem:[#allocation8_spill] sm:$0xff] %v13152_v20  ;;  %5316 = vmatpush.bf16.msra.mxu3 %v10555_v14  ;;  %v560_v24 = vor.u32 %v558_v8, %v557_v17  ;;  %v562_v25 = vrot.slane %v557_v17, 4  ;;  %v569_v26 = vor.u32 %v567_v11, %v566_v18  ;;  %v6919_v27 = vrot.slane %v6917_v19, 7  ;;  %v10528_v30 = vld [vmem:[%s13141_s1 + $0x20] sm:$0xff]  ;;  %v461_v33 = vld [vmem:[%s10967_s16 + $0x70] sm:$0xff]   ;;  %v10553_v35 = vld [vmem:[%s13141_s1 + $0xe8] sm:$0xff] }
  0x89   : > { %v836_v29 = vshrl.u32 %v537_v23, 16  ;;  %v9917_v34 = vrot.slane %v6912_v21, 11  ;;  %v433_v36 = vld [vmem:[%s10967_s16] sm:$0xff]   ;;  %v10527_v37 = vld [vmem:[%s13141_s1 + $0x18] sm:$0xff]  ;;  %v543_v39 = vld [vmem:[#allocation2 + $0x16c] sm:$0x8] }
  0x8a   : > { %v561_v31 = vsel %vm11094_vm2, %v9005_v16, %v560_v24  ;;  %v570_v32 = vsel %vm11094_vm2, %v562_v25, %v569_v26  ;;  %v6922_v38 = vor.u32 %v6920_v22, %v6919_v27  ;;  %v501_v40 = vld [vmem:[#allocation2 + $0x1c] sm:$0x8]  ;;  %494 = vst [vmem:[#allocation2 + $0x170] sm:$0xff] %v461_v33   ;;  %v459_v48 = vld [vmem:[%s10967_s16 + $0x68] sm:$0xff]   ;;  %v10552_v49 = vld [vmem:[%s13141_s1 + $0xe0] sm:$0xff]  ;;  %v880_v50 = vshrl.u32 %v543_v39, 16 }
  0x8b   : > { %5051 = vmatpush.bf16.msra.mxu0 %v10529_v15  ;;  %10751 = vmatpush.bf16.msra.mxu1 %v10529_v15  ;;  %933 = vst [vmem:[#allocation3] sm:$0xf] %v561_v31  ;;  %v9018_v43 = vrot.slane %v836_v29, 11  ;;  %v572_v51 = vshrl.u32 %v501_v40, 16  ;;  %v540_v52 = vld [vmem:[#allocation2 + $0x154] sm:$0x8] }
  0x8c   : > { %10752 = vmatpush.bf16.msra.mxu2 %v10529_v15  ;;  %5317 = vmatpush.bf16.msra.mxu3 %v10554_v28  ;;  %934 = vst [vmem:[#allocation3 + $0x24] sm:$0xf] %v570_v32  ;;  %v6923_v53 = vsel %vm11094_vm2, %v9917_v34, %v6922_v38  ;;  %v858_v56 = vshrl.u32 %v540_v52, 16  ;;  %v11122_v57 = vld [vmem:[#allocation2 + $0x8] sm:$0xf]  ;;  %v10526_v58 = vld [vmem:[%s13141_s1 + $0x10] sm:$0xff] }
  0x8d   : > { %v538_v41 = vld [vmem:[#allocation2 + $0x140] sm:$0xf]  ;;  %v539_v42 = vld [vmem:[#allocation2 + $0x144] sm:$0xf]  ;;  %466 = vst [vmem:[#allocation2 + $0x20] sm:$0xff] %v433_v36   ;;  %v9020_v63 = vrot.slane %v880_v50, 11 }
  0x8e   : > { %v841_v44 = vshrl.u32 %v538_v41, 16  ;;  %v844_v45 = vshll.u32 %v538_v41, 16  ;;  %v850_v46 = vshrl.u32 %v539_v42, 16  ;;  %v853_v47 = vshll.u32 %v539_v42, 16  ;;  %492 = vst [vmem:[#allocation2 + $0x158] sm:$0xff] %v459_v48   ;;  %v10551_v1 = vld [vmem:[%s13141_s1 + $0xd8] sm:$0xff] }
  0x8f   : > { %5052 = vmatpush.bf16.msra.mxu0 %v10528_v30  ;;  %10753 = vmatpush.bf16.msra.mxu1 %v10528_v30  ;;  %v11129_v0 = vrot.slane %v572_v51, 11  ;;  %v1081_v2 = vshrl.u32 %v11122_v57, 16  ;;  %v10525_v3 = vld [vmem:[%s13141_s1 + $0x8] sm:$0xff]  ;;  %v11142_v8 = vrot.slane %v858_v56, 11  ;;  %v1084_v9 = vshll.u32 %v11122_v57, 16  ;;  %v10550_v14 = vld [vmem:[%s13141_s1 + $0xd0] sm:$0xff] }
  0x90   : > { %10754 = vmatpush.bf16.msra.mxu2 %v10528_v30  ;;  %5318 = vmatpush.bf16.msra.mxu3 %v10553_v35  ;;  %v843_v54 = vrot.slane %v841_v44, 7  ;;  %v852_v55 = vrot.slane %v850_v46, 7  ;;  %vm1077_vm3 = vsmask.f32 3328  ;;  %v10524_v28 = vld [vmem:[%s13141_s1] sm:$0xff]  ;;  %v10563_v29 = vld [vmem:[%s13141_s1 + $0x138] sm:$0xff] }
  0x91   : > { %v544_v6 = vld [vmem:[#allocation2 + $0x170] sm:$0xf]  ;;  %v545_v7 = vld [vmem:[#allocation2 + $0x174] sm:$0xf]  ;;  %v10547_v34 = vld [vmem:[%s13141_s1 + $0xb8] sm:$0xff]  ;;  %v1083_v52 = vrot.slane %v1081_v2, 4 }
  0x92   : > { %v11127_v59 = vld [vmem:[#allocation3] sm:$0xf]  ;;  %v846_v60 = vor.u32 %v844_v45, %v843_v54  ;;  %v848_v61 = vrot.slane %v843_v54, 4  ;;  %v855_v62 = vor.u32 %v853_v47, %v852_v55  ;;  %v885_v10 = vshrl.u32 %v544_v6, 16  ;;  %v1030_v40 = vld [vmem:[#allocation2 + $0xc] sm:$0xf] }
  0x93   : > { %5053 = vmatpush.bf16.msra.mxu0 %v10527_v37  ;;  %10755 = vmatpush.bf16.msra.mxu1 %v10527_v37  ;;  %7023 = vst [vmem:[#allocation3] sm:$0xf] %v6923_v53  ;;  %v888_v11 = vshll.u32 %v544_v6, 16  ;;  %v894_v12 = vshrl.u32 %v545_v7, 16  ;;  %v897_v13 = vshll.u32 %v545_v7, 16  ;;  %v10539_v41 = vld [vmem:[%s13141_s1 + $0x78] sm:$0xff] }
  0x94   : > { %10756 = vmatpush.bf16.msra.mxu2 %v10527_v37  ;;  %5319 = vmatpush.bf16.msra.mxu3 %v10552_v49  ;;  %v847_v4 = vsel %vm11094_vm2, %v9018_v43, %v846_v60  ;;  %v856_v5 = vsel %vm11094_vm2, %v848_v61, %v855_v62  ;;  %v502_v15 = vld [vmem:[#allocation2 + $0x20] sm:$0xf]  ;;  %v503_v16 = vld [vmem:[#allocation2 + $0x24] sm:$0xf]  ;;  %v887_v17 = vrot.slane %v885_v10, 7  ;;  %v10546_v61 = vld [vmem:[%s13141_s1 + $0xb0] sm:$0xff] }
  0x95   : > { %959 = vst [vmem:[#allocation3 + $0x3a8] sm:$0xf] %v847_v4  ;;  %v896_v18 = vrot.slane %v894_v12, 7  ;;  %v577_v19 = vshrl.u32 %v502_v15, 16  ;;  %v580_v21 = vshll.u32 %v502_v15, 16  ;;  %v586_v23 = vshrl.u32 %v503_v16, 16 }
  0x96   : > { %960 = vst [vmem:[#allocation3 + $0x3cc] sm:$0xf] %v856_v5  ;;  %v541_v22 = vld [vmem:[#allocation2 + $0x158] sm:$0xf]  ;;  %v589_v24 = vshll.u32 %v503_v16, 16  ;;  %v890_v30 = vor.u32 %v888_v11, %v887_v17  ;;  %v892_v31 = vrot.slane %v887_v17, 4 }
  0x97   : > { %5054 = vmatpush.bf16.msra.mxu0 %v10526_v58  ;;  %10757 = vmatpush.bf16.msra.mxu1 %v10526_v58  ;;  %v542_v25 = vld [vmem:[#allocation2 + $0x15c] sm:$0xf]  ;;  %v863_v26 = vshrl.u32 %v541_v22, 16  ;;  %v866_v27 = vshll.u32 %v541_v22, 16  ;;  %v899_v32 = vor.u32 %v897_v13, %v896_v18  ;;  %v579_v33 = vrot.slane %v577_v19, 7  ;;  %v435_v2 = vld [vmem:[%s10967_s16 + $0x8] sm:$0xff]  }
  0x98   : > { %10758 = vmatpush.bf16.msra.mxu2 %v10526_v58  ;;  %5320 = vmatpush.bf16.msra.mxu3 %v10551_v1  ;;  %v10384_v35 = vld [vmem:[#allocation3 + $0x20] sm:$0xf0]  ;;  %v588_v36 = vrot.slane %v586_v23, 7  ;;  %v872_v38 = vshrl.u32 %v542_v25, 16  ;;  %v875_v39 = vshll.u32 %v542_v25, 16  ;;  %v891_v42 = vsel %vm11094_vm2, %v9020_v63, %v890_v30  ;;  %v10549_v58 = vld [vmem:[%s13141_s1 + $0xc8] sm:$0xff] }
  0x99   : > { %v865_v37 = vrot.slane %v863_v26, 7  ;;  %v900_v43 = vsel %vm11094_vm2, %v892_v31, %v899_v32  ;;  %v582_v44 = vor.u32 %v580_v21, %v579_v33  ;;  %v584_v45 = vrot.slane %v579_v33, 4  ;;  %v1031_v46 = vld [vmem:[#allocation2 + $0x10] sm:$0x1]  ;;  %v1528_v47 = vld [vmem:[#allocation2 + $0x1c] sm:$0x8] }
  0x9a   : > { %963 = vst [vmem:[#allocation3 + $0x438] sm:$0xf] %v891_v42  ;;  %v591_v49 = vor.u32 %v589_v24, %v588_v36  ;;  %v874_v51 = vrot.slane %v872_v38, 7  ;;  %v9056_v53 = vor.u32 %v10384_v35, %v11127_v59  ;;  %v10538_v59 = vld [vmem:[%s13141_s1 + $0x70] sm:$0xff]  ;;  %vm1078_vm4 = vsmask.f32 7440 }
  0x9b   : > { %5055 = vmatpush.bf16.msra.mxu0 %v10525_v3  ;;  %10759 = vmatpush.bf16.msra.mxu1 %v10525_v3  ;;  %v868_v50 = vor.u32 %v866_v27, %v865_v37  ;;  %964 = vst [vmem:[#allocation3 + $0x45c] sm:$0xf] %v900_v43  ;;  %v583_v55 = vsel %vm11094_vm2, %v11129_v0, %v582_v44  ;;  %v870_v56 = vrot.slane %v865_v37, 4  ;;  %v10562_v0 = vld [vmem:[%s13141_s1 + $0x130] sm:$0xff]  ;;  %v11185_v1 = vld [vmem:[#allocation2 + $0x20] sm:$0xf]  ;;  %vm11204_vm5 = vmor %vm1077_vm3, %vm1078_vm4 }
  0x9c   : > { %10760 = vmatpush.bf16.msra.mxu2 %v10525_v3  ;;  %5321 = vmatpush.bf16.msra.mxu3 %v10550_v14  ;;  %v9523_v48 = vld [vmem:[#allocation3 + $0x3a8] sm:$0xf]  ;;  %v592_v62 = vsel %vm11094_vm2, %v584_v45, %v591_v49  ;;  %935 = vst [vmem:[#allocation3 + $0x48] sm:$0xf] %v583_v55  ;;  %v877_v3 = vor.u32 %v875_v39, %v874_v51  ;;  %v1086_v4 = vrot.slane %v1084_v9, 5  ;;  %v1090_v5 = vshll.u32 %v1030_v40, 16 }
  0x9d   : > { %v10501_v54 = vld [vmem:[#allocation3 + $0x3c8] sm:$0xf0]  ;;  %v869_v63 = vsel %vm11094_vm2, %v11142_v8, %v868_v50  ;;  %936 = vst [vmem:[#allocation3 + $0x6c] sm:$0xf] %v592_v62  ;;  %v1094_v6 = vshrl.u32 %v1030_v40, 16  ;;  %v437_v7 = vld [vmem:[%s10967_s16 + $0x10] sm:$0xff]  }
  0x9e   : > { %v9524_v60 = vor.u32 %v10501_v54, %v9523_v48  ;;  %961 = vst [vmem:[#allocation3 + $0x3f0] sm:$0xf] %v869_v63  ;;  %v1100_v8 = vshll.u32 %v1031_v46, 16  ;;  %v7047_v10 = vld [vmem:[#allocation4 + $0x8] sm:$0xf]  ;;  %v1577_v11 = vshrl.u32 %v1528_v47, 16  ;;  %v878_v12 = vsel %vm11094_vm2, %v870_v56, %v877_v3 }
  0x9f   : > { %5056 = vmatpush.bf16.msra.mxu0 %v10524_v28  ;;  %10761 = vmatpush.bf16.msra.mxu1 %v10524_v28  ;;  %v10548_v13 = vld [vmem:[%s13141_s1 + $0xc0] sm:$0xff]  ;;  %v1087_v57 = vor.u32 %v1086_v4, %v1083_v52  ;;  %v1092_v9 = vrot.slane %v1090_v5, 5  ;;  %v1096_v14 = vrot.slane %v1094_v6, 4  ;;  %v7048_v15 = vld [vmem:[#allocation4 + $0xc] sm:$0x1]  ;;  %468 = vst [vmem:[#allocation2 + $0x38] sm:$0xff] %v435_v2  }
  0xa0   : > { %10762 = vmatpush.bf16.msra.mxu2 %v10524_v28  ;;  %v1530_v16 = vld [vmem:[#allocation2 + $0x24] sm:$0xf]  ;;  %v10545_v17 = vld [vmem:[%s13141_s1 + $0xa8] sm:$0xff]  ;;  %962 = vst [vmem:[#allocation3 + $0x414] sm:$0xf] %v878_v12  ;;  %5322 = vmatpush.bf16.msra.mxu3 %v10549_v58  ;;  %v1102_v21 = vrot.slane %v1100_v8, 5 }
  0xa1   : > { %v10537_v18 = vld [vmem:[%s13141_s1 + $0x68] sm:$0xff]  ;;  %v7064_v22 = vshrl.u32 %v7047_v10, 16  ;;  %v7067_v23 = vshll.u32 %v7047_v10, 16  ;;  %v7073_v24 = vshll.u32 %v7048_v15, 16  ;;  %v1088_v26 = vrot.slane %v1087_v57, 4  ;;  %470 = vst [vmem:[#allocation2 + $0x50] sm:$0xff] %v437_v7  }
  0xa2   : > { %5057 = vmatmul.bf16.vlgmr.msra.gmra.mxu0 %v9056_v53  ;;  %5122 = vmatmul.bf16.vlgmr.msra.gmra.mxu1 %v9524_v60  ;;  %v9595_v25 = vld [vmem:[#allocation3 + $0x438] sm:$0xf]  ;;  %v1097_v27 = vor.u32 %v1096_v14, %v1092_v9  ;;  %v9021_v28 = vrot.slane %v1577_v11, 11  ;;  %v10519_v30 = vld [vmem:[#allocation3 + $0x458] sm:$0xf0]  ;;  %v10544_v39 = vld [vmem:[%s13141_s1 + $0xa0] sm:$0xff] }
  0xa3   : > { %5405 = vmatpush.bf16.msrb.mxu0 %v10563_v29  ;;  %5138 = vmatpush.bf16.msrb.mxu1 %v10539_v41  ;;  %v1582_v29 = vshrl.u32 %v11185_v1, 16  ;;  %v7066_v31 = vrot.slane %v7064_v22, 4  ;;  %v7069_v32 = vrot.slane %v7067_v23, 5  ;;  %v7075_v33 = vrot.slane %v7073_v24, 5  ;;  %v504_v43 = vld [vmem:[#allocation2 + $0x34] sm:$0x8] }
  0xa4   : > { %5227 = vmatpush.bf16.msrb.mxu2 %v10547_v34  ;;  %v1585_v34 = vshll.u32 %v11185_v1, 16  ;;  %v9596_v35 = vor.u32 %v10519_v30, %v9595_v25  ;;  %v1093_v36 = vsel %vm11204_vm5, %v1088_v26, %v1092_v9  ;;  %v1098_v37 = vrot.slane %v1097_v27, 4  ;;  %5323 = vmatpush.bf16.msra.mxu3 %v10548_v13  ;;  %v10536_v44 = vld [vmem:[%s13141_s1 + $0x60] sm:$0xff]  ;;  %v9091_v45 = vld [vmem:[#allocation3 + $0x48] sm:$0xf]  ;;  %v10542_v14 = vld [vmem:[%s13141_s1 + $0x90] sm:$0xff] }
  0xa5   : > { %v1584_v38 = vrot.slane %v1582_v29, 7  ;;  %1496 = vst [vmem:[#allocation3 + $0x8] sm:$0xf] %v1093_v36  ;;  %v7070_v40 = vor.u32 %v7069_v32, %v7066_v31  ;;  %v1591_v41 = vshrl.u32 %v1530_v16, 16  ;;  %v1594_v42 = vshll.u32 %v1530_v16, 16  ;;  %v10543_v5 = vld [vmem:[%s13141_s1 + $0x98] sm:$0xff] }
  0xa6   : > { %5132 = vmatmul.bf16.vlgmr.msra.gmra.mxu2 %v9596_v35  ;;  %v10393_v46 = vld [vmem:[#allocation3 + $0x68] sm:$0xf0]  ;;  %v1103_v47 = vsel %vm11204_vm5, %v1098_v37, %v1102_v21  ;;  %v965_v50 = vld [vmem:[#allocation2 + $0x8] sm:$0xf]  ;;  %v9559_v51 = vld [vmem:[#allocation3 + $0x3f0] sm:$0xf] }
  0xa7   : > { %5406 = vmatpush.bf16.msrb.mxu0 %v10562_v0  ;;  %5139 = vmatpush.bf16.msrb.mxu1 %v10538_v59  ;;  %v1587_v48 = vor.u32 %v1585_v34, %v1584_v38  ;;  %v1589_v49 = vrot.slane %v1584_v38, 4  ;;  %1497 = vst [vmem:[#allocation3 + $0x2c] sm:$0xf] %v1103_v47  ;;  %v7071_v52 = vrot.slane %v7070_v40, 4  ;;  %v1593_v53 = vrot.slane %v1591_v41, 7  ;;  %v10535_v7 = vld [vmem:[%s13141_s1 + $0x58] sm:$0xff] }
  0xa8   : > { %5228 = vmatpush.bf16.msrb.mxu2 %v10546_v61  ;;  %v505_v54 = vld [vmem:[#allocation2 + $0x38] sm:$0xf]  ;;  %v10510_v55 = vld [vmem:[#allocation3 + $0x410] sm:$0xf0]  ;;  %v506_v58 = vld [vmem:[#allocation2 + $0x3c] sm:$0xf]  ;;  %v9092_v6 = vor.u32 %v10393_v46, %v9091_v45 }
  0xa9   : > { %v1588_v56 = vsel %vm11094_vm2, %v9021_v28, %v1587_v48  ;;  %v594_v60 = vshrl.u32 %v504_v43, 16  ;;  %v599_v61 = vshrl.u32 %v505_v54, 16  ;;  %v7076_v59 = vsel %vm11204_vm5, %v7071_v52, %v7075_v33  ;;  %v966_v0 = vld [vmem:[#allocation2 + $0xc] sm:$0xf]  ;;  %997 = vst [vmem:[#allocation3 + $0x4] sm:$0xf] %v965_v50 }
  0xaa   : > { %v1596_v62 = vor.u32 %v1594_v42, %v1593_v53  ;;  %1960 = vst [vmem:[#allocation3 + $0xc] sm:$0xf] %v1588_v56  ;;  %v602_v63 = vshll.u32 %v505_v54, 16  ;;  %v608_v3 = vshrl.u32 %v506_v58, 16  ;;  %v611_v4 = vshll.u32 %v506_v58, 16  ;;  %v10534_v25 = vld [vmem:[%s13141_s1 + $0x50] sm:$0xff] }
  0xab   : > { %5140 = vmatpush.bf16.msrb.mxu1 %v10537_v18  ;;  %v9007_v1 = vrot.slane %v594_v60, 11  ;;  %v601_v2 = vrot.slane %v599_v61, 7  ;;  %998 = vst [vmem:[#allocation3 + $0x28] sm:$0xf] %v966_v0  ;;  %v1032_v10 = vld [vmem:[#allocation2 + $0x20] sm:$0xf]  ;;  %v9560_v11 = vor.u32 %v10510_v55, %v9559_v51 }
  0xac   : > { %5229 = vmatpush.bf16.msrb.mxu2 %v10545_v17  ;;  %v1597_v8 = vsel %vm11094_vm2, %v1589_v49, %v1596_v62  ;;  %v11232_v12 = vld [vmem:[#allocation3 + $0x8] sm:$0xf]  ;;  %v610_v9 = vrot.slane %v608_v3, 7  ;;  %v1033_v15 = vld [vmem:[#allocation2 + $0x24] sm:$0xf]  ;;  %v1105_v22 = vshrl.u32 %v1032_v10, 16 }
  0xad   : > { %1961 = vst [vmem:[#allocation3 + $0x30] sm:$0xf] %v1597_v8  ;;  %v604_v13 = vor.u32 %v602_v63, %v601_v2  ;;  %v606_v57 = vrot.slane %v601_v2, 4  ;;  %v1034_v16 = vld [vmem:[#allocation2 + $0x28] sm:$0x1]  ;;  %v1108_v23 = vshll.u32 %v1032_v10, 16 }
  0xae   : > { %7183 = vst [vmem:[#allocation3 + $0x8] sm:$0xf] %v7076_v59  ;;  %v613_v18 = vor.u32 %v611_v4, %v610_v9  ;;  %v7031_v21 = vld [vmem:[#allocation4 + $0x8] sm:$0xf]  ;;  %v1531_v24 = vld [vmem:[#allocation2 + $0x34] sm:$0x8] }
  0xaf   : > { %5141 = vmatpush.bf16.msrb.mxu1 %v10536_v44  ;;  %v605_v17 = vsel %vm11094_vm2, %v9007_v1, %v604_v13  ;;  %v1114_v26 = vshll.u32 %v1033_v15, 16  ;;  %v1118_v27 = vshrl.u32 %v1033_v15, 16  ;;  %v1124_v28 = vshll.u32 %v1034_v16, 16  ;;  %v1532_v33 = vld [vmem:[#allocation2 + $0x38] sm:$0xf]  ;;  %v10541_v37 = vld [vmem:[%s13141_s1 + $0x88] sm:$0xff] }
  0xb0   : > { %5230 = vmatpush.bf16.msrb.mxu2 %v10544_v39  ;;  %937 = vst [vmem:[#allocation3 + $0x90] sm:$0xf] %v605_v17  ;;  %v614_v30 = vsel %vm11094_vm2, %v606_v57, %v613_v18  ;;  %v1107_v31 = vrot.slane %v1105_v22, 4  ;;  %v1110_v32 = vrot.slane %v1108_v23, 5  ;;  %v11244_v34 = vld [vmem:[#allocation3 + $0x4] sm:$0xf] }
  0xb1   : > { %v10381_v29 = vld [vmem:[#allocation3 + $0xc] sm:$0xf]  ;;  %938 = vst [vmem:[#allocation3 + $0xb4] sm:$0xf] %v614_v30  ;;  %v1116_v35 = vrot.slane %v1114_v26, 5  ;;  %v1120_v36 = vrot.slane %v1118_v27, 4 }
  0xb2   : > { %5062 = vmatmul.bf16.gmra.mxu0 %v9092_v6  ;;  %5127 = vmatmul.bf16.gmra.mxu1 %v9560_v11  ;;  %v10533_v38 = vld [vmem:[%s13141_s1 + $0x48] sm:$0xff]  ;;  %7039 = vst [vmem:[#allocation3 + $0x4] sm:$0xf] %v7031_v21  ;;  %v1111_v39 = vor.u32 %v1110_v32, %v1107_v31  ;;  %v1126_v40 = vrot.slane %v1124_v28, 5  ;;  %v1599_v41 = vshrl.u32 %v1531_v24, 16  ;;  %v1604_v45 = vshrl.u32 %v1532_v33, 16 }
  0xb3   : > { %5142 = vmatpush.bf16.msrb.mxu1 %v10535_v7  ;;  %v1121_v43 = vor.u32 %v1120_v36, %v1116_v35  ;;  %v1533_v44 = vld [vmem:[#allocation2 + $0x3c] sm:$0xf]  ;;  %v1607_v46 = vshll.u32 %v1532_v33, 16  ;;  %v507_v51 = vld [vmem:[#allocation2 + $0x4c] sm:$0x8]  ;;  %v10540_v53 = vld [vmem:[%s13141_s1 + $0x80] sm:$0xff] }
  0xb4   : > { %5231 = vmatpush.bf16.msrb.mxu2 %v10543_v5  ;;  %v9065_v42 = vld [vmem:[#allocation3 + $0x2c] sm:$0xf0]  ;;  %v1112_v48 = vrot.slane %v1111_v39, 4  ;;  %v9022_v49 = vrot.slane %v1599_v41, 11  ;;  %v1613_v50 = vshrl.u32 %v1533_v44, 16  ;;  %v10561_v52 = vld [vmem:[%s13141_s1 + $0x128] sm:$0xff] }
  0xb5   : > { %v9068_v47 = vor.u32 %v10381_v29, %v9065_v42  ;;  %v10532_v54 = vld [vmem:[%s13141_s1 + $0x40] sm:$0xff]  ;;  %v10385_v55 = vld [vmem:[#allocation3 + $0x28] sm:$0xf0]  ;;  %v1122_v56 = vrot.slane %v1121_v43, 4  ;;  %v1606_v58 = vrot.slane %v1604_v45, 7  ;;  %v1616_v60 = vshll.u32 %v1533_v44, 16  ;;  %5407 = vmatpush.bf16.msrb.mxu0 %v10561_v52 }
  0xb6   : > { %v508_v61 = vld [vmem:[#allocation2 + $0x50] sm:$0xf]  ;;  %v616_v59 = vshrl.u32 %v507_v51, 16  ;;  %v9057_v62 = vld [vmem:[#allocation3 + $0x24] sm:$0xf0]  ;;  %v1117_v63 = vsel %vm11204_vm5, %v1112_v48, %v1116_v35  ;;  %v1615_v0 = vrot.slane %v1613_v50, 7  ;;  %v9064_v17 = vor.u32 %v10385_v55, %v11232_v12 }
  0xb7   : > { %5143 = vmatpush.bf16.msrb.mxu1 %v10534_v25  ;;  %5324 = vmatmul.bf16.vlgmr.msra.gmra.mxu3 %v9068_v47  ;;  %v509_v1 = vld [vmem:[#allocation2 + $0x54] sm:$0xf]  ;;  %v621_v2 = vshrl.u32 %v508_v61, 16  ;;  %v9127_v3 = vld [vmem:[#allocation3 + $0x90] sm:$0xf]  ;;  %v1127_v4 = vsel %vm11204_vm5, %v1122_v56, %v1126_v40  ;;  %v1609_v5 = vor.u32 %v1607_v46, %v1606_v58  ;;  %v1611_v6 = vrot.slane %v1606_v58, 4 }
  0xb8   : > { %5232 = vmatpush.bf16.msrb.mxu2 %v10542_v14  ;;  %1498 = vst [vmem:[#allocation3 + $0x50] sm:$0xf] %v1117_v63  ;;  %v9008_v7 = vrot.slane %v616_v59, 11  ;;  %v967_v8 = vld [vmem:[#allocation2 + $0x20] sm:$0xf]  ;;  %v1618_v11 = vor.u32 %v1616_v60, %v1615_v0  ;;  %v624_v57 = vshll.u32 %v508_v61, 16  ;;  %v9060_v24 = vor.u32 %v11244_v34, %v9057_v62 }
  0xb9   : > { %v10402_v10 = vld [vmem:[#allocation3 + $0xb0] sm:$0xf0]  ;;  %1499 = vst [vmem:[#allocation3 + $0x74] sm:$0xf] %v1127_v4  ;;  %v623_v13 = vrot.slane %v621_v2, 7  ;;  %v1610_v9 = vsel %vm11094_vm2, %v9022_v49, %v1609_v5  ;;  %v630_v14 = vshrl.u32 %v509_v1, 16 }
  0xba   : > { %v633_v15 = vshll.u32 %v509_v1, 16  ;;  %v968_v16 = vld [vmem:[#allocation2 + $0x24] sm:$0xf]  ;;  %999 = vst [vmem:[#allocation3 + $0x4c] sm:$0xf] %v967_v8  ;;  %v1619_v18 = vsel %vm11094_vm2, %v1611_v6, %v1618_v11  ;;  %v9128_v28 = vor.u32 %v10402_v10, %v9127_v3  ;;  %v439_v39 = vld [vmem:[%s10967_s16 + $0x18] sm:$0xff]  }
  0xbb   : > { %5144 = vmatpush.bf16.msrb.mxu1 %v10533_v38  ;;  %1962 = vst [vmem:[#allocation3 + $0x54] sm:$0xf] %v1610_v9  ;;  %v626_v21 = vor.u32 %v624_v57, %v623_v13  ;;  %v628_v22 = vrot.slane %v623_v13, 4  ;;  %v1035_v23 = vld [vmem:[#allocation2 + $0x38] sm:$0xf]  ;;  %v632_v25 = vrot.slane %v630_v14, 7 }
  0xbc   : > { %5233 = vmatpush.bf16.msrb.mxu2 %v10541_v37  ;;  %1963 = vst [vmem:[#allocation3 + $0x78] sm:$0xf] %v1619_v18  ;;  %v1036_v26 = vld [vmem:[#allocation2 + $0x3c] sm:$0xf]  ;;  %v1129_v27 = vshrl.u32 %v1035_v23, 16  ;;  %v1132_v30 = vshll.u32 %v1035_v23, 16 }
  0xbd   : > { %v627_v12 = vsel %vm11094_vm2, %v9008_v7, %v626_v21  ;;  %1000 = vst [vmem:[#allocation3 + $0x70] sm:$0xf] %v968_v16  ;;  %v1037_v29 = vld [vmem:[#allocation2 + $0x40] sm:$0x1]  ;;  %v1138_v31 = vshll.u32 %v1036_v26, 16  ;;  %v635_v32 = vor.u32 %v633_v15, %v632_v25  ;;  %v1142_v35 = vshrl.u32 %v1036_v26, 16 }
  0xbe   : > { %939 = vst [vmem:[#allocation3 + $0xd8] sm:$0xf] %v627_v12  ;;  %v1131_v33 = vrot.slane %v1129_v27, 4  ;;  %v1148_v36 = vshll.u32 %v1037_v29, 16  ;;  %v1134_v34 = vrot.slane %v1132_v30, 5  ;;  %v441_v43 = vld [vmem:[%s10967_s16 + $0x20] sm:$0xff]  }
  0xbf   : > { %5145 = vmatpush.bf16.msrb.mxu1 %v10532_v54  ;;  %v1140_v37 = vrot.slane %v1138_v31, 5  ;;  %v1534_v38 = vld [vmem:[#allocation2 + $0x4c] sm:$0x8]  ;;  %v636_v40 = vsel %vm11094_vm2, %v628_v22, %v635_v32  ;;  %v1144_v41 = vrot.slane %v1142_v35, 4  ;;  %v1535_v42 = vld [vmem:[#allocation2 + $0x50] sm:$0xf] }
  0xc0   : > { %5234 = vmatpush.bf16.msrb.mxu2 %v10540_v53  ;;  %940 = vst [vmem:[#allocation3 + $0xfc] sm:$0xf] %v636_v40  ;;  %v1135_v44 = vor.u32 %v1134_v34, %v1131_v33  ;;  %v1150_v45 = vrot.slane %v1148_v36, 5  ;;  %v1536_v46 = vld [vmem:[#allocation2 + $0x54] sm:$0xf]  ;;  %v1621_v49 = vshrl.u32 %v1534_v38, 16 }
  0xc1   : > { %v1145_v48 = vor.u32 %v1144_v41, %v1140_v37  ;;  %v1626_v50 = vshrl.u32 %v1535_v42, 16  ;;  %v1629_v51 = vshll.u32 %v1535_v42, 16  ;;  %472 = vst [vmem:[#allocation2 + $0x68] sm:$0xff] %v439_v39   ;;  %v1635_v54 = vshrl.u32 %v1536_v46, 16  ;;  %v510_v63 = vld [vmem:[#allocation2 + $0x64] sm:$0x8] }
  0xc2   : > { %5067 = vmatmul.bf16.gmra.mxu0 %v9128_v28  ;;  %5146 = vmatmul.bf16.vlgmr.msrb.gmra.mxu1 %v9060_v24  ;;  %v10390_v47 = vld [vmem:[#allocation3 + $0x54] sm:$0xf]  ;;  %v1136_v53 = vrot.slane %v1135_v44, 4  ;;  %v1638_v55 = vshll.u32 %v1536_v46, 16  ;;  %474 = vst [vmem:[#allocation2 + $0x80] sm:$0xff] %v441_v43   ;;  %v9023_v60 = vrot.slane %v1621_v49, 11 }
  0xc3   : > { %5235 = vmatmul.bf16.vlgmr.msrb.gmra.mxu2 %v9064_v17  ;;  %v9101_v52 = vld [vmem:[#allocation3 + $0x74] sm:$0xf0]  ;;  %v1146_v58 = vrot.slane %v1145_v48, 4  ;;  %v1628_v61 = vrot.slane %v1626_v50, 7  ;;  %v1637_v62 = vrot.slane %v1635_v54, 7  ;;  %v638_v8 = vshrl.u32 %v510_v63, 16 }
  0xc4   : > { %v9104_v56 = vor.u32 %v10390_v47, %v9101_v52  ;;  %v1141_v59 = vsel %vm11204_vm5, %v1136_v53, %v1140_v37  ;;  %v9099_v0 = vld [vmem:[#allocation3 + $0x50] sm:$0xf]  ;;  %v10394_v1 = vld [vmem:[#allocation3 + $0x70] sm:$0xf0]  ;;  %v10389_v3 = vld [vmem:[#allocation3 + $0x4c] sm:$0xf] }
  0xc5   : > { %v9163_v2 = vld [vmem:[#allocation3 + $0xd8] sm:$0xf]  ;;  %v9093_v4 = vld [vmem:[#allocation3 + $0x6c] sm:$0xf0]  ;;  %v1151_v5 = vsel %vm11204_vm5, %v1146_v58, %v1150_v45  ;;  %1500 = vst [vmem:[#allocation3 + $0x98] sm:$0xf] %v1141_v59  ;;  %v1631_v6 = vor.u32 %v1629_v51, %v1628_v61  ;;  %v1640_v11 = vor.u32 %v1638_v55, %v1637_v62  ;;  %v9100_v26 = vor.u32 %v10394_v1, %v9099_v0 }
  0xc6   : > { %v1633_v7 = vrot.slane %v1628_v61, 4  ;;  %v969_v10 = vld [vmem:[#allocation2 + $0x38] sm:$0xf]  ;;  %1501 = vst [vmem:[#allocation3 + $0xbc] sm:$0xf] %v1151_v5  ;;  %v9009_v15 = vrot.slane %v638_v8, 11  ;;  %v9096_v28 = vor.u32 %v10389_v3, %v9093_v4 }
  0xc7   : > { %5329 = vmatmul.bf16.gmra.mxu3 %v9104_v56  ;;  %v970_v13 = vld [vmem:[#allocation2 + $0x3c] sm:$0xf]  ;;  %v1038_v57 = vld [vmem:[#allocation2 + $0x50] sm:$0xf]  ;;  %v10411_v9 = vld [vmem:[#allocation3 + $0xf8] sm:$0xf0]  ;;  %v1632_v14 = vsel %vm11094_vm2, %v9023_v60, %v1631_v6 }
  0xc8   : > { %1001 = vst [vmem:[#allocation3 + $0x94] sm:$0xf] %v969_v10  ;;  %v1153_v16 = vshrl.u32 %v1038_v57, 16  ;;  %v1641_v17 = vsel %vm11094_vm2, %v1633_v7, %v1640_v11  ;;  %v511_v18 = vld [vmem:[#allocation2 + $0x68] sm:$0xf]  ;;  %v9164_v27 = vor.u32 %v10411_v9, %v9163_v2  ;;  %v1156_v33 = vshll.u32 %v1038_v57, 16 }
  0xc9   : > { %1964 = vst [vmem:[#allocation3 + $0x9c] sm:$0xf] %v1632_v14  ;;  %v512_v21 = vld [vmem:[#allocation2 + $0x6c] sm:$0xf]  ;;  %v643_v22 = vshrl.u32 %v511_v18, 16  ;;  %v646_v23 = vshll.u32 %v511_v18, 16 }
  0xca   : > { %1965 = vst [vmem:[#allocation3 + $0xc0] sm:$0xf] %v1641_v17  ;;  %v652_v24 = vshrl.u32 %v512_v21, 16  ;;  %v655_v25 = vshll.u32 %v512_v21, 16  ;;  %v1039_v12 = vld [vmem:[#allocation2 + $0x54] sm:$0xf] }
  0xcb   : > { %1002 = vst [vmem:[#allocation3 + $0xb8] sm:$0xf] %v970_v13  ;;  %v1040_v29 = vld [vmem:[#allocation2 + $0x58] sm:$0x1]  ;;  %v645_v30 = vrot.slane %v643_v22, 7  ;;  %v1155_v32 = vrot.slane %v1153_v16, 4 }
  0xcc   : > { %v654_v31 = vrot.slane %v652_v24, 7  ;;  %v1537_v35 = vld [vmem:[#allocation2 + $0x64] sm:$0x8]  ;;  %v1162_v36 = vshll.u32 %v1039_v12, 16  ;;  %v1166_v34 = vshrl.u32 %v1039_v12, 16  ;;  %v1172_v37 = vshll.u32 %v1040_v29, 16 }
  0xcd   : > { %v1643_v38 = vshrl.u32 %v1537_v35, 16  ;;  %v648_v39 = vor.u32 %v646_v23, %v645_v30  ;;  %v650_v40 = vrot.slane %v645_v30, 4  ;;  %v1158_v42 = vrot.slane %v1156_v33, 5  ;;  %v1538_v43 = vld [vmem:[#allocation2 + $0x68] sm:$0xf]  ;;  %v10560_v46 = vld [vmem:[%s13141_s1 + $0x120] sm:$0xff] }
  0xce   : > { %v657_v41 = vor.u32 %v655_v25, %v654_v31  ;;  %v1164_v44 = vrot.slane %v1162_v36, 5  ;;  %v1168_v45 = vrot.slane %v1166_v34, 4  ;;  %v1174_v51 = vrot.slane %v1172_v37, 5  ;;  %v1539_v52 = vld [vmem:[#allocation2 + $0x6c] sm:$0xf]  ;;  %5408 = vmatpush.bf16.msrb.mxu0 %v10560_v46  ;;  %v445_v29 = vld [vmem:[%s10967_s16 + $0x30] sm:$0xff]  }
  0xcf   : > { %v649_v48 = vsel %vm11094_vm2, %v9009_v15, %v648_v39  ;;  %v1159_v50 = vor.u32 %v1158_v42, %v1155_v32  ;;  %v443_v53 = vld [vmem:[%s10967_s16 + $0x28] sm:$0xff]   ;;  %v1648_v56 = vshrl.u32 %v1538_v43, 16  ;;  %v1651_v58 = vshll.u32 %v1538_v43, 16  ;;  %v513_v2 = vld [vmem:[#allocation2 + $0x7c] sm:$0x8]  ;;  %478 = vst [vmem:[#allocation2 + $0xb0] sm:$0xff] %v445_v29  }
  0xd0   : > { %v10399_v47 = vld [vmem:[#allocation3 + $0x9c] sm:$0xf]  ;;  %v658_v49 = vsel %vm11094_vm2, %v650_v40, %v657_v41  ;;  %941 = vst [vmem:[#allocation3 + $0x120] sm:$0xf] %v649_v48  ;;  %v1169_v55 = vor.u32 %v1168_v45, %v1164_v44  ;;  %v9024_v61 = vrot.slane %v1643_v38, 11  ;;  %v1657_v59 = vshrl.u32 %v1539_v52, 16 }
  0xd1   : > { %v9137_v54 = vld [vmem:[#allocation3 + $0xbc] sm:$0xf0]  ;;  %942 = vst [vmem:[#allocation3 + $0x144] sm:$0xf] %v658_v49  ;;  %v1160_v60 = vrot.slane %v1159_v50, 4  ;;  %v1650_v0 = vrot.slane %v1648_v56, 7 }
  0xd2   : > { %5072 = vmatmul.bf16.gmra.mxu0 %v9164_v27  ;;  %5151 = vmatmul.bf16.gmra.mxu1 %v9096_v28  ;;  %v9140_v62 = vor.u32 %v10399_v47, %v9137_v54  ;;  %v1170_v63 = vrot.slane %v1169_v55, 4  ;;  %v1660_v1 = vshll.u32 %v1539_v52, 16  ;;  %476 = vst [vmem:[#allocation2 + $0x98] sm:$0xff] %v443_v53   ;;  %v1659_v4 = vrot.slane %v1657_v59, 7  ;;  %v514_v5 = vld [vmem:[#allocation2 + $0x80] sm:$0xf] }
  0xd3   : > { %5240 = vmatmul.bf16.gmra.mxu2 %v9100_v26  ;;  %v1165_v3 = vsel %vm11204_vm5, %v1160_v60, %v1164_v44  ;;  %v515_v6 = vld [vmem:[#allocation2 + $0x84] sm:$0xf]  ;;  %v660_v7 = vshrl.u32 %v513_v2, 16  ;;  %v9135_v8 = vld [vmem:[#allocation3 + $0x98] sm:$0xf]  ;;  %v1653_v13 = vor.u32 %v1651_v58, %v1650_v0  ;;  %v1655_v57 = vrot.slane %v1650_v0, 4 }
  0xd4   : > { %v10403_v10 = vld [vmem:[#allocation3 + $0xb8] sm:$0xf0]  ;;  %v1175_v11 = vsel %vm11204_vm5, %v1170_v63, %v1174_v51  ;;  %1502 = vst [vmem:[#allocation3 + $0xe0] sm:$0xf] %v1165_v3  ;;  %v665_v9 = vshrl.u32 %v514_v5, 16  ;;  %v1662_v15 = vor.u32 %v1660_v1, %v1659_v4  ;;  %v668_v17 = vshll.u32 %v514_v5, 16 }
  0xd5   : > { %v971_v14 = vld [vmem:[#allocation2 + $0x50] sm:$0xf]  ;;  %1503 = vst [vmem:[#allocation3 + $0x104] sm:$0xf] %v1175_v11  ;;  %v9010_v16 = vrot.slane %v660_v7, 11  ;;  %v674_v18 = vshrl.u32 %v515_v6, 16  ;;  %v1654_v21 = vsel %vm11094_vm2, %v9024_v61, %v1653_v13  ;;  %v9136_v33 = vor.u32 %v10403_v10, %v9135_v8 }
  0xd6   : > { %v667_v22 = vrot.slane %v665_v9, 7  ;;  %v677_v23 = vshll.u32 %v515_v6, 16  ;;  %v972_v24 = vld [vmem:[#allocation2 + $0x54] sm:$0xf]  ;;  %1003 = vst [vmem:[#allocation3 + $0xdc] sm:$0xf] %v971_v14  ;;  %v1663_v28 = vsel %vm11094_vm2, %v1655_v57, %v1662_v15 }
  0xd7   : > { %5334 = vmatmul.bf16.gmra.mxu3 %v9140_v62  ;;  %v9199_v25 = vld [vmem:[#allocation3 + $0x120] sm:$0xf]  ;;  %v10398_v26 = vld [vmem:[#allocation3 + $0x94] sm:$0xf]  ;;  %v9129_v27 = vld [vmem:[#allocation3 + $0xb4] sm:$0xf0] }
  0xd8   : > { %1966 = vst [vmem:[#allocation3 + $0xe4] sm:$0xf] %v1654_v21  ;;  %v676_v12 = vrot.slane %v674_v18, 7  ;;  %v10420_v30 = vld [vmem:[#allocation3 + $0x140] sm:$0xf0]  ;;  %v670_v31 = vor.u32 %v668_v17, %v667_v22  ;;  %v672_v32 = vrot.slane %v667_v22, 4  ;;  %v9132_v46 = vor.u32 %v10398_v26, %v9129_v27 }
  0xd9   : > { %1967 = vst [vmem:[#allocation3 + $0x108] sm:$0xf] %v1663_v28  ;;  %v1041_v36 = vld [vmem:[#allocation2 + $0x68] sm:$0xf]  ;;  %v1042_v34 = vld [vmem:[#allocation2 + $0x6c] sm:$0xf]  ;;  %v9200_v45 = vor.u32 %v10420_v30, %v9199_v25 }
  0xda   : > { %v679_v35 = vor.u32 %v677_v23, %v676_v12  ;;  %1004 = vst [vmem:[#allocation3 + $0x100] sm:$0xf] %v972_v24  ;;  %v671_v37 = vsel %vm11094_vm2, %v9010_v16, %v670_v31  ;;  %v1043_v38 = vld [vmem:[#allocation2 + $0x70] sm:$0x1]  ;;  %v1177_v39 = vshrl.u32 %v1041_v36, 16  ;;  %v1180_v40 = vshll.u32 %v1041_v36, 16 }
  0xdb   : > { %v1186_v41 = vshll.u32 %v1042_v34, 16  ;;  %943 = vst [vmem:[#allocation3 + $0x168] sm:$0xf] %v671_v37  ;;  %v1190_v43 = vshrl.u32 %v1042_v34, 16  ;;  %v1196_v44 = vshll.u32 %v1043_v38, 16  ;;  %v10559_v1 = vld [vmem:[%s13141_s1 + $0x118] sm:$0xff] }
  0xdc   : > { %v680_v42 = vsel %vm11094_vm2, %v672_v32, %v679_v35  ;;  %v1179_v47 = vrot.slane %v1177_v39, 4  ;;  %v1182_v48 = vrot.slane %v1180_v40, 5  ;;  %v1540_v54 = vld [vmem:[#allocation2 + $0x7c] sm:$0x8]  ;;  %v1541_v55 = vld [vmem:[#allocation2 + $0x80] sm:$0xf]  ;;  %5409 = vmatpush.bf16.msrb.mxu0 %v10559_v1 }
  0xdd   : > { %944 = vst [vmem:[#allocation3 + $0x18c] sm:$0xf] %v680_v42  ;;  %v1188_v49 = vrot.slane %v1186_v41, 5  ;;  %v1192_v50 = vrot.slane %v1190_v43, 4  ;;  %v1198_v51 = vrot.slane %v1196_v44, 5  ;;  %v1665_v61 = vshrl.u32 %v1540_v54, 16 }
  0xde   : > { %v1183_v53 = vor.u32 %v1182_v48, %v1179_v47  ;;  %v1542_v60 = vld [vmem:[#allocation2 + $0x84] sm:$0xf]  ;;  %v1670_v59 = vshrl.u32 %v1541_v55, 16  ;;  %v1673_v63 = vshll.u32 %v1541_v55, 16  ;;  %v516_v5 = vld [vmem:[#allocation2 + $0x94] sm:$0x8] }
  0xdf   : > { %v10408_v52 = vld [vmem:[#allocation3 + $0xe4] sm:$0xf]  ;;  %v1193_v58 = vor.u32 %v1192_v50, %v1188_v49  ;;  %v1679_v0 = vshrl.u32 %v1542_v60, 16  ;;  %v9025_v3 = vrot.slane %v1665_v61, 11  ;;  %v1682_v10 = vshll.u32 %v1542_v60, 16  ;;  %v447_v34 = vld [vmem:[%s10967_s16 + $0x38] sm:$0xff]  }
  0xe0   : > { %v9173_v56 = vld [vmem:[#allocation3 + $0x104] sm:$0xf0]  ;;  %v1184_v62 = vrot.slane %v1183_v53, 4  ;;  %v1672_v4 = vrot.slane %v1670_v59, 7  ;;  %v682_v14 = vshrl.u32 %v516_v5, 16  ;;  %480 = vst [vmem:[#allocation2 + $0xc8] sm:$0xff] %v447_v34  }
  0xe1   : > { %v1194_v2 = vrot.slane %v1193_v58, 4  ;;  %v9176_v6 = vor.u32 %v10408_v52, %v9173_v56  ;;  %v1681_v8 = vrot.slane %v1679_v0, 7  ;;  %v517_v11 = vld [vmem:[#allocation2 + $0x98] sm:$0xf]  ;;  %v9171_v15 = vld [vmem:[#allocation3 + $0xe0] sm:$0xf] }
  0xe2   : > { %5077 = vmatmul.bf16.gmra.mxu0 %v9200_v45  ;;  %5156 = vmatmul.bf16.gmra.mxu1 %v9132_v46  ;;  %v1189_v7 = vsel %vm11204_vm5, %v1184_v62, %v1188_v49  ;;  %v1675_v57 = vor.u32 %v1673_v63, %v1672_v4  ;;  %v1677_v9 = vrot.slane %v1672_v4, 4  ;;  %v518_v17 = vld [vmem:[#allocation2 + $0x9c] sm:$0xf]  ;;  %v687_v18 = vshrl.u32 %v517_v11, 16  ;;  %v10412_v22 = vld [vmem:[#allocation3 + $0x100] sm:$0xf0] }
  0xe3   : > { %5245 = vmatmul.bf16.gmra.mxu2 %v9136_v33  ;;  %v1199_v13 = vsel %vm11204_vm5, %v1194_v2, %v1198_v51  ;;  %1504 = vst [vmem:[#allocation3 + $0x128] sm:$0xf] %v1189_v7  ;;  %v1684_v16 = vor.u32 %v1682_v10, %v1681_v8  ;;  %v690_v21 = vshll.u32 %v517_v11, 16  ;;  %v696_v24 = vshrl.u32 %v518_v17, 16  ;;  %v973_v26 = vld [vmem:[#allocation2 + $0x68] sm:$0xf] }
  0xe4   : > { %1505 = vst [vmem:[#allocation3 + $0x14c] sm:$0xf] %v1199_v13  ;;  %v1676_v23 = vsel %vm11094_vm2, %v9025_v3, %v1675_v57  ;;  %v699_v25 = vshll.u32 %v518_v17, 16  ;;  %v9011_v28 = vrot.slane %v682_v14, 11  ;;  %v689_v12 = vrot.slane %v687_v18, 7  ;;  %s10704_s11 = sshll.u32 %s10932_s25, 5 }
  0xe5   : > { %v1685_v27 = vsel %vm11094_vm2, %v1677_v9, %v1684_v16  ;;  %1968 = vst [vmem:[#allocation3 + $0x12c] sm:$0xf] %v1676_v23  ;;  %v974_v29 = vld [vmem:[#allocation2 + $0x6c] sm:$0xf]  ;;  %v9235_v30 = vld [vmem:[#allocation3 + $0x168] sm:$0xf]  ;;  %v9172_v41 = vor.u32 %v10412_v22, %v9171_v15  ;;  %s8917_s14 = scalar_lea.hbm %s13146_s6, %s10704_s11 }
  0xe6   : > { %v10429_v31 = vld [vmem:[#allocation3 + $0x188] sm:$0xf0]  ;;  %v10407_v32 = vld [vmem:[#allocation3 + $0xdc] sm:$0xf]  ;;  %v9165_v33 = vld [vmem:[#allocation3 + $0xfc] sm:$0xf0]  ;;  %v692_v37 = vor.u32 %v690_v21, %v689_v12 }
  0xe7   : > { %5339 = vmatmul.bf16.gmra.mxu3 %v9176_v6  ;;  %1969 = vst [vmem:[#allocation3 + $0x150] sm:$0xf] %v1685_v27  ;;  %v698_v35 = vrot.slane %v696_v24, 7  ;;  %v1044_v36 = vld [vmem:[#allocation2 + $0x80] sm:$0xf]  ;;  %v694_v38 = vrot.slane %v689_v12, 4  ;;  %v9236_v53 = vor.u32 %v10429_v31, %v9235_v30  ;;  %v9168_v54 = vor.u32 %v10407_v32, %v9165_v33 }
  0xe8   : > { %1005 = vst [vmem:[#allocation3 + $0x124] sm:$0xf] %v973_v26  ;;  %v1045_v39 = vld [vmem:[#allocation2 + $0x84] sm:$0xf]  ;;  %v1201_v40 = vshrl.u32 %v1044_v36, 16  ;;  %v1204_v44 = vshll.u32 %v1044_v36, 16  ;;  %v693_v46 = vsel %vm11094_vm2, %v9011_v28, %v692_v37 }
  0xe9   : > { %v701_v42 = vor.u32 %v699_v25, %v698_v35  ;;  %1006 = vst [vmem:[#allocation3 + $0x148] sm:$0xf] %v974_v29  ;;  %v1046_v43 = vld [vmem:[#allocation2 + $0x88] sm:$0x1]  ;;  %v1210_v45 = vshll.u32 %v1045_v39, 16  ;;  %v1214_v48 = vshrl.u32 %v1045_v39, 16 }
  0xea   : > { %v1203_v47 = vrot.slane %v1201_v40, 4  ;;  %v1220_v49 = vshll.u32 %v1046_v43, 16  ;;  %945 = vst [vmem:[#allocation3 + $0x1b0] sm:$0xf] %v693_v46  ;;  %v1206_v51 = vrot.slane %v1204_v44, 5  ;;  %vm5978_vm6 = vcmask 1041408  }
  0xeb   : > { %v702_v50 = vsel %vm11094_vm2, %v694_v38, %v701_v42  ;;  %v1212_v52 = vrot.slane %v1210_v45, 5  ;;  %v1216_v55 = vrot.slane %v1214_v48, 4  ;;  %v1543_v58 = vld [vmem:[#allocation2 + $0x94] sm:$0x8]  ;;  %v1544_v59 = vld [vmem:[#allocation2 + $0x98] sm:$0xf] }
  0xec   : > { %946 = vst [vmem:[#allocation3 + $0x1d4] sm:$0xf] %v702_v50  ;;  %v1222_v56 = vrot.slane %v1220_v49, 5  ;;  %v10417_v60 = vld [vmem:[#allocation3 + $0x12c] sm:$0xf]  ;;  %v1207_v61 = vor.u32 %v1206_v51, %v1203_v47  ;;  %v1687_v1 = vshrl.u32 %v1543_v58, 16 }
  0xed   : > { %v1545_v62 = vld [vmem:[#allocation2 + $0x9c] sm:$0xf]  ;;  %v1217_v0 = vor.u32 %v1216_v55, %v1212_v52  ;;  %v1692_v2 = vshrl.u32 %v1544_v59, 16  ;;  %v1695_v3 = vshll.u32 %v1544_v59, 16  ;;  %v519_v9 = vld [vmem:[#allocation2 + $0xac] sm:$0x8] }
  0xee   : > { %v9209_v63 = vld [vmem:[#allocation3 + $0x14c] sm:$0xf0]  ;;  %v1208_v4 = vrot.slane %v1207_v61, 4  ;;  %v1701_v5 = vshrl.u32 %v1545_v62, 16  ;;  %v1704_v6 = vshll.u32 %v1545_v62, 16  ;;  %v9026_v8 = vrot.slane %v1687_v1, 11 }
  0xef   : > { %v1218_v7 = vrot.slane %v1217_v0, 4  ;;  %v1694_v10 = vrot.slane %v1692_v2, 7  ;;  %v9212_v11 = vor.u32 %v10417_v60, %v9209_v63  ;;  %v520_v14 = vld [vmem:[#allocation2 + $0xb0] sm:$0xf]  ;;  %v704_v18 = vshrl.u32 %v519_v9, 16  ;;  %v449_v55 = vld [vmem:[%s10967_s16 + $0x40] sm:$0xff]  }
  0xf0   : > { %v1213_v13 = vsel %vm11204_vm5, %v1208_v4, %v1212_v52  ;;  %v1703_v57 = vrot.slane %v1701_v5, 7  ;;  %v521_v22 = vld [vmem:[#allocation2 + $0xb4] sm:$0xf]  ;;  %v709_v24 = vshrl.u32 %v520_v14, 16  ;;  %v975_v25 = vld [vmem:[#allocation2 + $0x80] sm:$0xf] }
  0xf1   : > { %v1223_v15 = vsel %vm11204_vm5, %v1218_v7, %v1222_v56  ;;  %1506 = vst [vmem:[#allocation3 + $0x170] sm:$0xf] %v1213_v13  ;;  %v1697_v16 = vor.u32 %v1695_v3, %v1694_v10  ;;  %v1699_v17 = vrot.slane %v1694_v10, 4  ;;  %v976_v26 = vld [vmem:[#allocation2 + $0x84] sm:$0xf]  ;;  %v712_v29 = vshll.u32 %v520_v14, 16 }
  0xf2   : > { %5082 = vmatmul.bf16.gmra.mxu0 %v9236_v53  ;;  %5161 = vmatmul.bf16.gmra.mxu1 %v9168_v54  ;;  %1507 = vst [vmem:[#allocation3 + $0x194] sm:$0xf] %v1223_v15  ;;  %v1706_v21 = vor.u32 %v1704_v6, %v1703_v57  ;;  %v9207_v27 = vld [vmem:[#allocation3 + $0x128] sm:$0xf]  ;;  %v10421_v28 = vld [vmem:[#allocation3 + $0x148] sm:$0xf0] }
  0xf3   : > { %5250 = vmatmul.bf16.gmra.mxu2 %v9172_v41  ;;  %v1698_v23 = vsel %vm11094_vm2, %v9026_v8, %v1697_v16  ;;  %v718_v30 = vshrl.u32 %v521_v22, 16  ;;  %v721_v31 = vshll.u32 %v521_v22, 16  ;;  %v9012_v32 = vrot.slane %v704_v18, 11  ;;  %v1047_v35 = vld [vmem:[#allocation2 + $0x98] sm:$0xf]  ;;  %482 = vst [vmem:[#allocation2 + $0xe0] sm:$0xff] %v449_v55  }
  0xf4   : > { %v1707_v12 = vsel %vm11094_vm2, %v1699_v17, %v1706_v21  ;;  %1970 = vst [vmem:[#allocation3 + $0x174] sm:$0xf] %v1698_v23  ;;  %v711_v33 = vrot.slane %v709_v24, 7  ;;  %v9271_v36 = vld [vmem:[#allocation3 + $0x1b0] sm:$0xf]  ;;  %v1225_v40 = vshrl.u32 %v1047_v35, 16  ;;  %v9208_v50 = vor.u32 %v10421_v28, %v9207_v27 }
  0xf5   : > { %1971 = vst [vmem:[#allocation3 + $0x198] sm:$0xf] %v1707_v12  ;;  %v10416_v34 = vld [vmem:[#allocation3 + $0x124] sm:$0xf]  ;;  %v9201_v37 = vld [vmem:[#allocation3 + $0x144] sm:$0xf0] }
  0xf6   : > { %v720_v38 = vrot.slane %v718_v30, 7  ;;  %1007 = vst [vmem:[#allocation3 + $0x16c] sm:$0xf] %v975_v25  ;;  %v1048_v39 = vld [vmem:[#allocation2 + $0x9c] sm:$0xf]  ;;  %v714_v41 = vor.u32 %v712_v29, %v711_v33  ;;  %v716_v42 = vrot.slane %v711_v33, 4  ;;  %v9204_v62 = vor.u32 %v10416_v34, %v9201_v37 }
  0xf7   : > { %5344 = vmatmul.bf16.gmra.mxu3 %v9212_v11  ;;  %1008 = vst [vmem:[#allocation3 + $0x190] sm:$0xf] %v976_v26  ;;  %v1049_v43 = vld [vmem:[#allocation2 + $0xa0] sm:$0x1]  ;;  %v1228_v44 = vshll.u32 %v1047_v35, 16  ;;  %v1227_v47 = vrot.slane %v1225_v40, 4 }
  0xf8   : > { %v10438_v45 = vld [vmem:[#allocation3 + $0x1d0] sm:$0xf0]  ;;  %v723_v46 = vor.u32 %v721_v31, %v720_v38  ;;  %v1234_v48 = vshll.u32 %v1048_v39, 16  ;;  %v1238_v49 = vshrl.u32 %v1048_v39, 16  ;;  %v715_v51 = vsel %vm11094_vm2, %v9012_v32, %v714_v41  ;;  %v1546_v54 = vld [vmem:[#allocation2 + $0xac] sm:$0x8] }
  0xf9   : > { %v1230_v52 = vrot.slane %v1228_v44, 5  ;;  %v1244_v53 = vshll.u32 %v1049_v43, 16  ;;  %947 = vst [vmem:[#allocation3 + $0x1f8] sm:$0xf] %v715_v51  ;;  %v1547_v61 = vld [vmem:[#allocation2 + $0xb0] sm:$0xf]  ;;  %v9272_v59 = vor.u32 %v10438_v45, %v9271_v36 }
  0xfa   : > { %v724_v56 = vsel %vm11094_vm2, %v716_v42, %v723_v46  ;;  %v1236_v58 = vrot.slane %v1234_v48, 5  ;;  %v1240_v60 = vrot.slane %v1238_v49, 4  ;;  %v1709_v0 = vshrl.u32 %v1546_v54, 16  ;;  %v1548_v3 = vld [vmem:[#allocation2 + $0xb4] sm:$0xf]  ;;  %s8906_s25 = scalar_lea.sflag [#allocation6], %s257_s9 }
  0xfb   : > { %948 = vst [vmem:[#allocation3 + $0x21c] sm:$0xf] %v724_v56  ;;  %v1231_v63 = vor.u32 %v1230_v52, %v1227_v47  ;;  %v1246_v2 = vrot.slane %v1244_v53, 5  ;;  %v1714_v4 = vshrl.u32 %v1547_v61, 16  ;;  %v1717_v5 = vshll.u32 %v1547_v61, 16  ;;  %v10558_v18 = vld [vmem:[%s13141_s1 + $0x110] sm:$0xff] }
  0xfc   : > { %v1241_v1 = vor.u32 %v1240_v60, %v1236_v58  ;;  %v10426_v6 = vld [vmem:[#allocation3 + $0x174] sm:$0xf]  ;;  %v1723_v8 = vshrl.u32 %v1548_v3, 16  ;;  %v9245_v10 = vld [vmem:[#allocation3 + $0x194] sm:$0xf0]  ;;  %v9027_v13 = vrot.slane %v1709_v0, 11  ;;  %5410 = vmatpush.bf16.msrb.mxu0 %v10558_v18 }
  0xfd   : > { %v1232_v7 = vrot.slane %v1231_v63, 4  ;;  %v1716_v57 = vrot.slane %v1714_v4, 7  ;;  %v1726_v9 = vshll.u32 %v1548_v3, 16  ;;  %v522_v16 = vld [vmem:[#allocation2 + $0xc4] sm:$0x8]  ;;  %v9248_v26 = vor.u32 %v10426_v6, %v9245_v10  ;;  %s10829_s28 = scalar_lea.hbm %s13146_s6, 64 }
  0xfe   : > { %v1242_v11 = vrot.slane %v1241_v1, 4  ;;  %v1725_v15 = vrot.slane %v1723_v8, 7  ;;  %v523_v17 = vld [vmem:[#allocation2 + $0xc8] sm:$0xf]  ;;  %v524_v24 = vld [vmem:[#allocation2 + $0xcc] sm:$0xf] }
  0xff   : > { %v1237_v14 = vsel %vm11204_vm5, %v1232_v7, %v1236_v58  ;;  %v1719_v22 = vor.u32 %v1717_v5, %v1716_v57  ;;  %v1721_v23 = vrot.slane %v1716_v57, 4  ;;  %v726_v25 = vshrl.u32 %v522_v16, 16  ;;  %v977_v36 = vld [vmem:[#allocation2 + $0x98] sm:$0xf]  ;;  %v9243_v34 = vld [vmem:[#allocation3 + $0x170] sm:$0xf] }
 0x100   : > { %v1247_v21 = vsel %vm11204_vm5, %v1242_v11, %v1246_v2  ;;  %1508 = vst [vmem:[#allocation3 + $0x1b8] sm:$0xf] %v1237_v14  ;;  %v1728_v27 = vor.u32 %v1726_v9, %v1725_v15  ;;  %v731_v28 = vshrl.u32 %v523_v17, 16  ;;  %v734_v12 = vshll.u32 %v523_v17, 16  ;;  %v10430_v37 = vld [vmem:[#allocation3 + $0x190] sm:$0xf0] }
 0x101   : > { %1509 = vst [vmem:[#allocation3 + $0x1dc] sm:$0xf] %v1247_v21  ;;  %v1720_v29 = vsel %vm11094_vm2, %v9027_v13, %v1719_v22  ;;  %v740_v30 = vshrl.u32 %v524_v24, 16  ;;  %v743_v31 = vshll.u32 %v524_v24, 16  ;;  %v9013_v33 = vrot.slane %v726_v25, 11  ;;  %v451_v5 = vld [vmem:[%s10967_s16 + $0x48] sm:$0xff]  }
 0x102   : > { %5087 = vmatmul.bf16.gmra.mxu0 %v9272_v59  ;;  %5166 = vmatmul.bf16.gmra.mxu1 %v9204_v62  ;;  %v1729_v32 = vsel %vm11094_vm2, %v1721_v23, %v1728_v27  ;;  %1972 = vst [vmem:[#allocation3 + $0x1bc] sm:$0xf] %v1720_v29  ;;  %v733_v35 = vrot.slane %v731_v28, 7  ;;  %v978_v39 = vld [vmem:[#allocation2 + $0x9c] sm:$0xf]  ;;  %v9244_v58 = vor.u32 %v10430_v37, %v9243_v34  ;;  %vm6752_vm7 = vcmask 1041409  }
 0x103   : > { %5255 = vmatmul.bf16.gmra.mxu2 %v9208_v50  ;;  %1973 = vst [vmem:[#allocation3 + $0x1e0] sm:$0xf] %v1729_v32  ;;  %v742_v38 = vrot.slane %v740_v30, 7  ;;  %v1050_v42 = vld [vmem:[#allocation2 + $0xb0] sm:$0xf]  ;;  %vm6755_vm8 = vcmask 1042434  }
 0x104   : > { %v736_v40 = vor.u32 %v734_v12, %v733_v35  ;;  %v738_v41 = vrot.slane %v733_v35, 4  ;;  %1009 = vst [vmem:[#allocation3 + $0x1b4] sm:$0xf] %v977_v36  ;;  %v10425_v43 = vld [vmem:[#allocation3 + $0x16c] sm:$0xf]  ;;  %v1249_v50 = vshrl.u32 %v1050_v42, 16 }
 0x105   : > { %v9237_v44 = vld [vmem:[#allocation3 + $0x18c] sm:$0xf0]  ;;  %v745_v45 = vor.u32 %v743_v31, %v742_v38  ;;  %1010 = vst [vmem:[#allocation3 + $0x1d8] sm:$0xf] %v978_v39  ;;  %v1051_v46 = vld [vmem:[#allocation2 + $0xb4] sm:$0xf] }
 0x106   : > { %v1052_v47 = vld [vmem:[#allocation2 + $0xb8] sm:$0x1]  ;;  %v9307_v48 = vld [vmem:[#allocation3 + $0x1f8] sm:$0xf]  ;;  %v737_v49 = vsel %vm11094_vm2, %v9013_v33, %v736_v40  ;;  %v1252_v51 = vshll.u32 %v1050_v42, 16  ;;  %v1258_v52 = vshll.u32 %v1051_v46, 16  ;;  %v9240_v1 = vor.u32 %v10425_v43, %v9237_v44 }
 0x107   : > { %5349 = vmatmul.bf16.gmra.mxu3 %v9248_v26  ;;  %v10447_v53 = vld [vmem:[#allocation3 + $0x218] sm:$0xf0]  ;;  %v746_v54 = vsel %vm11094_vm2, %v738_v41, %v745_v45  ;;  %949 = vst [vmem:[#allocation3 + $0x240] sm:$0xf] %v737_v49  ;;  %v1262_v55 = vshrl.u32 %v1051_v46, 16  ;;  %v1268_v56 = vshll.u32 %v1052_v47, 16 }
 0x108   : > { %950 = vst [vmem:[#allocation3 + $0x264] sm:$0xf] %v746_v54  ;;  %v1251_v60 = vrot.slane %v1249_v50, 4  ;;  %v1254_v61 = vrot.slane %v1252_v51, 5  ;;  %v1260_v59 = vrot.slane %v1258_v52, 5  ;;  %v9308_v0 = vor.u32 %v10447_v53, %v9307_v48  ;;  %v10557_v52 = vld [vmem:[%s13141_s1 + $0x108] sm:$0xff] }
 0x109   : > { %v1264_v62 = vrot.slane %v1262_v55, 4  ;;  %v1549_v63 = vld [vmem:[#allocation2 + $0xc4] sm:$0x8]  ;;  %v1550_v3 = vld [vmem:[#allocation2 + $0xc8] sm:$0xf]  ;;  %v1270_v8 = vrot.slane %v1268_v56, 5  ;;  %5411 = vmatpush.bf16.msrb.mxu0 %v10557_v52 }
 0x10a   : > { %v1255_v2 = vor.u32 %v1254_v61, %v1251_v60  ;;  %v1551_v4 = vld [vmem:[#allocation2 + $0xcc] sm:$0xf]  ;;  %v1731_v10 = vshrl.u32 %v1549_v63, 16  ;;  %v1736_v11 = vshrl.u32 %v1550_v3, 16  ;;  %v525_v13 = vld [vmem:[#allocation2 + $0xdc] sm:$0x8] }
 0x10b   : > { %v10435_v6 = vld [vmem:[#allocation3 + $0x1bc] sm:$0xf]  ;;  %v1265_v7 = vor.u32 %v1264_v62, %v1260_v59  ;;  %v9281_v57 = vld [vmem:[#allocation3 + $0x1dc] sm:$0xf0]  ;;  %v1739_v14 = vshll.u32 %v1550_v3, 16  ;;  %v1745_v15 = vshrl.u32 %v1551_v4, 16 }
 0x10c   : > { %v1256_v9 = vrot.slane %v1255_v2, 4  ;;  %v1748_v16 = vshll.u32 %v1551_v4, 16  ;;  %v9028_v18 = vrot.slane %v1731_v10, 11  ;;  %v1738_v21 = vrot.slane %v1736_v11, 7  ;;  %v526_v22 = vld [vmem:[#allocation2 + $0xe0] sm:$0xf] }
 0x10d   : > { %v1266_v17 = vrot.slane %v1265_v7, 4  ;;  %484 = vst [vmem:[#allocation2 + $0xf8] sm:$0xff] %v451_v5   ;;  %v1747_v24 = vrot.slane %v1745_v15, 7  ;;  %v527_v25 = vld [vmem:[#allocation2 + $0xe4] sm:$0xf]  ;;  %v748_v26 = vshrl.u32 %v525_v13, 16  ;;  %v9284_v30 = vor.u32 %v10435_v6, %v9281_v57 }
 0x10e   : > { %v1261_v23 = vsel %vm11204_vm5, %v1256_v9, %v1260_v59  ;;  %v1741_v28 = vor.u32 %v1739_v14, %v1738_v21  ;;  %v1743_v12 = vrot.slane %v1738_v21, 4  ;;  %v753_v29 = vshrl.u32 %v526_v22, 16  ;;  %v979_v35 = vld [vmem:[#allocation2 + $0xb0] sm:$0xf]  ;;  %v9279_v36 = vld [vmem:[#allocation3 + $0x1b8] sm:$0xf] }
 0x10f   : > { %v1271_v27 = vsel %vm11204_vm5, %v1266_v17, %v1270_v8  ;;  %1510 = vst [vmem:[#allocation3 + $0x200] sm:$0xf] %v1261_v23  ;;  %v1750_v31 = vor.u32 %v1748_v16, %v1747_v24  ;;  %v9014_v32 = vrot.slane %v748_v26, 11  ;;  %v756_v33 = vshll.u32 %v526_v22, 16  ;;  %v10439_v34 = vld [vmem:[#allocation3 + $0x1d8] sm:$0xf0] }
 0x110   : > { %1511 = vst [vmem:[#allocation3 + $0x224] sm:$0xf] %v1271_v27  ;;  %v1742_v37 = vsel %vm11094_vm2, %v9028_v18, %v1741_v28  ;;  %v755_v38 = vrot.slane %v753_v29, 7  ;;  %v762_v39 = vshrl.u32 %v527_v25, 16  ;;  %v765_v40 = vshll.u32 %v527_v25, 16 }
 0x111   : > { %v980_v41 = vld [vmem:[#allocation2 + $0xb4] sm:$0xf]  ;;  %v11357_v42 = vld [vmem:[#allocation3 + $0x1b4] sm:$0xf]  ;;  %v11359_v43 = vld [vmem:[#allocation3 + $0x1d4] sm:$0xf0]  ;;  %v1751_v44 = vsel %vm11094_vm2, %v1743_v12, %v1750_v31  ;;  %v9280_v63 = vor.u32 %v10439_v34, %v9279_v36 }
 0x112   : > { %5092 = vmatmul.bf16.gmra.mxu0 %v9308_v0  ;;  %5171 = vmatmul.bf16.gmra.mxu1 %v9240_v1  ;;  %1974 = vst [vmem:[#allocation3 + $0x204] sm:$0xf] %v1742_v37  ;;  %v1053_v45 = vld [vmem:[#allocation2 + $0xc8] sm:$0xf]  ;;  %v1054_v46 = vld [vmem:[#allocation2 + $0xcc] sm:$0xf]  ;;  %v758_v49 = vor.u32 %v756_v33, %v755_v38  ;;  %v9276_v2 = vor.u32 %v11357_v42, %v11359_v43 }
 0x113   : > { %5260 = vmatmul.bf16.gmra.mxu2 %v9244_v58  ;;  %v9343_v47 = vld [vmem:[#allocation3 + $0x240] sm:$0xf]  ;;  %v10456_v48 = vld [vmem:[#allocation3 + $0x260] sm:$0xf0]  ;;  %1975 = vst [vmem:[#allocation3 + $0x228] sm:$0xf] %v1751_v44 }
 0x114   : > { %v760_v50 = vrot.slane %v755_v38, 4  ;;  %v764_v51 = vrot.slane %v762_v39, 7  ;;  %v1273_v53 = vshrl.u32 %v1053_v45, 16  ;;  %1011 = vst [vmem:[#allocation3 + $0x1fc] sm:$0xf] %v979_v35  ;;  %v1276_v55 = vshll.u32 %v1053_v45, 16 }
 0x115   : > { %v1055_v54 = vld [vmem:[#allocation2 + $0xd0] sm:$0x1]  ;;  %v1282_v56 = vshll.u32 %v1054_v46, 16  ;;  %v759_v58 = vsel %vm11094_vm2, %v9014_v32, %v758_v49  ;;  %1012 = vst [vmem:[#allocation3 + $0x220] sm:$0xf] %v980_v41  ;;  %v1286_v59 = vshrl.u32 %v1054_v46, 16  ;;  %v9344_v7 = vor.u32 %v10456_v48, %v9343_v47 }
 0x116   : > { %v767_v60 = vor.u32 %v765_v40, %v764_v51  ;;  %v1275_v61 = vrot.slane %v1273_v53, 4  ;;  %v1552_v62 = vld [vmem:[#allocation2 + $0xdc] sm:$0x8]  ;;  %951 = vst [vmem:[#allocation3 + $0x288] sm:$0xf] %v759_v58  ;;  %v1278_v0 = vrot.slane %v1276_v55, 5 }
 0x117   : > { %5354 = vmatmul.bf16.gmra.mxu3 %v9284_v30  ;;  %v1284_v1 = vrot.slane %v1282_v56, 5  ;;  %v1288_v4 = vrot.slane %v1286_v59, 4  ;;  %v1292_v5 = vshll.u32 %v1055_v54, 16  ;;  %v1553_v6 = vld [vmem:[#allocation2 + $0xe0] sm:$0xf]  ;;  %v1753_v11 = vshrl.u32 %v1552_v62, 16 }
 0x118   : > { %v768_v3 = vsel %vm11094_vm2, %v760_v50, %v767_v60  ;;  %v1279_v8 = vor.u32 %v1278_v0, %v1275_v61  ;;  %v1554_v10 = vld [vmem:[#allocation2 + $0xe4] sm:$0xf]  ;;  %v1758_v13 = vshrl.u32 %v1553_v6, 16  ;;  %v1761_v14 = vshll.u32 %v1553_v6, 16  ;;  %v528_v26 = vld [vmem:[#allocation2 + $0xf4] sm:$0x8] }
 0x119   : > { %952 = vst [vmem:[#allocation3 + $0x2ac] sm:$0xf] %v768_v3  ;;  %v1289_v57 = vor.u32 %v1288_v4, %v1284_v1  ;;  %v1294_v9 = vrot.slane %v1292_v5, 5  ;;  %v1767_v15 = vshrl.u32 %v1554_v10, 16  ;;  %v9029_v17 = vrot.slane %v1753_v11, 11  ;;  %v453_v48 = vld [vmem:[%s10967_s16 + $0x50] sm:$0xff]  }
 0x11a   : > { %v1280_v16 = vrot.slane %v1279_v8, 4  ;;  %v1760_v18 = vrot.slane %v1758_v13, 7  ;;  %v1770_v21 = vshll.u32 %v1554_v10, 16  ;;  %v10444_v27 = vld [vmem:[#allocation3 + $0x204] sm:$0xf]  ;;  %v770_v31 = vshrl.u32 %v528_v26, 16 }
 0x11b   : > { %v1290_v24 = vrot.slane %v1289_v57, 4  ;;  %v1769_v25 = vrot.slane %v1767_v15, 7  ;;  %v529_v30 = vld [vmem:[#allocation2 + $0xf8] sm:$0xf]  ;;  %v530_v36 = vld [vmem:[#allocation2 + $0xfc] sm:$0xf] }
 0x11c   : > { %v1285_v28 = vsel %vm11204_vm5, %v1280_v16, %v1284_v1  ;;  %v1763_v12 = vor.u32 %v1761_v14, %v1760_v18  ;;  %v1765_v29 = vrot.slane %v1760_v18, 4  ;;  %v9317_v32 = vld [vmem:[#allocation3 + $0x224] sm:$0xf0]  ;;  %v775_v37 = vshrl.u32 %v529_v30, 16  ;;  %v981_v45 = vld [vmem:[#allocation2 + $0xc8] sm:$0xf] }
 0x11d   : > { %v1295_v33 = vsel %vm11204_vm5, %v1290_v24, %v1294_v9  ;;  %1512 = vst [vmem:[#allocation3 + $0x248] sm:$0xf] %v1285_v28  ;;  %v1772_v35 = vor.u32 %v1770_v21, %v1769_v25  ;;  %v778_v38 = vshll.u32 %v529_v30, 16  ;;  %v784_v40 = vshrl.u32 %v530_v36, 16  ;;  %v982_v47 = vld [vmem:[#allocation2 + $0xcc] sm:$0xf] }
 0x11e   : > { %1513 = vst [vmem:[#allocation3 + $0x26c] sm:$0xf] %v1295_v33  ;;  %v1764_v34 = vsel %vm11094_vm2, %v9029_v17, %v1763_v12  ;;  %v787_v41 = vshll.u32 %v530_v36, 16  ;;  %v9320_v42 = vor.u32 %v10444_v27, %v9317_v32  ;;  %v9015_v43 = vrot.slane %v770_v31, 11  ;;  %v1056_v51 = vld [vmem:[#allocation2 + $0xe0] sm:$0xf] }
 0x11f   : > { %v11372_v22 = vpop.f32.mrf.mxu0  ;;  %v11374_v23 = vpop.f32.mrf.mxu1  ;;  %v1773_v39 = vsel %vm11094_vm2, %v1765_v29, %v1772_v35  ;;  %1976 = vst [vmem:[#allocation3 + $0x24c] sm:$0xf] %v1764_v34  ;;  %v777_v44 = vrot.slane %v775_v37, 7  ;;  %v786_v46 = vrot.slane %v784_v40, 7  ;;  %v9315_v54 = vld [vmem:[#allocation3 + $0x200] sm:$0xf] }
 0x120   : > { %1977 = vst [vmem:[#allocation3 + $0x270] sm:$0xf] %v1773_v39  ;;  %v10448_v55 = vld [vmem:[#allocation3 + $0x220] sm:$0xf0]  ;;  %v1057_v58 = vld [vmem:[#allocation2 + $0xe4] sm:$0xf] }
 0x121   : > { %1013 = vst [vmem:[#allocation3 + $0x244] sm:$0xf] %v981_v45  ;;  %v780_v49 = vor.u32 %v778_v38, %v777_v44  ;;  %v782_v50 = vrot.slane %v777_v44, 4  ;;  %v789_v56 = vor.u32 %v787_v41, %v786_v46  ;;  %v1058_v60 = vld [vmem:[#allocation2 + $0xe8] sm:$0x1]  ;;  %v1297_v61 = vshrl.u32 %v1056_v51, 16 }
 0x122   : > { %5097 = vmatmul.bf16.gmra.mxu0 %v9344_v7  ;;  %5176 = vmatmul.bf16.gmra.mxu1 %v9276_v2  ;;  %1014 = vst [vmem:[#allocation3 + $0x268] sm:$0xf] %v982_v47  ;;  %v1300_v59 = vshll.u32 %v1056_v51, 16  ;;  %v10443_v62 = vld [vmem:[#allocation3 + $0x1fc] sm:$0xf]  ;;  %v1306_v0 = vshll.u32 %v1057_v58, 16  ;;  %v9316_v14 = vor.u32 %v10448_v55, %v9315_v54 }
 0x123   : > { %5265 = vmatmul.bf16.gmra.mxu2 %v9280_v63  ;;  %v781_v63 = vsel %vm11094_vm2, %v9015_v43, %v780_v49  ;;  %v1310_v1 = vshrl.u32 %v1057_v58, 16  ;;  %v1316_v2 = vshll.u32 %v1058_v60, 16  ;;  %486 = vst [vmem:[#allocation2 + $0x110] sm:$0xff] %v453_v48   ;;  %v9309_v3 = vld [vmem:[#allocation3 + $0x21c] sm:$0xf0]  ;;  %v790_v4 = vsel %vm11094_vm2, %v782_v50, %v789_v56  ;;  %v455_v9 = vld [vmem:[%s10967_s16 + $0x58] sm:$0xff]  }
 0x124   : > { %953 = vst [vmem:[#allocation3 + $0x2d0] sm:$0xf] %v781_v63  ;;  %v1299_v5 = vrot.slane %v1297_v61, 4  ;;  %v1302_v6 = vrot.slane %v1300_v59, 5  ;;  %v9379_v7 = vld [vmem:[#allocation3 + $0x288] sm:$0xf]  ;;  %v9312_v15 = vor.u32 %v10443_v62, %v9309_v3 }
 0x125   : > { %954 = vst [vmem:[#allocation3 + $0x2f4] sm:$0xf] %v790_v4  ;;  %v1308_v8 = vrot.slane %v1306_v0, 5  ;;  %v1312_v10 = vrot.slane %v1310_v1, 4  ;;  %v10465_v11 = vld [vmem:[#allocation3 + $0x2a8] sm:$0xf0] }
 0x126   : > { %v1303_v13 = vor.u32 %v1302_v6, %v1299_v5  ;;  %v1555_v57 = vld [vmem:[#allocation2 + $0xf4] sm:$0x8]  ;;  %v1318_v17 = vrot.slane %v1316_v2, 5  ;;  %v1556_v18 = vld [vmem:[#allocation2 + $0xf8] sm:$0xf]  ;;  %v9380_v28 = vor.u32 %v10465_v11, %v9379_v7  ;;  %488 = vst [vmem:[#allocation2 + $0x128] sm:$0xff] %v455_v9  }
 0x127   : > { %v11385_v52 = vpop.f32.mrf.mxu0  ;;  %v11387_v53 = vpop.f32.mrf.mxu1  ;;  %5359 = vmatmul.bf16.gmra.mxu3 %v9320_v42  ;;  %v1313_v16 = vor.u32 %v1312_v10, %v1308_v8  ;;  %v1557_v21 = vld [vmem:[#allocation2 + $0xfc] sm:$0xf]  ;;  %v1775_v25 = vshrl.u32 %v1555_v57, 16  ;;  %v1780_v26 = vshrl.u32 %v1556_v18, 16  ;;  %v1783_v27 = vshll.u32 %v1556_v18, 16 }
 0x128   : > { %v1304_v24 = vrot.slane %v1303_v13, 4  ;;  %v1789_v30 = vshrl.u32 %v1557_v21, 16  ;;  %v1792_v31 = vshll.u32 %v1557_v21, 16  ;;  %v531_v32 = vld [vmem:[#allocation2 + $0x10c] sm:$0x8]  ;;  %vm6758_vm9 = vcmask 1043459  }
 0x129   : > { %v11394_v12 = vpop.f32.mrf.mxu2  ;;  %v1314_v29 = vrot.slane %v1313_v16, 4  ;;  %v10453_v36 = vld [vmem:[#allocation3 + $0x24c] sm:$0xf]  ;;  %v9030_v37 = vrot.slane %v1775_v25, 11  ;;  %v1782_v38 = vrot.slane %v1780_v26, 7  ;;  %v792_v43 = vshrl.u32 %v531_v32, 16 }
 0x12a   : > { %v1309_v34 = vsel %vm11204_vm5, %v1304_v24, %v1308_v8  ;;  %v532_v39 = vld [vmem:[#allocation2 + $0x110] sm:$0xf]  ;;  %v1791_v41 = vrot.slane %v1789_v30, 7  ;;  %v533_v42 = vld [vmem:[#allocation2 + $0x114] sm:$0xf]  ;;  %vm6761_vm10 = vcmask 1044484  }
 0x12b   : > { %v1319_v40 = vsel %vm11204_vm5, %v1314_v29, %v1318_v17  ;;  %1514 = vst [vmem:[#allocation3 + $0x290] sm:$0xf] %v1309_v34  ;;  %v9353_v44 = vld [vmem:[#allocation3 + $0x26c] sm:$0xf0]  ;;  %v1785_v45 = vor.u32 %v1783_v27, %v1782_v38  ;;  %v1787_v46 = vrot.slane %v1782_v38, 4  ;;  %v797_v47 = vshrl.u32 %v532_v39, 16 }
 0x12c   : > { %1515 = vst [vmem:[#allocation3 + $0x2b4] sm:$0xf] %v1319_v40  ;;  %v1794_v48 = vor.u32 %v1792_v31, %v1791_v41  ;;  %v9016_v49 = vrot.slane %v792_v43, 11  ;;  %v800_v50 = vshll.u32 %v532_v39, 16  ;;  %v983_v51 = vld [vmem:[#allocation2 + $0xe0] sm:$0xf]  ;;  %v9356_v61 = vor.u32 %v10453_v36, %v9353_v44 }
 0x12d   : > { %v984_v54 = vld [vmem:[#allocation2 + $0xe4] sm:$0xf]  ;;  %v1786_v55 = vsel %vm11094_vm2, %v9030_v37, %v1785_v45  ;;  %v799_v56 = vrot.slane %v797_v47, 7  ;;  %v806_v58 = vshrl.u32 %v533_v42, 16  ;;  %v809_v60 = vshll.u32 %v533_v42, 16 }
 0x12e   : > { %1015 = vst [vmem:[#allocation3 + $0x28c] sm:$0xf] %v983_v51  ;;  %v1795_v59 = vsel %vm11094_vm2, %v1787_v46, %v1794_v48  ;;  %v1059_v62 = vld [vmem:[#allocation2 + $0xf8] sm:$0xf]  ;;  %v1060_v63 = vld [vmem:[#allocation2 + $0xfc] sm:$0xf] }
 0x12f   : > { %v11396_v33 = vpop.f32.mrf.mxu0  ;;  %v11398_v35 = vpop.f32.mrf.mxu1  ;;  %1978 = vst [vmem:[#allocation3 + $0x294] sm:$0xf] %v1786_v55  ;;  %v802_v0 = vor.u32 %v800_v50, %v799_v56  ;;  %v804_v1 = vrot.slane %v799_v56, 4  ;;  %v808_v2 = vrot.slane %v806_v58, 7  ;;  %v1061_v3 = vld [vmem:[#allocation2 + $0x100] sm:$0x1] }
 0x130   : > { %1979 = vst [vmem:[#allocation3 + $0x2b8] sm:$0xf] %v1795_v59  ;;  %v1321_v4 = vshrl.u32 %v1059_v62, 16  ;;  %v1324_v5 = vshll.u32 %v1059_v62, 16  ;;  %v1330_v6 = vshll.u32 %v1060_v63, 16  ;;  %v1334_v7 = vshrl.u32 %v1060_v63, 16 }
 0x131   : > { %1016 = vst [vmem:[#allocation3 + $0x2b0] sm:$0xf] %v984_v54  ;;  %v9351_v11 = vld [vmem:[#allocation3 + $0x248] sm:$0xf]  ;;  %v10457_v13 = vld [vmem:[#allocation3 + $0x268] sm:$0xf0]  ;;  %v803_v57 = vsel %vm11094_vm2, %v9016_v49, %v802_v0  ;;  %v811_v9 = vor.u32 %v809_v60, %v808_v2  ;;  %v11417_v18 = vpop.f32.mrf.mxu2 }
 0x132   : > { %5102 = vmatmul.bf16.gmra.mxu0 %v9380_v28  ;;  %5181 = vmatmul.bf16.gmra.mxu1 %v9312_v15  ;;  %955 = vst [vmem:[#allocation3 + $0x318] sm:$0xf] %v803_v57  ;;  %v10556_v15 = vld [vmem:[%s13141_s1 + $0x100] sm:$0xff]  ;;  %v1323_v16 = vrot.slane %v1321_v4, 4  ;;  %v1558_v17 = vld [vmem:[#allocation2 + $0x10c] sm:$0x8]  ;;  %v9352_v30 = vor.u32 %v10457_v13, %v9351_v11 }
 0x133   : > { %5270 = vmatmul.bf16.gmra.mxu2 %v9316_v14  ;;  %v1340_v14 = vshll.u32 %v1061_v3, 16  ;;  %v10452_v21 = vld [vmem:[#allocation3 + $0x244] sm:$0xf]  ;;  %v9345_v24 = vld [vmem:[#allocation3 + $0x264] sm:$0xf0]  ;;  %v812_v25 = vsel %vm11094_vm2, %v804_v1, %v811_v9  ;;  %v1326_v26 = vrot.slane %v1324_v5, 5  ;;  %5412 = vmatpush.bf16.msrb.mxu0 %v10556_v15 }
 0x134   : > { %v1332_v27 = vrot.slane %v1330_v6, 5  ;;  %v1559_v28 = vld [vmem:[#allocation2 + $0x110] sm:$0xf]  ;;  %v1560_v29 = vld [vmem:[#allocation2 + $0x114] sm:$0xf]  ;;  %v1336_v32 = vrot.slane %v1334_v7, 4  ;;  %v9348_v50 = vor.u32 %v10452_v21, %v9345_v24 }
 0x135   : > { %v9415_v31 = vld [vmem:[#allocation3 + $0x2d0] sm:$0xf]  ;;  %956 = vst [vmem:[#allocation3 + $0x33c] sm:$0xf] %v812_v25  ;;  %v10474_v36 = vld [vmem:[#allocation3 + $0x2f0] sm:$0xf0]  ;;  %v1327_v37 = vor.u32 %v1326_v26, %v1323_v16 }
 0x136   : > { %v1797_v38 = vshrl.u32 %v1558_v17, 16  ;;  %v1802_v39 = vshrl.u32 %v1559_v28, 16  ;;  %v1805_v40 = vshll.u32 %v1559_v28, 16  ;;  %v1337_v41 = vor.u32 %v1336_v32, %v1332_v27  ;;  %v534_v45 = vld [vmem:[#allocation2 + $0x124] sm:$0x8] }
 0x137   : > { %v11408_v8 = vpop.f32.mrf.mxu0  ;;  %v11410_v10 = vpop.f32.mrf.mxu1  ;;  %5364 = vmatmul.bf16.gmra.mxu3 %v9356_v61  ;;  %v1342_v42 = vrot.slane %v1340_v14, 5  ;;  %v1811_v43 = vshrl.u32 %v1560_v29, 16  ;;  %v1814_v44 = vshll.u32 %v1560_v29, 16  ;;  %v1328_v46 = vrot.slane %v1327_v37, 4  ;;  %v11423_v51 = vld [vmem:[#allocation3 + $0x294] sm:$0xf] }
 0x138   : > { %v9031_v47 = vrot.slane %v1797_v38, 11  ;;  %v1804_v48 = vrot.slane %v1802_v39, 7  ;;  %v9416_v49 = vor.u32 %v10474_v36, %v9415_v31  ;;  %v1338_v54 = vrot.slane %v1337_v41, 4  ;;  %v535_v56 = vld [vmem:[#allocation2 + $0x128] sm:$0xf] }
 0x139   : > { %v1813_v55 = vrot.slane %v1811_v43, 7  ;;  %v9389_v61 = vld [vmem:[#allocation3 + $0x2b4] sm:$0xf0]  ;;  %v1333_v59 = vsel %vm11204_vm5, %v1328_v46, %v1332_v27  ;;  %v536_v0 = vld [vmem:[#allocation2 + $0x12c] sm:$0xf]  ;;  %v814_v1 = vshrl.u32 %v534_v45, 16 }
 0x13a   : > { %v11421_v34 = vpop.f32.mrf.mxu3  ;;  %v1807_v62 = vor.u32 %v1805_v40, %v1804_v48  ;;  %v1809_v63 = vrot.slane %v1804_v48, 4  ;;  %v1343_v3 = vsel %vm11204_vm5, %v1338_v54, %v1342_v42  ;;  %1516 = vst [vmem:[#allocation3 + $0x2d8] sm:$0xf] %v1333_v59  ;;  %v819_v5 = vshrl.u32 %v535_v56, 16  ;;  %v985_v6 = vld [vmem:[#allocation2 + $0xf8] sm:$0xf] }
 0x13b   : > { %v1816_v4 = vor.u32 %v1814_v44, %v1813_v55  ;;  %1517 = vst [vmem:[#allocation3 + $0x2fc] sm:$0xf] %v1343_v3  ;;  %v9017_v11 = vrot.slane %v814_v1, 11  ;;  %v822_v13 = vshll.u32 %v535_v56, 16  ;;  %v986_v57 = vld [vmem:[#allocation2 + $0xfc] sm:$0xf]  ;;  %v9392_v21 = vor.u32 %v11423_v51, %v9389_v61 }
 0x13c   : > { %v1808_v7 = vsel %vm11094_vm2, %v9031_v47, %v1807_v62  ;;  %v821_v9 = vrot.slane %v819_v5, 7  ;;  %v828_v14 = vshrl.u32 %v536_v0, 16  ;;  %v1062_v15 = vld [vmem:[#allocation2 + $0x110] sm:$0xf]  ;;  %v831_v24 = vshll.u32 %v536_v0, 16 }
 0x13d   : > { %1980 = vst [vmem:[#allocation3 + $0x2dc] sm:$0xf] %v1808_v7  ;;  %v1063_v25 = vld [vmem:[#allocation2 + $0x114] sm:$0xf]  ;;  %v1345_v26 = vshrl.u32 %v1062_v15, 16  ;;  %v1348_v36 = vshll.u32 %v1062_v15, 16 }
 0x13e   : > { %v824_v28 = vor.u32 %v822_v13, %v821_v9  ;;  %v826_v29 = vrot.slane %v821_v9, 4  ;;  %1017 = vst [vmem:[#allocation3 + $0x2d4] sm:$0xf] %v985_v6  ;;  %v1064_v31 = vld [vmem:[#allocation2 + $0x118] sm:$0x1]  ;;  %v1354_v37 = vshll.u32 %v1063_v25, 16 }
 0x13f   : > { %v11425_v58 = vpop.f32.mrf.mxu0  ;;  %v5147_v60 = vpop.f32.mrf.mxu1  ;;  %1018 = vst [vmem:[#allocation3 + $0x2f8] sm:$0xf] %v986_v57  ;;  %v1347_v32 = vrot.slane %v1345_v26, 4  ;;  %v1358_v38 = vshrl.u32 %v1063_v25, 16  ;;  %v9387_v40 = vld [vmem:[#allocation3 + $0x290] sm:$0xf] }
 0x140   : > { %v5148_v2 = vadd.f32 %v5147_v60, %v11372_v22  ;;  %v1817_v22 = vsel %vm11094_vm2, %v1809_v63, %v1816_v4  ;;  %v10466_v41 = vld [vmem:[#allocation3 + $0x2b0] sm:$0xf0]  ;;  %v825_v42 = vsel %vm11094_vm2, %v9017_v11, %v824_v28  ;;  %v1364_v44 = vshll.u32 %v1064_v31, 16  ;;  %v10461_v54 = vld [vmem:[#allocation3 + $0x28c] sm:$0xf] }
 0x141   : > { %1981 = vst [vmem:[#allocation3 + $0x300] sm:$0xf] %v1817_v22  ;;  %v1561_v45 = vld [vmem:[#allocation2 + $0x124] sm:$0x8]  ;;  %v1350_v48 = vrot.slane %v1348_v36, 5  ;;  %v10579_v60 = vld [vmem:[%s13141_s1 + $0x1b8] sm:$0xff]  ;;  %v9388_v5 = vor.u32 %v10466_v41, %v9387_v40 }
 0x142   : > { %5107 = vmatmul.bf16.gmra.mxu0 %v9416_v49  ;;  %5186 = vmatmul.bf16.gmra.mxu1 %v9348_v50  ;;  %v11436_v17 = vpop.f32.mrf.mxu3  ;;  %957 = vst [vmem:[#allocation3 + $0x360] sm:$0xf] %v825_v42  ;;  %v1356_v49 = vrot.slane %v1354_v37, 5  ;;  %v1562_v50 = vld [vmem:[#allocation2 + $0x128] sm:$0xf]  ;;  %v1360_v61 = vrot.slane %v1358_v38, 4 }
 0x143   : > { %5275 = vmatmul.bf16.gmra.mxu2 %v9352_v30  ;;  %v830_v30 = vrot.slane %v828_v14, 7  ;;  %v9381_v55 = vld [vmem:[#allocation3 + $0x2ac] sm:$0xf0]  ;;  %v1351_v59 = vor.u32 %v1350_v48, %v1347_v32  ;;  %v1366_v62 = vrot.slane %v1364_v44, 5  ;;  %v1563_v63 = vld [vmem:[#allocation2 + $0x12c] sm:$0xf] }
 0x144   : > { %v10483_v0 = vld [vmem:[#allocation3 + $0x338] sm:$0xf0]  ;;  %5583 = vmatpush.bf16.msra.mxu2 %v10579_v60  ;;  %v1361_v1 = vor.u32 %v1360_v61, %v1356_v49  ;;  %v1827_v3 = vshll.u32 %v1562_v50, 16  ;;  %v1833_v11 = vshrl.u32 %v1563_v63, 16  ;;  %v1836_v13 = vshll.u32 %v1563_v63, 16  ;;  %v10587_v22 = vld [vmem:[%s13141_s1 + $0x1f8] sm:$0xff] }
 0x145   : > { %v833_v43 = vor.u32 %v831_v24, %v830_v30  ;;  %v1352_v7 = vrot.slane %v1351_v59, 4  ;;  %v987_v26 = vld [vmem:[#allocation2 + $0x110] sm:$0xf]  ;;  %v10471_v28 = vld [vmem:[#allocation3 + $0x2dc] sm:$0xf]  ;;  %5672 = vmatpush.bf16.msrb.mxu3 %v10587_v22  ;;  %v10571_v30 = vld [vmem:[%s13141_s1 + $0x178] sm:$0xff] }
 0x146   : > { %v5236_v16 = vpop.f32.mrf.mxu2  ;;  %v1362_v9 = vrot.slane %v1361_v1, 4  ;;  %v1835_v25 = vrot.slane %v1833_v11, 7  ;;  %v1992_v41 = vld [vmem:[#allocation2 + $0x20] sm:$0xf]  ;;  %5494 = vmatpush.bf16.msra.mxu1 %v10571_v30  ;;  %1019 = vst [vmem:[#allocation3 + $0x31c] sm:$0xf] %v987_v26 }
 0x147   : > { %v5237_v27 = vadd.f32 %v5236_v16, %v5148_v2  ;;  %v11444_v46 = vpop.f32.mrf.mxu0  ;;  %v5149_v47 = vpop.f32.mrf.mxu1  ;;  %5369 = vmatmul.bf16.gmra.mxu3 %v9392_v21  ;;  %v834_v56 = vsel %vm11094_vm2, %v826_v29, %v833_v43  ;;  %v1824_v2 = vshrl.u32 %v1562_v50, 16  ;;  %v9384_v21 = vor.u32 %v10461_v54, %v9381_v55  ;;  %v1993_v44 = vld [vmem:[#allocation2 + $0x24] sm:$0xf]  ;;  %v1066_v48 = vld [vmem:[#allocation2 + $0x12c] sm:$0xf] }
 0x148   : > { %v5150_v51 = vadd.f32 %v5149_v47, %v11385_v52  ;;  %958 = vst [vmem:[#allocation3 + $0x384] sm:$0xf] %v834_v56  ;;  %v1819_v52 = vshrl.u32 %v1561_v45, 16  ;;  %v1357_v24 = vsel %vm11204_vm5, %v1352_v7, %v1356_v49  ;;  %v9425_v29 = vld [vmem:[#allocation3 + $0x2fc] sm:$0xf0]  ;;  %v1367_v31 = vsel %vm11204_vm5, %v1362_v9, %v1366_v62  ;;  %v10595_v62 = vld [vmem:[%s13141_s1 + $0x238] sm:$0xff] }
 0x149   : > { %v11440_v39 = vadd.f32 %v11421_v34, %v5237_v27  ;;  %v9451_v34 = vld [vmem:[#allocation3 + $0x318] sm:$0xf]  ;;  %v1826_v15 = vrot.slane %v1824_v2, 7  ;;  %1518 = vst [vmem:[#allocation3 + $0x320] sm:$0xf] %v1357_v24  ;;  %v1838_v40 = vor.u32 %v1836_v13, %v1835_v25  ;;  %v9428_v56 = vor.u32 %v10471_v28, %v9425_v29  ;;  %5761 = vmatpush.bf16.msra.mxu0 %v10595_v62 }
 0x14a   : > { %v5330_v6 = vpop.f32.mrf.mxu3  ;;  %v9032_v14 = vrot.slane %v1819_v52, 11  ;;  %v9452_v16 = vor.u32 %v10483_v0, %v9451_v34  ;;  %1519 = vst [vmem:[#allocation3 + $0x344] sm:$0xf] %v1367_v31  ;;  %v1065_v45 = vld [vmem:[#allocation2 + $0x128] sm:$0xf]  ;;  %v1382_v34 = vshrl.u32 %v1066_v48, 16 }
 0x14b   : > { %v1829_v32 = vor.u32 %v1827_v3, %v1826_v15  ;;  %v1831_v36 = vrot.slane %v1826_v15, 4  ;;  %v1067_v49 = vld [vmem:[#allocation2 + $0x130] sm:$0x1]  ;;  %v1369_v50 = vshrl.u32 %v1065_v45, 16  ;;  %v1564_v61 = vld [vmem:[#allocation2 + $0x13c] sm:$0x8] }
 0x14c   : > { %v1388_v60 = vshll.u32 %v1067_v49, 16  ;;  %2024 = vst [vmem:[#allocation3 + $0x10] sm:$0xf] %v1992_v41  ;;  %v1384_v52 = vrot.slane %v1382_v34, 4  ;;  %v9423_v13 = vld [vmem:[#allocation3 + $0x2d8] sm:$0xf] }
 0x14d   : > { %v1830_v43 = vsel %vm11094_vm2, %v9032_v14, %v1829_v32  ;;  %v1839_v47 = vsel %vm11094_vm2, %v1831_v36, %v1838_v40  ;;  %v1371_v63 = vrot.slane %v1369_v50, 4  ;;  %2025 = vst [vmem:[#allocation3 + $0x34] sm:$0xf] %v1993_v44  ;;  %v1841_v9 = vshrl.u32 %v1564_v61, 16  ;;  %v10470_v25 = vld [vmem:[#allocation3 + $0x2d4] sm:$0xf] }
 0x14e   : > { %v5238_v4 = vpop.f32.mrf.mxu2  ;;  %1982 = vst [vmem:[#allocation3 + $0x324] sm:$0xf] %v1830_v43  ;;  %v1390_v22 = vrot.slane %v1388_v60, 5  ;;  %v9417_v26 = vld [vmem:[#allocation3 + $0x2f4] sm:$0xf0]  ;;  %vm6764_vm11 = vcmask 1045509  }
 0x14f   : > { %v5239_v57 = vadd.f32 %v5238_v4, %v5150_v51  ;;  %v11465_v37 = vpop.f32.mrf.mxu0  ;;  %v5152_v38 = vpop.f32.mrf.mxu1  ;;  %1983 = vst [vmem:[#allocation3 + $0x348] sm:$0xf] %v1839_v47  ;;  %v1372_v51 = vshll.u32 %v1065_v45, 16  ;;  %v1565_v4 = vld [vmem:[#allocation2 + $0x140] sm:$0xf]  ;;  %v9033_v29 = vrot.slane %v1841_v9, 11 }
 0x150   : > { %v5153_v42 = vadd.f32 %v5152_v38, %v11396_v33  ;;  %v1378_v33 = vshll.u32 %v1066_v48, 16  ;;  %v1846_v14 = vshrl.u32 %v1565_v4, 16  ;;  %v1849_v24 = vshll.u32 %v1565_v4, 16  ;;  %v9487_v32 = vld [vmem:[#allocation3 + $0x360] sm:$0xf] }
 0x151   : > { %v11458_v27 = vadd.f32 %v11436_v17, %v5239_v57  ;;  %v988_v17 = vld [vmem:[#allocation2 + $0x114] sm:$0xf]  ;;  %v1374_v0 = vrot.slane %v1372_v51, 5  ;;  %v989_v40 = vld [vmem:[#allocation2 + $0x128] sm:$0xf]  ;;  %vm6767_vm12 = vcmask 1046534  }
 0x152   : > { %5112 = vmatmul.bf16.gmra.mxu0 %v9452_v16  ;;  %5191 = vmatmul.bf16.gmra.mxu1 %v9384_v21  ;;  %v5332_v55 = vpop.f32.mrf.mxu3  ;;  %1020 = vst [vmem:[#allocation3 + $0x340] sm:$0xf] %v988_v17  ;;  %v1380_v1 = vrot.slane %v1378_v33, 5  ;;  %v10475_v16 = vld [vmem:[#allocation3 + $0x2f8] sm:$0xf0]  ;;  %v1848_v30 = vrot.slane %v1846_v14, 7 }
 0x153   : > { %5280 = vmatmul.bf16.gmra.mxu2 %v9388_v5  ;;  %v1375_v3 = vor.u32 %v1374_v0, %v1371_v63  ;;  %v1566_v5 = vld [vmem:[#allocation2 + $0x144] sm:$0xf]  ;;  %v10492_v41 = vld [vmem:[#allocation3 + $0x380] sm:$0xf0]  ;;  %v9424_v47 = vor.u32 %v10475_v16, %v9423_v13  ;;  %v990_v49 = vld [vmem:[#allocation2 + $0x12c] sm:$0xf] }
 0x154   : > { %v1385_v57 = vor.u32 %v1384_v52, %v1380_v1  ;;  %v1858_v31 = vshll.u32 %v1566_v5, 16  ;;  %v1851_v43 = vor.u32 %v1849_v24, %v1848_v30  ;;  %v1853_v44 = vrot.slane %v1848_v30, 4  ;;  %1021 = vst [vmem:[#allocation3 + $0x364] sm:$0xf] %v989_v40  ;;  %v1994_v51 = vld [vmem:[#allocation2 + $0x38] sm:$0xf] }
 0x155   : > { %v1376_v21 = vrot.slane %v1375_v3, 4  ;;  %v1995_v33 = vld [vmem:[#allocation2 + $0x3c] sm:$0xf]  ;;  %v1068_v61 = vld [vmem:[#allocation2 + $0x140] sm:$0xf]  ;;  %vm6770_vm13 = vcmask 1047559  }
 0x156   : > { %v5241_v54 = vpop.f32.mrf.mxu2  ;;  %v1386_v28 = vrot.slane %v1385_v57, 4  ;;  %v1852_v50 = vsel %vm11094_vm2, %v9033_v29, %v1851_v43  ;;  %v10480_v0 = vld [vmem:[#allocation3 + $0x324] sm:$0xf]  ;;  %v1393_v52 = vshrl.u32 %v1068_v61, 16  ;;  %v1396_v3 = vshll.u32 %v1068_v61, 16 }
 0x157   : > { %v5242_v59 = vadd.f32 %v5241_v54, %v5153_v42  ;;  %v11477_v7 = vpop.f32.mrf.mxu0  ;;  %v5154_v11 = vpop.f32.mrf.mxu1  ;;  %5374 = vmatmul.bf16.gmra.mxu3 %v9428_v56  ;;  %v1381_v36 = vsel %vm11204_vm5, %v1376_v21, %v1380_v1  ;;  %v9488_v54 = vor.u32 %v10492_v41, %v9487_v32  ;;  %v9420_v56 = vor.u32 %v10470_v25, %v9417_v26  ;;  %v9461_v1 = vld [vmem:[#allocation3 + $0x344] sm:$0xf0]  ;;  %v1567_v26 = vld [vmem:[#allocation2 + $0x154] sm:$0x8]  ;;  %v10386_v61 = vld [vmem:[#allocation3 + $0x30] sm:$0xf0] }
 0x158   : > { %v5155_v15 = vadd.f32 %v5154_v11, %v11408_v8  ;;  %v1391_v42 = vsel %vm11204_vm5, %v1386_v28, %v1390_v22  ;;  %1520 = vst [vmem:[#allocation3 + $0x368] sm:$0xf] %v1381_v36  ;;  %v1070_v11 = vld [vmem:[#allocation2 + $0x148] sm:$0x1]  ;;  %v1568_v13 = vld [vmem:[#allocation2 + $0x158] sm:$0xf]  ;;  %v9464_v29 = vor.u32 %v10480_v0, %v9461_v1 }
 0x159   : > { %v11475_v2 = vadd.f32 %v5330_v6, %v5242_v59  ;;  %v1855_v6 = vshrl.u32 %v1566_v5, 16  ;;  %1521 = vst [vmem:[#allocation3 + $0x38c] sm:$0xf] %v1391_v42  ;;  %v1069_v59 = vld [vmem:[#allocation2 + $0x144] sm:$0xf]  ;;  %v1395_v57 = vrot.slane %v1393_v52, 4 }
 0x15a   : > { %v5335_v8 = vpop.f32.mrf.mxu3  ;;  %1984 = vst [vmem:[#allocation3 + $0x36c] sm:$0xf] %v1852_v50  ;;  %v1402_v4 = vshll.u32 %v1069_v59, 16  ;;  %v1406_v5 = vshrl.u32 %v1069_v59, 16  ;;  %v1398_v22 = vrot.slane %v1396_v3, 5  ;;  %v1868_v16 = vshrl.u32 %v1568_v13, 16 }
 0x15b   : > { %v1857_v38 = vrot.slane %v1855_v6, 7  ;;  %1022 = vst [vmem:[#allocation3 + $0x388] sm:$0xf] %v990_v49  ;;  %v1871_v40 = vshll.u32 %v1568_v13, 16  ;;  %v991_v1 = vld [vmem:[#allocation2 + $0x140] sm:$0xf] }
 0x15c   : > { %2026 = vst [vmem:[#allocation3 + $0x58] sm:$0xf] %v1994_v51  ;;  %v1404_v9 = vrot.slane %v1402_v4, 5  ;;  %v1408_v14 = vrot.slane %v1406_v5, 4  ;;  %v1399_v6 = vor.u32 %v1398_v22, %v1395_v57  ;;  %v1996_v5 = vld [vmem:[#allocation2 + $0x50] sm:$0xf] }
 0x15d   : > { %v1860_v48 = vor.u32 %v1858_v31, %v1857_v38  ;;  %2027 = vst [vmem:[#allocation3 + $0x7c] sm:$0xf] %v1995_v33  ;;  %v1863_v31 = vshrl.u32 %v1567_v26, 16  ;;  %v1870_v38 = vrot.slane %v1868_v16, 7  ;;  %v10586_v57 = vld [vmem:[%s13141_s1 + $0x1f0] sm:$0xff] }
 0x15e   : > { %v5243_v17 = vpop.f32.mrf.mxu2  ;;  %v1409_v25 = vor.u32 %v1408_v14, %v1404_v9  ;;  %v1400_v32 = vrot.slane %v1399_v6, 4  ;;  %1023 = vst [vmem:[#allocation3 + $0x3ac] sm:$0xf] %v991_v1  ;;  %v1071_v22 = vld [vmem:[#allocation2 + $0x158] sm:$0xf]  ;;  %5673 = vmatpush.bf16.msrb.mxu3 %v10586_v57  ;;  %v10570_v26 = vld [vmem:[%s13141_s1 + $0x170] sm:$0xff] }
 0x15f   : > { %v5244_v45 = vadd.f32 %v5243_v17, %v5155_v15  ;;  %v1861_v60 = vsel %vm11094_vm2, %v1853_v44, %v1860_v48  ;;  %v11490_v62 = vpop.f32.mrf.mxu0  ;;  %v5157_v63 = vpop.f32.mrf.mxu1  ;;  %v1412_v15 = vshll.u32 %v1070_v11, 16  ;;  %v9034_v41 = vrot.slane %v1863_v31, 11  ;;  %2028 = vst [vmem:[#allocation3 + $0xa0] sm:$0xf] %v1996_v5  ;;  %5495 = vmatpush.bf16.msra.mxu1 %v10570_v26  ;;  %v994_v26 = vld [vmem:[#allocation2 + $0x15c] sm:$0xf] }
 0x160   : > { %1985 = vst [vmem:[#allocation3 + $0x390] sm:$0xf] %v1861_v60  ;;  %v1410_v36 = vrot.slane %v1409_v25, 4  ;;  %v1405_v48 = vsel %vm11204_vm5, %v1400_v32, %v1404_v9  ;;  %v1873_v50 = vor.u32 %v1871_v40, %v1870_v38  ;;  %v9071_v60 = vld [vmem:[#allocation3 + $0x10] sm:$0xf]  ;;  %v1417_v16 = vshrl.u32 %v1071_v22, 16 }
 0x161   : > { %v11486_v34 = vadd.f32 %v5332_v55, %v5244_v45  ;;  %v5158_v55 = vadd.f32 %v5157_v63, %v11425_v58  ;;  %v1569_v58 = vld [vmem:[#allocation2 + $0x15c] sm:$0xf]  ;;  %v1414_v30 = vrot.slane %v1412_v15, 5  ;;  %v9459_v45 = vld [vmem:[#allocation3 + $0x320] sm:$0xf]  ;;  %v1875_v63 = vrot.slane %v1870_v38, 4 }
 0x162   : > { %5117 = vmatmul.bf16.gmra.mxu0 %v9488_v54  ;;  %5196 = vmatmul.bf16.gmra.mxu1 %v9420_v56  ;;  %v5337_v24 = vpop.f32.mrf.mxu3  ;;  %v1877_v42 = vshrl.u32 %v1569_v58, 16  ;;  %v1880_v51 = vshll.u32 %v1569_v58, 16  ;;  %v9453_v54 = vld [vmem:[#allocation3 + $0x33c] sm:$0xf0]  ;;  %1522 = vst [vmem:[#allocation3 + $0x3b0] sm:$0xf] %v1405_v48  ;;  %v1874_v59 = vsel %vm11094_vm2, %v9034_v41, %v1873_v50  ;;  %v9072_v25 = vor.u32 %v10386_v61, %v9071_v60 }
 0x163   : > { %5285 = vmatmul.bf16.gmra.mxu2 %v9424_v47  ;;  %v10484_v47 = vld [vmem:[#allocation3 + $0x340] sm:$0xf0]  ;;  %v1415_v49 = vsel %vm11204_vm5, %v1410_v36, %v1414_v30  ;;  %1986 = vst [vmem:[#allocation3 + $0x3b4] sm:$0xf] %v1874_v59  ;;  %v1072_v15 = vld [vmem:[#allocation2 + $0x15c] sm:$0xf] }
 0x164   : > { %v10578_v56 = vld [vmem:[%s13141_s1 + $0x1b0] sm:$0xff]  ;;  %1523 = vst [vmem:[#allocation3 + $0x3d4] sm:$0xf] %v1415_v49  ;;  %v1879_v0 = vrot.slane %v1877_v42, 7  ;;  %v9460_v13 = vor.u32 %v10484_v47, %v9459_v45  ;;  %v1426_v58 = vshll.u32 %v1072_v15, 16  ;;  %v1419_v31 = vrot.slane %v1417_v16, 4 }
 0x165   : > { %5584 = vmatpush.bf16.msra.mxu2 %v10578_v56  ;;  %v1073_v38 = vld [vmem:[#allocation2 + $0x160] sm:$0x1]  ;;  %v1571_v47 = vld [vmem:[#allocation2 + $0x170] sm:$0xf]  ;;  %v1570_v49 = vld [vmem:[#allocation2 + $0x16c] sm:$0x8] }
 0x166   : > { %v5246_v21 = vpop.f32.mrf.mxu2  ;;  %v1882_v4 = vor.u32 %v1880_v51, %v1879_v0  ;;  %v1428_v40 = vrot.slane %v1426_v58, 5  ;;  %v1436_v45 = vshll.u32 %v1073_v38, 16  ;;  %v1572_v50 = vld [vmem:[#allocation2 + $0x174] sm:$0xf]  ;;  %v1890_v56 = vshrl.u32 %v1571_v47, 16 }
 0x167   : > { %v5247_v28 = vadd.f32 %v5246_v21, %v5158_v55  ;;  %v11495_v43 = vpop.f32.mrf.mxu0  ;;  %v5159_v44 = vpop.f32.mrf.mxu1  ;;  %5379 = vmatmul.bf16.gmra.mxu3 %v9464_v29  ;;  %v1997_v55 = vld [vmem:[#allocation2 + $0x54] sm:$0xf]  ;;  %v1420_v21 = vshll.u32 %v1071_v22, 16  ;;  %v9497_v42 = vld [vmem:[#allocation3 + $0x38c] sm:$0xf0]  ;;  %v1893_v0 = vshll.u32 %v1571_v47, 16 }
 0x168   : > { %v5160_v33 = vadd.f32 %v5159_v44, %v11444_v46  ;;  %v992_v46 = vld [vmem:[#allocation2 + $0x144] sm:$0xf]  ;;  %v1883_v14 = vsel %vm11094_vm2, %v1875_v63, %v1882_v4  ;;  %2029 = vst [vmem:[#allocation3 + $0xc4] sm:$0xf] %v1997_v55  ;;  %v10594_v59 = vld [vmem:[%s13141_s1 + $0x230] sm:$0xff]  ;;  %v1899_v4 = vshrl.u32 %v1572_v50, 16 }
 0x169   : > { %v11493_v17 = vadd.f32 %v5335_v8, %v5247_v28  ;;  %v10479_v8 = vld [vmem:[#allocation3 + $0x31c] sm:$0xf]  ;;  %1024 = vst [vmem:[#allocation3 + $0x3d0] sm:$0xf] %v992_v46  ;;  %v1430_v28 = vshrl.u32 %v1072_v15, 16  ;;  %v1422_v32 = vrot.slane %v1420_v21, 5  ;;  %5762 = vmatpush.bf16.msra.mxu0 %v10594_v59 }
 0x16a   : > { %v5340_v3 = vpop.f32.mrf.mxu3  ;;  %v9456_v9 = vor.u32 %v10479_v8, %v9453_v54  ;;  %1987 = vst [vmem:[#allocation3 + $0x3d8] sm:$0xf] %v1883_v14  ;;  %v1438_v54 = vrot.slane %v1436_v45, 5  ;;  %v9495_v22 = vld [vmem:[#allocation3 + $0x368] sm:$0xf]  ;;  %v1901_v16 = vrot.slane %v1899_v4, 7 }
 0x16b   : > { %v1432_v41 = vrot.slane %v1430_v28, 4  ;;  %v1423_v44 = vor.u32 %v1422_v32, %v1419_v31  ;;  %v9489_v58 = vld [vmem:[#allocation3 + $0x384] sm:$0xf0]  ;;  %v9107_v28 = vld [vmem:[#allocation3 + $0x58] sm:$0xf] }
 0x16c   : > { %v10395_v32 = vld [vmem:[#allocation3 + $0x78] sm:$0xf0]  ;;  %1026 = vst [vmem:[#allocation3 + $0x418] sm:$0xf] %v994_v26  ;;  %v1074_v45 = vld [vmem:[#allocation2 + $0x170] sm:$0xf] }
 0x16d   : > { %v1433_v48 = vor.u32 %v1432_v41, %v1428_v40  ;;  %v1424_v8 = vrot.slane %v1423_v44, 4  ;;  %v463_v41 = vld [vmem:[%s10967_s16 + $0x78] sm:$0xff]   ;;  %v1075_v47 = vld [vmem:[#allocation2 + $0x174] sm:$0xf]  ;;  %s8920_s16 = sshll.u32 %s8917_s14, 4  ;;  %s8921_s16 = int_to_ptr.hbm [resolvable:$true] %s8920_s16 }
 0x16e   : > { %v5248_v52 = vpop.f32.mrf.mxu2  ;;  %496 = vst [vmem:[#allocation2 + $0x188] sm:$0xff] %v463_v41   ;;  %s10823_s15 = sshra.s32 %s8921_s16, 4  ;;  %s10824_s15 = int_to_ptr.hbm [resolvable:$true] %s10823_s15 }
 0x16f   : > { %v5249_v11 = vadd.f32 %v5248_v52, %v5160_v33  ;;  %v11517_v29 = vpop.f32.mrf.mxu0  ;;  %v5162_v30 = vpop.f32.mrf.mxu1  ;;  %v1434_v63 = vrot.slane %v1433_v48, 4  ;;  %v1429_v1 = vsel %vm11204_vm5, %v1424_v8, %v1428_v40  ;;  %v1892_v52 = vrot.slane %v1890_v56, 7  ;;  %v1999_v40 = vld [vmem:[#allocation2 + $0x6c] sm:$0xf]  ;;  %s10825_s17 = scalar_lea.hbm %s10824_s15, 32  ;;  %p10830_p1 = scmp.lt.s32.totalorder %s10824_s15, %s13146_s6 }
 0x170   : > { %v5163_v36 = vadd.f32 %v5162_v30, %v11465_v37  ;;  %v1885_v37 = vshrl.u32 %v1570_v49, 16  ;;  %1524 = vst [vmem:[#allocation3 + $0x3f8] sm:$0xf] %v1429_v1  ;;  %v1441_v49 = vshrl.u32 %v1074_v45, 16  ;;  %v9108_v8 = vor.u32 %v10395_v32, %v9107_v28  ;;  %p10826_p12 = scmp.ne.s32.totalorder %s10824_s15, %s10825_s17  ;;  %p10831_p2 = scmp.lt.s32.totalorder %s10829_s28, %s10825_s17 }
 0x171   : > { %v11512_v6 = vadd.f32 %v5337_v24, %v5249_v11  ;;  %v10489_v24 = vld [vmem:[#allocation3 + $0x36c] sm:$0xf]  ;;  %v1439_v55 = vsel %vm11204_vm5, %v1434_v63, %v1438_v54  ;;  %v1902_v11 = vshll.u32 %v1572_v50, 16  ;;  %v1895_v14 = vor.u32 %v1893_v0, %v1892_v52  ;;  %2031 = vst [vmem:[#allocation3 + $0x10c] sm:$0xf] %v1999_v40 }
 0x172   : > { %5201 = vmatmul.bf16.gmra.mxu1 %v9456_v9  ;;  %5413 = vmatmul.bf16.vlgmr.msrb.gmra.mxu0 %v9072_v25  ;;  %v5342_v33 = vpop.f32.mrf.mxu3  ;;  %v9500_v61 = vor.u32 %v10489_v24, %v9497_v42  ;;  %v9035_v46 = vrot.slane %v1885_v37, 11  ;;  %v10493_v9 = vld [vmem:[#allocation3 + $0x388] sm:$0xf0]  ;;  %1525 = vst [vmem:[#allocation3 + $0x41c] sm:$0xf] %v1439_v55  ;;  %v1897_v15 = vrot.slane %v1892_v52, 4  ;;  %p10827_p13 = pnand %p10826_p12, %p10949_p5  ;;  %p10832_p3 = por %p10831_p2, %p10830_p1 }
 0x173   : > { %5290 = vmatmul.bf16.gmra.mxu2 %v9460_v13  ;;  %v993_v25 = vld [vmem:[#allocation2 + $0x158] sm:$0xf]  ;;  %v1904_v31 = vor.u32 %v1902_v11, %v1901_v16  ;;  %v9496_v44 = vor.u32 %v10493_v9, %v9495_v22  ;;  %v1444_v50 = vshll.u32 %v1074_v45, 16  ;;  %v1450_v54 = vshll.u32 %v1075_v47, 16  ;;  %v10498_v52 = vld [vmem:[#allocation3 + $0x3b4] sm:$0xf] }
 0x174   : > { %v1896_v30 = vsel %vm11094_vm2, %v9035_v46, %v1895_v14  ;;  %1025 = vst [vmem:[#allocation3 + $0x3f4] sm:$0xf] %v993_v25  ;;  %v1454_v37 = vshrl.u32 %v1075_v47, 16  ;;  %v1076_v0 = vld [vmem:[#allocation2 + $0x178] sm:$0x1]  ;;  %p10828_p0 = pneg %p10827_p13 }
 0x175   : > { %1988 = vst [vmem:[#allocation3 + $0x3fc] sm:$0xf] %v1896_v30  ;;  %v1446_v59 = vrot.slane %v1444_v50, 5  ;;  %v1452_v1 = vrot.slane %v1450_v54, 5  ;;  %v9533_v4 = vld [vmem:[#allocation3 + $0x3d4] sm:$0xf0] }
 0x176   : > { %v5251_v51 = vpop.f32.mrf.mxu2  ;;  %v1456_v46 = vrot.slane %v1454_v37, 4  ;;  %v1460_v55 = vshll.u32 %v1076_v0, 16  ;;  %v1574_v28 = vld [vmem:[#allocation2 + $0x188] sm:$0xf]  ;;  %v1575_v30 = vld [vmem:[#allocation2 + $0x18c] sm:$0xf]  ;;  %p10833_p4 = pnand %p10832_p3, %p10828_p0 }
 0x177   : > { %v5252_v60 = vadd.f32 %v5251_v51, %v5163_v36  ;;  %v11529_v13 = vpop.f32.mrf.mxu0  ;;  %v5164_v57 = vpop.f32.mrf.mxu1  ;;  %5384 = vmatmul.bf16.gmra.mxu3 %v9500_v61  ;;  %v1998_v36 = vld [vmem:[#allocation2 + $0x68] sm:$0xf]  ;;  %v1443_v61 = vrot.slane %v1441_v49, 4  ;;  %v1912_v40 = vshrl.u32 %v1574_v28, 16  ;;  %v1915_v41 = vshll.u32 %v1574_v28, 16 }
 0x178   : > { %v5165_v21 = vadd.f32 %v5164_v57, %v11477_v7  ;;  %v1905_v7 = vsel %vm11094_vm2, %v1897_v15, %v1904_v31  ;;  %2030 = vst [vmem:[#allocation3 + $0xe8] sm:$0xf] %v1998_v36  ;;  %v1457_v11 = vor.u32 %v1456_v46, %v1452_v1  ;;  %v1573_v57 = vld [vmem:[#allocation2 + $0x184] sm:$0x8]  ;;  %v1462_v15 = vrot.slane %v1460_v55, 5  ;;  %v10585_v54 = vld [vmem:[%s13141_s1 + $0x1e8] sm:$0xff] }
 0x179   : > { %v11525_v5 = vadd.f32 %v5340_v3, %v5252_v60  ;;  %v10488_v3 = vld [vmem:[#allocation3 + $0x364] sm:$0xf]  ;;  %1989 = vst [vmem:[#allocation3 + $0x420] sm:$0xf] %v1905_v7  ;;  %v1907_v25 = vshrl.u32 %v1573_v57, 16  ;;  %v10577_v7 = vld [vmem:[%s13141_s1 + $0x1a8] sm:$0xff]  ;;  %5674 = vmatpush.bf16.msrb.mxu3 %v10585_v54 }
 0x17a   : > { %v5345_v38 = vpop.f32.mrf.mxu3  ;;  %v9492_v48 = vor.u32 %v10488_v3, %v9489_v58  ;;  %v1458_v3 = vrot.slane %v1457_v11, 4  ;;  %v9531_v36 = vld [vmem:[#allocation3 + $0x3b0] sm:$0xf]  ;;  %v995_v45 = vld [vmem:[#allocation2 + $0x170] sm:$0xf]  ;;  %5585 = vmatpush.bf16.msra.mxu2 %v10577_v7  ;;  %v10583_v7 = vld [vmem:[%s13141_s1 + $0x1d8] sm:$0xff] }
 0x17b   : > { %v996_v47 = vld [vmem:[#allocation2 + $0x174] sm:$0xf]  ;;  %v9525_v49 = vld [vmem:[#allocation3 + $0x3cc] sm:$0xf0]  ;;  %v9143_v50 = vld [vmem:[#allocation3 + $0xa0] sm:$0xf] }
 0x17c   : > { %v1463_v58 = vsel %vm11204_vm5, %v1458_v3, %v1462_v15  ;;  %v9036_v37 = vrot.slane %v1907_v25, 11  ;;  %1027 = vst [vmem:[#allocation3 + $0x43c] sm:$0xf] %v995_v45  ;;  %v10584_v57 = vld [vmem:[%s13141_s1 + $0x1e0] sm:$0xff]  ;;  %v2554_v28 = vld [vmem:[#allocation2 + $0x38] sm:$0xf] }
 0x17d   : > { %1527 = vst [vmem:[#allocation3 + $0x464] sm:$0xf] %v1463_v58  ;;  %v10568_v3 = vld [vmem:[%s13141_s1 + $0x160] sm:$0xff]  ;;  %5675 = vmatpush.bf16.msrb.mxu3 %v10584_v57  ;;  %v10575_v58 = vld [vmem:[%s13141_s1 + $0x198] sm:$0xff] }
 0x17e   : > { %v5253_v24 = vpop.f32.mrf.mxu2  ;;  %1028 = vst [vmem:[#allocation3 + $0x460] sm:$0xf] %v996_v47 }
 0x17f   : > { %v5254_v42 = vadd.f32 %v5253_v24, %v5165_v21  ;;  %v11539_v56 = vpop.f32.mrf.mxu0  ;;  %v5167_v60 = vpop.f32.mrf.mxu1  ;;  %v9536_v21 = vor.u32 %v10498_v52, %v9533_v4  ;;  %v10502_v24 = vld [vmem:[#allocation3 + $0x3d0] sm:$0xf0] }
 0x180   : > { %v5168_v63 = vadd.f32 %v5167_v60, %v11490_v62  ;;  %v1914_v60 = vrot.slane %v1912_v40, 7  ;;  %v9532_v11 = vor.u32 %v10502_v24, %v9531_v36  ;;  %v2555_v36 = vld [vmem:[#allocation2 + $0x3c] sm:$0xf]  ;;  %v9569_v24 = vld [vmem:[#allocation3 + $0x41c] sm:$0xf0] }
 0x181   : > { %v11537_v51 = vadd.f32 %v5342_v33, %v5254_v42  ;;  %v1447_v33 = vor.u32 %v1446_v59, %v1443_v61  ;;  %v2000_v59 = vld [vmem:[#allocation2 + $0x80] sm:$0xf]  ;;  %5676 = vmatpush.bf16.msrb.mxu3 %v10583_v7  ;;  %v9179_v7 = vld [vmem:[#allocation3 + $0xe8] sm:$0xf] }
 0x182   : > { %5206 = vmatmul.bf16.gmra.mxu1 %v9492_v48  ;;  %5418 = vmatmul.bf16.gmra.mxu0 %v9108_v8  ;;  %v5347_v9 = vpop.f32.mrf.mxu3  ;;  %v10497_v48 = vld [vmem:[#allocation3 + $0x3ac] sm:$0xf]  ;;  %v10404_v8 = vld [vmem:[#allocation3 + $0xc0] sm:$0xf0]  ;;  %v1917_v46 = vor.u32 %v1915_v41, %v1914_v60  ;;  %v1919_v52 = vrot.slane %v1914_v60, 4  ;;  %v2607_v41 = vshrl.u32 %v2554_v28, 16 }
 0x183   : > { %5295 = vmatmul.bf16.gmra.mxu2 %v9496_v44  ;;  %v1448_v14 = vrot.slane %v1447_v33, 4  ;;  %v1924_v44 = vshll.u32 %v1575_v30, 16  ;;  %v2001_v33 = vld [vmem:[#allocation2 + $0x84] sm:$0xf]  ;;  %2032 = vst [vmem:[#allocation3 + $0x130] sm:$0xf] %v2000_v59 }
 0x184   : > { %2033 = vst [vmem:[#allocation3 + $0x154] sm:$0xf] %v2001_v33  ;;  %v10582_v59 = vld [vmem:[%s13141_s1 + $0x1d0] sm:$0xff]  ;;  %v2058_v33 = vld [vmem:[#allocation2 + $0x28] sm:$0x1] }
 0x185   : > { %v1453_v62 = vsel %vm11204_vm5, %v1448_v14, %v1452_v1  ;;  %v10576_v1 = vld [vmem:[%s13141_s1 + $0x1a0] sm:$0xff]  ;;  %5677 = vmatpush.bf16.msrb.mxu3 %v10582_v59 }
 0x186   : > { %v5256_v22 = vpop.f32.mrf.mxu2  ;;  %1526 = vst [vmem:[#allocation3 + $0x440] sm:$0xf] %v1453_v62  ;;  %5586 = vmatpush.bf16.msra.mxu2 %v10576_v1 }
 0x187   : > { %v5257_v16 = vadd.f32 %v5256_v22, %v5168_v63  ;;  %v11548_v31 = vpop.f32.mrf.mxu0  ;;  %v5169_v32 = vpop.f32.mrf.mxu1  ;;  %5389 = vmatmul.bf16.gmra.mxu3 %v9536_v21  ;;  %v1918_v22 = vsel %vm11094_vm2, %v9036_v37, %v1917_v46  ;;  %v9144_v21 = vor.u32 %v10404_v8, %v9143_v50  ;;  %v2609_v50 = vrot.slane %v2607_v41, 7  ;;  %v10593_v37 = vld [vmem:[%s13141_s1 + $0x228] sm:$0xff] }
 0x188   : > { %v5170_v42 = vadd.f32 %v5169_v32, %v11495_v43  ;;  %v10569_v43 = vld [vmem:[%s13141_s1 + $0x168] sm:$0xff]  ;;  %1990 = vst [vmem:[#allocation3 + $0x444] sm:$0xf] %v1918_v22  ;;  %v2553_v32 = vld [vmem:[#allocation2 + $0x34] sm:$0x8]  ;;  %5763 = vmatpush.bf16.msra.mxu0 %v10593_v37 }
 0x189   : > { %v11544_v26 = vadd.f32 %v5345_v38, %v5257_v16  ;;  %v1921_v38 = vshrl.u32 %v1575_v30, 16  ;;  %5496 = vmatpush.bf16.msra.mxu1 %v10569_v43  ;;  %v9528_v16 = vor.u32 %v10497_v48, %v9525_v49  ;;  %v10507_v30 = vld [vmem:[#allocation3 + $0x3fc] sm:$0xf]  ;;  %v2602_v40 = vshrl.u32 %v2553_v32, 16  ;;  %v10574_v48 = vld [vmem:[%s13141_s1 + $0x190] sm:$0xff] }
 0x18a   : > { %v5350_v0 = vpop.f32.mrf.mxu3  ;;  %5587 = vmatpush.bf16.msra.mxu2 %v10575_v58  ;;  %v9572_v54 = vor.u32 %v10507_v30, %v9569_v24  ;;  %v2057_v43 = vld [vmem:[#allocation2 + $0x24] sm:$0xf]  ;;  %v2614_v1 = vrot.slane %v2609_v50, 4  ;;  %v9561_v30 = vld [vmem:[#allocation3 + $0x414] sm:$0xf0] }
 0x18b   : > { %v1923_v61 = vrot.slane %v1921_v38, 7  ;;  %v2610_v38 = vshll.u32 %v2554_v28, 16  ;;  %v9037_v49 = vrot.slane %v2602_v40, 11  ;;  %v2114_v58 = vshll.u32 %v2057_v43, 16  ;;  %v2003_v24 = vld [vmem:[#allocation2 + $0x9c] sm:$0xf] }
 0x18c   : > { %v10581_v40 = vld [vmem:[%s13141_s1 + $0x1c8] sm:$0xff]  ;;  %2035 = vst [vmem:[#allocation3 + $0x19c] sm:$0xf] %v2003_v24 }
 0x18d   : > { %v1926_v4 = vor.u32 %v1924_v44, %v1923_v61  ;;  %5497 = vmatpush.bf16.msra.mxu1 %v10568_v3  ;;  %v2619_v44 = vshll.u32 %v2555_v36, 16  ;;  %v2056_v61 = vld [vmem:[#allocation2 + $0x20] sm:$0xf]  ;;  %v3017_v3 = vld [vmem:[#allocation2 + $0x38] sm:$0xf]  ;;  %5678 = vmatpush.bf16.msrb.mxu3 %v10581_v40 }
 0x18e   : > { %v5258_v63 = vpop.f32.mrf.mxu2  ;;  %5588 = vmatpush.bf16.msra.mxu2 %v10574_v48  ;;  %3049 = vst [vmem:[#allocation3 + $0x1c] sm:$0xf] %v3017_v3  ;;  %v10413_v48 = vld [vmem:[#allocation3 + $0x108] sm:$0xf0]  ;;  %v2059_v3 = vld [vmem:[#allocation2 + $0x38] sm:$0xf] }
 0x18f   : > { %v5259_v55 = vadd.f32 %v5258_v63, %v5170_v42  ;;  %v1927_v14 = vsel %vm11094_vm2, %v1919_v52, %v1926_v4  ;;  %v11575_v62 = vpop.f32.mrf.mxu0  ;;  %v5172_v25 = vpop.f32.mrf.mxu1  ;;  %v2616_v42 = vshrl.u32 %v2555_v36, 16  ;;  %v2612_v63 = vor.u32 %v2610_v38, %v2609_v50  ;;  %v10566_v52 = vld [vmem:[%s13141_s1 + $0x150] sm:$0xff]  ;;  %v2002_v36 = vld [vmem:[#allocation2 + $0x98] sm:$0xf]  ;;  %v10572_v50 = vld [vmem:[%s13141_s1 + $0x180] sm:$0xff] }
 0x190   : > { %1991 = vst [vmem:[#allocation3 + $0x468] sm:$0xf] %v1927_v14  ;;  %v9567_v14 = vld [vmem:[#allocation3 + $0x3f8] sm:$0xf] }
 0x191   : > { %v11570_v15 = vadd.f32 %v5347_v9, %v5259_v55  ;;  %v5173_v9 = vadd.f32 %v5172_v25, %v11517_v29  ;;  %v10567_v29 = vld [vmem:[%s13141_s1 + $0x158] sm:$0xff]  ;;  %v2618_v60 = vrot.slane %v2616_v42, 7  ;;  %v2105_v55 = vshrl.u32 %v2056_v61, 16  ;;  %2034 = vst [vmem:[#allocation3 + $0x178] sm:$0xf] %v2002_v36 }
 0x192   : > { %5211 = vmatmul.bf16.gmra.mxu1 %v9528_v16  ;;  %5423 = vmatmul.bf16.gmra.mxu0 %v9144_v21  ;;  %v11587_v47 = vpop.f32.mrf.mxu3  ;;  %v10511_v16 = vld [vmem:[#allocation3 + $0x418] sm:$0xf0]  ;;  %v2613_v21 = vsel %vm11094_vm2, %v9037_v49, %v2612_v63  ;;  %v3018_v25 = vld [vmem:[#allocation2 + $0x3c] sm:$0xf]  ;;  %v2118_v42 = vshrl.u32 %v2057_v43, 16  ;;  %v10580_v43 = vld [vmem:[%s13141_s1 + $0x1c0] sm:$0xff] }
 0x193   : > { %5300 = vmatmul.bf16.gmra.mxu2 %v9532_v11  ;;  %5498 = vmatpush.bf16.msra.mxu1 %v10567_v29  ;;  %v2621_v4 = vor.u32 %v2619_v44, %v2618_v60  ;;  %v2108_v11 = vshll.u32 %v2056_v61, 16  ;;  %2985 = vst [vmem:[#allocation3 + $0x18] sm:$0xf] %v2613_v21  ;;  %v2107_v41 = vrot.slane %v2105_v55, 4  ;;  %v2116_v29 = vrot.slane %v2114_v58, 5 }
 0x194   : > { %v2124_v44 = vshll.u32 %v2058_v33, 16  ;;  %3050 = vst [vmem:[#allocation3 + $0x40] sm:$0xf] %v3018_v25  ;;  %v9568_v37 = vor.u32 %v10511_v16, %v9567_v14  ;;  %v2120_v60 = vrot.slane %v2118_v42, 4  ;;  %v2557_v55 = vld [vmem:[#allocation2 + $0x50] sm:$0xf]  ;;  %5679 = vmatpush.bf16.msrb.mxu3 %v10580_v43 }
 0x195   : > { %v2622_v32 = vsel %vm11094_vm2, %v2614_v1, %v2621_v4  ;;  %v2110_v38 = vrot.slane %v2108_v11, 5  ;;  %v9180_v1 = vor.u32 %v10413_v48, %v9179_v7  ;;  %v2558_v11 = vld [vmem:[#allocation2 + $0x54] sm:$0xf]  ;;  %v2629_v21 = vshrl.u32 %v2557_v55, 16 }
 0x196   : > { %v5261_v45 = vpop.f32.mrf.mxu2  ;;  %2986 = vst [vmem:[#allocation3 + $0x3c] sm:$0xf] %v2622_v32  ;;  %v2121_v4 = vor.u32 %v2120_v60, %v2116_v29  ;;  %v2126_v33 = vrot.slane %v2124_v44, 5  ;;  %v10516_v16 = vld [vmem:[#allocation3 + $0x444] sm:$0xf]  ;;  %v2632_v36 = vshll.u32 %v2557_v55, 16 }
 0x197   : > { %v5262_v8 = vadd.f32 %v5261_v45, %v5173_v9  ;;  %v11603_v57 = vpop.f32.mrf.mxu0  ;;  %v5174_v22 = vpop.f32.mrf.mxu1  ;;  %5394 = vmatmul.bf16.gmra.mxu3 %v9572_v54  ;;  %v10506_v9 = vld [vmem:[#allocation3 + $0x3f4] sm:$0xf]  ;;  %5499 = vmatpush.bf16.msra.mxu1 %v10566_v52  ;;  %v9605_v58 = vld [vmem:[#allocation3 + $0x464] sm:$0xf0]  ;;  %v2631_v32 = vrot.slane %v2629_v21, 7 }
 0x198   : > { %v5175_v28 = vadd.f32 %v5174_v22, %v11529_v13  ;;  %v10565_v13 = vld [vmem:[%s13141_s1 + $0x148] sm:$0xff]  ;;  %v9564_v61 = vor.u32 %v10506_v9, %v9561_v30  ;;  %v10564_v52 = vld [vmem:[%s13141_s1 + $0x140] sm:$0xff]  ;;  %v2129_v9 = vshrl.u32 %v2059_v3, 16  ;;  %v10520_v55 = vld [vmem:[#allocation3 + $0x460] sm:$0xf0] }
 0x199   : > { %v11598_v46 = vadd.f32 %v5350_v0, %v5262_v8  ;;  %v10573_v0 = vld [vmem:[%s13141_s1 + $0x188] sm:$0xff]  ;;  %v2111_v8 = vor.u32 %v2110_v38, %v2107_v41  ;;  %v2641_v41 = vshll.u32 %v2558_v11, 16  ;;  %v2636_v42 = vrot.slane %v2631_v32, 4 }
 0x19a   : > { %5589 = vmatpush.bf16.msra.mxu2 %v10573_v0  ;;  %v5355_v49 = vpop.f32.mrf.mxu3  ;;  %v2556_v30 = vld [vmem:[#allocation2 + $0x4c] sm:$0x8]  ;;  %v2131_v44 = vrot.slane %v2129_v9, 4 }
 0x19b   : > { %5500 = vmatpush.bf16.msra.mxu1 %v10565_v13  ;;  %v2112_v59 = vrot.slane %v2111_v8, 4  ;;  %v2624_v7 = vshrl.u32 %v2556_v30, 16  ;;  %v2060_v8 = vld [vmem:[#allocation2 + $0x3c] sm:$0xf] }
 0x19c   : > { %v2142_v60 = vshrl.u32 %v2060_v8, 16 }
 0x19d   : > { %v2117_v0 = vsel %vm11204_vm5, %v2112_v59, %v2116_v29  ;;  %v2634_v29 = vor.u32 %v2632_v36, %v2631_v32  ;;  %v9038_v48 = vrot.slane %v2624_v7, 11  ;;  %v9215_v36 = vld [vmem:[#allocation3 + $0x130] sm:$0xf] }
 0x19e   : > { %v5263_v45 = vpop.f32.mrf.mxu2  ;;  %5590 = vmatpush.bf16.msra.mxu2 %v10572_v50  ;;  %2520 = vst [vmem:[#allocation3 + $0x14] sm:$0xf] %v2117_v0  ;;  %v2004_v0 = vld [vmem:[#allocation2 + $0xb0] sm:$0xf] }
 0x19f   : > { %v5264_v54 = vadd.f32 %v5263_v45, %v5175_v28  ;;  %v11631_v22 = vpop.f32.mrf.mxu0  ;;  %v5177_v14 = vpop.f32.mrf.mxu1  ;;  %5501 = vmatpush.bf16.msra.mxu1 %v10564_v52  ;;  %v2122_v28 = vrot.slane %v2121_v4, 4  ;;  %v2635_v43 = vsel %vm11094_vm2, %v9038_v48, %v2634_v29  ;;  %2036 = vst [vmem:[#allocation3 + $0x1c0] sm:$0xf] %v2004_v0  ;;  %v2560_v48 = vld [vmem:[#allocation2 + $0x68] sm:$0xf] }
 0x1a0   : > { %v5178_v25 = vadd.f32 %v5177_v14, %v11539_v56  ;;  %v9608_v56 = vor.u32 %v10516_v16, %v9605_v58  ;;  %2987 = vst [vmem:[#allocation3 + $0x60] sm:$0xf] %v2635_v43  ;;  %v2061_v14 = vld [vmem:[#allocation2 + $0x40] sm:$0x1]  ;;  %v2144_v58 = vrot.slane %v2142_v60, 4  ;;  %v2651_v43 = vshrl.u32 %v2560_v48, 16 }
 0x1a1   : > { %v11626_v63 = vadd.f32 %v11587_v47, %v5264_v54  ;;  %v2638_v47 = vshrl.u32 %v2558_v11, 16  ;;  %v2127_v24 = vsel %vm11204_vm5, %v2122_v28, %v2126_v33  ;;  %v2132_v54 = vshll.u32 %v2059_v3, 16  ;;  %v9603_v33 = vld [vmem:[#allocation3 + $0x440] sm:$0xf]  ;;  %v2005_v3 = vld [vmem:[#allocation2 + $0xb4] sm:$0xf] }
 0x1a2   : > { %5216 = vmatmul.bf16.gmra.mxu1 %v9564_v61  ;;  %5428 = vmatmul.bf16.gmra.mxu0 %v9180_v1  ;;  %v5357_v13 = vpop.f32.mrf.mxu3  ;;  %2521 = vst [vmem:[#allocation3 + $0x38] sm:$0xf] %v2127_v24  ;;  %v3019_v11 = vld [vmem:[#allocation2 + $0x50] sm:$0xf]  ;;  %v2148_v30 = vshll.u32 %v2061_v14, 16  ;;  %v2654_v14 = vshll.u32 %v2560_v48, 16 }
 0x1a3   : > { %5305 = vmatmul.bf16.gmra.mxu2 %v9568_v37  ;;  %v2640_v40 = vrot.slane %v2638_v47, 7  ;;  %v2138_v37 = vshll.u32 %v2060_v8, 16  ;;  %v2134_v1 = vrot.slane %v2132_v54, 5  ;;  %v10515_v47 = vld [vmem:[#allocation3 + $0x43c] sm:$0xf] }
 0x1a4   : > { %3051 = vst [vmem:[#allocation3 + $0x64] sm:$0xf] %v3019_v11  ;;  %v9597_v28 = vld [vmem:[#allocation3 + $0x45c] sm:$0xf0]  ;;  %v10422_v24 = vld [vmem:[#allocation3 + $0x150] sm:$0xf0] }
 0x1a5   : > { %v2643_v50 = vor.u32 %v2641_v41, %v2640_v40  ;;  %v2135_v21 = vor.u32 %v2134_v1, %v2131_v44  ;;  %v9604_v41 = vor.u32 %v10520_v55, %v9603_v33  ;;  %2037 = vst [vmem:[#allocation3 + $0x1e4] sm:$0xf] %v2005_v3  ;;  %v9600_v44 = vor.u32 %v10515_v47, %v9597_v28  ;;  %v9081_v33 = vld [vmem:[#allocation3 + $0x3c] sm:$0xf0]  ;;  %v2063_v0 = vld [vmem:[#allocation2 + $0x54] sm:$0xf] }
 0x1a6   : > { %v5266_v38 = vpop.f32.mrf.mxu2  ;;  %v2653_v11 = vrot.slane %v2651_v43, 7  ;;  %v10387_v48 = vld [vmem:[#allocation3 + $0x38] sm:$0xf0]  ;;  %v2006_v43 = vld [vmem:[#allocation2 + $0xc8] sm:$0xf] }
 0x1a7   : > { %v5267_v45 = vadd.f32 %v5266_v38, %v5178_v25  ;;  %v2644_v59 = vsel %vm11094_vm2, %v2636_v42, %v2643_v50  ;;  %v11644_v52 = vpop.f32.mrf.mxu0  ;;  %v5179_v4 = vpop.f32.mrf.mxu1  ;;  %5399 = vmatmul.bf16.gmra.mxu3 %v9608_v56  ;;  %v2140_v25 = vrot.slane %v2138_v37, 5  ;;  %v2136_v9 = vrot.slane %v2135_v21, 4  ;;  %v2561_v50 = vld [vmem:[#allocation2 + $0x6c] sm:$0xf]  ;;  %2038 = vst [vmem:[#allocation3 + $0x208] sm:$0xf] %v2006_v43 }
 0x1a8   : > { %v5180_v16 = vadd.f32 %v5179_v4, %v11548_v31  ;;  %2988 = vst [vmem:[#allocation3 + $0x84] sm:$0xf] %v2644_v59  ;;  %v2150_v56 = vrot.slane %v2148_v30, 5  ;;  %v10383_v37 = vld [vmem:[#allocation3 + $0x1c] sm:$0xf]  ;;  %v2660_v59 = vshrl.u32 %v2561_v50, 16 }
 0x1a9   : > { %v11638_v61 = vadd.f32 %v5355_v49, %v5267_v45  ;;  %v3020_v49 = vld [vmem:[#allocation2 + $0x54] sm:$0xf]  ;;  %v2145_v31 = vor.u32 %v2144_v58, %v2140_v25  ;;  %v2141_v38 = vsel %vm11204_vm5, %v2136_v9, %v2140_v25  ;;  %v9216_v45 = vor.u32 %v10422_v24, %v9215_v36  ;;  %v2559_v4 = vld [vmem:[#allocation2 + $0x64] sm:$0x8]  ;;  %v2064_v36 = vld [vmem:[#allocation2 + $0x58] sm:$0x1] }
 0x1aa   : > { %3052 = vst [vmem:[#allocation3 + $0x88] sm:$0xf] %v3020_v49  ;;  %v5360_v7 = vpop.f32.mrf.mxu3  ;;  %v2646_v55 = vshrl.u32 %v2559_v4, 16  ;;  %v2663_v49 = vshll.u32 %v2561_v50, 16  ;;  %v2656_v25 = vor.u32 %v2654_v14, %v2653_v11  ;;  %v2658_v58 = vrot.slane %v2653_v11, 4  ;;  %v10592_v30 = vld [vmem:[%s13141_s1 + $0x220] sm:$0xff] }
 0x1ab   : > { %v2146_v29 = vrot.slane %v2145_v31, 4  ;;  %2522 = vst [vmem:[#allocation3 + $0x5c] sm:$0xf] %v2141_v38  ;;  %v9084_v9 = vor.u32 %v10383_v37, %v9081_v33  ;;  %5764 = vmatpush.bf16.msra.mxu0 %v10592_v30  ;;  %v3021_v50 = vld [vmem:[#allocation2 + $0x68] sm:$0xf]  ;;  %v2172_v37 = vshll.u32 %v2064_v36, 16 }
 0x1ac   : > { %v9039_v3 = vrot.slane %v2646_v55, 11  ;;  %3053 = vst [vmem:[#allocation3 + $0xac] sm:$0xf] %v3021_v50  ;;  %v10431_v33 = vld [vmem:[#allocation3 + $0x198] sm:$0xf0] }
 0x1ad   : > { %v2151_v60 = vsel %vm11204_vm5, %v2146_v29, %v2150_v56  ;;  %v2166_v56 = vshrl.u32 %v2063_v0, 16  ;;  %v10382_v14 = vld [vmem:[#allocation3 + $0x14] sm:$0xf] }
 0x1ae   : > { %v5268_v32 = vpop.f32.mrf.mxu2  ;;  %2523 = vst [vmem:[#allocation3 + $0x80] sm:$0xf] %v2151_v60  ;;  %v2657_v24 = vsel %vm11094_vm2, %v9039_v3, %v2656_v25  ;;  %v2174_v25 = vrot.slane %v2172_v37, 5 }
 0x1af   : > { %v5269_v40 = vadd.f32 %v5268_v32, %v5180_v16  ;;  %v11651_v8 = vpop.f32.mrf.mxu0  ;;  %v5182_v54 = vpop.f32.mrf.mxu1  ;;  %v2662_v16 = vrot.slane %v2660_v59, 7  ;;  %2989 = vst [vmem:[#allocation3 + $0xa8] sm:$0xf] %v2657_v24  ;;  %v9251_v59 = vld [vmem:[#allocation3 + $0x178] sm:$0xf]  ;;  %v2168_v55 = vrot.slane %v2166_v56, 4 }
 0x1b0   : > { %v5183_v1 = vadd.f32 %v5182_v54, %v11575_v62 }
 0x1b1   : > { %v11649_v42 = vadd.f32 %v5357_v13, %v5269_v40  ;;  %v2062_v13 = vld [vmem:[#allocation2 + $0x50] sm:$0xf]  ;;  %v2665_v32 = vor.u32 %v2663_v49, %v2662_v16  ;;  %v2162_v40 = vshll.u32 %v2063_v0, 16  ;;  %v9073_v16 = vld [vmem:[#allocation3 + $0x34] sm:$0xf0] }
 0x1b2   : > { %5221 = vmatmul.bf16.gmra.mxu1 %v9600_v44  ;;  %5433 = vmatmul.bf16.gmra.mxu0 %v9216_v45  ;;  %v5362_v47 = vpop.f32.mrf.mxu3  ;;  %v2153_v28 = vshrl.u32 %v2062_v13, 16  ;;  %v2156_v31 = vshll.u32 %v2062_v13, 16  ;;  %v9079_v45 = vld [vmem:[#allocation3 + $0x18] sm:$0xf] }
 0x1b3   : > { %5310 = vmatmul.bf16.gmra.mxu2 %v9604_v41  ;;  %v2666_v38 = vsel %vm11094_vm2, %v2658_v58, %v2665_v32  ;;  %v2164_v13 = vrot.slane %v2162_v40, 5  ;;  %v2563_v32 = vld [vmem:[#allocation2 + $0x80] sm:$0xf] }
 0x1b4   : > { %2990 = vst [vmem:[#allocation3 + $0xcc] sm:$0xf] %v2666_v38  ;;  %v2155_v54 = vrot.slane %v2153_v28, 4  ;;  %v2158_v4 = vrot.slane %v2156_v31, 5  ;;  %v10392_v31 = vld [vmem:[#allocation3 + $0x64] sm:$0xf] }
 0x1b5   : > { %v2169_v3 = vor.u32 %v2168_v55, %v2164_v13  ;;  %v2564_v38 = vld [vmem:[#allocation2 + $0x84] sm:$0xf]  ;;  %v2673_v56 = vshrl.u32 %v2563_v32, 16  ;;  %v2676_v37 = vshll.u32 %v2563_v32, 16  ;;  %v9115_v32 = vld [vmem:[#allocation3 + $0x60] sm:$0xf] }
 0x1b6   : > { %v5271_v21 = vpop.f32.mrf.mxu2  ;;  %v2159_v0 = vor.u32 %v2158_v4, %v2155_v54 }
 0x1b7   : > { %v5272_v62 = vadd.f32 %v5271_v21, %v5183_v1  ;;  %v11665_v29 = vpop.f32.mrf.mxu0  ;;  %v5184_v44 = vpop.f32.mrf.mxu1  ;;  %5680 = vmatmul.bf16.vlgmr.msrb.gmra.mxu3 %v9084_v9  ;;  %v2007_v1 = vld [vmem:[#allocation2 + $0xcc] sm:$0xf]  ;;  %v9076_v9 = vor.u32 %v10382_v14, %v9073_v16  ;;  %v2170_v30 = vrot.slane %v2169_v3, 4  ;;  %v2675_v54 = vrot.slane %v2673_v56, 7  ;;  %v10440_v56 = vld [vmem:[#allocation3 + $0x1e0] sm:$0xf0] }
 0x1b8   : > { %v5185_v60 = vadd.f32 %v5184_v44, %v11603_v57  ;;  %2039 = vst [vmem:[#allocation3 + $0x22c] sm:$0xf] %v2007_v1  ;;  %v9080_v57 = vor.u32 %v10387_v48, %v9079_v45  ;;  %v2160_v58 = vrot.slane %v2159_v0, 4  ;;  %v9117_v45 = vld [vmem:[#allocation3 + $0x84] sm:$0xf0] }
 0x1b9   : > { %v11661_v41 = vadd.f32 %v5360_v7, %v5272_v62  ;;  %v3022_v7 = vld [vmem:[#allocation2 + $0x6c] sm:$0xf]  ;;  %v9252_v62 = vor.u32 %v10431_v33, %v9251_v59  ;;  %v2562_v48 = vld [vmem:[#allocation2 + $0x7c] sm:$0x8]  ;;  %v9120_v1 = vor.u32 %v10392_v31, %v9117_v45  ;;  %v2067_v0 = vld [vmem:[#allocation2 + $0x70] sm:$0x1] }
 0x1ba   : > { %3054 = vst [vmem:[#allocation3 + $0xd0] sm:$0xf] %v3022_v7  ;;  %v5365_v49 = vpop.f32.mrf.mxu3  ;;  %v2165_v40 = vsel %vm11204_vm5, %v2160_v58, %v2164_v13  ;;  %v2668_v50 = vshrl.u32 %v2562_v48, 16  ;;  %v2685_v7 = vshll.u32 %v2564_v38, 16  ;;  %v2065_v13 = vld [vmem:[#allocation2 + $0x68] sm:$0xf] }
 0x1bb   : > { %2524 = vst [vmem:[#allocation3 + $0xa4] sm:$0xf] %v2165_v40  ;;  %v2066_v33 = vld [vmem:[#allocation2 + $0x6c] sm:$0xf]  ;;  %v2177_v16 = vshrl.u32 %v2065_v13, 16 }
 0x1bc   : > { %v9040_v4 = vrot.slane %v2668_v50, 11  ;;  %v3023_v31 = vld [vmem:[#allocation2 + $0x80] sm:$0xf]  ;;  %v2009_v50 = vld [vmem:[#allocation2 + $0xe4] sm:$0xf] }
 0x1bd   : > { %3055 = vst [vmem:[#allocation3 + $0xf4] sm:$0xf] %v3023_v31  ;;  %v2179_v45 = vrot.slane %v2177_v16, 4  ;;  %v2008_v48 = vld [vmem:[#allocation2 + $0xe0] sm:$0xf] }
 0x1be   : > { %v5273_v11 = vpop.f32.mrf.mxu2  ;;  %2040 = vst [vmem:[#allocation3 + $0x250] sm:$0xf] %v2008_v48  ;;  %v7631_v48 = vld [vmem:[#allocation4 + $0xbc] sm:$0xf] }
 0x1bf   : > { %v5274_v21 = vadd.f32 %v5273_v11, %v5185_v60  ;;  %v11670_v36 = vpop.f32.mrf.mxu0  ;;  %v5187_v24 = vpop.f32.mrf.mxu1  ;;  %v2682_v60 = vshrl.u32 %v2564_v38, 16  ;;  %v2678_v11 = vor.u32 %v2676_v37, %v2675_v54  ;;  %v9287_v38 = vld [vmem:[#allocation3 + $0x1c0] sm:$0xf]  ;;  %2041 = vst [vmem:[#allocation3 + $0x274] sm:$0xf] %v2009_v50 }
 0x1c0   : > { %v5188_v44 = vadd.f32 %v5187_v24, %v11631_v22  ;;  %v2680_v22 = vrot.slane %v2675_v54, 4  ;;  %v10396_v24 = vld [vmem:[#allocation3 + $0x80] sm:$0xf0] }
 0x1c1   : > { %v11668_v28 = vadd.f32 %v5362_v47, %v5274_v21  ;;  %v2175_v47 = vsel %vm11204_vm5, %v2170_v30, %v2174_v25  ;;  %v2684_v14 = vrot.slane %v2682_v60, 7  ;;  %v2180_v21 = vshll.u32 %v2065_v13, 16 }
 0x1c2   : > { %2525 = vst [vmem:[#allocation3 + $0xc8] sm:$0xf] %v2175_v47  ;;  %5438 = vmatmul.bf16.gmra.mxu0 %v9252_v62  ;;  %5502 = vmatmul.bf16.vlgmr.msra.gmra.mxu1 %v9076_v9  ;;  %v5367_v59 = vpop.f32.mrf.mxu3  ;;  %v2679_v25 = vsel %vm11094_vm2, %v9040_v4, %v2678_v11  ;;  %v2190_v62 = vshrl.u32 %v2066_v33, 16  ;;  %v2196_v47 = vshll.u32 %v2067_v0, 16  ;;  %v9116_v13 = vor.u32 %v10396_v24, %v9115_v32  ;;  %v7502_v32 = vld [vmem:[#allocation4 + $0xb8] sm:$0x8] }
 0x1c3   : > { %5591 = vmatmul.bf16.vlgmr.msra.gmra.mxu2 %v9080_v57  ;;  %v2186_v57 = vshll.u32 %v2066_v33, 16  ;;  %v2687_v58 = vor.u32 %v2685_v7, %v2684_v14  ;;  %2991 = vst [vmem:[#allocation3 + $0xf0] sm:$0xf] %v2679_v25  ;;  %v2182_v54 = vrot.slane %v2180_v21, 5  ;;  %v2566_v21 = vld [vmem:[#allocation2 + $0x98] sm:$0xf] }
 0x1c4   : > { %v2192_v60 = vrot.slane %v2190_v62, 4  ;;  %v2198_v11 = vrot.slane %v2196_v47, 5  ;;  %v10401_v62 = vld [vmem:[#allocation3 + $0xac] sm:$0xf]  ;;  %v7503_v24 = vld [vmem:[#allocation4 + $0xbc] sm:$0xf] }
 0x1c5   : > { %v2188_v37 = vrot.slane %v2186_v57, 5 }
 0x1c6   : > { %v5276_v43 = vpop.f32.mrf.mxu2 }
 0x1c7   : > { %v5277_v55 = vadd.f32 %v5276_v43, %v5188_v44  ;;  %v11681_v9 = vpop.f32.mrf.mxu0  ;;  %v5189_v30 = vpop.f32.mrf.mxu1  ;;  %5685 = vmatmul.bf16.gmra.mxu3 %v9120_v1  ;;  %v3024_v44 = vld [vmem:[#allocation2 + $0x84] sm:$0xf]  ;;  %v10391_v43 = vld [vmem:[#allocation3 + $0x5c] sm:$0xf]  ;;  %v2193_v33 = vor.u32 %v2192_v60, %v2188_v37 }
 0x1c8   : > { %v5190_v40 = vadd.f32 %v5189_v30, %v11644_v52  ;;  %3056 = vst [vmem:[#allocation3 + $0x118] sm:$0xf] %v3024_v44  ;;  %v9109_v52 = vld [vmem:[#allocation3 + $0x7c] sm:$0xf0]  ;;  %v9153_v30 = vld [vmem:[#allocation3 + $0xcc] sm:$0xf0] }
 0x1c9   : > { %v11677_v3 = vadd.f32 %v5365_v49, %v5277_v55  ;;  %v2688_v49 = vsel %vm11094_vm2, %v2680_v22, %v2687_v58  ;;  %v2183_v22 = vor.u32 %v2182_v54, %v2179_v45  ;;  %v9288_v55 = vor.u32 %v10440_v56, %v9287_v38  ;;  %v2567_v45 = vld [vmem:[#allocation2 + $0x9c] sm:$0xf] }
 0x1ca   : > { %2992 = vst [vmem:[#allocation3 + $0x114] sm:$0xf] %v2688_v49  ;;  %v5370_v1 = vpop.f32.mrf.mxu3  ;;  %v9112_v16 = vor.u32 %v10391_v43, %v9109_v52  ;;  %v2194_v25 = vrot.slane %v2193_v33, 4  ;;  %v2695_v38 = vshrl.u32 %v2566_v21, 16  ;;  %v7601_v56 = vshrl.u32 %v7503_v24, 16  ;;  %v10591_v43 = vld [vmem:[%s13141_s1 + $0x218] sm:$0xff] }
 0x1cb   : > { %v2184_v0 = vrot.slane %v2183_v22, 4  ;;  %v7604_v49 = vshll.u32 %v7503_v24, 16  ;;  %v2565_v52 = vld [vmem:[#allocation2 + $0x94] sm:$0x8]  ;;  %5765 = vmatpush.bf16.msra.mxu0 %v10591_v43 }
 0x1cc   : > { %v2199_v44 = vsel %vm11204_vm5, %v2194_v25, %v2198_v11  ;;  %v7603_v60 = vrot.slane %v7601_v56, 7  ;;  %v2690_v33 = vshrl.u32 %v2565_v52, 16  ;;  %v2704_v11 = vshrl.u32 %v2567_v45, 16  ;;  %v3025_v56 = vld [vmem:[#allocation2 + $0x98] sm:$0xf] }
 0x1cd   : > { %2527 = vst [vmem:[#allocation3 + $0x110] sm:$0xf] %v2199_v44  ;;  %v2707_v25 = vshll.u32 %v2567_v45, 16  ;;  %v3026_v44 = vld [vmem:[#allocation2 + $0x9c] sm:$0xf] }
 0x1ce   : > { %v5278_v7 = vpop.f32.mrf.mxu2  ;;  %v7606_v22 = vor.u32 %v7604_v49, %v7603_v60  ;;  %v10405_v49 = vld [vmem:[#allocation3 + $0xc8] sm:$0xf0]  ;;  %v9323_v45 = vld [vmem:[#allocation3 + $0x208] sm:$0xf]  ;;  %3057 = vst [vmem:[#allocation3 + $0x13c] sm:$0xf] %v3025_v56 }
 0x1cf   : > { %v5279_v4 = vadd.f32 %v5278_v7, %v5190_v40  ;;  %v11688_v57 = vpop.f32.mrf.mxu0  ;;  %v5192_v58 = vpop.f32.mrf.mxu1  ;;  %v2189_v40 = vsel %vm11204_vm5, %v2184_v0, %v2188_v37  ;;  %v11695_v47 = vld [vmem:[#allocation3 + $0x114] sm:$0xf0]  ;;  %v9156_v7 = vor.u32 %v10401_v62, %v9153_v30  ;;  %v2069_v62 = vld [vmem:[#allocation2 + $0x84] sm:$0xf]  ;;  %v9145_v60 = vld [vmem:[#allocation3 + $0xc4] sm:$0xf0] }
 0x1d0   : > { %v5193_v31 = vadd.f32 %v5192_v58, %v11651_v8  ;;  %2526 = vst [vmem:[#allocation3 + $0xec] sm:$0xf] %v2189_v40  ;;  %v2068_v58 = vld [vmem:[#allocation2 + $0x80] sm:$0xf]  ;;  %v9041_v40 = vrot.slane %v2690_v33, 11  ;;  %v2214_v33 = vshrl.u32 %v2069_v62, 16 }
 0x1d1   : > { %v11686_v14 = vadd.f32 %v5367_v59, %v5279_v4  ;;  %v7596_v59 = vshrl.u32 %v7502_v32, 16  ;;  %7639 = vst [vmem:[#allocation3 + $0x118] sm:$0xf] %v7631_v48  ;;  %v2697_v4 = vrot.slane %v2695_v38, 7  ;;  %v9151_v32 = vld [vmem:[#allocation3 + $0xa8] sm:$0xf] }
 0x1d2   : > { %5443 = vmatmul.bf16.gmra.mxu0 %v9288_v55  ;;  %5507 = vmatmul.bf16.gmra.mxu1 %v9112_v16  ;;  %v11697_v50 = vpop.f32.mrf.mxu3  ;;  %v2698_v55 = vshll.u32 %v2566_v21, 16  ;;  %v2070_v21 = vld [vmem:[#allocation2 + $0x88] sm:$0x1]  ;;  %v10449_v48 = vld [vmem:[#allocation3 + $0x228] sm:$0xf0]  ;;  %v2201_v52 = vshrl.u32 %v2068_v58, 16 }
 0x1d3   : > { %13156 = vst [vmem:[#allocation9_spill] sm:$0xff] %v11686_v14  ;;  %5596 = vmatmul.bf16.gmra.mxu2 %v9116_v13  ;;  %v9940_v54 = vrot.slane %v7596_v59, 11  ;;  %v11702_v13 = vld [vmem:[#allocation3 + $0x110] sm:$0xf0]  ;;  %v2702_v0 = vrot.slane %v2697_v4, 4  ;;  %v2706_v59 = vrot.slane %v2704_v11, 7  ;;  %v9324_v56 = vor.u32 %v10449_v48, %v9323_v45 }
 0x1d4   : > { %v2700_v38 = vor.u32 %v2698_v55, %v2697_v4  ;;  %v2204_v4 = vshll.u32 %v2068_v58, 16  ;;  %3058 = vst [vmem:[#allocation3 + $0x160] sm:$0xf] %v3026_v44  ;;  %v2570_v44 = vld [vmem:[#allocation2 + $0xb4] sm:$0xf] }
 0x1d5   : > { %v7607_v24 = vsel %vm11094_vm2, %v9940_v54, %v7606_v22  ;;  %v2709_v43 = vor.u32 %v2707_v25, %v2706_v59  ;;  %v2010_v54 = vld [vmem:[#allocation2 + $0xf8] sm:$0xf]  ;;  %v2210_v22 = vshll.u32 %v2069_v62, 16 }
 0x1d6   : > { %v5281_v8 = vpop.f32.mrf.mxu2  ;;  %7623 = vst [vmem:[#allocation3 + $0x114] sm:$0xf] %v7607_v24  ;;  %v2203_v24 = vrot.slane %v2201_v52, 4 }
 0x1d7   : > { %v5282_v37 = vadd.f32 %v5281_v8, %v5193_v31  ;;  %v11706_v30 = vpop.f32.mrf.mxu0  ;;  %v5194_v31 = vpop.f32.mrf.mxu1  ;;  %5690 = vmatmul.bf16.gmra.mxu3 %v9156_v7  ;;  %v10400_v8 = vld [vmem:[#allocation3 + $0xa4] sm:$0xf]  ;;  %v2710_v11 = vsel %vm11094_vm2, %v2702_v0, %v2709_v43  ;;  %v2212_v25 = vrot.slane %v2210_v22, 5  ;;  %2042 = vst [vmem:[#allocation3 + $0x298] sm:$0xf] %v2010_v54 }
 0x1d8   : > { %2994 = vst [vmem:[#allocation3 + $0x15c] sm:$0xf] %v2710_v11  ;;  %v2569_v0 = vld [vmem:[#allocation2 + $0xb0] sm:$0xf]  ;;  %v2568_v22 = vld [vmem:[#allocation2 + $0xac] sm:$0x8] }
 0x1d9   : > { %v11704_v16 = vadd.f32 %v5370_v1, %v5282_v37  ;;  %v5195_v1 = vadd.f32 %v5194_v31, %v11665_v29  ;;  %v2701_v37 = vsel %vm11094_vm2, %v9041_v40, %v2700_v38  ;;  %v2220_v29 = vshll.u32 %v2070_v21, 16  ;;  %v2011_v31 = vld [vmem:[#allocation2 + $0xfc] sm:$0xf] }
 0x1da   : > { %2993 = vst [vmem:[#allocation3 + $0x138] sm:$0xf] %v2701_v37  ;;  %v5375_v7 = vpop.f32.mrf.mxu3  ;;  %v9152_v40 = vor.u32 %v10405_v49, %v9151_v32  ;;  %v2216_v38 = vrot.slane %v2214_v33, 4  ;;  %v9148_v21 = vor.u32 %v10400_v8, %v9145_v60  ;;  %v2717_v32 = vshrl.u32 %v2569_v0, 16 }
 0x1db   : > { %13157 = vst [vmem:[#allocation10_spill] sm:$0xff] %v11704_v16  ;;  %v2206_v16 = vrot.slane %v2204_v4, 5  ;;  %v2222_v59 = vrot.slane %v2220_v29, 5  ;;  %v2726_v49 = vshrl.u32 %v2570_v44, 16  ;;  %v2071_v4 = vld [vmem:[#allocation2 + $0x98] sm:$0xf] }
 0x1dc   : > { %2043 = vst [vmem:[#allocation3 + $0x2bc] sm:$0xf] %v2011_v31  ;;  %v2217_v37 = vor.u32 %v2216_v38, %v2212_v25  ;;  %v2712_v45 = vshrl.u32 %v2568_v22, 16  ;;  %v2719_v48 = vrot.slane %v2717_v32, 7  ;;  %v2720_v8 = vshll.u32 %v2569_v0, 16 }
 0x1dd   : > { %v2207_v58 = vor.u32 %v2206_v16, %v2203_v24  ;;  %v2728_v33 = vrot.slane %v2726_v49, 7  ;;  %v2729_v29 = vshll.u32 %v2570_v44, 16  ;;  %v3028_v22 = vld [vmem:[#allocation2 + $0xb4] sm:$0xf] }
 0x1de   : > { %v5283_v55 = vpop.f32.mrf.mxu2  ;;  %v2218_v16 = vrot.slane %v2217_v37, 4  ;;  %v9042_v31 = vrot.slane %v2712_v45, 11  ;;  %v2722_v24 = vor.u32 %v2720_v8, %v2719_v48  ;;  %v2072_v37 = vld [vmem:[#allocation2 + $0x9c] sm:$0xf]  ;;  %3060 = vst [vmem:[#allocation3 + $0x1a8] sm:$0xf] %v3028_v22 }
 0x1df   : > { %v5284_v14 = vadd.f32 %v5283_v55, %v5195_v1  ;;  %v11718_v43 = vpop.f32.mrf.mxu0  ;;  %v5197_v52 = vpop.f32.mrf.mxu1  ;;  %v2208_v1 = vrot.slane %v2207_v58, 4  ;;  %v2225_v55 = vshrl.u32 %v2071_v4, 16  ;;  %v2731_v58 = vor.u32 %v2729_v29, %v2728_v33  ;;  %v10458_v8 = vld [vmem:[#allocation3 + $0x270] sm:$0xf0]  ;;  %v2573_v22 = vld [vmem:[#allocation2 + $0xcc] sm:$0xf] }
 0x1e0   : > { %v5198_v54 = vadd.f32 %v5197_v52, %v11670_v36  ;;  %v2223_v60 = vsel %vm11204_vm5, %v2218_v16, %v2222_v59  ;;  %v2234_v59 = vshll.u32 %v2072_v37, 16  ;;  %v2073_v52 = vld [vmem:[#allocation2 + $0xa0] sm:$0x1]  ;;  %v2238_v32 = vshrl.u32 %v2072_v37, 16  ;;  %v3027_v16 = vld [vmem:[#allocation2 + $0xb0] sm:$0xf] }
 0x1e1   : > { %v11716_v62 = vadd.f32 %v11697_v50, %v5284_v14  ;;  %v10410_v14 = vld [vmem:[#allocation3 + $0xf4] sm:$0xf]  ;;  %v2213_v50 = vsel %vm11204_vm5, %v2208_v1, %v2212_v25  ;;  %2529 = vst [vmem:[#allocation3 + $0x158] sm:$0xf] %v2223_v60  ;;  %v2227_v1 = vrot.slane %v2225_v55, 4  ;;  %v2244_v33 = vshll.u32 %v2073_v52, 16 }
 0x1e2   : > { %5448 = vmatmul.bf16.gmra.mxu0 %v9324_v56  ;;  %5512 = vmatmul.bf16.gmra.mxu1 %v9148_v21  ;;  %2528 = vst [vmem:[#allocation3 + $0x134] sm:$0xf] %v2213_v50  ;;  %v5377_v11 = vpop.f32.mrf.mxu3  ;;  %v9192_v25 = vor.u32 %v10410_v14, %v11695_v47  ;;  %v2723_v56 = vsel %vm11094_vm2, %v9042_v31, %v2722_v24  ;;  %v2228_v21 = vshll.u32 %v2071_v4, 16  ;;  %v9187_v47 = vld [vmem:[#allocation3 + $0xf0] sm:$0xf]  ;;  %v2240_v60 = vrot.slane %v2238_v32, 4 }
 0x1e3   : > { %5601 = vmatmul.bf16.gmra.mxu2 %v9152_v40  ;;  %v2724_v40 = vrot.slane %v2719_v48, 4  ;;  %2995 = vst [vmem:[#allocation3 + $0x180] sm:$0xf] %v2723_v56  ;;  %v2013_v4 = vld [vmem:[#allocation2 + $0x114] sm:$0xf]  ;;  %v2236_v48 = vrot.slane %v2234_v59, 5 }
 0x1e4   : > { %3059 = vst [vmem:[#allocation3 + $0x184] sm:$0xf] %v3027_v16  ;;  %v9359_v50 = vld [vmem:[#allocation3 + $0x250] sm:$0xf]  ;;  %v2230_v45 = vrot.slane %v2228_v21, 5 }
 0x1e5   : > { %v2732_v44 = vsel %vm11094_vm2, %v2724_v40, %v2731_v58  ;;  %v10409_v55 = vld [vmem:[#allocation3 + $0xec] sm:$0xf]  ;;  %2045 = vst [vmem:[#allocation3 + $0x304] sm:$0xf] %v2013_v4  ;;  %v9360_v56 = vor.u32 %v10458_v8, %v9359_v50  ;;  %v2751_v8 = vshll.u32 %v2573_v22, 16 }
 0x1e6   : > { %v5286_v36 = vpop.f32.mrf.mxu2  ;;  %2996 = vst [vmem:[#allocation3 + $0x1a4] sm:$0xf] %v2732_v44  ;;  %v2231_v24 = vor.u32 %v2230_v45, %v2227_v1  ;;  %v2572_v44 = vld [vmem:[#allocation2 + $0xc8] sm:$0xf] }
 0x1e7   : > { %v5287_v38 = vadd.f32 %v5286_v36, %v5198_v54  ;;  %v11732_v49 = vpop.f32.mrf.mxu0  ;;  %v5199_v54 = vpop.f32.mrf.mxu1  ;;  %5695 = vmatmul.bf16.gmra.mxu3 %v9192_v25  ;;  %v9181_v36 = vld [vmem:[#allocation3 + $0x10c] sm:$0xf0]  ;;  %v2246_v25 = vrot.slane %v2244_v33, 5  ;;  %v2739_v1 = vshrl.u32 %v2572_v44, 16  ;;  %v2742_v45 = vshll.u32 %v2572_v44, 16 }
 0x1e8   : > { %v5200_v14 = vadd.f32 %v5199_v54, %v11681_v9  ;;  %v9188_v9 = vor.u32 %v11702_v13, %v9187_v47  ;;  %v2232_v58 = vrot.slane %v2231_v24, 4  ;;  %v9184_v21 = vor.u32 %v10409_v55, %v9181_v36  ;;  %v10419_v54 = vld [vmem:[#allocation3 + $0x13c] sm:$0xf]  ;;  %v2074_v55 = vld [vmem:[#allocation2 + $0xb0] sm:$0xf] }
 0x1e9   : > { %v11728_v0 = vadd.f32 %v5375_v7, %v5287_v38  ;;  %v2012_v7 = vld [vmem:[#allocation2 + $0x110] sm:$0xf]  ;;  %v2241_v38 = vor.u32 %v2240_v60, %v2236_v48  ;;  %v2741_v50 = vrot.slane %v2739_v1, 7  ;;  %v2075_v36 = vld [vmem:[#allocation2 + $0xb4] sm:$0xf] }
 0x1ea   : > { %2044 = vst [vmem:[#allocation3 + $0x2e0] sm:$0xf] %v2012_v7  ;;  %v5380_v31 = vpop.f32.mrf.mxu3  ;;  %v2237_v16 = vsel %vm11204_vm5, %v2232_v58, %v2236_v48  ;;  %v2571_v7 = vld [vmem:[#allocation2 + $0xc4] sm:$0x8]  ;;  %v2748_v48 = vshrl.u32 %v2573_v22, 16  ;;  %v2249_v58 = vshrl.u32 %v2074_v55, 16 }
 0x1eb   : > { %v2242_v59 = vrot.slane %v2241_v38, 4  ;;  %2530 = vst [vmem:[#allocation3 + $0x17c] sm:$0xf] %v2237_v16  ;;  %v2734_v4 = vshrl.u32 %v2571_v7, 16  ;;  %v9223_v44 = vld [vmem:[#allocation3 + $0x138] sm:$0xf] }
 0x1ec   : > { %v2750_v38 = vrot.slane %v2748_v48, 7  ;;  %v2262_v16 = vshrl.u32 %v2075_v36, 16  ;;  %v2251_v48 = vrot.slane %v2249_v58, 4 }
 0x1ed   : > { %v2247_v47 = vsel %vm11204_vm5, %v2242_v59, %v2246_v25  ;;  %v2076_v25 = vld [vmem:[#allocation2 + $0xb8] sm:$0x1] }
 0x1ee   : > { %v5288_v29 = vpop.f32.mrf.mxu2  ;;  %2531 = vst [vmem:[#allocation3 + $0x1a0] sm:$0xf] %v2247_v47 }
 0x1ef   : > { %v5289_v40 = vadd.f32 %v5288_v29, %v5200_v14  ;;  %v5202_v32 = vpop.f32.mrf.mxu1  ;;  %v5414_v52 = vpop.f32.mrf.mxu0  ;;  %v2746_v29 = vrot.slane %v2741_v50, 4 }
 0x1f0   : > { %v5203_v14 = vadd.f32 %v5202_v32, %v11688_v57  ;;  %v11742_v13 = vadd.f32 %v5414_v52, %v11440_v39  ;;  %v9043_v39 = vrot.slane %v2734_v4, 11  ;;  %v10423_v32 = vld [vmem:[#allocation3 + $0x158] sm:$0xf0] }
 0x1f1   : > { %v11736_v37 = vadd.f32 %v5377_v11, %v5289_v40  ;;  %v9225_v11 = vld [vmem:[#allocation3 + $0x15c] sm:$0xf0]  ;;  %v10467_v4 = vld [vmem:[#allocation3 + $0x2b8] sm:$0xf0] }
 0x1f2   : > { %5453 = vmatmul.bf16.gmra.mxu0 %v9360_v56  ;;  %5517 = vmatmul.bf16.gmra.mxu1 %v9184_v21  ;;  %v5382_v57 = vpop.f32.mrf.mxu3  ;;  %v9228_v33 = vor.u32 %v10419_v54, %v9225_v11  ;;  %v10590_v40 = vld [vmem:[%s13141_s1 + $0x210] sm:$0xff]  ;;  %v2252_v56 = vshll.u32 %v2074_v55, 16  ;;  %v2258_v21 = vshll.u32 %v2075_v36, 16  ;;  %v2753_v54 = vor.u32 %v2751_v8, %v2750_v38  ;;  %v2014_v8 = vld [vmem:[#allocation2 + $0x128] sm:$0xf] }
 0x1f3   : > { %5606 = vmatmul.bf16.gmra.mxu2 %v9188_v9  ;;  %v2744_v9 = vor.u32 %v2742_v45, %v2741_v50  ;;  %5766 = vmatpush.bf16.msra.mxu0 %v10590_v40  ;;  %v2268_v11 = vshll.u32 %v2076_v25, 16  ;;  %v3030_v45 = vld [vmem:[#allocation2 + $0xcc] sm:$0xf]  ;;  %v2264_v36 = vrot.slane %v2262_v16, 4  ;;  %v9217_v40 = vld [vmem:[#allocation3 + $0x154] sm:$0xf0] }
 0x1f4   : > { %v2754_v50 = vsel %vm11094_vm2, %v2746_v29, %v2753_v54  ;;  %3062 = vst [vmem:[#allocation3 + $0x1f0] sm:$0xf] %v3030_v45  ;;  %v2260_v55 = vrot.slane %v2258_v21, 5  ;;  %v9261_v45 = vld [vmem:[#allocation3 + $0x1a4] sm:$0xf0] }
 0x1f5   : > { %v2745_v52 = vsel %vm11094_vm2, %v9043_v39, %v2744_v9  ;;  %2998 = vst [vmem:[#allocation3 + $0x1ec] sm:$0xf] %v2754_v50  ;;  %v2254_v39 = vrot.slane %v2252_v56, 5  ;;  %v2270_v25 = vrot.slane %v2268_v11, 5  ;;  %v2575_v56 = vld [vmem:[#allocation2 + $0xe0] sm:$0xf] }
 0x1f6   : > { %v5291_v60 = vpop.f32.mrf.mxu2  ;;  %2997 = vst [vmem:[#allocation3 + $0x1c8] sm:$0xf] %v2745_v52  ;;  %v2265_v29 = vor.u32 %v2264_v36, %v2260_v55 }
 0x1f7   : > { %v5292_v24 = vadd.f32 %v5291_v60, %v5203_v14  ;;  %v5204_v22 = vpop.f32.mrf.mxu1  ;;  %v5416_v1 = vpop.f32.mrf.mxu0  ;;  %v3029_v14 = vld [vmem:[#allocation2 + $0xc8] sm:$0xf]  ;;  %5700 = vmatmul.bf16.gmra.mxu3 %v9228_v33  ;;  %v2015_v60 = vld [vmem:[#allocation2 + $0x12c] sm:$0xf]  ;;  %2046 = vst [vmem:[#allocation3 + $0x328] sm:$0xf] %v2014_v8  ;;  %v2255_v38 = vor.u32 %v2254_v39, %v2251_v48 }
 0x1f8   : > { %v5205_v47 = vadd.f32 %v5204_v22, %v11706_v30  ;;  %v11755_v7 = vadd.f32 %v5416_v1, %v11458_v27  ;;  %3061 = vst [vmem:[#allocation3 + $0x1cc] sm:$0xf] %v3029_v14  ;;  %v10418_v27 = vld [vmem:[#allocation3 + $0x134] sm:$0xf]  ;;  %v2266_v1 = vrot.slane %v2265_v29, 4 }
 0x1f9   : > { %v11749_v59 = vadd.f32 %v5380_v31, %v5292_v24  ;;  %v9395_v31 = vld [vmem:[#allocation3 + $0x298] sm:$0xf]  ;;  %v9224_v24 = vor.u32 %v10423_v32, %v9223_v44  ;;  %2047 = vst [vmem:[#allocation3 + $0x34c] sm:$0xf] %v2015_v60  ;;  %v9220_v54 = vor.u32 %v10418_v27, %v9217_v40  ;;  %v2256_v22 = vrot.slane %v2255_v38, 4 }
 0x1fa   : > { %v5385_v33 = vpop.f32.mrf.mxu3  ;;  %v9396_v52 = vor.u32 %v10467_v4, %v9395_v31  ;;  %v10428_v14 = vld [vmem:[#allocation3 + $0x184] sm:$0xf]  ;;  %v2576_v44 = vld [vmem:[#allocation2 + $0xe4] sm:$0xf]  ;;  %v2761_v32 = vshrl.u32 %v2575_v56, 16  ;;  %v2271_v11 = vsel %vm11204_vm5, %v2266_v1, %v2270_v25 }
 0x1fb   : > { %v2574_v31 = vld [vmem:[#allocation2 + $0xdc] sm:$0x8]  ;;  %v2077_v4 = vld [vmem:[#allocation2 + $0xc8] sm:$0xf]  ;;  %2533 = vst [vmem:[#allocation3 + $0x1e8] sm:$0xf] %v2271_v11  ;;  %v9264_v36 = vor.u32 %v10428_v14, %v9261_v45 }
 0x1fc   : > { %v2756_v48 = vshrl.u32 %v2574_v31, 16  ;;  %v2763_v8 = vrot.slane %v2761_v32, 7  ;;  %v2770_v60 = vshrl.u32 %v2576_v44, 16  ;;  %v2273_v27 = vshrl.u32 %v2077_v4, 16  ;;  %v2078_v29 = vld [vmem:[#allocation2 + $0xcc] sm:$0xf] }
 0x1fd   : > { %v2079_v25 = vld [vmem:[#allocation2 + $0xd0] sm:$0x1]  ;;  %v2276_v1 = vshll.u32 %v2077_v4, 16  ;;  %v2286_v32 = vshrl.u32 %v2078_v29, 16 }
 0x1fe   : > { %v5293_v30 = vpop.f32.mrf.mxu2  ;;  %v2772_v38 = vrot.slane %v2770_v60, 7  ;;  %v2017_v60 = vld [vmem:[#allocation2 + $0x144] sm:$0xf] }
 0x1ff   : > { %v5294_v9 = vadd.f32 %v5293_v30, %v5205_v47  ;;  %v5207_v21 = vpop.f32.mrf.mxu1  ;;  %v5419_v16 = vpop.f32.mrf.mxu0  ;;  %v9044_v30 = vrot.slane %v2756_v48, 11  ;;  %v2016_v48 = vld [vmem:[#allocation2 + $0x140] sm:$0xf]  ;;  %2049 = vst [vmem:[#allocation3 + $0x394] sm:$0xf] %v2017_v60 }
 0x200   : > { %v5208_v50 = vadd.f32 %v5207_v21, %v11718_v43  ;;  %v11763_v47 = vadd.f32 %v5419_v16, %v11475_v2  ;;  %v2764_v43 = vshll.u32 %v2575_v56, 16  ;;  %v2282_v21 = vshll.u32 %v2078_v29, 16  ;;  %v10432_v56 = vld [vmem:[#allocation3 + $0x1a0] sm:$0xf0]  ;;  %2048 = vst [vmem:[#allocation3 + $0x370] sm:$0xf] %v2016_v48 }
 0x201   : > { %v11759_v58 = vadd.f32 %v5382_v57, %v5294_v9  ;;  %v2261_v57 = vsel %vm11204_vm5, %v2256_v22, %v2260_v55  ;;  %v2768_v9 = vrot.slane %v2763_v8, 4  ;;  %v2275_v22 = vrot.slane %v2273_v27, 4  ;;  %v2080_v48 = vld [vmem:[#allocation2 + $0xe0] sm:$0xf] }
 0x202   : > { %2532 = vst [vmem:[#allocation3 + $0x1c4] sm:$0xf] %v2261_v57  ;;  %5458 = vmatmul.bf16.gmra.mxu0 %v9396_v52  ;;  %5522 = vmatmul.bf16.gmra.mxu1 %v9220_v54  ;;  %v5387_v39 = vpop.f32.mrf.mxu3  ;;  %v2766_v40 = vor.u32 %v2764_v43, %v2763_v8  ;;  %v9259_v54 = vld [vmem:[#allocation3 + $0x180] sm:$0xf]  ;;  %v3032_v57 = vld [vmem:[#allocation2 + $0xe4] sm:$0xf] }
 0x203   : > { %5611 = vmatmul.bf16.gmra.mxu2 %v9224_v24  ;;  %v2773_v24 = vshll.u32 %v2576_v44, 16  ;;  %v2292_v8 = vshll.u32 %v2079_v25, 16  ;;  %v10476_v43 = vld [vmem:[#allocation3 + $0x300] sm:$0xf0]  ;;  %3064 = vst [vmem:[#allocation3 + $0x238] sm:$0xf] %v3032_v57 }
 0x204   : > { %v2767_v16 = vsel %vm11094_vm2, %v9044_v30, %v2766_v40  ;;  %v2284_v30 = vrot.slane %v2282_v21, 5 }
 0x205   : > { %v2775_v14 = vor.u32 %v2773_v24, %v2772_v38  ;;  %2999 = vst [vmem:[#allocation3 + $0x210] sm:$0xf] %v2767_v16  ;;  %v2288_v24 = vrot.slane %v2286_v32, 4  ;;  %v2294_v29 = vrot.slane %v2292_v8, 5 }
 0x206   : > { %v5296_v2 = vpop.f32.mrf.mxu2 }
 0x207   : > { %v5297_v55 = vadd.f32 %v5296_v2, %v5208_v50  ;;  %v5209_v44 = vpop.f32.mrf.mxu1  ;;  %v5421_v45 = vpop.f32.mrf.mxu0  ;;  %v3031_v50 = vld [vmem:[#allocation2 + $0xe0] sm:$0xf]  ;;  %5705 = vmatmul.bf16.gmra.mxu3 %v9264_v36  ;;  %v2776_v4 = vsel %vm11094_vm2, %v2768_v9, %v2775_v14  ;;  %v2278_v2 = vrot.slane %v2276_v1, 5  ;;  %v2289_v9 = vor.u32 %v2288_v24, %v2284_v30  ;;  %v2578_v1 = vld [vmem:[#allocation2 + $0xf8] sm:$0xf] }
 0x208   : > { %v5210_v11 = vadd.f32 %v5209_v44, %v11732_v49  ;;  %v11775_v31 = vadd.f32 %v5421_v45, %v11486_v34  ;;  %3063 = vst [vmem:[#allocation3 + $0x214] sm:$0xf] %v3031_v50  ;;  %v9260_v49 = vor.u32 %v10432_v56, %v9259_v54  ;;  %v9253_v34 = vld [vmem:[#allocation3 + $0x19c] sm:$0xf0]  ;;  %v10437_v50 = vld [vmem:[#allocation3 + $0x1cc] sm:$0xf] }
 0x209   : > { %v11769_v52 = vadd.f32 %v5385_v33, %v5297_v55  ;;  %v9431_v33 = vld [vmem:[#allocation3 + $0x2e0] sm:$0xf]  ;;  %3000 = vst [vmem:[#allocation3 + $0x234] sm:$0xf] %v2776_v4  ;;  %v10427_v55 = vld [vmem:[#allocation3 + $0x17c] sm:$0xf]  ;;  %v2279_v38 = vor.u32 %v2278_v2, %v2275_v22 }
 0x20a   : > { %v5390_v40 = vpop.f32.mrf.mxu3  ;;  %v9432_v16 = vor.u32 %v10476_v43, %v9431_v33  ;;  %v9256_v14 = vor.u32 %v10427_v55, %v9253_v34  ;;  %v2290_v45 = vrot.slane %v2289_v9, 4  ;;  %v2579_v54 = vld [vmem:[#allocation2 + $0xfc] sm:$0xf]  ;;  %v2783_v56 = vshrl.u32 %v2578_v1, 16  ;;  %v9297_v22 = vld [vmem:[#allocation3 + $0x1ec] sm:$0xf0] }
 0x20b   : > { %v2280_v44 = vrot.slane %v2279_v38, 4  ;;  %v2577_v4 = vld [vmem:[#allocation2 + $0xf4] sm:$0x8]  ;;  %v2792_v60 = vshrl.u32 %v2579_v54, 16  ;;  %v9300_v24 = vor.u32 %v10437_v50, %v9297_v22  ;;  %v2297_v55 = vshrl.u32 %v2080_v48, 16  ;;  %v10589_v34 = vld [vmem:[%s13141_s1 + $0x208] sm:$0xff] }
 0x20c   : > { %v2295_v33 = vsel %vm11204_vm5, %v2290_v45, %v2294_v29  ;;  %v2778_v8 = vshrl.u32 %v2577_v4, 16  ;;  %v2785_v43 = vrot.slane %v2783_v56, 7  ;;  %v2081_v29 = vld [vmem:[#allocation2 + $0xe4] sm:$0xf]  ;;  %5767 = vmatpush.bf16.msra.mxu0 %v10589_v34  ;;  %v10436_v34 = vld [vmem:[#allocation3 + $0x1c4] sm:$0xf] }
 0x20d   : > { %2535 = vst [vmem:[#allocation3 + $0x230] sm:$0xf] %v2295_v33  ;;  %v2794_v9 = vrot.slane %v2792_v60, 7  ;;  %v2306_v45 = vshll.u32 %v2081_v29, 16  ;;  %v2310_v56 = vshrl.u32 %v2081_v29, 16 }
 0x20e   : > { %v5298_v27 = vpop.f32.mrf.mxu2  ;;  %v2790_v38 = vrot.slane %v2785_v43, 4  ;;  %v3034_v33 = vld [vmem:[#allocation2 + $0xfc] sm:$0xf] }
 0x20f   : > { %v5299_v36 = vadd.f32 %v5298_v27, %v5210_v11  ;;  %v5212_v21 = vpop.f32.mrf.mxu1  ;;  %v5424_v32 = vpop.f32.mrf.mxu0  ;;  %v9045_v27 = vrot.slane %v2778_v8, 11  ;;  %v10485_v60 = vld [vmem:[#allocation3 + $0x348] sm:$0xf0]  ;;  %3066 = vst [vmem:[#allocation3 + $0x280] sm:$0xf] %v3034_v33 }
 0x210   : > { %v5213_v57 = vadd.f32 %v5212_v21, %v11374_v23  ;;  %v11783_v11 = vadd.f32 %v5424_v32, %v11493_v17  ;;  %v2786_v23 = vshll.u32 %v2578_v1, 16  ;;  %v9295_v21 = vld [vmem:[#allocation3 + $0x1c8] sm:$0xf]  ;;  %v10441_v32 = vld [vmem:[#allocation3 + $0x1e8] sm:$0xf0] }
 0x211   : > { %v11779_v25 = vadd.f32 %v5387_v39, %v5299_v36  ;;  %v2285_v39 = vsel %vm11204_vm5, %v2280_v44, %v2284_v30  ;;  %v2300_v44 = vshll.u32 %v2080_v48, 16 }
 0x212   : > { %2534 = vst [vmem:[#allocation3 + $0x20c] sm:$0xf] %v2285_v39  ;;  %5463 = vmatmul.bf16.gmra.mxu0 %v9432_v16  ;;  %5527 = vmatmul.bf16.gmra.mxu1 %v9256_v14  ;;  %v5392_v2 = vpop.f32.mrf.mxu3  ;;  %v2788_v36 = vor.u32 %v2786_v23, %v2785_v43  ;;  %v2082_v16 = vld [vmem:[#allocation2 + $0xe8] sm:$0x1]  ;;  %v2299_v14 = vrot.slane %v2297_v55, 4  ;;  %v2312_v55 = vrot.slane %v2310_v56, 4 }
 0x213   : > { %5616 = vmatmul.bf16.gmra.mxu2 %v9260_v49  ;;  %v2795_v49 = vshll.u32 %v2579_v54, 16  ;;  %v3033_v39 = vld [vmem:[#allocation2 + $0xf8] sm:$0xf]  ;;  %v2316_v23 = vshll.u32 %v2082_v16, 16 }
 0x214   : > { %v2789_v50 = vsel %vm11094_vm2, %v9045_v27, %v2788_v36  ;;  %3065 = vst [vmem:[#allocation3 + $0x25c] sm:$0xf] %v3033_v39  ;;  %v2018_v43 = vld [vmem:[#allocation2 + $0x158] sm:$0xf]  ;;  %v2302_v27 = vrot.slane %v2300_v44, 5 }
 0x215   : > { %v2797_v54 = vor.u32 %v2795_v49, %v2794_v9  ;;  %3001 = vst [vmem:[#allocation3 + $0x258] sm:$0xf] %v2789_v50  ;;  %v2308_v49 = vrot.slane %v2306_v45, 5  ;;  %v2318_v29 = vrot.slane %v2316_v23, 5  ;;  %v2581_v44 = vld [vmem:[#allocation2 + $0x110] sm:$0xf] }
 0x216   : > { %v5301_v17 = vpop.f32.mrf.mxu2  ;;  %2050 = vst [vmem:[#allocation3 + $0x3b8] sm:$0xf] %v2018_v43  ;;  %v2303_v9 = vor.u32 %v2302_v27, %v2299_v14  ;;  %v10446_v39 = vld [vmem:[#allocation3 + $0x214] sm:$0xf]  ;;  %v9333_v14 = vld [vmem:[#allocation3 + $0x234] sm:$0xf0] }
 0x217   : > { %v5302_v30 = vadd.f32 %v5301_v17, %v5213_v57  ;;  %v5214_v57 = vpop.f32.mrf.mxu1  ;;  %v5426_v22 = vpop.f32.mrf.mxu0  ;;  %5710 = vmatmul.bf16.gmra.mxu3 %v9300_v24  ;;  %v2798_v8 = vsel %vm11094_vm2, %v2790_v38, %v2797_v54  ;;  %v2019_v17 = vld [vmem:[#allocation2 + $0x15c] sm:$0xf]  ;;  %v2313_v38 = vor.u32 %v2312_v55, %v2308_v49  ;;  %v2083_v43 = vld [vmem:[#allocation2 + $0xf8] sm:$0xf]  ;;  %v9336_v55 = vor.u32 %v10446_v39, %v9333_v14 }
 0x218   : > { %v5215_v4 = vadd.f32 %v5214_v57, %v11387_v53  ;;  %v11798_v48 = vadd.f32 %v5426_v22, %v11512_v6  ;;  %3002 = vst [vmem:[#allocation3 + $0x27c] sm:$0xf] %v2798_v8  ;;  %v9296_v53 = vor.u32 %v10441_v32, %v9295_v21  ;;  %v9289_v6 = vld [vmem:[#allocation3 + $0x1e4] sm:$0xf0]  ;;  %v2304_v57 = vrot.slane %v2303_v9, 4 }
 0x219   : > { %v11792_v1 = vadd.f32 %v5390_v40, %v5302_v30  ;;  %v9467_v40 = vld [vmem:[#allocation3 + $0x328] sm:$0xf]  ;;  %2051 = vst [vmem:[#allocation3 + $0x3dc] sm:$0xf] %v2019_v17  ;;  %v9292_v54 = vor.u32 %v10436_v34, %v9289_v6  ;;  %v2314_v22 = vrot.slane %v2313_v38, 4  ;;  %v2805_v32 = vshrl.u32 %v2581_v44, 16 }
 0x21a   : > { %v5395_v36 = vpop.f32.mrf.mxu3  ;;  %v9468_v50 = vor.u32 %v10485_v60, %v9467_v40  ;;  %v2582_v21 = vld [vmem:[#allocation2 + $0x114] sm:$0xf]  ;;  %v2580_v8 = vld [vmem:[#allocation2 + $0x10c] sm:$0x8]  ;;  %v2321_v34 = vshrl.u32 %v2083_v43, 16 }
 0x21b   : > { %v2319_v40 = vsel %vm11204_vm5, %v2314_v22, %v2318_v29  ;;  %v2800_v23 = vshrl.u32 %v2580_v8, 16  ;;  %v2807_v60 = vrot.slane %v2805_v32, 7  ;;  %v2814_v17 = vshrl.u32 %v2582_v21, 16  ;;  %v2084_v38 = vld [vmem:[#allocation2 + $0xfc] sm:$0xf] }
 0x21c   : > { %2537 = vst [vmem:[#allocation3 + $0x278] sm:$0xf] %v2319_v40  ;;  %v2085_v29 = vld [vmem:[#allocation2 + $0x100] sm:$0x1]  ;;  %v2324_v22 = vshll.u32 %v2083_v43, 16  ;;  %v2334_v32 = vshrl.u32 %v2084_v38, 16 }
 0x21d   : > { %v2816_v9 = vrot.slane %v2814_v17, 7  ;;  %v2021_v17 = vld [vmem:[#allocation2 + $0x174] sm:$0xf] }
 0x21e   : > { %v5303_v30 = vpop.f32.mrf.mxu2  ;;  %2053 = vst [vmem:[#allocation3 + $0x424] sm:$0xf] %v2021_v17 }
 0x21f   : > { %v5304_v24 = vadd.f32 %v5303_v30, %v5215_v4  ;;  %v5217_v45 = vpop.f32.mrf.mxu1  ;;  %v5429_v56 = vpop.f32.mrf.mxu0  ;;  %v9046_v30 = vrot.slane %v2800_v23, 11  ;;  %v2020_v23 = vld [vmem:[#allocation2 + $0x170] sm:$0xf] }
 0x220   : > { %v5218_v33 = vadd.f32 %v5217_v45, %v11398_v35  ;;  %v11806_v4 = vadd.f32 %v5429_v56, %v11525_v5  ;;  %v2808_v35 = vshll.u32 %v2581_v44, 16  ;;  %v2330_v45 = vshll.u32 %v2084_v38, 16  ;;  %v10450_v44 = vld [vmem:[#allocation3 + $0x230] sm:$0xf0]  ;;  %2052 = vst [vmem:[#allocation3 + $0x400] sm:$0xf] %v2020_v23 }
 0x221   : > { %v11802_v16 = vadd.f32 %v5392_v2, %v5304_v24  ;;  %v2309_v2 = vsel %vm11204_vm5, %v2304_v57, %v2308_v49  ;;  %v2812_v24 = vrot.slane %v2807_v60, 4  ;;  %v2323_v57 = vrot.slane %v2321_v34, 4  ;;  %v2086_v23 = vld [vmem:[#allocation2 + $0x110] sm:$0xf] }
 0x222   : > { %2536 = vst [vmem:[#allocation3 + $0x254] sm:$0xf] %v2309_v2  ;;  %5468 = vmatmul.bf16.gmra.mxu0 %v9468_v50  ;;  %5532 = vmatmul.bf16.gmra.mxu1 %v9292_v54  ;;  %v5397_v27 = vpop.f32.mrf.mxu3  ;;  %v2810_v6 = vor.u32 %v2808_v35, %v2807_v60  ;;  %v9331_v54 = vld [vmem:[#allocation3 + $0x210] sm:$0xf]  ;;  %v3036_v2 = vld [vmem:[#allocation2 + $0x114] sm:$0xf] }
 0x223   : > { %5621 = vmatmul.bf16.gmra.mxu2 %v9296_v53  ;;  %v2817_v53 = vshll.u32 %v2582_v21, 16  ;;  %v2340_v60 = vshll.u32 %v2085_v29, 16  ;;  %v10494_v35 = vld [vmem:[#allocation3 + $0x390] sm:$0xf0]  ;;  %3068 = vst [vmem:[#allocation3 + $0x2c8] sm:$0xf] %v3036_v2 }
 0x224   : > { %v2811_v56 = vsel %vm11094_vm2, %v9046_v30, %v2810_v6  ;;  %v2332_v30 = vrot.slane %v2330_v45, 5 }
 0x225   : > { %v2819_v39 = vor.u32 %v2817_v53, %v2816_v9  ;;  %3003 = vst [vmem:[#allocation3 + $0x2a0] sm:$0xf] %v2811_v56  ;;  %v2336_v53 = vrot.slane %v2334_v32, 4  ;;  %v2342_v38 = vrot.slane %v2340_v60, 5 }
 0x226   : > { %v5306_v5 = vpop.f32.mrf.mxu2 }
 0x227   : > { %v5307_v49 = vadd.f32 %v5306_v5, %v5218_v33  ;;  %v5219_v21 = vpop.f32.mrf.mxu1  ;;  %v5431_v14 = vpop.f32.mrf.mxu0  ;;  %v3035_v33 = vld [vmem:[#allocation2 + $0x110] sm:$0xf]  ;;  %5715 = vmatmul.bf16.gmra.mxu3 %v9336_v55  ;;  %v2820_v43 = vsel %vm11094_vm2, %v2812_v24, %v2819_v39  ;;  %v2326_v5 = vrot.slane %v2324_v22, 5  ;;  %v2337_v24 = vor.u32 %v2336_v53, %v2332_v30  ;;  %v2584_v22 = vld [vmem:[#allocation2 + $0x128] sm:$0xf] }
 0x228   : > { %v5220_v40 = vadd.f32 %v5219_v21, %v11410_v10  ;;  %v11818_v8 = vadd.f32 %v5431_v14, %v11537_v51  ;;  %3067 = vst [vmem:[#allocation3 + $0x2a4] sm:$0xf] %v3035_v33  ;;  %v9332_v10 = vor.u32 %v10450_v44, %v9331_v54  ;;  %v9325_v51 = vld [vmem:[#allocation3 + $0x22c] sm:$0xf0]  ;;  %v10455_v33 = vld [vmem:[#allocation3 + $0x25c] sm:$0xf] }
 0x229   : > { %v11812_v50 = vadd.f32 %v5395_v36, %v5307_v49  ;;  %v9503_v36 = vld [vmem:[#allocation3 + $0x370] sm:$0xf]  ;;  %3004 = vst [vmem:[#allocation3 + $0x2c4] sm:$0xf] %v2820_v43  ;;  %v10445_v49 = vld [vmem:[#allocation3 + $0x20c] sm:$0xf]  ;;  %v2327_v9 = vor.u32 %v2326_v5, %v2323_v57 }
 0x22a   : > { %v5400_v6 = vpop.f32.mrf.mxu3  ;;  %v9504_v56 = vor.u32 %v10494_v35, %v9503_v36  ;;  %v9328_v39 = vor.u32 %v10445_v49, %v9325_v51  ;;  %v2338_v14 = vrot.slane %v2337_v24, 4  ;;  %v2585_v54 = vld [vmem:[#allocation2 + $0x12c] sm:$0xf]  ;;  %v2827_v44 = vshrl.u32 %v2584_v22, 16  ;;  %v9369_v57 = vld [vmem:[#allocation3 + $0x27c] sm:$0xf0] }
 0x22b   : > { %v2328_v21 = vrot.slane %v2327_v9, 4  ;;  %v2583_v43 = vld [vmem:[#allocation2 + $0x124] sm:$0x8]  ;;  %v2836_v17 = vshrl.u32 %v2585_v54, 16  ;;  %v9372_v53 = vor.u32 %v10455_v33, %v9369_v57  ;;  %v2345_v49 = vshrl.u32 %v2086_v23, 16 }
 0x22c   : > { %v2343_v36 = vsel %vm11204_vm5, %v2338_v14, %v2342_v38  ;;  %v2822_v60 = vshrl.u32 %v2583_v43, 16  ;;  %v2829_v35 = vrot.slane %v2827_v44, 7  ;;  %v10588_v51 = vld [vmem:[%s13141_s1 + $0x200] sm:$0xff]  ;;  %v2087_v38 = vld [vmem:[#allocation2 + $0x114] sm:$0xf] }
 0x22d   : > { %2539 = vst [vmem:[#allocation3 + $0x2c0] sm:$0xf] %v2343_v36  ;;  %v2838_v24 = vrot.slane %v2836_v17, 7  ;;  %v2354_v14 = vshll.u32 %v2087_v38, 16  ;;  %5768 = vmatpush.bf16.msra.mxu0 %v10588_v51  ;;  %v2358_v44 = vshrl.u32 %v2087_v38, 16 }
 0x22e   : > { %v5308_v34 = vpop.f32.mrf.mxu2  ;;  %v2834_v9 = vrot.slane %v2829_v35, 4  ;;  %v3038_v36 = vld [vmem:[#allocation2 + $0x12c] sm:$0xf]  ;;  %v10454_v51 = vld [vmem:[#allocation3 + $0x254] sm:$0xf] }
 0x22f   : > { %v5309_v55 = vadd.f32 %v5308_v34, %v5220_v40  ;;  %v5222_v45 = vpop.f32.mrf.mxu1  ;;  %v5434_v32 = vpop.f32.mrf.mxu0  ;;  %v9047_v34 = vrot.slane %v2822_v60, 11  ;;  %v10503_v17 = vld [vmem:[#allocation3 + $0x3d8] sm:$0xf0]  ;;  %3070 = vst [vmem:[#allocation3 + $0x310] sm:$0xf] %v3038_v36 }
 0x230   : > { %v5223_v2 = vadd.f32 %v5222_v45, %v11394_v12  ;;  %v11826_v40 = vadd.f32 %v5434_v32, %v11544_v26  ;;  %v2830_v12 = vshll.u32 %v2584_v22, 16  ;;  %v9367_v45 = vld [vmem:[#allocation3 + $0x258] sm:$0xf]  ;;  %v10459_v32 = vld [vmem:[#allocation3 + $0x278] sm:$0xf0] }
 0x231   : > { %v11822_v29 = vadd.f32 %v5397_v27, %v5309_v55  ;;  %v2333_v27 = vsel %vm11204_vm5, %v2328_v21, %v2332_v30  ;;  %v2348_v21 = vshll.u32 %v2086_v23, 16 }
 0x232   : > { %2538 = vst [vmem:[#allocation3 + $0x29c] sm:$0xf] %v2333_v27  ;;  %5473 = vmatmul.bf16.gmra.mxu0 %v9504_v56  ;;  %5537 = vmatmul.bf16.gmra.mxu1 %v9328_v39  ;;  %v5402_v5 = vpop.f32.mrf.mxu3  ;;  %v2832_v55 = vor.u32 %v2830_v12, %v2829_v35  ;;  %v2088_v56 = vld [vmem:[#allocation2 + $0x118] sm:$0x1]  ;;  %v2347_v39 = vrot.slane %v2345_v49, 4  ;;  %v2360_v49 = vrot.slane %v2358_v44, 4 }
 0x233   : > { %5626 = vmatmul.bf16.gmra.mxu2 %v9332_v10  ;;  %v2839_v10 = vshll.u32 %v2585_v54, 16  ;;  %v3037_v27 = vld [vmem:[#allocation2 + $0x128] sm:$0xf]  ;;  %v2364_v12 = vshll.u32 %v2088_v56, 16 }
 0x234   : > { %v2833_v33 = vsel %vm11094_vm2, %v9047_v34, %v2832_v55  ;;  %3069 = vst [vmem:[#allocation3 + $0x2ec] sm:$0xf] %v3037_v27  ;;  %v2022_v35 = vld [vmem:[#allocation2 + $0x188] sm:$0xf]  ;;  %v2350_v34 = vrot.slane %v2348_v21, 5 }
 0x235   : > { %v2841_v54 = vor.u32 %v2839_v10, %v2838_v24  ;;  %3005 = vst [vmem:[#allocation3 + $0x2e8] sm:$0xf] %v2833_v33  ;;  %v2356_v10 = vrot.slane %v2354_v14, 5  ;;  %v2366_v38 = vrot.slane %v2364_v12, 5  ;;  %v2587_v21 = vld [vmem:[#allocation2 + $0x140] sm:$0xf] }
 0x236   : > { %v5311_v26 = vpop.f32.mrf.mxu2  ;;  %2054 = vst [vmem:[#allocation3 + $0x448] sm:$0xf] %v2022_v35  ;;  %v2351_v24 = vor.u32 %v2350_v34, %v2347_v39  ;;  %v10464_v27 = vld [vmem:[#allocation3 + $0x2a4] sm:$0xf]  ;;  %v9405_v39 = vld [vmem:[#allocation3 + $0x2c4] sm:$0xf0] }
 0x237   : > { %v5312_v30 = vadd.f32 %v5311_v26, %v5223_v2  ;;  %v5224_v2 = vpop.f32.mrf.mxu1  ;;  %v5436_v57 = vpop.f32.mrf.mxu0  ;;  %5720 = vmatmul.bf16.gmra.mxu3 %v9372_v53  ;;  %v2842_v60 = vsel %vm11094_vm2, %v2834_v9, %v2841_v54  ;;  %v2023_v26 = vld [vmem:[#allocation2 + $0x18c] sm:$0xf]  ;;  %v2361_v9 = vor.u32 %v2360_v49, %v2356_v10  ;;  %v2089_v35 = vld [vmem:[#allocation2 + $0x128] sm:$0xf]  ;;  %v9408_v49 = vor.u32 %v10464_v27, %v9405_v39 }
 0x238   : > { %v5225_v43 = vadd.f32 %v5224_v2, %v11417_v18  ;;  %v11841_v23 = vadd.f32 %v5436_v57, %v11570_v15  ;;  %3006 = vst [vmem:[#allocation3 + $0x30c] sm:$0xf] %v2842_v60  ;;  %v9368_v18 = vor.u32 %v10459_v32, %v9367_v45  ;;  %v9361_v15 = vld [vmem:[#allocation3 + $0x274] sm:$0xf0]  ;;  %v2352_v2 = vrot.slane %v2351_v24, 4 }
 0x239   : > { %v11835_v22 = vadd.f32 %v5400_v6, %v5312_v30  ;;  %v9539_v6 = vld [vmem:[#allocation3 + $0x3b8] sm:$0xf]  ;;  %2055 = vst [vmem:[#allocation3 + $0x46c] sm:$0xf] %v2023_v26  ;;  %v9364_v54 = vor.u32 %v10454_v51, %v9361_v15  ;;  %v2362_v57 = vrot.slane %v2361_v9, 4  ;;  %v2849_v32 = vshrl.u32 %v2587_v21, 16 }
 0x23a   : > { %v5681_v55 = vpop.f32.mrf.mxu3  ;;  %v9540_v33 = vor.u32 %v10503_v17, %v9539_v6  ;;  %v2588_v45 = vld [vmem:[#allocation2 + $0x144] sm:$0xf]  ;;  %v2586_v60 = vld [vmem:[#allocation2 + $0x13c] sm:$0x8]  ;;  %v2369_v51 = vshrl.u32 %v2089_v35, 16 }
 0x23b   : > { %v2367_v6 = vsel %vm11204_vm5, %v2362_v57, %v2366_v38  ;;  %v2844_v12 = vshrl.u32 %v2586_v60, 16  ;;  %v2851_v17 = vrot.slane %v2849_v32, 7  ;;  %v2858_v26 = vshrl.u32 %v2588_v45, 16  ;;  %v11855_v15 = vld [vmem:[#allocation3 + $0x2a0] sm:$0xf] }
 0x23c   : > { %2541 = vst [vmem:[#allocation3 + $0x308] sm:$0xf] %v2367_v6  ;;  %v2371_v57 = vrot.slane %v2369_v51, 4 }
 0x23d   : > { %v2856_v9 = vrot.slane %v2851_v17, 4  ;;  %v2860_v38 = vrot.slane %v2858_v26, 7 }
 0x23e   : > { %v5313_v30 = vpop.f32.mrf.mxu2 }
 0x23f   : > { %v5314_v53 = vadd.f32 %v5313_v30, %v5225_v43  ;;  %v5439_v14 = vpop.f32.mrf.mxu0  ;;  %v5503_v44 = vpop.f32.mrf.mxu1  ;;  %v9048_v30 = vrot.slane %v2844_v12, 11  ;;  %v3039_v12 = vld [vmem:[#allocation2 + $0x140] sm:$0xf] }
 0x240   : > { %v11848_v36 = vadd.f32 %v5439_v14, %v11598_v46  ;;  %v5504_v43 = vadd.f32 %v5503_v44, %v11742_v13  ;;  %v2852_v46 = vshll.u32 %v2587_v21, 16  ;;  %v2372_v21 = vshll.u32 %v2089_v35, 16  ;;  %3071 = vst [vmem:[#allocation3 + $0x334] sm:$0xf] %v3039_v12 }
 0x241   : > { %v11845_v56 = vadd.f32 %v5402_v5, %v5314_v53  ;;  %v2357_v5 = vsel %vm11204_vm5, %v2352_v2, %v2356_v10  ;;  %v11857_v53 = vld [vmem:[#allocation3 + $0x2c0] sm:$0xf0]  ;;  %v2090_v2 = vld [vmem:[#allocation2 + $0x12c] sm:$0xf] }
 0x242   : > { %2540 = vst [vmem:[#allocation3 + $0x2e4] sm:$0xf] %v2357_v5  ;;  %5478 = vmatmul.bf16.gmra.mxu0 %v9540_v33  ;;  %5542 = vmatmul.bf16.gmra.mxu1 %v9364_v54  ;;  %v5683_v13 = vpop.f32.mrf.mxu3  ;;  %v2854_v24 = vor.u32 %v2852_v46, %v2851_v17  ;;  %v2091_v33 = vld [vmem:[#allocation2 + $0x130] sm:$0x1]  ;;  %v2378_v14 = vshll.u32 %v2090_v2, 16  ;;  %v2382_v44 = vshrl.u32 %v2090_v2, 16 }
 0x243   : > { %13158 = vst [vmem:[#allocation11_spill] sm:$0xff] %v11845_v56  ;;  %5631 = vmatmul.bf16.gmra.mxu2 %v9368_v18  ;;  %v2861_v18 = vshll.u32 %v2588_v45, 16  ;;  %v11859_v54 = vld [vmem:[#allocation3 + $0x400] sm:$0xf]  ;;  %v11863_v45 = vld [vmem:[#allocation3 + $0x420] sm:$0xf0] }
 0x244   : > { %v2855_v32 = vsel %vm11094_vm2, %v9048_v30, %v2854_v24  ;;  %v2388_v39 = vshll.u32 %v2091_v33, 16  ;;  %v3081_v5 = vld [vmem:[#allocation2 + $0x38] sm:$0xf]  ;;  %v3040_v17 = vld [vmem:[#allocation2 + $0x144] sm:$0xf]  ;;  %v2374_v26 = vrot.slane %v2372_v21, 5  ;;  %v9404_v30 = vor.u32 %v11857_v53, %v11855_v15 }
 0x245   : > { %3007 = vst [vmem:[#allocation3 + $0x330] sm:$0xf] %v2855_v32  ;;  %v2384_v51 = vrot.slane %v2382_v44, 4  ;;  %v10463_v24 = vld [vmem:[#allocation3 + $0x29c] sm:$0xf]  ;;  %v3133_v32 = vshll.u32 %v3081_v5, 16 }
 0x246   : > { %v5592_v34 = vpop.f32.mrf.mxu2  ;;  %3072 = vst [vmem:[#allocation3 + $0x358] sm:$0xf] %v3040_v17 }
 0x247   : > { %v5593_v10 = vadd.f32 %v5592_v34, %v5504_v43  ;;  %v2863_v43 = vor.u32 %v2861_v18, %v2860_v38  ;;  %v5441_v6 = vpop.f32.mrf.mxu0  ;;  %v5505_v60 = vpop.f32.mrf.mxu1  ;;  %5725 = vmatmul.bf16.gmra.mxu3 %v9408_v49  ;;  %v3082_v34 = vld [vmem:[#allocation2 + $0x3c] sm:$0xf]  ;;  %v2380_v18 = vrot.slane %v2378_v14, 5  ;;  %v2390_v49 = vrot.slane %v2388_v39, 5 }
 0x248   : > { %v11868_v46 = vadd.f32 %v5441_v6, %v11626_v63  ;;  %v5506_v35 = vadd.f32 %v5505_v60, %v11755_v7  ;;  %v9576_v63 = vor.u32 %v11863_v45, %v11859_v54  ;;  %v2375_v7 = vor.u32 %v2374_v26, %v2371_v57 }
 0x249   : > { %v11861_v27 = vadd.f32 %v5681_v55, %v5593_v10  ;;  %v2864_v55 = vsel %vm11094_vm2, %v2856_v9, %v2863_v43  ;;  %v3083_v10 = vld [vmem:[#allocation2 + $0x40] sm:$0x1]  ;;  %v3130_v38 = vshrl.u32 %v3081_v5, 16  ;;  %v9397_v9 = vld [vmem:[#allocation3 + $0x2bc] sm:$0xf0]  ;;  %v2385_v21 = vor.u32 %v2384_v51, %v2380_v18 }
 0x24a   : > { %3008 = vst [vmem:[#allocation3 + $0x354] sm:$0xf] %v2864_v55  ;;  %v5686_v33 = vpop.f32.mrf.mxu3  ;;  %v3139_v43 = vshll.u32 %v3082_v34, 16  ;;  %v3143_v6 = vshrl.u32 %v3082_v34, 16  ;;  %v2376_v53 = vrot.slane %v2375_v7, 4  ;;  %v3149_v44 = vshll.u32 %v3083_v10, 16 }
 0x24b   : > { %13159 = vst [vmem:[#allocation12_spill] sm:$0xff] %v11861_v27  ;;  %v3132_v14 = vrot.slane %v3130_v38, 4  ;;  %v2386_v60 = vrot.slane %v2385_v21, 4  ;;  %v3135_v12 = vrot.slane %v3133_v32, 5  ;;  %v9400_v57 = vor.u32 %v10463_v24, %v9397_v9  ;;  %v2590_v10 = vld [vmem:[#allocation2 + $0x158] sm:$0xf] }
 0x24c   : > { %v3141_v55 = vrot.slane %v3139_v43, 5  ;;  %v3145_v54 = vrot.slane %v3143_v6, 4  ;;  %v2381_v39 = vsel %vm11204_vm5, %v2376_v53, %v2380_v18  ;;  %v3151_v17 = vrot.slane %v3149_v44, 5  ;;  %v2591_v7 = vld [vmem:[#allocation2 + $0x15c] sm:$0xf] }
 0x24d   : > { %v2391_v5 = vsel %vm11204_vm5, %v2386_v60, %v2390_v49  ;;  %2542 = vst [vmem:[#allocation3 + $0x32c] sm:$0xf] %v2381_v39  ;;  %v10473_v24 = vld [vmem:[#allocation3 + $0x2ec] sm:$0xf]  ;;  %v2589_v18 = vld [vmem:[#allocation2 + $0x154] sm:$0x8] }
 0x24e   : > { %v5594_v2 = vpop.f32.mrf.mxu2  ;;  %v3146_v34 = vor.u32 %v3145_v54, %v3141_v55  ;;  %2543 = vst [vmem:[#allocation3 + $0x350] sm:$0xf] %v2391_v5  ;;  %v2866_v32 = vshrl.u32 %v2589_v18, 16  ;;  %v2871_v49 = vshrl.u32 %v2590_v10, 16  ;;  %v2874_v43 = vshll.u32 %v2590_v10, 16 }
 0x24f   : > { %v5595_v15 = vadd.f32 %v5594_v2, %v5506_v35  ;;  %v5444_v26 = vpop.f32.mrf.mxu0  ;;  %v5508_v51 = vpop.f32.mrf.mxu1  ;;  %v3136_v35 = vor.u32 %v3135_v12, %v3132_v14  ;;  %v9441_v2 = vld [vmem:[#allocation3 + $0x30c] sm:$0xf0]  ;;  %v2880_v6 = vshrl.u32 %v2591_v7, 16  ;;  %v2093_v12 = vld [vmem:[#allocation2 + $0x144] sm:$0xf] }
 0x250   : > { %v11884_v38 = vadd.f32 %v5444_v26, %v11638_v61  ;;  %v3147_v21 = vrot.slane %v3146_v34, 4  ;;  %v11889_v61 = vld [vmem:[#allocation3 + $0x2e8] sm:$0xf]  ;;  %v9049_v60 = vrot.slane %v2866_v32, 11  ;;  %v2873_v39 = vrot.slane %v2871_v49, 7 }
 0x251   : > { %v11877_v45 = vadd.f32 %v5683_v13, %v5595_v15  ;;  %v5509_v13 = vadd.f32 %v5508_v51, %v11763_v47  ;;  %v3137_v9 = vrot.slane %v3136_v35, 4  ;;  %v2092_v15 = vld [vmem:[#allocation2 + $0x140] sm:$0xf]  ;;  %v11891_v47 = vld [vmem:[#allocation3 + $0x308] sm:$0xf0]  ;;  %v2882_v26 = vrot.slane %v2880_v6, 7 }
 0x252   : > { %5483 = vmatmul.bf16.gmra.mxu0 %v9576_v63  ;;  %5547 = vmatmul.bf16.gmra.mxu1 %v9400_v57  ;;  %v11887_v14 = vpop.f32.mrf.mxu3  ;;  %v3152_v44 = vsel %vm11204_vm5, %v3147_v21, %v3151_v17  ;;  %v2883_v63 = vshll.u32 %v2591_v7, 16  ;;  %v9444_v57 = vor.u32 %v10473_v24, %v9441_v2  ;;  %v2094_v51 = vld [vmem:[#allocation2 + $0x148] sm:$0x1]  ;;  %v2393_v5 = vshrl.u32 %v2092_v15, 16  ;;  %v3084_v2 = vld [vmem:[#allocation2 + $0x50] sm:$0xf] }
 0x253   : > { %13160 = vst [vmem:[#allocation13_spill] sm:$0xff] %v11877_v45  ;;  %5636 = vmatmul.bf16.gmra.mxu2 %v9404_v30  ;;  %v3142_v30 = vsel %vm11204_vm5, %v3137_v9, %v3141_v55  ;;  %v2396_v35 = vshll.u32 %v2092_v15, 16  ;;  %v2402_v34 = vshll.u32 %v2093_v12, 16  ;;  %v2406_v10 = vshrl.u32 %v2093_v12, 16  ;;  %v11899_v55 = vld [vmem:[#allocation3 + $0x448] sm:$0xf] }
 0x254   : > { %3545 = vst [vmem:[#allocation3 + $0x20] sm:$0xf] %v3142_v30  ;;  %v2876_v9 = vor.u32 %v2874_v43, %v2873_v39  ;;  %v2878_v17 = vrot.slane %v2873_v39, 4  ;;  %v2885_v21 = vor.u32 %v2883_v63, %v2882_v26  ;;  %v2412_v24 = vshll.u32 %v2094_v51, 16  ;;  %v10472_v15 = vld [vmem:[#allocation3 + $0x2e4] sm:$0xf] }
 0x255   : > { %3546 = vst [vmem:[#allocation3 + $0x44] sm:$0xf] %v3152_v44  ;;  %v3041_v30 = vld [vmem:[#allocation2 + $0x158] sm:$0xf]  ;;  %v3042_v44 = vld [vmem:[#allocation2 + $0x15c] sm:$0xf] }
 0x256   : > { %v5597_v53 = vpop.f32.mrf.mxu2  ;;  %v2877_v43 = vsel %vm11094_vm2, %v9049_v60, %v2876_v9  ;;  %v3085_v63 = vld [vmem:[#allocation2 + $0x54] sm:$0xf]  ;;  %v2886_v12 = vsel %vm11094_vm2, %v2878_v17, %v2885_v21  ;;  %v2404_v39 = vrot.slane %v2402_v34, 5  ;;  %v3157_v26 = vshll.u32 %v3084_v2, 16  ;;  %3073 = vst [vmem:[#allocation3 + $0x37c] sm:$0xf] %v3041_v30 }
 0x257   : > { %v5598_v54 = vadd.f32 %v5597_v53, %v5509_v13  ;;  %v5446_v7 = vpop.f32.mrf.mxu0  ;;  %v5510_v32 = vpop.f32.mrf.mxu1  ;;  %v11901_v13 = vld [vmem:[#allocation3 + $0x468] sm:$0xf0]  ;;  %5730 = vmatmul.bf16.gmra.mxu3 %v9444_v57  ;;  %v9433_v53 = vld [vmem:[#allocation3 + $0x304] sm:$0xf0]  ;;  %3009 = vst [vmem:[#allocation3 + $0x378] sm:$0xf] %v2877_v43 }
 0x258   : > { %v11904_v49 = vadd.f32 %v5446_v7, %v11649_v42  ;;  %v5511_v6 = vadd.f32 %v5510_v32, %v11775_v31  ;;  %v2395_v42 = vrot.slane %v2393_v5, 4  ;;  %v3086_v31 = vld [vmem:[#allocation2 + $0x58] sm:$0x1]  ;;  %3010 = vst [vmem:[#allocation3 + $0x39c] sm:$0xf] %v2886_v12  ;;  %v3154_v57 = vshrl.u32 %v3084_v2, 16 }
 0x259   : > { %v11897_v18 = vadd.f32 %v5686_v33, %v5598_v54  ;;  %v9440_v33 = vor.u32 %v11891_v47, %v11889_v61  ;;  %v2398_v54 = vrot.slane %v2396_v35, 5  ;;  %v9612_v61 = vor.u32 %v11901_v13, %v11899_v55  ;;  %3074 = vst [vmem:[#allocation3 + $0x3a0] sm:$0xf] %v3042_v44  ;;  %v2593_v30 = vld [vmem:[#allocation2 + $0x170] sm:$0xf] }
 0x25a   : > { %v2408_v47 = vrot.slane %v2406_v10, 4  ;;  %v11915_v60 = vpop.f32.mrf.mxu3  ;;  %v2414_v7 = vrot.slane %v2412_v24, 5  ;;  %v3163_v32 = vshll.u32 %v3085_v63, 16  ;;  %v3167_v17 = vshrl.u32 %v3085_v63, 16 }
 0x25b   : > { %13161 = vst [vmem:[#allocation14_spill] sm:$0xff] %v11897_v18  ;;  %v2399_v9 = vor.u32 %v2398_v54, %v2395_v42  ;;  %v3156_v35 = vrot.slane %v3154_v57, 4  ;;  %v3159_v34 = vrot.slane %v3157_v26, 5  ;;  %v9436_v43 = vor.u32 %v10472_v15, %v9433_v53  ;;  %v2594_v42 = vld [vmem:[#allocation2 + $0x174] sm:$0xf] }
 0x25c   : > { %v2409_v5 = vor.u32 %v2408_v47, %v2404_v39  ;;  %v3165_v55 = vrot.slane %v3163_v32, 5  ;;  %v3169_v13 = vrot.slane %v3167_v17, 4  ;;  %v3173_v56 = vshll.u32 %v3086_v31, 16  ;;  %v9477_v26 = vld [vmem:[#allocation3 + $0x354] sm:$0xf0] }
 0x25d   : > { %v2400_v45 = vrot.slane %v2399_v9, 4  ;;  %v3160_v12 = vor.u32 %v3159_v34, %v3156_v35  ;;  %v2893_v63 = vshrl.u32 %v2593_v30, 16  ;;  %v2902_v47 = vshrl.u32 %v2594_v42, 16  ;;  %v2096_v35 = vld [vmem:[#allocation2 + $0x15c] sm:$0xf] }
 0x25e   : > { %v5599_v51 = vpop.f32.mrf.mxu2  ;;  %v2410_v2 = vrot.slane %v2409_v5, 4  ;;  %v3170_v44 = vor.u32 %v3169_v13, %v3165_v55  ;;  %v3175_v9 = vrot.slane %v3173_v56, 5  ;;  %v2896_v32 = vshll.u32 %v2593_v30, 16  ;;  %v11934_v13 = vld [vmem:[#allocation3 + $0x330] sm:$0xf] }
 0x25f   : > { %v5600_v21 = vadd.f32 %v5599_v51, %v5511_v6  ;;  %v5449_v24 = vpop.f32.mrf.mxu0  ;;  %v5513_v54 = vpop.f32.mrf.mxu1  ;;  %v2405_v6 = vsel %vm11204_vm5, %v2400_v45, %v2404_v39  ;;  %v3161_v57 = vrot.slane %v3160_v12, 4  ;;  %v2895_v39 = vrot.slane %v2893_v63, 7 }
 0x260   : > { %v11923_v15 = vadd.f32 %v5449_v24, %v11661_v41  ;;  %v5514_v53 = vadd.f32 %v5513_v54, %v11783_v11  ;;  %v2415_v31 = vsel %vm11204_vm5, %v2410_v2, %v2414_v7  ;;  %2544 = vst [vmem:[#allocation3 + $0x374] sm:$0xf] %v2405_v6  ;;  %v3171_v51 = vrot.slane %v3170_v44, 4  ;;  %v2592_v41 = vld [vmem:[#allocation2 + $0x16c] sm:$0x8] }
 0x261   : > { %v11918_v10 = vadd.f32 %v11887_v14, %v5600_v21  ;;  %v10482_v14 = vld [vmem:[#allocation3 + $0x334] sm:$0xf]  ;;  %2545 = vst [vmem:[#allocation3 + $0x398] sm:$0xf] %v2415_v31  ;;  %v3166_v45 = vsel %vm11204_vm5, %v3161_v57, %v3165_v55  ;;  %v2095_v11 = vld [vmem:[#allocation2 + $0x158] sm:$0xf]  ;;  %v2898_v34 = vor.u32 %v2896_v32, %v2895_v39 }
 0x262   : > { %5488 = vmatmul.bf16.gmra.mxu0 %v9612_v61  ;;  %5552 = vmatmul.bf16.gmra.mxu1 %v9436_v43  ;;  %v11930_v17 = vpop.f32.mrf.mxu3  ;;  %v3176_v7 = vsel %vm11204_vm5, %v3171_v51, %v3175_v9  ;;  %3547 = vst [vmem:[#allocation3 + $0x68] sm:$0xf] %v3166_v45  ;;  %v2888_v21 = vshrl.u32 %v2592_v41, 16  ;;  %v2904_v5 = vrot.slane %v2902_v47, 7  ;;  %v9480_v61 = vor.u32 %v10482_v14, %v9477_v26  ;;  %v2097_v55 = vld [vmem:[#allocation2 + $0x160] sm:$0x1] }
 0x263   : > { %13162 = vst [vmem:[#allocation15_spill] sm:$0xff] %v11918_v10  ;;  %5641 = vmatmul.bf16.gmra.mxu2 %v9440_v33  ;;  %v2900_v43 = vrot.slane %v2895_v39, 4  ;;  %v2905_v12 = vshll.u32 %v2594_v42, 16  ;;  %v2417_v30 = vshrl.u32 %v2095_v11, 16  ;;  %v2420_v24 = vshll.u32 %v2095_v11, 16 }
 0x264   : > { %3548 = vst [vmem:[#allocation3 + $0x8c] sm:$0xf] %v3176_v7  ;;  %v9050_v2 = vrot.slane %v2888_v21, 11  ;;  %v10486_v6 = vld [vmem:[#allocation3 + $0x350] sm:$0xf0]  ;;  %v2426_v44 = vshll.u32 %v2096_v35, 16 }
 0x265   : > { %v2430_v63 = vshrl.u32 %v2096_v35, 16  ;;  %v3087_v47 = vld [vmem:[#allocation2 + $0x68] sm:$0xf]  ;;  %v11939_v14 = vld [vmem:[#allocation3 + $0x32c] sm:$0xf]  ;;  %v2907_v51 = vor.u32 %v2905_v12, %v2904_v5  ;;  %v2436_v9 = vshll.u32 %v2097_v55, 16 }
 0x266   : > { %v5602_v33 = vpop.f32.mrf.mxu2  ;;  %v11941_v57 = vld [vmem:[#allocation3 + $0x34c] sm:$0xf0]  ;;  %v2899_v26 = vsel %vm11094_vm2, %v9050_v2, %v2898_v34  ;;  %v3043_v42 = vld [vmem:[#allocation2 + $0x170] sm:$0xf]  ;;  %v3088_v45 = vld [vmem:[#allocation2 + $0x6c] sm:$0xf] }
 0x267   : > { %v5603_v56 = vadd.f32 %v5602_v33, %v5514_v53  ;;  %v5451_v31 = vpop.f32.mrf.mxu0  ;;  %v5515_v53 = vpop.f32.mrf.mxu1  ;;  %5735 = vmatmul.bf16.gmra.mxu3 %v9480_v61  ;;  %3011 = vst [vmem:[#allocation3 + $0x3c0] sm:$0xf] %v2899_v26  ;;  %v3044_v39 = vld [vmem:[#allocation2 + $0x174] sm:$0xf]  ;;  %v2419_v32 = vrot.slane %v2417_v30, 4  ;;  %v2422_v11 = vrot.slane %v2420_v24, 5  ;;  %v2908_v21 = vsel %vm11094_vm2, %v2900_v43, %v2907_v51 }
 0x268   : > { %v5516_v41 = vadd.f32 %v5515_v53, %v11798_v48  ;;  %v9087_v33 = vld [vmem:[#allocation3 + $0x20] sm:$0xf]  ;;  %v10388_v7 = vld [vmem:[#allocation3 + $0x40] sm:$0xf0]  ;;  %3075 = vst [vmem:[#allocation3 + $0x3c4] sm:$0xf] %v3043_v42  ;;  %v9472_v43 = vor.u32 %v11939_v14, %v11941_v57 }
 0x269   : > { %v11937_v54 = vadd.f32 %v11915_v60, %v5603_v56  ;;  %v11946_v60 = vadd.f32 %v5451_v31, %v11668_v28  ;;  %v2428_v5 = vrot.slane %v2426_v44, 5  ;;  %v2432_v35 = vrot.slane %v2430_v63, 4  ;;  %3012 = vst [vmem:[#allocation3 + $0x3e4] sm:$0xf] %v2908_v21  ;;  %v3089_v34 = vld [vmem:[#allocation2 + $0x70] sm:$0x1] }
 0x26a   : > { %v9476_v56 = vor.u32 %v10486_v6, %v11934_v13  ;;  %v2423_v28 = vor.u32 %v2422_v11, %v2419_v32  ;;  %v3178_v55 = vshrl.u32 %v3087_v47, 16  ;;  %v11952_v61 = vpop.f32.mrf.mxu3  ;;  %3076 = vst [vmem:[#allocation3 + $0x3e8] sm:$0xf] %v3044_v39  ;;  %v2438_v12 = vrot.slane %v2436_v9, 5  ;;  %v2597_v32 = vld [vmem:[#allocation2 + $0x18c] sm:$0xf] }
 0x26b   : > { %13163 = vst [vmem:[#allocation16_spill] sm:$0xff] %v11937_v54  ;;  %v2433_v2 = vor.u32 %v2432_v35, %v2428_v5  ;;  %v3181_v30 = vshll.u32 %v3087_v47, 16  ;;  %v3187_v24 = vshll.u32 %v3088_v45, 16  ;;  %v3191_v26 = vshrl.u32 %v3088_v45, 16  ;;  %v2596_v47 = vld [vmem:[#allocation2 + $0x188] sm:$0xf] }
 0x26c   : > { %v2424_v44 = vrot.slane %v2423_v28, 4  ;;  %v3180_v63 = vrot.slane %v3178_v55, 4  ;;  %v9088_v42 = vor.u32 %v10388_v7, %v9087_v33  ;;  %v3197_v9 = vshll.u32 %v3089_v34, 16  ;;  %v10491_v21 = vld [vmem:[#allocation3 + $0x37c] sm:$0xf] }
 0x26d   : > { %v2434_v53 = vrot.slane %v2433_v2, 4  ;;  %v3183_v13 = vrot.slane %v3181_v30, 5  ;;  %v3189_v6 = vrot.slane %v3187_v24, 5  ;;  %v3193_v35 = vrot.slane %v3191_v26, 4  ;;  %v9513_v7 = vld [vmem:[#allocation3 + $0x39c] sm:$0xf0] }
 0x26e   : > { %v5604_v48 = vpop.f32.mrf.mxu2  ;;  %v2429_v39 = vsel %vm11204_vm5, %v2424_v44, %v2428_v5  ;;  %v2915_v45 = vshrl.u32 %v2596_v47, 16  ;;  %v2924_v5 = vshrl.u32 %v2597_v32, 16  ;;  %v3199_v55 = vrot.slane %v3197_v9, 5  ;;  %v11969_v30 = vld [vmem:[#allocation3 + $0x398] sm:$0xf0] }
 0x26f   : > { %v5605_v31 = vadd.f32 %v5604_v48, %v5516_v41  ;;  %v5454_v41 = vpop.f32.mrf.mxu0  ;;  %v5518_v11 = vpop.f32.mrf.mxu1  ;;  %v2439_v14 = vsel %vm11204_vm5, %v2434_v53, %v2438_v12  ;;  %2546 = vst [vmem:[#allocation3 + $0x3bc] sm:$0xf] %v2429_v39  ;;  %v3184_v57 = vor.u32 %v3183_v13, %v3180_v63  ;;  %v3194_v34 = vor.u32 %v3193_v35, %v3189_v6  ;;  %v2595_v48 = vld [vmem:[#allocation2 + $0x184] sm:$0x8]  ;;  %v11967_v12 = vld [vmem:[#allocation3 + $0x378] sm:$0xf] }
 0x270   : > { %v5519_v33 = vadd.f32 %v5518_v11, %v11806_v4  ;;  %2547 = vst [vmem:[#allocation3 + $0x3e0] sm:$0xf] %v2439_v14  ;;  %v2917_v2 = vrot.slane %v2915_v45, 7  ;;  %v2910_v24 = vshrl.u32 %v2595_v48, 16  ;;  %v2098_v26 = vld [vmem:[#allocation2 + $0x170] sm:$0xf] }
 0x271   : > { %v11957_v51 = vadd.f32 %v11930_v17, %v5605_v31  ;;  %v11964_v17 = vadd.f32 %v5454_v41, %v11677_v3  ;;  %v3185_v28 = vrot.slane %v3184_v57, 4  ;;  %v2918_v3 = vshll.u32 %v2596_v47, 16  ;;  %v2099_v39 = vld [vmem:[#allocation2 + $0x174] sm:$0xf]  ;;  %v11977_v47 = vld [vmem:[#allocation3 + $0x394] sm:$0xf0] }
 0x272   : > { %5557 = vmatmul.bf16.gmra.mxu1 %v9472_v43  ;;  %5769 = vmatmul.bf16.vlgmr.msra.gmra.mxu0 %v9088_v42  ;;  %v2926_v31 = vrot.slane %v2924_v5, 7  ;;  %v11971_v4 = vpop.f32.mrf.mxu3  ;;  %v3195_v53 = vrot.slane %v3194_v34, 4  ;;  %v2922_v13 = vrot.slane %v2917_v2, 4  ;;  %v11975_v42 = vld [vmem:[#allocation3 + $0x374] sm:$0xf]  ;;  %v9051_v9 = vrot.slane %v2910_v24, 11 }
 0x273   : > { %13164 = vst [vmem:[#allocation17_spill] sm:$0xff] %v11957_v51  ;;  %5646 = vmatmul.bf16.gmra.mxu2 %v9476_v56  ;;  %v9516_v56 = vor.u32 %v10491_v21, %v9513_v7  ;;  %v3190_v63 = vsel %vm11204_vm5, %v3185_v28, %v3189_v6  ;;  %v2920_v41 = vor.u32 %v2918_v3, %v2917_v2  ;;  %v2927_v11 = vshll.u32 %v2597_v32, 16  ;;  %v2100_v7 = vld [vmem:[#allocation2 + $0x178] sm:$0x1]  ;;  %v3090_v48 = vld [vmem:[#allocation2 + $0x80] sm:$0xf] }
 0x274   : > { %3549 = vst [vmem:[#allocation3 + $0xb0] sm:$0xf] %v3190_v63  ;;  %v3200_v14 = vsel %vm11204_vm5, %v3195_v53, %v3199_v55  ;;  %v2441_v21 = vshrl.u32 %v2098_v26, 16  ;;  %v2444_v57 = vshll.u32 %v2098_v26, 16  ;;  %v2450_v35 = vshll.u32 %v2099_v39, 16  ;;  %v13166_v2 = vld [vmem:[#allocation9_spill] sm:$0xff] }
 0x275   : > { %3550 = vst [vmem:[#allocation3 + $0xd4] sm:$0xf] %v3200_v14  ;;  %v2921_v45 = vsel %vm11094_vm2, %v9051_v9, %v2920_v41  ;;  %v2454_v5 = vshrl.u32 %v2099_v39, 16  ;;  %v9512_v34 = vor.u32 %v11969_v30, %v11967_v12  ;;  %v3045_v55 = vld [vmem:[#allocation2 + $0x188] sm:$0xf]  ;;  %v9508_v3 = vor.u32 %v11975_v42, %v11977_v47 }
 0x276   : > { %v5607_v44 = vpop.f32.mrf.mxu2  ;;  %3013 = vst [vmem:[#allocation3 + $0x408] sm:$0xf] %v2921_v45  ;;  %v3091_v63 = vld [vmem:[#allocation2 + $0x84] sm:$0xf]  ;;  %v3092_v53 = vld [vmem:[#allocation2 + $0x88] sm:$0x1] }
 0x277   : > { %v5608_v43 = vadd.f32 %v5607_v44, %v5519_v33  ;;  %v2929_v33 = vor.u32 %v2927_v11, %v2926_v31  ;;  %v5456_v28 = vpop.f32.mrf.mxu0  ;;  %v5520_v32 = vpop.f32.mrf.mxu1  ;;  %5740 = vmatmul.bf16.gmra.mxu3 %v9516_v56  ;;  %v3046_v44 = vld [vmem:[#allocation2 + $0x18c] sm:$0xf]  ;;  %v9123_v26 = vld [vmem:[#allocation3 + $0x68] sm:$0xf]  ;;  %v2443_v12 = vrot.slane %v2441_v21, 4  ;;  %v2446_v30 = vrot.slane %v2444_v57, 5 }
 0x278   : > { %v11989_v24 = vadd.f32 %v5456_v28, %v13166_v2  ;;  %v2452_v39 = vrot.slane %v2450_v35, 5  ;;  %3077 = vst [vmem:[#allocation3 + $0x40c] sm:$0xf] %v3045_v55  ;;  %v2460_v9 = vshll.u32 %v2100_v7, 16  ;;  %v3202_v41 = vshrl.u32 %v3090_v48, 16 }
 0x279   : > { %v11982_v6 = vadd.f32 %v11952_v61, %v5608_v43  ;;  %v5521_v61 = vadd.f32 %v5520_v32, %v11818_v8  ;;  %v2930_v31 = vsel %vm11094_vm2, %v2922_v13, %v2929_v33  ;;  %v2456_v43 = vrot.slane %v2454_v5, 4  ;;  %v10397_v14 = vld [vmem:[#allocation3 + $0x88] sm:$0xf0]  ;;  %3078 = vst [vmem:[#allocation3 + $0x430] sm:$0xf] %v3046_v44 }
 0x27a   : > { %3014 = vst [vmem:[#allocation3 + $0x42c] sm:$0xf] %v2930_v31  ;;  %v3205_v8 = vshll.u32 %v3090_v48, 16  ;;  %v3211_v56 = vshll.u32 %v3091_v63, 16  ;;  %v11996_v42 = vpop.f32.mrf.mxu3  ;;  %v2447_v13 = vor.u32 %v2446_v30, %v2443_v12  ;;  %v3215_v45 = vshrl.u32 %v3091_v63, 16 }
 0x27b   : > { %13165 = vst [vmem:[#allocation18_spill] sm:$0xff] %v11982_v6  ;;  %v2457_v47 = vor.u32 %v2456_v43, %v2452_v39  ;;  %v3221_v33 = vshll.u32 %v3092_v53, 16  ;;  %v2462_v32 = vrot.slane %v2460_v9, 5  ;;  %v3204_v21 = vrot.slane %v3202_v41, 4  ;;  %v2599_v6 = vld [vmem:[#allocation2 + $0x1a0] sm:$0xf] }
 0x27c   : > { %v3207_v57 = vrot.slane %v3205_v8, 5  ;;  %v2448_v35 = vrot.slane %v2447_v13, 4  ;;  %v3213_v55 = vrot.slane %v3211_v56, 5  ;;  %v3217_v7 = vrot.slane %v3215_v45, 4  ;;  %v2600_v30 = vld [vmem:[#allocation2 + $0x1a4] sm:$0xf] }
 0x27d   : > { %v2458_v5 = vrot.slane %v2457_v47, 4  ;;  %v9124_v2 = vor.u32 %v10397_v14, %v9123_v26  ;;  %v3223_v51 = vrot.slane %v3221_v33, 5  ;;  %v2937_v43 = vshrl.u32 %v2599_v6, 16  ;;  %v13168_v9 = vld [vmem:[#allocation10_spill] sm:$0xff]  ;;  %v9549_v56 = vld [vmem:[#allocation3 + $0x3e4] sm:$0xf0] }
 0x27e   : > { %v5609_v11 = vpop.f32.mrf.mxu2  ;;  %v3208_v31 = vor.u32 %v3207_v57, %v3204_v21  ;;  %v3218_v53 = vor.u32 %v3217_v7, %v3213_v55  ;;  %v2946_v8 = vshrl.u32 %v2600_v30, 16  ;;  %v2598_v13 = vld [vmem:[#allocation2 + $0x19c] sm:$0x8]  ;;  %v2940_v47 = vshll.u32 %v2599_v6, 16  ;;  %v2101_v21 = vld [vmem:[#allocation2 + $0x188] sm:$0xf] }
 0x27f   : > { %v5610_v28 = vadd.f32 %v5609_v11, %v5521_v61  ;;  %v5459_v44 = vpop.f32.mrf.mxu0  ;;  %v12001_v12 = vpop.f32.mrf.mxu1  ;;  %v2453_v61 = vsel %vm11204_vm5, %v2448_v35, %v2452_v39  ;;  %v2463_v63 = vsel %vm11204_vm5, %v2458_v5, %v2462_v32  ;;  %v2939_v14 = vrot.slane %v2937_v43, 7  ;;  %v7655_v35 = vld [vmem:[#allocation4 + $0xc0] sm:$0x1] }
 0x280   : > { %v12008_v41 = vadd.f32 %v5459_v44, %v13168_v9  ;;  %2548 = vst [vmem:[#allocation3 + $0x404] sm:$0xf] %v2453_v61  ;;  %v3209_v26 = vrot.slane %v3208_v31, 4  ;;  %v3219_v11 = vrot.slane %v3218_v53, 4  ;;  %v2948_v32 = vrot.slane %v2946_v8, 7 }
 0x281   : > { %v11999_v48 = vadd.f32 %v11971_v4, %v5610_v28  ;;  %v10500_v4 = vld [vmem:[#allocation3 + $0x3c4] sm:$0xf]  ;;  %2549 = vst [vmem:[#allocation3 + $0x428] sm:$0xf] %v2463_v63  ;;  %v2932_v28 = vshrl.u32 %v2598_v13, 16  ;;  %v2942_v5 = vor.u32 %v2940_v47, %v2939_v14  ;;  %v2944_v31 = vrot.slane %v2939_v14, 4 }
 0x282   : > { %5562 = vmatmul.bf16.gmra.mxu1 %v9508_v3  ;;  %5774 = vmatmul.bf16.gmra.mxu0 %v9124_v2  ;;  %v3214_v39 = vsel %vm11204_vm5, %v3209_v26, %v3213_v55  ;;  %v12014_v33 = vpop.f32.mrf.mxu3  ;;  %v9552_v57 = vor.u32 %v10500_v4, %v9549_v56  ;;  %v7654_v3 = vld [vmem:[#allocation4 + $0xbc] sm:$0xf]  ;;  %v7764_v2 = vshll.u32 %v7655_v35, 16  ;;  %v2949_v44 = vshll.u32 %v2600_v30, 16  ;;  %v10504_v9 = vld [vmem:[#allocation3 + $0x3e0] sm:$0xf0] }
 0x283   : > { %13167 = vst [vmem:[#allocation9_spill] sm:$0xff] %v11999_v48  ;;  %5651 = vmatmul.bf16.gmra.mxu2 %v9512_v34  ;;  %v3224_v34 = vsel %vm11204_vm5, %v3219_v11, %v3223_v51  ;;  %v7755_v7 = vshrl.u32 %v7654_v3, 16  ;;  %v7758_v55 = vshll.u32 %v7654_v3, 16  ;;  %v9052_v6 = vrot.slane %v2932_v28, 11  ;;  %v9547_v51 = vld [vmem:[#allocation3 + $0x3c0] sm:$0xf] }
 0x284   : > { %3551 = vst [vmem:[#allocation3 + $0xf8] sm:$0xf] %v3214_v39  ;;  %v2465_v61 = vshrl.u32 %v2101_v21, 16  ;;  %v2468_v63 = vshll.u32 %v2101_v21, 16  ;;  %v10499_v26 = vld [vmem:[#allocation3 + $0x3bc] sm:$0xf]  ;;  %v2951_v28 = vor.u32 %v2949_v44, %v2948_v32 }
 0x285   : > { %3552 = vst [vmem:[#allocation3 + $0x11c] sm:$0xf] %v3224_v34  ;;  %v9541_v8 = vld [vmem:[#allocation3 + $0x3dc] sm:$0xf0]  ;;  %v7757_v4 = vrot.slane %v7755_v7, 4  ;;  %v7760_v56 = vrot.slane %v7758_v55, 5  ;;  %v2943_v11 = vsel %vm11094_vm2, %v9052_v6, %v2942_v5 }
 0x286   : > { %v12012_v45 = vpop.f32.mrf.mxu2  ;;  %v2102_v39 = vld [vmem:[#allocation2 + $0x18c] sm:$0xf]  ;;  %v2103_v13 = vld [vmem:[#allocation2 + $0x190] sm:$0x1]  ;;  %v9159_v30 = vld [vmem:[#allocation3 + $0xb0] sm:$0xf]  ;;  %v2952_v5 = vsel %vm11094_vm2, %v2944_v31, %v2951_v28 }
 0x287   : > { %v5461_v53 = vpop.f32.mrf.mxu0  ;;  %v12018_v43 = vpop.f32.mrf.mxu1  ;;  %5745 = vmatmul.bf16.gmra.mxu3 %v9552_v57  ;;  %v10406_v14 = vld [vmem:[#allocation3 + $0xd0] sm:$0xf0]  ;;  %v7766_v34 = vrot.slane %v7764_v2, 5  ;;  %3015 = vst [vmem:[#allocation3 + $0x450] sm:$0xf] %v2943_v11  ;;  %v7761_v3 = vor.u32 %v7760_v56, %v7757_v4  ;;  %v2467_v7 = vrot.slane %v2465_v61, 4  ;;  %v9548_v4 = vor.u32 %v10504_v9, %v9547_v51 }
 0x288   : > { %v12023_v47 = vadd.f32 %v5461_v53, %v11716_v62  ;;  %v3047_v21 = vld [vmem:[#allocation2 + $0x1a0] sm:$0xf]  ;;  %v3048_v35 = vld [vmem:[#allocation2 + $0x1a4] sm:$0xf]  ;;  %v2470_v55 = vrot.slane %v2468_v63, 5  ;;  %v2474_v6 = vshll.u32 %v2102_v39, 16  ;;  %v9544_v56 = vor.u32 %v10499_v26, %v9541_v8 }
 0x289   : > { %3079 = vst [vmem:[#allocation3 + $0x454] sm:$0xf] %v3047_v21  ;;  %v2478_v48 = vshrl.u32 %v2102_v39, 16  ;;  %v3093_v62 = vld [vmem:[#allocation2 + $0x98] sm:$0xf]  ;;  %v7762_v2 = vrot.slane %v7761_v3, 4  ;;  %v9160_v20 = vor.u32 %v10406_v14, %v9159_v30 }
 0x28a   : > { %3080 = vst [vmem:[#allocation3 + $0x478] sm:$0xf] %v3048_v35  ;;  %v12029_v57 = vpop.f32.mrf.mxu3  ;;  %v2471_v32 = vor.u32 %v2470_v55, %v2467_v7  ;;  %v2484_v44 = vshll.u32 %v2103_v13, 16  ;;  %v2476_v11 = vrot.slane %v2474_v6, 5  ;;  %v3094_v63 = vld [vmem:[#allocation2 + $0x9c] sm:$0xf] }
 0x28b   : > { %3016 = vst [vmem:[#allocation3 + $0x474] sm:$0xf] %v2952_v5  ;;  %v2480_v61 = vrot.slane %v2478_v48, 4  ;;  %v3095_v21 = vld [vmem:[#allocation2 + $0xa0] sm:$0x1]  ;;  %v7767_v39 = vsel %vm11204_vm5, %v7762_v2, %v7766_v34  ;;  %v3226_v35 = vshrl.u32 %v3093_v62, 16 }
 0x28c   : > { %v12031_v31 = vld [vmem:[#allocation3 + $0x118] sm:$0xf0]  ;;  %v2472_v28 = vrot.slane %v2471_v32, 4  ;;  %v2486_v3 = vrot.slane %v2484_v44, 5  ;;  %v3229_v5 = vshll.u32 %v3093_v62, 16  ;;  %v3235_v7 = vshll.u32 %v3094_v63, 16 }
 0x28d   : > { %7783 = vst [vmem:[#allocation3 + $0x11c] sm:$0xf] %v7767_v39  ;;  %v2481_v54 = vor.u32 %v2480_v61, %v2476_v11  ;;  %v3228_v9 = vrot.slane %v3226_v35, 4  ;;  %v3239_v26 = vshrl.u32 %v3094_v63, 16  ;;  %v3245_v8 = vshll.u32 %v3095_v21, 16 }
 0x28e   : > { %v12027_v53 = vpop.f32.mrf.mxu2  ;;  %v2477_v48 = vsel %vm11204_vm5, %v2472_v28, %v2476_v11  ;;  %v3231_v34 = vrot.slane %v3229_v5, 5  ;;  %v10509_v55 = vld [vmem:[#allocation3 + $0x40c] sm:$0xf]  ;;  %v9585_v6 = vld [vmem:[#allocation3 + $0x42c] sm:$0xf0]  ;;  %v3237_v62 = vrot.slane %v3235_v7, 5 }
 0x28f   : > { %v5464_v13 = vpop.f32.mrf.mxu0  ;;  %v12035_v51 = vpop.f32.mrf.mxu1  ;;  %v2482_v14 = vrot.slane %v2481_v54, 4  ;;  %2550 = vst [vmem:[#allocation3 + $0x44c] sm:$0xf] %v2477_v48  ;;  %v3241_v2 = vrot.slane %v3239_v26, 4  ;;  %v3247_v11 = vrot.slane %v3245_v8, 5  ;;  %v9588_v35 = vor.u32 %v10509_v55, %v9585_v6 }
 0x290   : > { %v12040_v30 = vadd.f32 %v5464_v13, %v11728_v0  ;;  %v3232_v44 = vor.u32 %v3231_v34, %v3228_v9  ;;  %v3096_v61 = vld [vmem:[#allocation2 + $0xb0] sm:$0xf]  ;;  %v3097_v63 = vld [vmem:[#allocation2 + $0xb4] sm:$0xf] }
 0x291   : > { %v2487_v32 = vsel %vm11204_vm5, %v2482_v14, %v2486_v3  ;;  %v3242_v54 = vor.u32 %v3241_v2, %v3237_v62  ;;  %v3250_v39 = vshrl.u32 %v3096_v61, 16  ;;  %v3253_v28 = vshll.u32 %v3096_v61, 16  ;;  %v9583_v61 = vld [vmem:[#allocation3 + $0x408] sm:$0xf] }
 0x292   : > { %5567 = vmatmul.bf16.gmra.mxu1 %v9544_v56  ;;  %5779 = vmatmul.bf16.gmra.mxu0 %v9160_v20  ;;  %v12046_v0 = vpop.f32.mrf.mxu3  ;;  %2551 = vst [vmem:[#allocation3 + $0x470] sm:$0xf] %v2487_v32  ;;  %v3233_v5 = vrot.slane %v3232_v44, 4  ;;  %v3259_v56 = vshll.u32 %v3097_v63, 16  ;;  %v3263_v20 = vshrl.u32 %v3097_v63, 16 }
 0x293   : > { %5656 = vmatmul.bf16.gmra.mxu2 %v9548_v4  ;;  %v3098_v4 = vld [vmem:[#allocation2 + $0xb8] sm:$0x1]  ;;  %v3243_v7 = vrot.slane %v3242_v54, 4  ;;  %v3252_v13 = vrot.slane %v3250_v39, 4  ;;  %v3255_v3 = vrot.slane %v3253_v28, 5 }
 0x294   : > { %v3269_v48 = vshll.u32 %v3098_v4, 16  ;;  %v3238_v9 = vsel %vm11204_vm5, %v3233_v5, %v3237_v62  ;;  %v3261_v26 = vrot.slane %v3259_v56, 5  ;;  %v3265_v8 = vrot.slane %v3263_v20, 4  ;;  %v10513_v63 = vld [vmem:[#allocation3 + $0x428] sm:$0xf0] }
 0x295   : > { %v3248_v2 = vsel %vm11204_vm5, %v3243_v7, %v3247_v11  ;;  %3553 = vst [vmem:[#allocation3 + $0x140] sm:$0xf] %v3238_v9  ;;  %v3256_v55 = vor.u32 %v3255_v3, %v3252_v13  ;;  %v10508_v39 = vld [vmem:[#allocation3 + $0x404] sm:$0xf]  ;;  %v9577_v28 = vld [vmem:[#allocation3 + $0x424] sm:$0xf0] }
 0x296   : > { %v12044_v21 = vpop.f32.mrf.mxu2  ;;  %3554 = vst [vmem:[#allocation3 + $0x164] sm:$0xf] %v3248_v2  ;;  %v3266_v32 = vor.u32 %v3265_v8, %v3261_v26  ;;  %v3271_v44 = vrot.slane %v3269_v48, 5  ;;  %v9195_v5 = vld [vmem:[#allocation3 + $0xf8] sm:$0xf]  ;;  %v9580_v20 = vor.u32 %v10508_v39, %v9577_v28 }
 0x297   : > { %v5466_v14 = vpop.f32.mrf.mxu0  ;;  %v12050_v34 = vpop.f32.mrf.mxu1  ;;  %5750 = vmatmul.bf16.gmra.mxu3 %v9588_v35  ;;  %v3257_v62 = vrot.slane %v3256_v55, 4  ;;  %v9196_v7 = vor.u32 %v12031_v31, %v9195_v5  ;;  %v3099_v48 = vld [vmem:[#allocation2 + $0xc8] sm:$0xf]  ;;  %v3100_v9 = vld [vmem:[#allocation2 + $0xcc] sm:$0xf] }
 0x298   : > { %v12055_v6 = vadd.f32 %v5466_v14, %v11736_v37  ;;  %v3267_v54 = vrot.slane %v3266_v32, 4  ;;  %v9584_v37 = vor.u32 %v10513_v63, %v9583_v61  ;;  %v10518_v14 = vld [vmem:[#allocation3 + $0x454] sm:$0xf]  ;;  %v9621_v2 = vld [vmem:[#allocation3 + $0x474] sm:$0xf0]  ;;  %v3277_v55 = vshll.u32 %v3099_v48, 16 }
 0x299   : > { %v3262_v11 = vsel %vm11204_vm5, %v3257_v62, %v3261_v26  ;;  %v3274_v26 = vshrl.u32 %v3099_v48, 16  ;;  %v3283_v32 = vshll.u32 %v3100_v9, 16  ;;  %v3101_v62 = vld [vmem:[#allocation2 + $0xd0] sm:$0x1]  ;;  %v9624_v28 = vor.u32 %v10518_v14, %v9621_v2  ;;  %v10522_v10 = vld [vmem:[#allocation3 + $0x470] sm:$0xf0] }
 0x29a   : > { %13169 = vst [vmem:[#allocation10_spill] sm:$0xff] %v12055_v6  ;;  %v12059_v56 = vpop.f32.mrf.mxu3  ;;  %v3272_v35 = vsel %vm11204_vm5, %v3267_v54, %v3271_v44  ;;  %v3287_v44 = vshrl.u32 %v3100_v9, 16  ;;  %v3279_v54 = vrot.slane %v3277_v55, 5  ;;  %v3293_v5 = vshll.u32 %v3101_v62, 16  ;;  %v10517_v14 = vld [vmem:[#allocation3 + $0x44c] sm:$0xf] }
 0x29b   : > { %3555 = vst [vmem:[#allocation3 + $0x188] sm:$0xf] %v3262_v11  ;;  %v3276_v61 = vrot.slane %v3274_v26, 4  ;;  %v3285_v39 = vrot.slane %v3283_v32, 5  ;;  %v9619_v26 = vld [vmem:[#allocation3 + $0x450] sm:$0xf] }
 0x29c   : > { %3556 = vst [vmem:[#allocation3 + $0x1ac] sm:$0xf] %v3272_v35  ;;  %v3295_v35 = vrot.slane %v3293_v5, 5  ;;  %v9613_v2 = vld [vmem:[#allocation3 + $0x46c] sm:$0xf0] }
 0x29d   : > { %v3280_v11 = vor.u32 %v3279_v54, %v3276_v61  ;;  %v9231_v61 = vld [vmem:[#allocation3 + $0x140] sm:$0xf]  ;;  %v10424_v62 = vld [vmem:[#allocation3 + $0x160] sm:$0xf0] }
 0x29e   : > { %v12057_v4 = vpop.f32.mrf.mxu2 }
 0x29f   : > { %v5469_v13 = vpop.f32.mrf.mxu0  ;;  %v12066_v3 = vpop.f32.mrf.mxu1  ;;  %v3281_v9 = vrot.slane %v3280_v11, 4 }
 0x2a0   : > { %v12069_v8 = vadd.f32 %v5469_v13, %v11749_v59  ;;  %v3289_v59 = vrot.slane %v3287_v44, 4 }
 0x2a1   : > { %v3286_v55 = vsel %vm11204_vm5, %v3281_v9, %v3285_v39 }
 0x2a2   : > { %13170 = vst [vmem:[#allocation19_spill] sm:$0xff] %v12069_v8  ;;  %5572 = vmatmul.bf16.gmra.mxu1 %v9580_v20  ;;  %5784 = vmatmul.bf16.gmra.mxu0 %v9196_v7  ;;  %v12073_v31 = vpop.f32.mrf.mxu3 }
 0x2a3   : > { %5661 = vmatmul.bf16.gmra.mxu2 %v9584_v37  ;;  %v3290_v37 = vor.u32 %v3289_v59, %v3285_v39  ;;  %3557 = vst [vmem:[#allocation3 + $0x1d0] sm:$0xf] %v3286_v55  ;;  %v9232_v59 = vor.u32 %v10424_v62, %v9231_v61  ;;  %v3102_v39 = vld [vmem:[#allocation2 + $0xe0] sm:$0xf] }
 0x2a4   : > { %v3301_v9 = vshll.u32 %v3102_v39, 16 }
 0x2a5   : > { %v3291_v7 = vrot.slane %v3290_v37, 4  ;;  %v3103_v37 = vld [vmem:[#allocation2 + $0xe4] sm:$0xf] }
 0x2a6   : > { %v12071_v63 = vpop.f32.mrf.mxu2  ;;  %v3311_v55 = vshrl.u32 %v3103_v37, 16 }
 0x2a7   : > { %v5471_v13 = vpop.f32.mrf.mxu0  ;;  %v12075_v48 = vpop.f32.mrf.mxu1  ;;  %5755 = vmatmul.bf16.gmra.mxu3 %v9624_v28  ;;  %v3296_v32 = vsel %vm11204_vm5, %v3291_v7, %v3295_v35  ;;  %v9616_v28 = vor.u32 %v10517_v14, %v9613_v2  ;;  %v3298_v35 = vshrl.u32 %v3102_v39, 16  ;;  %v3307_v7 = vshll.u32 %v3103_v37, 16 }
 0x2a8   : > { %v12078_v20 = vadd.f32 %v5471_v13, %v11759_v58  ;;  %3558 = vst [vmem:[#allocation3 + $0x1f4] sm:$0xf] %v3296_v32  ;;  %v9620_v58 = vor.u32 %v10522_v10, %v9619_v26  ;;  %v3303_v32 = vrot.slane %v3301_v9, 5  ;;  %v3104_v26 = vld [vmem:[#allocation2 + $0xe8] sm:$0x1]  ;;  %v3313_v2 = vrot.slane %v3311_v55, 4 }
 0x2a9   : > { %v3300_v18 = vrot.slane %v3298_v35, 4  ;;  %v3309_v14 = vrot.slane %v3307_v7, 5 }
 0x2aa   : > { %13171 = vst [vmem:[#allocation20_spill] sm:$0xff] %v12078_v20  ;;  %v12086_v54 = vpop.f32.mrf.mxu3 }
 0x2ab   : > { %v3304_v62 = vor.u32 %v3303_v32, %v3300_v18  ;;  %v10639_v18 = vld [vmem:[%s13143_s3 + $0x38] sm:$0xff] }
 0x2ac   : > { %8584 = vmatpush.bf16.msrb.mxu1 %v10639_v18 }
 0x2ae   : > { %v12084_v44 = vpop.f32.mrf.mxu2 }
 0x2af   : > { %v5474_v5 = vpop.f32.mrf.mxu0  ;;  %v12088_v11 = vpop.f32.mrf.mxu1 }
 0x2b0   : > { %v12091_v13 = vadd.f32 %v5474_v5, %v11769_v52  ;;  %v10647_v52 = vld [vmem:[%s13143_s3 + $0x78] sm:$0xff]  ;;  %v3314_v5 = vor.u32 %v3313_v2, %v3309_v14 }
 0x2b1   : > { %8613 = vmatpush.bf16.msrb.mxu2 %v10647_v52  ;;  %v9267_v2 = vld [vmem:[#allocation3 + $0x188] sm:$0xf]  ;;  %v10433_v52 = vld [vmem:[#allocation3 + $0x1a8] sm:$0xf0] }
 0x2b2   : > { %13172 = vst [vmem:[#allocation21_spill] sm:$0xff] %v12091_v13  ;;  %5577 = vmatmul.bf16.gmra.mxu1 %v9616_v28  ;;  %5789 = vmatmul.bf16.gmra.mxu0 %v9232_v59  ;;  %v12095_v61 = vpop.f32.mrf.mxu3  ;;  %v10655_v28 = vld [vmem:[%s13143_s3 + $0xb8] sm:$0xff]  ;;  %v3305_v59 = vrot.slane %v3304_v62, 4  ;;  %v3315_v9 = vrot.slane %v3314_v5, 4 }
 0x2b3   : > { %5666 = vmatmul.bf16.gmra.mxu2 %v9620_v58  ;;  %13173 = vst [vmem:[#allocation22_spill] sm:$0xff] %v12095_v61  ;;  %v3317_v58 = vshll.u32 %v3104_v26, 16  ;;  %8642 = vmatpush.bf16.msra.mxu3 %v10655_v28  ;;  %v3105_v28 = vld [vmem:[#allocation2 + $0xf8] sm:$0xf] }
 0x2b4   : > { %v3310_v55 = vsel %vm11204_vm5, %v3305_v59, %v3309_v14  ;;  %v3322_v59 = vshrl.u32 %v3105_v28, 16 }
 0x2b5   : > { %v3319_v39 = vrot.slane %v3317_v58, 5  ;;  %3559 = vst [vmem:[#allocation3 + $0x218] sm:$0xf] %v3310_v55 }
 0x2b6   : > { %v12093_v10 = vpop.f32.mrf.mxu2  ;;  %v3324_v55 = vrot.slane %v3322_v59, 4 }
 0x2b7   : > { %v5476_v37 = vpop.f32.mrf.mxu0  ;;  %v12103_v35 = vpop.f32.mrf.mxu1  ;;  %v3320_v32 = vsel %vm11204_vm5, %v3315_v9, %v3319_v39  ;;  %v3325_v39 = vshll.u32 %v3105_v28, 16 }
 0x2b8   : > { %v12106_v7 = vadd.f32 %v5476_v37, %v11779_v25  ;;  %3560 = vst [vmem:[#allocation3 + $0x23c] sm:$0xf] %v3320_v32  ;;  %v9268_v25 = vor.u32 %v10433_v52, %v9267_v2  ;;  %v3106_v37 = vld [vmem:[#allocation2 + $0xfc] sm:$0xf]  ;;  %v3107_v2 = vld [vmem:[#allocation2 + $0x100] sm:$0x1] }
 0x2b9   : > { %v3331_v9 = vshll.u32 %v3106_v37, 16  ;;  %v3335_v18 = vshrl.u32 %v3106_v37, 16  ;;  %v3327_v32 = vrot.slane %v3325_v39, 5 }
 0x2ba   : > { %13174 = vst [vmem:[#allocation23_spill] sm:$0xff] %v12106_v7  ;;  %v12117_v62 = vpop.f32.mrf.mxu3 }
 0x2bb   : > { %13175 = vst [vmem:[#allocation24_spill] sm:$0xff] %v12117_v62  ;;  %v3333_v52 = vrot.slane %v3331_v9, 5  ;;  %v3337_v13 = vrot.slane %v3335_v18, 4  ;;  %v3328_v27 = vor.u32 %v3327_v32, %v3324_v55  ;;  %v3341_v62 = vshll.u32 %v3107_v2, 16 }
 0x2bd   : > { %v3338_v61 = vor.u32 %v3337_v13, %v3333_v52  ;;  %v3329_v20 = vrot.slane %v3328_v27, 4  ;;  %v3343_v8 = vrot.slane %v3341_v62, 5  ;;  %v9303_v27 = vld [vmem:[#allocation3 + $0x1d0] sm:$0xf]  ;;  %v10442_v62 = vld [vmem:[#allocation3 + $0x1f0] sm:$0xf0] }
 0x2be   : > { %v12115_v26 = vpop.f32.mrf.mxu2  ;;  %v9304_v39 = vor.u32 %v10442_v62, %v9303_v27  ;;  %v3110_v62 = vld [vmem:[#allocation2 + $0x118] sm:$0x1] }
 0x2bf   : > { %v5479_v58 = vpop.f32.mrf.mxu0  ;;  %v12119_v5 = vpop.f32.mrf.mxu1 }
 0x2c0   : > { %v12122_v14 = vadd.f32 %v5479_v58, %v11792_v1  ;;  %v3339_v58 = vrot.slane %v3338_v61, 4 }
 0x2c2   : > { %13176 = vst [vmem:[#allocation25_spill] sm:$0xff] %v12122_v14  ;;  %5794 = vmatmul.bf16.gmra.mxu0 %v9268_v25  ;;  %v3334_v25 = vsel %vm11204_vm5, %v3329_v20, %v3333_v52  ;;  %v12133_v37 = vpop.f32.mrf.mxu3  ;;  %v3344_v59 = vsel %vm11204_vm5, %v3339_v58, %v3343_v8  ;;  %v3109_v20 = vld [vmem:[#allocation2 + $0x114] sm:$0xf] }
 0x2c3   : > { %13178 = vst [vmem:[#allocation27_spill] sm:$0xff] %v12133_v37  ;;  %v3355_v32 = vshll.u32 %v3109_v20, 16  ;;  %v3359_v2 = vshrl.u32 %v3109_v20, 16  ;;  %v5524_v37 = vadd.f32 %v12001_v12, %v11826_v40  ;;  %v5536_v40 = vadd.f32 %v12075_v48, %v11904_v49 }
 0x2c4   : > { %3561 = vst [vmem:[#allocation3 + $0x260] sm:$0xf] %v3334_v25 }
 0x2c5   : > { %3562 = vst [vmem:[#allocation3 + $0x284] sm:$0xf] %v3344_v59  ;;  %v3357_v59 = vrot.slane %v3355_v32, 5  ;;  %v3361_v27 = vrot.slane %v3359_v2, 4 }
 0x2c6   : > { %v12124_v7 = vpop.f32.mrf.mxu2 }
 0x2c7   : > { %v5481_v6 = vpop.f32.mrf.mxu0  ;;  %v12126_v1 = vpop.f32.mrf.mxu1 }
 0x2c8   : > { %v12129_v28 = vadd.f32 %v5481_v6, %v11802_v16  ;;  %v3108_v6 = vld [vmem:[#allocation2 + $0x110] sm:$0xf] }
 0x2c9   : > { %v3346_v18 = vshrl.u32 %v3108_v6, 16  ;;  %v3349_v55 = vshll.u32 %v3108_v6, 16 }
 0x2ca   : > { %13177 = vst [vmem:[#allocation26_spill] sm:$0xff] %v12129_v28  ;;  %v12146_v52 = vpop.f32.mrf.mxu3  ;;  %v3365_v28 = vshll.u32 %v3110_v62, 16 }
 0x2cb   : > { %13180 = vst [vmem:[#allocation29_spill] sm:$0xff] %v12146_v52  ;;  %v3348_v58 = vrot.slane %v3346_v18, 4  ;;  %v3351_v25 = vrot.slane %v3349_v55, 5 }
 0x2cc   : > { %v3367_v32 = vrot.slane %v3365_v28, 5  ;;  %v10451_v28 = vld [vmem:[#allocation3 + $0x238] sm:$0xf0] }
 0x2ce   : > { %v12137_v13 = vpop.f32.mrf.mxu2 }
 0x2cf   : > { %v5484_v9 = vpop.f32.mrf.mxu0  ;;  %v12139_v61 = vpop.f32.mrf.mxu1 }
 0x2d0   : > { %v12142_v16 = vadd.f32 %v5484_v9, %v11812_v50  ;;  %v10646_v50 = vld [vmem:[%s13143_s3 + $0x70] sm:$0xff]  ;;  %v3352_v9 = vor.u32 %v3351_v25, %v3348_v58 }
 0x2d1   : > { %8614 = vmatpush.bf16.msrb.mxu2 %v10646_v50  ;;  %v10638_v58 = vld [vmem:[%s13143_s3 + $0x30] sm:$0xff] }
 0x2d2   : > { %13179 = vst [vmem:[#allocation28_spill] sm:$0xff] %v12142_v16  ;;  %5799 = vmatmul.bf16.gmra.mxu0 %v9304_v39  ;;  %v3362_v16 = vor.u32 %v3361_v27, %v3357_v59  ;;  %v10654_v39 = vld [vmem:[%s13143_s3 + $0xb0] sm:$0xff]  ;;  %v3353_v18 = vrot.slane %v3352_v9, 4  ;;  %8585 = vmatpush.bf16.msrb.mxu1 %v10638_v58 }
 0x2d3   : > { %8643 = vmatpush.bf16.msra.mxu3 %v10654_v39  ;;  %v9375_v58 = vld [vmem:[#allocation3 + $0x260] sm:$0xf] }
 0x2d4   : > { %v3363_v55 = vrot.slane %v3362_v16, 4  ;;  %v3358_v25 = vsel %vm11204_vm5, %v3353_v18, %v3357_v59  ;;  %v9339_v16 = vld [vmem:[#allocation3 + $0x218] sm:$0xf] }
 0x2d5   : > { %3563 = vst [vmem:[#allocation3 + $0x2a8] sm:$0xf] %v3358_v25  ;;  %v9340_v62 = vor.u32 %v10451_v28, %v9339_v16  ;;  %v10460_v25 = vld [vmem:[#allocation3 + $0x280] sm:$0xf0]  ;;  %v3111_v16 = vld [vmem:[#allocation2 + $0x128] sm:$0xf] }
 0x2d6   : > { %v12144_v8 = vpop.f32.mrf.mxu2  ;;  %v3368_v27 = vsel %vm11204_vm5, %v3363_v55, %v3367_v32  ;;  %v3112_v28 = vld [vmem:[#allocation2 + $0x12c] sm:$0xf]  ;;  %v3373_v14 = vshll.u32 %v3111_v16, 16 }
 0x2d7   : > { %v5486_v6 = vpop.f32.mrf.mxu0  ;;  %v12154_v20 = vpop.f32.mrf.mxu1  ;;  %3564 = vst [vmem:[#allocation3 + $0x2cc] sm:$0xf] %v3368_v27 }
 0x2d8   : > { %v12157_v2 = vadd.f32 %v5486_v6, %v11822_v29  ;;  %v12168_v29 = vpop.f32.mrf.mxu3  ;;  %v3375_v52 = vrot.slane %v3373_v14, 5  ;;  %v5531_v14 = vadd.f32 %v12050_v34, %v11868_v46 }
 0x2d9   : > { %13183 = vst [vmem:[#allocation32_spill] sm:$0xff] %v12168_v29  ;;  %v3379_v29 = vshll.u32 %v3112_v28, 16 }
 0x2da   : > { %13181 = vst [vmem:[#allocation30_spill] sm:$0xff] %v12157_v2  ;;  %v3370_v2 = vshrl.u32 %v3111_v16, 16  ;;  %v5526_v16 = vadd.f32 %v12018_v43, %v11841_v23  ;;  %v5539_v23 = vadd.f32 %v12088_v11, %v11923_v15  ;;  %v5613_v43 = vadd.f32 %v12012_v45, %v5524_v37  ;;  %v3114_v37 = vld [vmem:[#allocation2 + $0x140] sm:$0xf] }
 0x2db   : > { %v5620_v34 = vadd.f32 %v12057_v4, %v5531_v14  ;;  %v5625_v15 = vadd.f32 %v12084_v44, %v5536_v40  ;;  %v5541_v45 = vadd.f32 %v12103_v35, %v11946_v60  ;;  %v5549_v4 = vadd.f32 %v12139_v61, %v12008_v41  ;;  %v13199_v40 = vld [vmem:[#allocation12_spill] sm:$0xff] }
 0x2dc   : > { %v5628_v11 = vadd.f32 %v12093_v10, %v5539_v23  ;;  %v5551_v10 = vadd.f32 %v12154_v20, %v12023_v47  ;;  %v9411_v35 = vld [vmem:[#allocation3 + $0x2a8] sm:$0xf]  ;;  %v13201_v23 = vld [vmem:[#allocation27_spill] sm:$0xff] }
 0x2dd   : > { %v12242_v41 = vadd.f32 %v12073_v31, %v5625_v15  ;;  %v5630_v47 = vadd.f32 %v12115_v26, %v5541_v45  ;;  %v5638_v31 = vadd.f32 %v12144_v8, %v5549_v4 }
 0x2de   : > { %v12166_v50 = vpop.f32.mrf.mxu2 }
 0x2df   : > { %13182 = vst [vmem:[#allocation31_spill] sm:$0xff] %v12166_v50  ;;  %v5489_v9 = vpop.f32.mrf.mxu0  ;;  %v12170_v39 = vpop.f32.mrf.mxu1 }
 0x2e0   : > { %13184 = vst [vmem:[#allocation33_spill] sm:$0xff] %v12170_v39  ;;  %v12173_v6 = vadd.f32 %v5489_v9, %v11835_v22  ;;  %v12177_v18 = vpop.f32.mrf.mxu3  ;;  %v3383_v22 = vshrl.u32 %v3112_v28, 16  ;;  %v9376_v9 = vor.u32 %v10460_v25, %v9375_v58  ;;  %v5529_v58 = vadd.f32 %v12035_v51, %v11848_v36  ;;  %v13195_v25 = vld [vmem:[#allocation19_spill] sm:$0xff] }
 0x2e1   : > { %13187 = vst [vmem:[#allocation36_spill] sm:$0xff] %v12177_v18  ;;  %v3381_v18 = vrot.slane %v3379_v29, 5 }
 0x2e2   : > { %13185 = vst [vmem:[#allocation34_spill] sm:$0xff] %v12173_v6  ;;  %5804 = vmatmul.bf16.gmra.mxu0 %v9340_v62  ;;  %v3372_v6 = vrot.slane %v3370_v2, 4  ;;  %v5534_v2 = vadd.f32 %v12066_v3, %v11884_v38  ;;  %v5615_v38 = vadd.f32 %v12027_v53, %v5526_v16  ;;  %v5618_v49 = vadd.f32 %v12044_v21, %v5529_v58  ;;  %v13197_v58 = vld [vmem:[#allocation22_spill] sm:$0xff] }
 0x2e3   : > { %v5544_v53 = vadd.f32 %v12119_v5, %v11964_v17  ;;  %v5546_v21 = vadd.f32 %v12126_v1, %v11989_v24  ;;  %v12236_v17 = vadd.f32 %v12046_v0, %v5620_v34  ;;  %v12247_v5 = vadd.f32 %v12086_v54, %v5628_v11 }
 0x2e4   : > { %v5623_v3 = vadd.f32 %v12071_v63, %v5534_v2  ;;  %v12225_v63 = vadd.f32 %v11996_v42, %v5613_v43  ;;  %v12228_v44 = vadd.f32 %v12014_v33, %v5615_v38  ;;  %v12233_v60 = vadd.f32 %v12029_v57, %v5618_v49  ;;  %v10469_v33 = vld [vmem:[#allocation3 + $0x2c8] sm:$0xf0]  ;;  %v13203_v49 = vld [vmem:[#allocation29_spill] sm:$0xff] }
 0x2e5   : > { %v5633_v57 = vadd.f32 %v12124_v7, %v5544_v53  ;;  %v5635_v0 = vadd.f32 %v12137_v13, %v5546_v21  ;;  %v13196_v13 = vld [vmem:[#allocation20_spill] sm:$0xff]  ;;  %v12264_v14 = vadd.f32 %v13197_v58, %v5630_v47  ;;  %v12277_v34 = vadd.f32 %v13203_v49, %v5638_v31  ;;  %v13210_v58 = vld [vmem:[#allocation15_spill] sm:$0xff] }
 0x2e6   : > { %v12175_v59 = vpop.f32.mrf.mxu2  ;;  %v12239_v24 = vadd.f32 %v12059_v56, %v5623_v3  ;;  %v12252_v56 = vld [vmem:[#allocation2 + $0x144] sm:$0xf]  ;;  %v13204_v3 = vld [vmem:[#allocation32_spill] sm:$0xff] }
 0x2e7   : > { %13186 = vst [vmem:[#allocation35_spill] sm:$0xff] %v12175_v59  ;;  %v12179_v55 = vpop.f32.mrf.mxu0  ;;  %v12181_v32 = vpop.f32.mrf.mxu1  ;;  %v3385_v59 = vrot.slane %v3383_v22, 4  ;;  %v13191_v61 = vld [vmem:[#allocation33_spill] sm:$0xff]  ;;  %v3403_v8 = vshll.u32 %v12252_v56, 16 }
 0x2e8   : > { %13188 = vst [vmem:[#allocation37_spill] sm:$0xff] %v12179_v55  ;;  %v3113_v55 = vld [vmem:[#allocation2 + $0x130] sm:$0x1]  ;;  %v5554_v20 = vadd.f32 %v13191_v61, %v12040_v30  ;;  %v13198_v30 = vld [vmem:[#allocation24_spill] sm:$0xff] }
 0x2e9   : > { %13189 = vst [vmem:[#allocation38_spill] sm:$0xff] %v12181_v32  ;;  %v12189_v32 = vpop.f32.mrf.mxu3  ;;  %v3386_v50 = vor.u32 %v3385_v59, %v3381_v18  ;;  %v3389_v39 = vshll.u32 %v3113_v55, 16  ;;  %v13192_v59 = vld [vmem:[#allocation31_spill] sm:$0xff]  ;;  %v12267_v2 = vadd.f32 %v13198_v30, %v5633_v57 }
 0x2ea   : > { %v5640_v54 = vadd.f32 %v13192_v59, %v5551_v10  ;;  %v12283_v10 = vrot.slane %v3403_v8, 5 }
 0x2ec   : > { %v12280_v15 = vadd.f32 %v13204_v3, %v5640_v54 }
 0x2ee   : > { %v12183_v27 = vpop.f32.mrf.mxu2 }
 0x2ef   : > { %13190 = vst [vmem:[#allocation39_spill] sm:$0xff] %v12183_v27  ;;  %v12185_v62 = vpop.f32.mrf.mxu0  ;;  %v3376_v27 = vor.u32 %v3375_v52, %v3372_v6  ;;  %v5558_v29 = vpop.f32.mrf.mxu1  ;;  %v3387_v52 = vrot.slane %v3386_v50, 4  ;;  %v3391_v6 = vrot.slane %v3389_v39, 5  ;;  %v3394_v50 = vshrl.u32 %v3114_v37, 16  ;;  %v13208_v31 = vld [vmem:[#allocation37_spill] sm:$0xff] }
 0x2f0   : > { %v3397_v39 = vshll.u32 %v3114_v37, 16  ;;  %v13194_v55 = vld [vmem:[#allocation38_spill] sm:$0xff]  ;;  %v5559_v7 = vadd.f32 %v5558_v29, %v13195_v25  ;;  %v13207_v37 = vld [vmem:[#allocation11_spill] sm:$0xff] }
 0x2f1   : > { %v3377_v12 = vrot.slane %v3376_v27, 4  ;;  %v3392_v46 = vsel %vm11204_vm5, %v3387_v52, %v3391_v6  ;;  %v12244_v42 = vpop.f32.mrf.mxu3  ;;  %v9412_v27 = vor.u32 %v10469_v33, %v9411_v35  ;;  %v13200_v6 = vld [vmem:[#allocation14_spill] sm:$0xff]  ;;  %v12291_v61 = vadd.f32 %v13208_v31, %v13207_v37 }
 0x2f2   : > { %5809 = vmatmul.bf16.gmra.mxu0 %v9376_v9  ;;  %3566 = vst [vmem:[#allocation3 + $0x314] sm:$0xf] %v3392_v46  ;;  %v3396_v9 = vrot.slane %v3394_v50, 4  ;;  %v3399_v16 = vrot.slane %v3397_v39, 5  ;;  %v13202_v46 = vld [vmem:[#allocation35_spill] sm:$0xff] }
 0x2f3   : > { %v3382_v36 = vsel %vm11204_vm5, %v3377_v12, %v3381_v18  ;;  %v13193_v18 = vld [vmem:[#allocation10_spill] sm:$0xff]  ;;  %v5771_v12 = vadd.f32 %v12185_v62, %v13199_v40  ;;  %v5643_v43 = vadd.f32 %v13202_v46, %v5554_v20 }
 0x2f4   : > { %3565 = vst [vmem:[#allocation3 + $0x2f0] sm:$0xf] %v3382_v36  ;;  %v5556_v26 = vadd.f32 %v13194_v55, %v13193_v18  ;;  %v12273_v36 = vadd.f32 %v13201_v23, %v5635_v0  ;;  %v3400_v38 = vor.u32 %v3399_v16, %v3396_v9  ;;  %v13206_v0 = vld [vmem:[#allocation36_spill] sm:$0xff]  ;;  %v13209_v16 = vld [vmem:[#allocation13_spill] sm:$0xff] }
 0x2f6   : > { %v5647_v51 = vpop.f32.mrf.mxu2  ;;  %v13205_v11 = vld [vmem:[#allocation39_spill] sm:$0xff]  ;;  %v3401_v4 = vrot.slane %v3400_v38, 4 }
 0x2f7   : > { %v12213_v48 = vpop.f32.mrf.mxu0  ;;  %v5560_v1 = vpop.f32.mrf.mxu1  ;;  %v5645_v45 = vadd.f32 %v13205_v11, %v5556_v26  ;;  %v5648_v62 = vadd.f32 %v5647_v51, %v5559_v7  ;;  %v10645_v11 = vld [vmem:[%s13143_s3 + $0x68] sm:$0xff] }
 0x2f8   : > { %v5561_v28 = vadd.f32 %v5560_v1, %v13196_v13  ;;  %v12287_v1 = vadd.f32 %v13206_v0, %v5643_v43  ;;  %v3406_v51 = vsel %vm11204_vm5, %v3401_v4, %v12283_v10  ;;  %v12330_v0 = vld [vmem:[%s13142_s2] ss:$0 sm:$0xff]  ;;  %8615 = vmatpush.bf16.msrb.mxu2 %v10645_v11 }
 0x2f9   : > { %v5738_v20 = vpop.f32.mrf.mxu3  ;;  %v12299_v59 = vadd.f32 %v12189_v32, %v5645_v45  ;;  %3567 = vst [vmem:[#allocation3 + $0x338] sm:$0xf] %v3406_v51  ;;  %v12305_v9 = vadd.f32 %v12244_v42, %v5648_v62  ;;  %v5773_v32 = vadd.f32 %v12213_v48, %v13209_v16  ;;  %v3407_v42 = vshrl.u32 %v12252_v56, 16  ;;  %v10653_v45 = vld [vmem:[%s13143_s3 + $0xa8] sm:$0xff] }
 0x2fa   : > { %8644 = vmatpush.bf16.msra.mxu3 %v10653_v45  ;;  %v3116_v45 = vld [vmem:[#allocation2 + $0x148] sm:$0x1] }
 0x2fb   : > { %v12293_v39 = vld [vmem:[#allocation3 + $0x2f0] sm:$0xf] }
 0x2fe   : > { %v5649_v52 = vpop.f32.mrf.mxu2 }
 0x2ff   : > { %v5775_v22 = vpop.f32.mrf.mxu0  ;;  %v5650_v21 = vadd.f32 %v5649_v52, %v5561_v28  ;;  %v5563_v26 = vpop.f32.mrf.mxu1 }
 0x300   : > { %v5776_v29 = vadd.f32 %v5775_v22, %v13200_v6  ;;  %v10478_v22 = vld [vmem:[#allocation3 + $0x310] sm:$0xf0] }
 0x301   : > { %v12309_v8 = vadd.f32 %v5738_v20, %v5650_v21  ;;  %v9448_v43 = vor.u32 %v10478_v22, %v12293_v39 }
 0x302   : > { %v5850_v53 = vmax.f32 %v5771_v12, %v5776_v29  ;;  %5814 = vmatmul.bf16.gmra.mxu0 %v9412_v27  ;;  %v13211_v29 = vld [vmem:[#allocation21_spill] sm:$0xff] }
 0x303   : > { %v12313_v23 = vadd.f32 %v5563_v26, %v13211_v29 }
 0x304   : > { %v5882_v35 = vrot.slane %v5850_v53, 2  ;;  %v5883_v33 = vrot.slane %v5850_v53, 4  ;;  %v5884_v47 = vrot.slane %v5850_v53, 6  ;;  %v5979_v57 = vsel %vm5978_vm6, %v5850_v53, -inf  ;;  %v10637_v53 = vld [vmem:[%s13143_s3 + $0x28] sm:$0xff] }
 0x305   : > { %v5980_v50 = vrot.slane %v5979_v57, 4  ;;  %8586 = vmatpush.bf16.msrb.mxu1 %v10637_v53 }
 0x306   : > { %v5986_v54 = vsel %vm5978_vm6, %v5882_v35, -inf  ;;  %v5993_v18 = vsel %vm5978_vm6, %v5883_v33, -inf  ;;  %v6000_v55 = vsel %vm5978_vm6, %v5884_v47, -inf }
 0x307   : > { %v5981_v25 = vmax.f32 %v5979_v57, %v5980_v50  ;;  %v5987_v7 = vrot.slane %v5986_v54, 4  ;;  %v5994_v27 = vrot.slane %v5993_v18, 4  ;;  %v6001_v13 = vrot.slane %v6000_v55, 4  ;;  %v5777_v28 = vpop.f32.mrf.mxu0 }
 0x308   : > { %v5778_v30 = vadd.f32 %v5777_v28, %v13210_v58 }
 0x309   : > { %v5982_v40 = vrot.slane %v5981_v25, 2  ;;  %v5988_v12 = vmax.f32 %v5986_v54, %v5987_v7  ;;  %v5995_v52 = vmax.f32 %v5993_v18, %v5994_v27  ;;  %v6002_v6 = vmax.f32 %v6000_v55, %v6001_v13 }
 0x30a   : > { %v5851_v46 = vmax.f32 %v5773_v32, %v5778_v30 }
 0x30b   : > { %v5983_v38 = vmax.f32 %v5981_v25, %v5982_v40  ;;  %v5989_v49 = vrot.slane %v5988_v12, 2  ;;  %v5996_v3 = vrot.slane %v5995_v52, 2  ;;  %v6003_v48 = vrot.slane %v6002_v6, 2 }
 0x30c   : > { %v5885_v62 = vrot.slane %v5851_v46, 2  ;;  %v5886_v21 = vrot.slane %v5851_v46, 4  ;;  %v5887_v4 = vrot.slane %v5851_v46, 6  ;;  %v6007_v56 = vsel %vm5978_vm6, %v5851_v46, -inf  ;;  %v5652_v46 = vpop.f32.mrf.mxu2 }
 0x30d   : > { %v5984_v35 = vrot.slane %v5983_v38, 1  ;;  %v5990_v33 = vmax.f32 %v5988_v12, %v5989_v49  ;;  %v5997_v47 = vmax.f32 %v5995_v52, %v5996_v3  ;;  %v6004_v57 = vmax.f32 %v6002_v6, %v6003_v48 }
 0x30e   : > { %v6008_v37 = vrot.slane %v6007_v56, 4  ;;  %v6014_v31 = vsel %vm5978_vm6, %v5885_v62, -inf  ;;  %v6021_v20 = vsel %vm5978_vm6, %v5886_v21, -inf  ;;  %v6028_v50 = vsel %vm5978_vm6, %v5887_v4, -inf }
 0x30f   : > { %v5985_v39 = vmax.f32 %v5983_v38, %v5984_v35  ;;  %v5991_v51 = vrot.slane %v5990_v33, 1  ;;  %v5998_v54 = vrot.slane %v5997_v47, 1  ;;  %v6005_v18 = vrot.slane %v6004_v57, 1  ;;  %v12335_v55 = vpop.f32.mrf.mxu0  ;;  %v5565_v38 = vpop.f32.mrf.mxu1 }
 0x310   : > { %v6009_v26 = vmax.f32 %v6007_v56, %v6008_v37  ;;  %v6015_v25 = vrot.slane %v6014_v31, 4  ;;  %v6022_v7 = vrot.slane %v6021_v20, 4  ;;  %v6029_v27 = vrot.slane %v6028_v50, 4 }
 0x311   : > { %v5992_v13 = vmax.f32 %v5990_v33, %v5991_v51  ;;  %v5999_v28 = vmax.f32 %v5997_v47, %v5998_v54  ;;  %v6006_v22 = vmax.f32 %v6004_v57, %v6005_v18  ;;  %v6431_v16 = vadd.f32 %v12330_v0, %v5985_v39 }
 0x312   : > { %v6010_v32 = vrot.slane %v6009_v26, 2  ;;  %v6016_v58 = vmax.f32 %v6014_v31, %v6015_v25  ;;  %v6023_v30 = vmax.f32 %v6021_v20, %v6022_v7  ;;  %v6030_v40 = vmax.f32 %v6028_v50, %v6029_v27  ;;  %5819 = vmatmul.bf16.gmra.mxu0 %v9448_v43  ;;  %v10644_v43 = vld [vmem:[%s13143_s3 + $0x60] sm:$0xff]  ;;  %v5741_v7 = vpop.f32.mrf.mxu3 }
 0x313   : > { %v6432_v12 = vadd.f32 %v12330_v0, %v5992_v13  ;;  %v6433_v52 = vadd.f32 %v12330_v0, %v5999_v28  ;;  %v6434_v6 = vadd.f32 %v12330_v0, %v6006_v22  ;;  %v6495_v29 = vmax.f32 %v6431_v16, 0.0  ;;  %8616 = vmatpush.bf16.msrb.mxu2 %v10644_v43  ;;  %v10643_v13 = vld [vmem:[%s13143_s3 + $0x58] sm:$0xff] }
 0x314   : > { %v6011_v49 = vmax.f32 %v6009_v26, %v6010_v32  ;;  %v6017_v3 = vrot.slane %v6016_v58, 2  ;;  %v6024_v48 = vrot.slane %v6023_v30, 2  ;;  %v6031_v11 = vrot.slane %v6030_v40, 2 }
 0x315   : > { %v6496_v53 = vmax.f32 %v6432_v12, 0.0  ;;  %v6497_v62 = vmax.f32 %v6433_v52, 0.0  ;;  %v6498_v21 = vmax.f32 %v6434_v6, 0.0  ;;  %v3409_v4 = vrot.slane %v3407_v42, 4 }
 0x316   : > { %v6012_v56 = vrot.slane %v6011_v49, 1  ;;  %v6018_v35 = vmax.f32 %v6016_v58, %v6017_v3  ;;  %v6025_v33 = vmax.f32 %v6023_v30, %v6024_v48  ;;  %v6032_v47 = vmax.f32 %v6030_v40, %v6031_v11  ;;  %v13212_v40 = vld [vmem:[#allocation23_spill] sm:$0xff] }
 0x317   : > { %v6559_v57 = vpack.c.bf16 %v6495_v29, %v6495_v29  ;;  %v6560_v37 = vpack.c.bf16 %v6496_v53, %v6496_v53  ;;  %v6561_v31 = vpack.c.bf16 %v6497_v62, %v6497_v62  ;;  %v12344_v20 = vpop.f32.mrf.mxu0  ;;  %v3413_v50 = vshll.u32 %v3116_v45, 16  ;;  %8617 = vmatpush.bf16.msrb.mxu2 %v10643_v13  ;;  %v5654_v45 = vpop.f32.mrf.mxu2 }
 0x318   : > { %v6013_v39 = vmax.f32 %v6011_v49, %v6012_v56  ;;  %v6019_v51 = vrot.slane %v6018_v35, 1  ;;  %v6026_v54 = vrot.slane %v6025_v33, 1  ;;  %v6033_v42 = vrot.slane %v6032_v47, 1  ;;  %v10636_v49 = vld [vmem:[%s13143_s3 + $0x20] sm:$0xff]  ;;  %v5568_v56 = vpop.f32.mrf.mxu1 }
 0x319   : > { %v6562_v18 = vpack.c.bf16 %v6498_v21, %v6498_v21  ;;  %v6688_v26 = vunpack.c.l.b16 %v6560_v37  ;;  %v6689_v25 = vunpack.c.l.b16 %v6561_v31  ;;  %v3410_v27 = vor.u32 %v3409_v4, %v12283_v10  ;;  %8587 = vmatpush.bf16.msrb.mxu1 %v10636_v49 }
 0x31a   : > { %v6020_v28 = vmax.f32 %v6018_v35, %v6019_v51  ;;  %v6027_v22 = vmax.f32 %v6025_v33, %v6026_v54  ;;  %v6034_v16 = vmax.f32 %v6032_v47, %v6033_v42  ;;  %v6435_v32 = vadd.f32 %v12330_v0, %v6013_v39  ;;  %v13213_v39 = vld [vmem:[#allocation16_spill] sm:$0xff]  ;;  %v13214_v54 = vld [vmem:[#allocation18_spill] sm:$0xff] }
 0x31b   : > { %v6687_v58 = vunpack.c.l.b16 %v6559_v57  ;;  %v6751_v30 = vrot.slane %v6688_v26, 7  ;;  %v5566_v12 = vadd.f32 %v5565_v38, %v13212_v40  ;;  %v6690_v3 = vunpack.c.l.b16 %v6562_v18  ;;  %v10642_v38 = vld [vmem:[%s13143_s3 + $0x50] sm:$0xff] }
 0x31c   : > { %v6436_v52 = vadd.f32 %v12330_v0, %v6020_v28  ;;  %v6437_v6 = vadd.f32 %v12330_v0, %v6027_v22  ;;  %v6438_v10 = vadd.f32 %v12330_v0, %v6034_v16  ;;  %v6499_v29 = vmax.f32 %v6435_v32, 0.0  ;;  %8618 = vmatpush.bf16.msrb.mxu2 %v10642_v38  ;;  %v5743_v22 = vpop.f32.mrf.mxu3 }
 0x31d   : > { %v6754_v48 = vrot.slane %v6689_v25, 6  ;;  %v5653_v11 = vadd.f32 %v5652_v46, %v12313_v23  ;;  %v3415_v53 = vrot.slane %v3413_v50, 5  ;;  %v6753_v62 = vsel %vm6752_vm7, %v6751_v30, %v6687_v58 }
 0x31e   : > { %v6500_v21 = vmax.f32 %v6436_v52, 0.0  ;;  %v6501_v4 = vmax.f32 %v6437_v6, 0.0  ;;  %v6502_v43 = vmax.f32 %v6438_v10, 0.0  ;;  %v6563_v35 = vpack.c.bf16 %v6499_v29, %v6499_v29 }
 0x31f   : > { %v5785_v33 = vpop.f32.mrf.mxu0  ;;  %v3411_v47 = vrot.slane %v3410_v27, 4  ;;  %v5655_v37 = vadd.f32 %v5654_v45, %v5566_v12  ;;  %v6756_v31 = vsel %vm6755_vm8, %v6754_v48, %v6753_v62  ;;  %v5781_v51 = vadd.f32 %v12335_v55, %v13213_v39 }
 0x320   : > { %v6564_v23 = vpack.c.bf16 %v6500_v21, %v6500_v21  ;;  %v6565_v46 = vpack.c.bf16 %v6501_v4, %v6501_v4  ;;  %v6566_v57 = vpack.c.bf16 %v6502_v43, %v6502_v43  ;;  %v6691_v50 = vunpack.c.l.b16 %v6563_v35  ;;  %v5570_v21 = vpop.f32.mrf.mxu1 }
 0x321   : > { %v5786_v42 = vadd.f32 %v5785_v33, %v13214_v54  ;;  %v6757_v18 = vrot.slane %v6690_v3, 5  ;;  %v12367_v28 = vadd.f32 %v5741_v7, %v5653_v11  ;;  %v3416_v32 = vsel %vm11204_vm5, %v3411_v47, %v3415_v53  ;;  %v12377_v3 = vld [vmem:[#allocation2 + $0x158] sm:$0xf] }
 0x322   : > { %v6692_v26 = vunpack.c.l.b16 %v6564_v23  ;;  %v6693_v25 = vunpack.c.l.b16 %v6565_v46  ;;  %v6694_v13 = vunpack.c.l.b16 %v6566_v57  ;;  %v6760_v27 = vrot.slane %v6691_v50, 4  ;;  %3568 = vst [vmem:[#allocation3 + $0x35c] sm:$0xf] %v3416_v32  ;;  %v9483_v46 = vld [vmem:[#allocation3 + $0x338] sm:$0xf] }
 0x323   : > { %v5852_v16 = vmax.f32 %v5781_v51, %v5786_v42  ;;  %v6759_v58 = vsel %vm6758_vm9, %v6757_v18, %v6756_v31  ;;  %v12374_v29 = vadd.f32 %v5743_v22, %v5655_v37  ;;  %v3418_v57 = vshrl.u32 %v12377_v3, 16  ;;  %v13215_v37 = vld [vmem:[#allocation17_spill] sm:$0xff] }
 0x324   : > { %v6763_v30 = vrot.slane %v6692_v26, 3  ;;  %v6766_v40 = vrot.slane %v6693_v25, 2  ;;  %v6762_v55 = vsel %vm6761_vm10, %v6760_v27, %v6759_v58  ;;  %v6769_v10 = vrot.slane %v6694_v13, 1  ;;  %v13216_v51 = vld [vmem:[#allocation9_spill] sm:$0xff]  ;;  %v13218_v26 = vld [vmem:[#allocation26_spill] sm:$0xff] }
 0x325   : > { %v5888_v12 = vrot.slane %v5852_v16, 2  ;;  %v5889_v52 = vrot.slane %v5852_v16, 4  ;;  %v5890_v6 = vrot.slane %v5852_v16, 6  ;;  %v6035_v49 = vsel %vm5978_vm6, %v5852_v16, -inf  ;;  %v13217_v42 = vld [vmem:[#allocation25_spill] sm:$0xff]  ;;  %v12394_v16 = vpop.f32.mrf.mxu2 }
 0x326   : > { %v6765_v7 = vsel %vm6764_vm11, %v6763_v30, %v6762_v55  ;;  %v6036_v11 = vrot.slane %v6035_v49, 4  ;;  %v5783_v31 = vadd.f32 %v12344_v20, %v13215_v37  ;;  %v12389_v18 = vadd.f32 %v5568_v56, %v13217_v42 }
 0x327   : > { %v6768_v48 = vsel %vm6767_vm12, %v6766_v40, %v6765_v7  ;;  %v6042_v45 = vsel %vm5978_vm6, %v5888_v12, -inf  ;;  %v6049_v53 = vsel %vm5978_vm6, %v5889_v52, -inf  ;;  %v5787_v38 = vpop.f32.mrf.mxu0  ;;  %v6056_v35 = vsel %vm5978_vm6, %v5890_v6, -inf }
 0x328   : > { %v6771_v62 = vsel %vm6770_vm13, %v6769_v10, %v6768_v48  ;;  %v6043_v4 = vrot.slane %v6042_v45, 4  ;;  %v6050_v43 = vrot.slane %v6049_v53, 4  ;;  %v6037_v47 = vmax.f32 %v6035_v49, %v6036_v11 }
 0x329   : > { %v6870_v33 = vpack.c.b16 %v6771_v62, %v6771_v62  ;;  %v6057_v23 = vrot.slane %v6056_v35, 4  ;;  %v5788_v54 = vadd.f32 %v5787_v38, %v13216_v51  ;;  %v12392_v25 = vadd.f32 %v5570_v21, %v13218_v26  ;;  %v10487_v22 = vld [vmem:[#allocation3 + $0x358] sm:$0xf0] }
 0x32a   : > { %v6044_v50 = vmax.f32 %v6042_v45, %v6043_v4  ;;  %v6051_v39 = vmax.f32 %v6049_v53, %v6050_v43  ;;  %v6038_v13 = vrot.slane %v6037_v47, 2  ;;  %v9484_v30 = vor.u32 %v10487_v22, %v9483_v46 }
 0x32b   : > { %6887 = vst [vmem:[#allocation4 + $0x1c] sm:$0xf] %v6870_v33  ;;  %v6058_v27 = vmax.f32 %v6056_v35, %v6057_v23  ;;  %v5853_v20 = vmax.f32 %v5783_v31, %v5788_v54  ;;  %v12396_v12 = vrot.slane %v3418_v57, 4  ;;  %v3421_v52 = vshll.u32 %v12377_v3, 16  ;;  %v10652_v31 = vld [vmem:[%s13143_s3 + $0xa0] sm:$0xff] }
 0x32c   : > { %v6045_v32 = vrot.slane %v6044_v50, 2  ;;  %v6052_v58 = vrot.slane %v6051_v39, 2  ;;  %v6039_v40 = vmax.f32 %v6037_v47, %v6038_v13  ;;  %5824 = vmatmul.bf16.gmra.mxu0 %v9484_v30  ;;  %8645 = vmatpush.bf16.msra.mxu3 %v10652_v31  ;;  %v10651_v30 = vld [vmem:[%s13143_s3 + $0x98] sm:$0xff] }
 0x32d   : > { %v6059_v55 = vrot.slane %v6058_v27, 2  ;;  %v5891_v7 = vrot.slane %v5853_v20, 2  ;;  %v5892_v10 = vrot.slane %v5853_v20, 4  ;;  %v5893_v11 = vrot.slane %v5853_v20, 6 }
 0x32e   : > { %v6046_v56 = vmax.f32 %v6044_v50, %v6045_v32  ;;  %v6053_v6 = vmax.f32 %v6051_v39, %v6052_v58  ;;  %v6040_v49 = vrot.slane %v6039_v40, 1  ;;  %v6063_v45 = vsel %vm5978_vm6, %v5853_v20, -inf  ;;  %v10635_v32 = vld [vmem:[%s13143_s3 + $0x18] sm:$0xff]  ;;  %v10641_v58 = vld [vmem:[%s13143_s3 + $0x48] sm:$0xff] }
 0x32f   : > { %v6060_v48 = vmax.f32 %v6058_v27, %v6059_v55  ;;  %v12400_v53 = vpop.f32.mrf.mxu0  ;;  %v6064_v21 = vrot.slane %v6063_v45, 4  ;;  %v6070_v4 = vsel %vm5978_vm6, %v5891_v7, -inf  ;;  %v6077_v47 = vsel %vm5978_vm6, %v5892_v10, -inf  ;;  %8588 = vmatpush.bf16.msrb.mxu1 %v10635_v32  ;;  %8619 = vmatpush.bf16.msrb.mxu2 %v10641_v58 }
 0x330   : > { %v6047_v38 = vrot.slane %v6046_v56, 1  ;;  %v6054_v62 = vrot.slane %v6053_v6, 1  ;;  %v6041_v43 = vmax.f32 %v6039_v40, %v6040_v49  ;;  %v6071_v33 = vrot.slane %v6070_v4, 4  ;;  %8646 = vmatpush.bf16.msra.mxu3 %v10651_v30 }
 0x331   : > { %v6061_v35 = vrot.slane %v6060_v48, 1  ;;  %v6065_v57 = vmax.f32 %v6063_v45, %v6064_v21  ;;  %v6078_v37 = vrot.slane %v6077_v47, 4  ;;  %v6084_v54 = vsel %vm5978_vm6, %v5893_v11, -inf  ;;  %v10634_v11 = vld [vmem:[%s13143_s3 + $0x10] sm:$0xff]  ;;  %v10640_v45 = vld [vmem:[%s13143_s3 + $0x40] sm:$0xff] }
 0x332   : > { %v6048_v23 = vmax.f32 %v6046_v56, %v6047_v38  ;;  %v6055_v46 = vmax.f32 %v6053_v6, %v6054_v62  ;;  %v6439_v39 = vadd.f32 %v12330_v0, %v6041_v43  ;;  %v6072_v51 = vmax.f32 %v6070_v4, %v6071_v33  ;;  %v7032_v42 = vld [vmem:[#allocation4 + $0x1c] sm:$0xf]  ;;  %v5659_v6 = vpop.f32.mrf.mxu2 }
 0x333   : > { %v6062_v50 = vmax.f32 %v6060_v48, %v6061_v35  ;;  %v6066_v27 = vrot.slane %v6065_v57, 2  ;;  %v6079_v22 = vmax.f32 %v6077_v47, %v6078_v37  ;;  %7040 = vst [vmem:[#allocation3 + $0x28] sm:$0xf] %v7032_v42  ;;  %v6085_v56 = vrot.slane %v6084_v54, 4  ;;  %8589 = vmatpush.bf16.msrb.mxu1 %v10634_v11  ;;  %8620 = vmatpush.bf16.msrb.mxu2 %v10640_v45 }
 0x334   : > { %v6440_v26 = vadd.f32 %v12330_v0, %v6048_v23  ;;  %v6441_v13 = vadd.f32 %v12330_v0, %v6055_v46  ;;  %v6503_v40 = vmax.f32 %v6439_v39, 0.0  ;;  %v6073_v55 = vrot.slane %v6072_v51, 2  ;;  %v10650_v46 = vld [vmem:[%s13143_s3 + $0x90] sm:$0xff] }
 0x335   : > { %v6442_v20 = vadd.f32 %v12330_v0, %v6062_v50  ;;  %v6067_v49 = vmax.f32 %v6065_v57, %v6066_v27  ;;  %v6080_v48 = vrot.slane %v6079_v22, 2  ;;  %v6086_v4 = vmax.f32 %v6084_v54, %v6085_v56  ;;  %v5573_v57 = vpop.f32.mrf.mxu1  ;;  %v10633_v27 = vld [vmem:[%s13143_s3 + $0x8] sm:$0xff]  ;;  %8647 = vmatpush.bf16.msra.mxu3 %v10650_v46 }
 0x336   : > { %v6504_v7 = vmax.f32 %v6440_v26, 0.0  ;;  %v6505_v10 = vmax.f32 %v6441_v13, 0.0  ;;  %v6567_v62 = vpack.c.bf16 %v6503_v40, %v6503_v40  ;;  %v6074_v21 = vmax.f32 %v6072_v51, %v6073_v55  ;;  %v3118_v13 = vld [vmem:[#allocation2 + $0x15c] sm:$0xf] }
 0x337   : > { %v6506_v38 = vmax.f32 %v6442_v20, 0.0  ;;  %v12427_v43 = vpop.f32.mrf.mxu0  ;;  %v6068_v47 = vrot.slane %v6067_v49, 1  ;;  %v6081_v23 = vmax.f32 %v6079_v22, %v6080_v48  ;;  %v6087_v50 = vrot.slane %v6086_v4, 2  ;;  %8590 = vmatpush.bf16.msrb.mxu1 %v10633_v27 }
 0x338   : > { %v6568_v35 = vpack.c.bf16 %v6504_v7, %v6504_v7  ;;  %v6569_v33 = vpack.c.bf16 %v6505_v10, %v6505_v10  ;;  %v6075_v31 = vrot.slane %v6074_v21, 1  ;;  %v3423_v39 = vrot.slane %v3421_v52, 5  ;;  %v10649_v52 = vld [vmem:[%s13143_s3 + $0x88] sm:$0xff] }
 0x339   : > { %v6570_v37 = vpack.c.bf16 %v6506_v38, %v6506_v38  ;;  %v6069_v42 = vmax.f32 %v6067_v49, %v6068_v47  ;;  %v6082_v26 = vrot.slane %v6081_v23, 1  ;;  %v6695_v22 = vunpack.c.l.b16 %v6567_v62  ;;  %v13219_v62 = vld [vmem:[#allocation28_spill] sm:$0xff]  ;;  %8648 = vmatpush.bf16.msra.mxu3 %v10649_v52 }
 0x33a   : > { %v6696_v51 = vunpack.c.l.b16 %v6568_v35  ;;  %v6697_v54 = vunpack.c.l.b16 %v6569_v33  ;;  %v6076_v58 = vmax.f32 %v6074_v21, %v6075_v31  ;;  %v6088_v30 = vmax.f32 %v6086_v4, %v6087_v50  ;;  %v5662_v47 = vpop.f32.mrf.mxu2 }
 0x33b   : > { %v6698_v32 = vunpack.c.l.b16 %v6570_v37  ;;  %v6083_v55 = vmax.f32 %v6081_v23, %v6082_v26  ;;  %v6443_v3 = vadd.f32 %v12330_v0, %v6069_v42  ;;  %v12443_v56 = vadd.f32 %v12394_v16, %v12389_v18  ;;  %v3119_v18 = vld [vmem:[#allocation2 + $0x160] sm:$0x1] }
 0x33c   : > { %v6772_v20 = vrot.slane %v6696_v51, 7  ;;  %v6774_v40 = vrot.slane %v6697_v54, 6  ;;  %v6089_v7 = vrot.slane %v6088_v30, 1  ;;  %v6444_v10 = vadd.f32 %v12330_v0, %v6076_v58  ;;  %v10632_v37 = vld [vmem:[%s13143_s3] sm:$0xff] }
 0x33d   : > { %v3427_v49 = vshll.u32 %v3118_v13, 16  ;;  %v12447_v48 = vadd.f32 %v5659_v6, %v12392_v25  ;;  %v6445_v45 = vadd.f32 %v12330_v0, %v6083_v55  ;;  %v6507_v38 = vmax.f32 %v6443_v3, 0.0  ;;  %8591 = vmatpush.bf16.msrb.mxu1 %v10632_v37  ;;  %v3122_v37 = vld [vmem:[#allocation2 + $0x178] sm:$0x1] }
 0x33e   : > { %v6773_v11 = vsel %vm6752_vm7, %v6772_v20, %v6695_v22  ;;  %v5574_v21 = vadd.f32 %v5573_v57, %v13219_v62  ;;  %v6776_v4 = vrot.slane %v6698_v32, 5  ;;  %v6090_v35 = vmax.f32 %v6088_v30, %v6089_v7  ;;  %v5575_v22 = vpop.f32.mrf.mxu1  ;;  %v10596_v20 = vld [vmem:[#allocation3 + $0x4] sm:$0xf] }
 0x33f   : > { %v6508_v33 = vmax.f32 %v6444_v10, 0.0  ;;  %v6775_v16 = vsel %vm6755_vm8, %v6774_v40, %v6773_v11  ;;  %v6509_v23 = vmax.f32 %v6445_v45, 0.0  ;;  %v6571_v46 = vpack.c.bf16 %v6507_v38, %v6507_v38  ;;  %v5795_v6 = vpop.f32.mrf.mxu0  ;;  %v9945_v40 = vld [vmem:[#allocation3 + $0x24] sm:$0xf0]  ;;  %v3120_v45 = vld [vmem:[#allocation2 + $0x170] sm:$0xf] }
 0x340   : > { %v3424_v25 = vor.u32 %v3423_v39, %v12396_v12  ;;  %v6446_v31 = vadd.f32 %v12330_v0, %v6090_v35  ;;  %v3429_v50 = vrot.slane %v3427_v49, 5  ;;  %v3431_v51 = vshrl.u32 %v3118_v13, 16  ;;  %v10648_v12 = vld [vmem:[%s13143_s3 + $0x80] sm:$0xff]  ;;  %v13220_v38 = vld [vmem:[#allocation30_spill] sm:$0xff] }
 0x341   : > { %v6572_v57 = vpack.c.bf16 %v6508_v33, %v6508_v33  ;;  %v6573_v54 = vpack.c.bf16 %v6509_v23, %v6509_v23  ;;  %v6699_v42 = vunpack.c.l.b16 %v6571_v46  ;;  %v3437_v27 = vshll.u32 %v3119_v18, 16  ;;  %8649 = vmatpush.bf16.msra.mxu3 %v10648_v12 }
 0x342   : > { %v3425_v26 = vrot.slane %v3424_v25, 4  ;;  %v12461_v39 = vadd.f32 %v5662_v47, %v5574_v21  ;;  %v6510_v32 = vmax.f32 %v6446_v31, 0.0  ;;  %v3433_v30 = vrot.slane %v3431_v51, 4 }
 0x343   : > { %v6700_v58 = vunpack.c.l.b16 %v6572_v57  ;;  %v6777_v55 = vsel %vm6758_vm9, %v6776_v4, %v6775_v16  ;;  %v6701_v13 = vunpack.c.l.b16 %v6573_v54  ;;  %v6778_v3 = vrot.slane %v6699_v42, 4  ;;  %v3121_v4 = vld [vmem:[#allocation2 + $0x174] sm:$0xf] }
 0x344   : > { %v3430_v52 = vsel %vm11204_vm5, %v3425_v26, %v3429_v50  ;;  %v6574_v7 = vpack.c.bf16 %v6510_v32, %v6510_v32  ;;  %v3434_v49 = vor.u32 %v3433_v30, %v3429_v50  ;;  %v3439_v11 = vrot.slane %v3437_v27, 5  ;;  %v6897_v50 = vld [vmem:[#allocation4 + $0x18] sm:$0x8] }
 0x345   : > { %v6780_v10 = vrot.slane %v6700_v58, 3  ;;  %3569 = vst [vmem:[#allocation3 + $0x380] sm:$0xf] %v3430_v52  ;;  %v12467_v62 = vadd.f32 %v5575_v22, %v13220_v38  ;;  %v6779_v21 = vsel %vm6761_vm10, %v6778_v3, %v6777_v55  ;;  %v6782_v35 = vrot.slane %v6701_v13, 2  ;;  %v6898_v52 = vld [vmem:[#allocation4 + $0x1c] sm:$0xf] }
 0x346   : > { %v9948_v33 = vor.u32 %v10596_v20, %v9945_v40  ;;  %v6702_v18 = vunpack.c.l.b16 %v6574_v7  ;;  %v5791_v47 = vadd.f32 %v12400_v53, %v12225_v63  ;;  %v3435_v23 = vrot.slane %v3434_v49, 4 }
 0x347   : > { %v6781_v16 = vsel %vm6764_vm11, %v6780_v10, %v6779_v21  ;;  %v5796_v25 = vadd.f32 %v5795_v6, %v12233_v60  ;;  %v3442_v31 = vshrl.u32 %v3120_v45, 16  ;;  %v3445_v57 = vshll.u32 %v3120_v45, 16  ;;  %v12481_v22 = vpop.f32.mrf.mxu0 }
 0x348   : > { %v6783_v46 = vsel %vm6767_vm12, %v6782_v35, %v6781_v16  ;;  %8621 = vmatmul.bf16.vlgmr.msrb.gmra.mxu2 %v9948_v33  ;;  %v6784_v51 = vrot.slane %v6702_v18, 1  ;;  %v3440_v54 = vsel %vm11204_vm5, %v3435_v23, %v3439_v11  ;;  %v12479_v42 = vadd.f32 %v12427_v43, %v12228_v44 }
 0x349   : > { %v3451_v26 = vshll.u32 %v3121_v4, 16  ;;  %3570 = vst [vmem:[#allocation3 + $0x3a4] sm:$0xf] %v3440_v54  ;;  %v5854_v63 = vmax.f32 %v5791_v47, %v5796_v25  ;;  %v3444_v53 = vrot.slane %v3442_v31, 4  ;;  %v3447_v27 = vrot.slane %v3445_v57, 5 }
 0x34a   : > { %v3455_v12 = vshrl.u32 %v3121_v4, 16  ;;  %v6785_v60 = vsel %vm6770_vm13, %v6784_v51, %v6783_v46  ;;  %v3461_v32 = vshll.u32 %v3122_v37, 16  ;;  %v6925_v58 = vshrl.u32 %v6897_v50, 16  ;;  %v7049_v57 = vld [vmem:[#allocation4 + $0x1c] sm:$0xf] }
 0x34b   : > { %v3453_v6 = vrot.slane %v3451_v26, 5  ;;  %v6871_v30 = vpack.c.b16 %v6785_v60, %v6785_v60  ;;  %v5894_v20 = vrot.slane %v5854_v63, 2  ;;  %v5895_v40 = vrot.slane %v5854_v63, 4  ;;  %v7050_v60 = vld [vmem:[#allocation4 + $0x20] sm:$0x1] }
 0x34c   : > { %v5896_v55 = vrot.slane %v5854_v63, 6  ;;  %v6091_v44 = vsel %vm5978_vm6, %v5854_v63, -inf  ;;  %v3448_v43 = vor.u32 %v3447_v27, %v3444_v53  ;;  %v3457_v13 = vrot.slane %v3455_v12, 4  ;;  %v9519_v45 = vld [vmem:[#allocation3 + $0x380] sm:$0xf] }
 0x34d   : > { %v3463_v3 = vrot.slane %v3461_v32, 5  ;;  %6888 = vst [vmem:[#allocation4 + $0x30] sm:$0xf] %v6871_v30  ;;  %v6092_v7 = vrot.slane %v6091_v44, 4  ;;  %v6098_v10 = vsel %vm5978_vm6, %v5894_v20, -inf  ;;  %v6105_v49 = vsel %vm5978_vm6, %v5895_v40, -inf }
 0x34e   : > { %v6112_v11 = vsel %vm5978_vm6, %v5896_v55, -inf  ;;  %v6099_v38 = vrot.slane %v6098_v10, 4  ;;  %v6106_v21 = vrot.slane %v6105_v49, 4  ;;  %v3449_v33 = vrot.slane %v3448_v43, 4 }
 0x34f   : > { %v6113_v35 = vrot.slane %v6112_v11, 4  ;;  %v6093_v4 = vmax.f32 %v6091_v44, %v6092_v7  ;;  %v3458_v18 = vor.u32 %v3457_v13, %v3453_v6  ;;  %v9918_v16 = vrot.slane %v6925_v58, 11  ;;  %v5800_v40 = vpop.f32.mrf.mxu0 }
 0x350   : > { %v6930_v47 = vshrl.u32 %v6898_v52, 16  ;;  %v10496_v23 = vld [vmem:[#allocation3 + $0x3a0] sm:$0xf0]  ;;  %v6100_v46 = vmax.f32 %v6098_v10, %v6099_v38  ;;  %v6107_v25 = vmax.f32 %v6105_v49, %v6106_v21  ;;  %v3454_v31 = vsel %vm11204_vm5, %v3449_v33, %v3453_v6 }
 0x351   : > { %v6114_v37 = vmax.f32 %v6112_v11, %v6113_v35  ;;  %v9520_v50 = vor.u32 %v10496_v23, %v9519_v45  ;;  %v6094_v51 = vrot.slane %v6093_v4, 2  ;;  %v3459_v54 = vrot.slane %v3458_v18, 4  ;;  %3571 = vst [vmem:[#allocation3 + $0x3c8] sm:$0xf] %v3454_v31  ;;  %v12494_v35 = vld [vmem:[#allocation2 + $0x188] sm:$0xf] }
 0x352   : > { %v6932_v26 = vrot.slane %v6930_v47, 7  ;;  %v6101_v63 = vrot.slane %v6100_v46, 2  ;;  %v6108_v53 = vrot.slane %v6107_v25, 2  ;;  %v6933_v12 = vshll.u32 %v6898_v52, 16 }
 0x353   : > { %v6115_v27 = vrot.slane %v6114_v37, 2  ;;  %5829 = vmatmul.bf16.gmra.mxu0 %v9520_v50  ;;  %v6095_v32 = vmax.f32 %v6093_v4, %v6094_v51  ;;  %v3464_v58 = vsel %vm11204_vm5, %v3459_v54, %v3463_v3  ;;  %v7078_v30 = vshrl.u32 %v7049_v57, 16 }
 0x354   : > { %v7081_v20 = vshll.u32 %v7049_v57, 16  ;;  %v6102_v6 = vmax.f32 %v6100_v46, %v6101_v63  ;;  %v6109_v55 = vmax.f32 %v6107_v25, %v6108_v53  ;;  %3572 = vst [vmem:[#allocation3 + $0x3ec] sm:$0xf] %v3464_v58  ;;  %v6935_v43 = vor.u32 %v6933_v12, %v6932_v26 }
 0x355   : > { %v6116_v44 = vmax.f32 %v6114_v37, %v6115_v27  ;;  %v6096_v13 = vrot.slane %v6095_v32, 1  ;;  %v7080_v7 = vrot.slane %v7078_v30, 4  ;;  %v7087_v49 = vshll.u32 %v7050_v60, 16 }
 0x356   : > { %v7083_v10 = vrot.slane %v7081_v20, 5  ;;  %v6103_v11 = vrot.slane %v6102_v6, 1  ;;  %v6110_v52 = vrot.slane %v6109_v55, 1  ;;  %v6936_v21 = vsel %vm11094_vm2, %v9918_v16, %v6935_v43 }
 0x357   : > { %v6117_v45 = vrot.slane %v6116_v44, 1  ;;  %v6097_v3 = vmax.f32 %v6095_v32, %v6096_v13  ;;  %7024 = vst [vmem:[#allocation3 + $0x24] sm:$0xf] %v6936_v21  ;;  %v7089_v4 = vrot.slane %v7087_v49, 5  ;;  %v5798_v18 = vadd.f32 %v12481_v22, %v12236_v17  ;;  %v9943_v22 = vld [vmem:[#allocation3] sm:$0xf] }
 0x358   : > { %v7084_v33 = vor.u32 %v7083_v10, %v7080_v7  ;;  %v6104_v47 = vmax.f32 %v6102_v6, %v6103_v11  ;;  %v6111_v23 = vmax.f32 %v6109_v55, %v6110_v52  ;;  %v12499_v25 = vadd.f32 %v5800_v40, %v12239_v24  ;;  %v9555_v31 = vld [vmem:[#allocation3 + $0x3c8] sm:$0xf]  ;;  %v5802_v55 = vpop.f32.mrf.mxu0 }
 0x359   : > { %v6118_v46 = vmax.f32 %v6116_v44, %v6117_v45  ;;  %v6447_v37 = vadd.f32 %v12330_v0, %v6097_v3  ;;  %v5855_v16 = vmax.f32 %v12479_v42, %v5798_v18  ;;  %v3466_v50 = vshrl.u32 %v12494_v35, 16  ;;  %v7033_v44 = vld [vmem:[#allocation4 + $0x30] sm:$0xf] }
 0x35a   : > { %v7085_v57 = vrot.slane %v7084_v33, 4  ;;  %v6448_v51 = vadd.f32 %v12330_v0, %v6104_v47  ;;  %v6449_v54 = vadd.f32 %v12330_v0, %v6111_v23  ;;  %v3469_v26 = vshll.u32 %v12494_v35, 16  ;;  %7041 = vst [vmem:[#allocation3 + $0x4c] sm:$0xf] %v7033_v44  ;;  %v3124_v47 = vld [vmem:[#allocation2 + $0x18c] sm:$0xf] }
 0x35b   : > { %v6450_v17 = vadd.f32 %v12330_v0, %v6118_v46  ;;  %v6511_v63 = vmax.f32 %v6447_v37, 0.0  ;;  %v10505_v24 = vld [vmem:[#allocation3 + $0x3e8] sm:$0xf0]  ;;  %v5897_v27 = vrot.slane %v5855_v16, 2  ;;  %v5898_v12 = vrot.slane %v5855_v16, 4 }
 0x35c   : > { %v7090_v53 = vsel %vm11204_vm5, %v7085_v57, %v7089_v4  ;;  %v6512_v60 = vmax.f32 %v6448_v51, 0.0  ;;  %v6513_v42 = vmax.f32 %v6449_v54, 0.0  ;;  %v9556_v58 = vor.u32 %v10505_v24, %v9555_v31  ;;  %v9951_v4 = vld [vmem:[#allocation3 + $0x8] sm:$0xf]  ;;  %v7327_v23 = vld [vmem:[#allocation4 + $0x1c] sm:$0xf] }
 0x35d   : > { %v6514_v32 = vmax.f32 %v6450_v17, 0.0  ;;  %7184 = vst [vmem:[#allocation3 + $0x2c] sm:$0xf] %v7090_v53  ;;  %v6575_v30 = vpack.c.bf16 %v6511_v63, %v6511_v63  ;;  %v5899_v20 = vrot.slane %v5855_v16, 6  ;;  %v6119_v40 = vsel %vm5978_vm6, %v5855_v16, -inf }
 0x35e   : > { %v6126_v6 = vsel %vm5978_vm6, %v5897_v27, -inf  ;;  %v6576_v43 = vpack.c.bf16 %v6512_v60, %v6512_v60  ;;  %v6577_v13 = vpack.c.bf16 %v6513_v42, %v6513_v42  ;;  %v10600_v10 = vld [vmem:[#allocation3 + $0x20] sm:$0xf0]  ;;  %v6120_v49 = vrot.slane %v6119_v40, 4  ;;  %7335 = vst [vmem:[#allocation3 + $0x10] sm:$0xf] %v7327_v23 }
 0x35f   : > { %v6578_v7 = vpack.c.bf16 %v6514_v32, %v6514_v32  ;;  %v6703_v11 = vunpack.c.l.b16 %v6575_v30  ;;  %v9944_v52 = vor.u32 %v10600_v10, %v9943_v22  ;;  %v6127_v45 = vrot.slane %v6126_v6, 4  ;;  %v3126_v23 = vld [vmem:[#allocation2 + $0x1a0] sm:$0xf] }
 0x360   : > { %v6133_v21 = vsel %vm5978_vm6, %v5898_v12, -inf  ;;  %v6704_v35 = vunpack.c.l.b16 %v6576_v43  ;;  %v6705_v3 = vunpack.c.l.b16 %v6577_v13  ;;  %v6121_v18 = vmax.f32 %v6119_v40, %v6120_v49 }
 0x361   : > { %v6706_v33 = vunpack.c.l.b16 %v6578_v7  ;;  %8592 = vmatmul.bf16.vlgmr.msrb.gmra.mxu1 %v9944_v52  ;;  %v6128_v46 = vmax.f32 %v6126_v6, %v6127_v45  ;;  %v6134_v37 = vrot.slane %v6133_v21, 4  ;;  %v6140_v31 = vsel %vm5978_vm6, %v5899_v20, -inf  ;;  %v3125_v6 = vld [vmem:[#allocation2 + $0x190] sm:$0x1] }
 0x362   : > { %v3468_v57 = vrot.slane %v3466_v50, 4  ;;  %v6786_v16 = vrot.slane %v6704_v35, 7  ;;  %v6788_v51 = vrot.slane %v6705_v3, 6  ;;  %v6122_v17 = vrot.slane %v6121_v18, 2 }
 0x363   : > { %v6790_v54 = vrot.slane %v6706_v33, 5  ;;  %5834 = vmatmul.bf16.gmra.mxu0 %v9556_v58  ;;  %v6129_v63 = vrot.slane %v6128_v46, 2  ;;  %v6135_v24 = vmax.f32 %v6133_v21, %v6134_v37  ;;  %v6141_v53 = vrot.slane %v6140_v31, 4 }
 0x364   : > { %v10601_v22 = vld [vmem:[#allocation3 + $0x28] sm:$0xf0]  ;;  %v3471_v27 = vrot.slane %v3469_v26, 5  ;;  %v6787_v12 = vsel %vm6752_vm7, %v6786_v16, %v6703_v11  ;;  %v6123_v42 = vmax.f32 %v6121_v18, %v6122_v17  ;;  %v3475_v32 = vshll.u32 %v3124_v47, 16  ;;  %v5805_v11 = vpop.f32.mrf.mxu0 }
 0x365   : > { %v9952_v60 = vor.u32 %v10601_v22, %v9951_v4  ;;  %v6789_v30 = vsel %vm6755_vm8, %v6788_v51, %v6787_v12  ;;  %v6130_v20 = vmax.f32 %v6128_v46, %v6129_v63  ;;  %v6136_v50 = vrot.slane %v6135_v24, 2 }
 0x366   : > { %v6142_v40 = vmax.f32 %v6140_v31, %v6141_v53  ;;  %v12517_v44 = vsel %vm6758_vm9, %v6790_v54, %v6789_v30  ;;  %v6124_v58 = vrot.slane %v6123_v42, 1  ;;  %v3472_v43 = vor.u32 %v3471_v27, %v3468_v57 }
 0x367   : > { %8650 = vmatmul.bf16.vlgmr.msra.gmra.mxu3 %v9952_v60  ;;  %v3477_v13 = vrot.slane %v3475_v32, 5  ;;  %v6131_v7 = vrot.slane %v6130_v20, 1  ;;  %v6137_v26 = vmax.f32 %v6135_v24, %v6136_v50  ;;  %v3479_v49 = vshrl.u32 %v3124_v47, 16 }
 0x368   : > { %v6143_v10 = vrot.slane %v6142_v40, 2  ;;  %v6125_v52 = vmax.f32 %v6123_v42, %v6124_v58  ;;  %v3473_v45 = vrot.slane %v3472_v43, 4  ;;  %v3485_v21 = vshll.u32 %v3125_v6, 16 }
 0x369   : > { %v12520_v35 = vadd.f32 %v5802_v55, %v12242_v41  ;;  %v6132_v3 = vmax.f32 %v6130_v20, %v6131_v7  ;;  %v6138_v33 = vrot.slane %v6137_v26, 1  ;;  %v3481_v18 = vrot.slane %v3479_v49, 4 }
 0x36a   : > { %v6144_v4 = vmax.f32 %v6142_v40, %v6143_v10  ;;  %v6451_v46 = vadd.f32 %v12330_v0, %v6125_v52  ;;  %v3478_v37 = vsel %vm11204_vm5, %v3473_v45, %v3477_v13  ;;  %v3487_v31 = vrot.slane %v3485_v21, 5 }
 0x36b   : > { %v5806_v47 = vadd.f32 %v5805_v11, %v12247_v5  ;;  %v6139_v57 = vmax.f32 %v6137_v26, %v6138_v33  ;;  %v6452_v51 = vadd.f32 %v12330_v0, %v6132_v3  ;;  %v3482_v54 = vor.u32 %v3481_v18, %v3477_v13  ;;  %3573 = vst [vmem:[#allocation3 + $0x410] sm:$0xf] %v3478_v37 }
 0x36c   : > { %v6145_v16 = vrot.slane %v6144_v4, 1  ;;  %v6515_v41 = vmax.f32 %v6451_v46, 0.0  ;;  %v3490_v17 = vshrl.u32 %v3126_v23, 16  ;;  %v3493_v22 = vshll.u32 %v3126_v23, 16  ;;  %v5807_v10 = vpop.f32.mrf.mxu0 }
 0x36d   : > { %v5856_v55 = vmax.f32 %v12499_v25, %v5806_v47  ;;  %v6453_v24 = vadd.f32 %v12330_v0, %v6139_v57  ;;  %v6516_v53 = vmax.f32 %v6452_v51, 0.0  ;;  %v3483_v27 = vrot.slane %v3482_v54, 4 }
 0x36e   : > { %v6146_v63 = vmax.f32 %v6144_v4, %v6145_v16  ;;  %v6579_v12 = vpack.c.bf16 %v6515_v41, %v6515_v41 }
 0x36f   : > { %v5900_v60 = vrot.slane %v5856_v55, 2  ;;  %v5901_v42 = vrot.slane %v5856_v55, 4  ;;  %v5902_v5 = vrot.slane %v5856_v55, 6  ;;  %v6517_v30 = vmax.f32 %v6453_v24, 0.0 }
 0x370   : > { %v6454_v32 = vadd.f32 %v12330_v0, %v6146_v63  ;;  %v6580_v20 = vpack.c.bf16 %v6516_v53, %v6516_v53  ;;  %v3488_v50 = vsel %vm11204_vm5, %v3483_v27, %v3487_v31  ;;  %v6707_v40 = vunpack.c.l.b16 %v6579_v12 }
 0x371   : > { %3574 = vst [vmem:[#allocation3 + $0x434] sm:$0xf] %v3488_v50  ;;  %v6147_v25 = vsel %vm5978_vm6, %v5856_v55, -inf  ;;  %v6154_v6 = vsel %vm5978_vm6, %v5900_v60, -inf  ;;  %v6161_v58 = vsel %vm5978_vm6, %v5901_v42, -inf  ;;  %v6581_v13 = vpack.c.bf16 %v6517_v30, %v6517_v30 }
 0x372   : > { %v6518_v43 = vmax.f32 %v6454_v32, 0.0  ;;  %v6708_v7 = vunpack.c.l.b16 %v6580_v20  ;;  %v6148_v26 = vrot.slane %v6147_v25, 4  ;;  %v6792_v49 = vrot.slane %v6707_v40, 4  ;;  %v9591_v57 = vld [vmem:[#allocation3 + $0x410] sm:$0xf] }
 0x373   : > { %v6155_v0 = vrot.slane %v6154_v6, 4  ;;  %v6162_v11 = vrot.slane %v6161_v58, 4  ;;  %v6168_v52 = vsel %vm5978_vm6, %v5902_v5, -inf  ;;  %v6709_v21 = vunpack.c.l.b16 %v6581_v13  ;;  %v3127_v55 = vld [vmem:[#allocation2 + $0x1a4] sm:$0xf]  ;;  %v5578_v13 = vpop.f32.mrf.mxu1 }
 0x374   : > { %v6582_v45 = vpack.c.bf16 %v6518_v43, %v6518_v43  ;;  %v6794_v3 = vrot.slane %v6708_v7, 3  ;;  %v6149_v33 = vmax.f32 %v6147_v25, %v6148_v26  ;;  %v6793_v4 = vsel %vm6761_vm10, %v6792_v49, %v12517_v44  ;;  %v3128_v50 = vld [vmem:[#allocation2 + $0x1a8] sm:$0x1] }
 0x375   : > { %v6156_v18 = vmax.f32 %v6154_v6, %v6155_v0  ;;  %v6163_v23 = vmax.f32 %v6161_v58, %v6162_v11  ;;  %v6169_v46 = vrot.slane %v6168_v52, 4  ;;  %v6796_v47 = vrot.slane %v6709_v21, 2  ;;  %v5810_v0 = vpop.f32.mrf.mxu0 }
 0x376   : > { %v6710_v37 = vunpack.c.l.b16 %v6582_v45  ;;  %v6795_v31 = vsel %vm6764_vm11, %v6794_v3, %v6793_v4  ;;  %v6150_v16 = vrot.slane %v6149_v33, 2  ;;  %v3492_v63 = vrot.slane %v3490_v17, 4  ;;  %v12544_v3 = vld [vmem:[%s13142_s2] ss:$0 sm:$0xff] }
 0x377   : > { %v6157_v51 = vrot.slane %v6156_v18, 2  ;;  %v6164_v54 = vrot.slane %v6163_v23, 2  ;;  %v6170_v41 = vmax.f32 %v6168_v52, %v6169_v46  ;;  %v6797_v24 = vsel %vm6767_vm12, %v6796_v47, %v6795_v31  ;;  %v13222_v46 = vld [vmem:[#allocation34_spill] sm:$0xff] }
 0x378   : > { %v6798_v53 = vrot.slane %v6710_v37, 1  ;;  %v10514_v27 = vld [vmem:[#allocation3 + $0x430] sm:$0xf0]  ;;  %v6151_v12 = vmax.f32 %v6149_v33, %v6150_v16  ;;  %v3495_v44 = vrot.slane %v3493_v22, 5  ;;  %v3499_v25 = vshll.u32 %v3127_v55, 16 }
 0x379   : > { %v9592_v60 = vor.u32 %v10514_v27, %v9591_v57  ;;  %v6158_v42 = vmax.f32 %v6156_v18, %v6157_v51  ;;  %v6165_v5 = vmax.f32 %v6163_v23, %v6164_v54  ;;  %v6171_v32 = vrot.slane %v6170_v41, 2 }
 0x37a   : > { %v6799_v30 = vsel %vm6770_vm13, %v6798_v53, %v6797_v24  ;;  %v6152_v20 = vrot.slane %v6151_v12, 1  ;;  %v3496_v40 = vor.u32 %v3495_v44, %v3492_v63  ;;  %v3501_v49 = vrot.slane %v3499_v25, 5 }
 0x37b   : > { %v6872_v6 = vpack.c.b16 %v6799_v30, %v6799_v30  ;;  %5839 = vmatmul.bf16.gmra.mxu0 %v9592_v60  ;;  %v6159_v58 = vrot.slane %v6158_v42, 1  ;;  %v6166_v17 = vrot.slane %v6165_v5, 1  ;;  %v6172_v43 = vmax.f32 %v6170_v41, %v6171_v32 }
 0x37c   : > { %v6153_v7 = vmax.f32 %v6151_v12, %v6152_v20  ;;  %v3497_v26 = vrot.slane %v3496_v40, 4  ;;  %v3503_v22 = vshrl.u32 %v3127_v55, 16  ;;  %v3509_v21 = vshll.u32 %v3128_v50, 16  ;;  %v7328_v55 = vld [vmem:[#allocation4 + $0x30] sm:$0xf] }
 0x37d   : > { %6889 = vst [vmem:[#allocation4 + $0x44] sm:$0xf] %v6872_v6  ;;  %v6160_v11 = vmax.f32 %v6158_v42, %v6159_v58  ;;  %v6167_v52 = vmax.f32 %v6165_v5, %v6166_v17  ;;  %v6173_v45 = vrot.slane %v6172_v43, 1  ;;  %v5808_v23 = vadd.f32 %v5807_v10, %v12264_v14  ;;  %v6899_v10 = vld [vmem:[#allocation4 + $0x2c] sm:$0x8]  ;;  %v12564_v40 = vpop.f32.mrf.mxu0 }
 0x37e   : > { %v6455_v33 = vadd.f32 %v12544_v3, %v6153_v7  ;;  %v3502_v4 = vsel %vm11204_vm5, %v3497_v26, %v3501_v49  ;;  %v3505_v18 = vrot.slane %v3503_v22, 4  ;;  %v12551_v37 = vadd.f32 %v5578_v13, %v13222_v46  ;;  %7336 = vst [vmem:[#allocation3 + $0x34] sm:$0xf] %v7328_v55  ;;  %v6900_v22 = vld [vmem:[#allocation4 + $0x30] sm:$0xf] }
 0x37f   : > { %v6174_v31 = vmax.f32 %v6172_v43, %v6173_v45  ;;  %v6456_v47 = vadd.f32 %v12544_v3, %v6160_v11  ;;  %v6457_v57 = vadd.f32 %v12544_v3, %v6167_v52  ;;  %3575 = vst [vmem:[#allocation3 + $0x458] sm:$0xf] %v3502_v4  ;;  %v3511_v54 = vrot.slane %v3509_v21, 5 }
 0x380   : > { %v6519_v16 = vmax.f32 %v6455_v33, 0.0  ;;  %v3506_v51 = vor.u32 %v3505_v18, %v3501_v49  ;;  %v5857_v41 = vmax.f32 %v12520_v35, %v5808_v23  ;;  %v12558_v14 = vadd.f32 %v5810_v0, %v12267_v2 }
 0x381   : > { %v6458_v63 = vadd.f32 %v12544_v3, %v6174_v31  ;;  %v6520_v24 = vmax.f32 %v6456_v47, 0.0  ;;  %v6521_v53 = vmax.f32 %v6457_v57, 0.0  ;;  %v6938_v25 = vshrl.u32 %v6899_v10, 16 }
 0x382   : > { %v6583_v27 = vpack.c.bf16 %v6519_v16, %v6519_v16  ;;  %v3507_v12 = vrot.slane %v3506_v51, 4  ;;  %v5903_v44 = vrot.slane %v5857_v41, 2  ;;  %v5904_v60 = vrot.slane %v5857_v41, 4 }
 0x383   : > { %v6522_v42 = vmax.f32 %v6458_v63, 0.0  ;;  %v6584_v5 = vpack.c.bf16 %v6520_v24, %v6520_v24  ;;  %v6585_v32 = vpack.c.bf16 %v6521_v53, %v6521_v53  ;;  %v5905_v30 = vrot.slane %v5857_v41, 6  ;;  %v6901_v53 = vld [vmem:[#allocation4 + $0x40] sm:$0x8] }
 0x384   : > { %v3512_v35 = vsel %vm11204_vm5, %v3507_v12, %v3511_v54  ;;  %v6175_v20 = vsel %vm5978_vm6, %v5857_v41, -inf  ;;  %v6182_v50 = vsel %vm5978_vm6, %v5903_v44, -inf  ;;  %v7034_v2 = vld [vmem:[#allocation4 + $0x44] sm:$0xf]  ;;  %v6711_v13 = vunpack.c.l.b16 %v6583_v27  ;;  %v12575_v12 = vpop.f32.mrf.mxu3 }
 0x385   : > { %v6586_v6 = vpack.c.bf16 %v6522_v42, %v6522_v42  ;;  %v6712_v58 = vunpack.c.l.b16 %v6584_v5  ;;  %v6713_v17 = vunpack.c.l.b16 %v6585_v32  ;;  %3576 = vst [vmem:[#allocation3 + $0x47c] sm:$0xf] %v3512_v35  ;;  %v6176_v43 = vrot.slane %v6175_v20, 4  ;;  %v12569_v47 = vld [vmem:[#allocation4 + $0x44] sm:$0xf]  ;;  %v5815_v32 = vpop.f32.mrf.mxu0 }
 0x386   : > { %v6183_v7 = vrot.slane %v6182_v50, 4  ;;  %v6189_v26 = vsel %vm5978_vm6, %v5904_v60, -inf  ;;  %v6196_v49 = vsel %vm5978_vm6, %v5905_v30, -inf  ;;  %7042 = vst [vmem:[#allocation3 + $0x70] sm:$0xf] %v7034_v2  ;;  %v9919_v18 = vrot.slane %v6938_v25, 11 }
 0x387   : > { %v6714_v0 = vunpack.c.l.b16 %v6586_v6  ;;  %v6800_v11 = vrot.slane %v6712_v58, 7  ;;  %v6802_v52 = vrot.slane %v6713_v17, 6  ;;  %v6177_v45 = vmax.f32 %v6175_v20, %v6176_v43  ;;  %v9627_v51 = vld [vmem:[#allocation3 + $0x458] sm:$0xf]  ;;  %v10605_v17 = vld [vmem:[#allocation3 + $0x4c] sm:$0xf] }
 0x388   : > { %v6184_v21 = vmax.f32 %v6182_v50, %v6183_v7  ;;  %v6190_v33 = vrot.slane %v6189_v26, 4  ;;  %v6197_v4 = vrot.slane %v6196_v49, 4  ;;  %v6943_v57 = vshrl.u32 %v6900_v22, 16 }
 0x389   : > { %v6801_v23 = vsel %vm6752_vm7, %v6800_v11, %v6711_v13  ;;  %v6804_v46 = vrot.slane %v6714_v0, 5  ;;  %v6178_v31 = vrot.slane %v6177_v45, 2  ;;  %v6946_v27 = vshll.u32 %v6900_v22, 16 }
 0x38a   : > { %v6803_v16 = vsel %vm6755_vm8, %v6802_v52, %v6801_v23  ;;  %v6185_v54 = vrot.slane %v6184_v21, 2  ;;  %v6191_v41 = vmax.f32 %v6189_v26, %v6190_v33  ;;  %v6198_v55 = vmax.f32 %v6196_v49, %v6197_v4 }
 0x38b   : > { %v12573_v63 = vsel %vm6758_vm9, %v6804_v46, %v6803_v16  ;;  %v6179_v24 = vmax.f32 %v6177_v45, %v6178_v31  ;;  %v6945_v10 = vrot.slane %v6943_v57, 7  ;;  %v6956_v30 = vshrl.u32 %v12569_v47, 16 }
 0x38c   : > { %v10523_v44 = vld [vmem:[#allocation3 + $0x478] sm:$0xf0]  ;;  %v6186_v60 = vmax.f32 %v6184_v21, %v6185_v54  ;;  %v6192_v42 = vrot.slane %v6191_v41, 2  ;;  %v6199_v5 = vrot.slane %v6198_v55, 2  ;;  %v5816_v50 = vadd.f32 %v5815_v32, %v12277_v34 }
 0x38d   : > { %v9628_v35 = vor.u32 %v10523_v44, %v9627_v51  ;;  %v6180_v20 = vrot.slane %v6179_v24, 1  ;;  %v6948_v2 = vor.u32 %v6946_v27, %v6945_v10  ;;  %v9981_v43 = vld [vmem:[#allocation3 + $0x6c] sm:$0xf0]  ;;  %v6951_v13 = vshrl.u32 %v6901_v53, 16 }
 0x38e   : > { %v6187_v25 = vrot.slane %v6186_v60, 1  ;;  %v6193_v6 = vmax.f32 %v6191_v41, %v6192_v42  ;;  %v6200_v58 = vmax.f32 %v6198_v55, %v6199_v5  ;;  %v9984_v26 = vor.u32 %v10605_v17, %v9981_v43 }
 0x38f   : > { %5844 = vmatmul.bf16.gmra.mxu0 %v9628_v35  ;;  %v6181_v7 = vmax.f32 %v6179_v24, %v6180_v20  ;;  %v5858_v49 = vmax.f32 %v12558_v14, %v5816_v50  ;;  %v6949_v22 = vsel %vm11094_vm2, %v9919_v18, %v6948_v2  ;;  %v12582_v45 = vrot.slane %v6951_v13, 11 }
 0x390   : > { %v6188_v0 = vmax.f32 %v6186_v60, %v6187_v25  ;;  %v6194_v11 = vrot.slane %v6193_v6, 1  ;;  %v6201_v52 = vrot.slane %v6200_v58, 1  ;;  %7025 = vst [vmem:[#allocation3 + $0x48] sm:$0xf] %v6949_v22  ;;  %8626 = vmatmul.bf16.gmra.mxu2 %v9984_v26  ;;  %v12592_v60 = vpop.f32.mrf.mxu3 }
 0x391   : > { %v6459_v34 = vadd.f32 %v12544_v3, %v6181_v7  ;;  %v5906_v21 = vrot.slane %v5858_v49, 2  ;;  %v5907_v33 = vrot.slane %v5858_v49, 4  ;;  %v5908_v4 = vrot.slane %v5858_v49, 6 }
 0x392   : > { %v6195_v23 = vmax.f32 %v6193_v6, %v6194_v11  ;;  %v6202_v46 = vmax.f32 %v6200_v58, %v6201_v52  ;;  %v6460_v31 = vadd.f32 %v12544_v3, %v6188_v0  ;;  %v6203_v14 = vsel %vm5978_vm6, %v5858_v49, -inf }
 0x393   : > { %v6523_v57 = vmax.f32 %v6459_v34, 0.0  ;;  %v6204_v18 = vrot.slane %v6203_v14, 4  ;;  %v6210_v16 = vsel %vm5978_vm6, %v5906_v21, -inf  ;;  %v6217_v51 = vsel %vm5978_vm6, %v5907_v33, -inf }
 0x394   : > { %v6461_v54 = vadd.f32 %v12544_v3, %v6195_v23  ;;  %v6462_v41 = vadd.f32 %v12544_v3, %v6202_v46  ;;  %v6524_v55 = vmax.f32 %v6460_v31, 0.0  ;;  %v6211_v24 = vrot.slane %v6210_v16, 4  ;;  %v7051_v23 = vld [vmem:[#allocation4 + $0x30] sm:$0xf] }
 0x395   : > { %v6587_v53 = vpack.c.bf16 %v6523_v57, %v6523_v57  ;;  %v6205_v10 = vmax.f32 %v6203_v14, %v6204_v18  ;;  %v6218_v27 = vrot.slane %v6217_v51, 4  ;;  %v6224_v44 = vsel %vm5978_vm6, %v5908_v4, -inf  ;;  %v5664_v18 = vpop.f32.mrf.mxu2 }
 0x396   : > { %v6525_v42 = vmax.f32 %v6461_v54, 0.0  ;;  %v6526_v5 = vmax.f32 %v6462_v41, 0.0  ;;  %v6588_v32 = vpack.c.bf16 %v6524_v55, %v6524_v55  ;;  %v6212_v35 = vmax.f32 %v6210_v16, %v6211_v24 }
 0x397   : > { %v6715_v20 = vunpack.c.l.b16 %v6587_v53  ;;  %v6206_v50 = vrot.slane %v6205_v10, 2  ;;  %v6219_v2 = vmax.f32 %v6217_v51, %v6218_v27  ;;  %v6225_v25 = vrot.slane %v6224_v44, 4 }
 0x398   : > { %v6589_v6 = vpack.c.bf16 %v6525_v42, %v6525_v42  ;;  %v6590_v58 = vpack.c.bf16 %v6526_v5, %v6526_v5  ;;  %v6716_v17 = vunpack.c.l.b16 %v6588_v32  ;;  %v6213_v43 = vrot.slane %v6212_v35, 2  ;;  %v7052_v5 = vld [vmem:[#allocation4 + $0x34] sm:$0x1]  ;;  %v7053_v32 = vld [vmem:[#allocation4 + $0x44] sm:$0xf] }
 0x399   : > { %v6806_v13 = vrot.slane %v6715_v20, 4  ;;  %v6207_v7 = vmax.f32 %v6205_v10, %v6206_v50  ;;  %v6220_v26 = vrot.slane %v6219_v2, 2  ;;  %v6226_v49 = vmax.f32 %v6224_v44, %v6225_v25  ;;  %v5751_v20 = vpop.f32.mrf.mxu3 }
 0x39a   : > { %v6717_v22 = vunpack.c.l.b16 %v6589_v6  ;;  %v6718_v0 = vunpack.c.l.b16 %v6590_v58  ;;  %v6808_v11 = vrot.slane %v6716_v17, 3  ;;  %v6214_v52 = vmax.f32 %v6212_v35, %v6213_v43  ;;  %v5817_v35 = vpop.f32.mrf.mxu0 }
 0x39b   : > { %v6807_v34 = vsel %vm6761_vm10, %v6806_v13, %v12573_v63  ;;  %v6208_v21 = vrot.slane %v6207_v7, 1  ;;  %v6221_v33 = vmax.f32 %v6219_v2, %v6220_v26  ;;  %v6227_v4 = vrot.slane %v6226_v49, 2 }
 0x39c   : > { %v6809_v46 = vsel %vm6764_vm11, %v6808_v11, %v6807_v34  ;;  %v6810_v31 = vrot.slane %v6717_v22, 2  ;;  %v6812_v14 = vrot.slane %v6718_v0, 1  ;;  %v6215_v57 = vrot.slane %v6214_v52, 1  ;;  %v7054_v11 = vld [vmem:[#allocation4 + $0x48] sm:$0x1] }
 0x39d   : > { %v6209_v16 = vmax.f32 %v6207_v7, %v6208_v21  ;;  %v6222_v51 = vrot.slane %v6221_v33, 1  ;;  %v6228_v54 = vmax.f32 %v6226_v49, %v6227_v4  ;;  %v6958_v41 = vrot.slane %v6956_v30, 7 }
 0x39e   : > { %v6811_v55 = vsel %vm6767_vm12, %v6810_v31, %v6809_v46  ;;  %v6216_v24 = vmax.f32 %v6214_v52, %v6215_v57  ;;  %v6959_v63 = vshll.u32 %v12569_v47, 16  ;;  %v7092_v53 = vshrl.u32 %v7051_v23, 16 }
 0x39f   : > { %v6813_v10 = vsel %vm6770_vm13, %v6812_v14, %v6811_v55  ;;  %v6223_v27 = vmax.f32 %v6221_v33, %v6222_v51  ;;  %v6229_v44 = vrot.slane %v6228_v54, 1  ;;  %v6463_v42 = vadd.f32 %v12544_v3, %v6209_v16 }
 0x3a0   : > { %v6873_v50 = vpack.c.b16 %v6813_v10, %v6813_v10  ;;  %v6464_v2 = vadd.f32 %v12544_v3, %v6216_v24  ;;  %v6961_v30 = vor.u32 %v6959_v63, %v6958_v41  ;;  %v7094_v25 = vrot.slane %v7092_v53, 4 }
 0x3a1   : > { %v6230_v6 = vmax.f32 %v6228_v54, %v6229_v44  ;;  %v6465_v58 = vadd.f32 %v12544_v3, %v6223_v27  ;;  %v6527_v47 = vmax.f32 %v6463_v42, 0.0  ;;  %v7095_v17 = vshll.u32 %v7051_v23, 16  ;;  %v5667_v54 = vpop.f32.mrf.mxu2  ;;  %v7191_v27 = vld [vmem:[#allocation4 + $0x18] sm:$0x8]  ;;  %v9979_v44 = vld [vmem:[#allocation3 + $0x48] sm:$0xf]  ;;  %v5753_v42 = vpop.f32.mrf.mxu3 }
 0x3a2   : > { %6890 = vst [vmem:[#allocation4 + $0x58] sm:$0xf] %v6873_v50  ;;  %v6528_v43 = vmax.f32 %v6464_v2, 0.0  ;;  %v6962_v13 = vsel %vm11094_vm2, %v12582_v45, %v6961_v30  ;;  %v7101_v7 = vshll.u32 %v7052_v5, 16  ;;  %v7106_v26 = vshrl.u32 %v7053_v32, 16 }
 0x3a3   : > { %v5813_v49 = vadd.f32 %v12564_v40, %v12273_v36  ;;  %v6466_v22 = vadd.f32 %v12544_v3, %v6230_v6  ;;  %v6529_v0 = vmax.f32 %v6465_v58, 0.0  ;;  %7026 = vst [vmem:[#allocation3 + $0x6c] sm:$0xf] %v6962_v13  ;;  %v7097_v52 = vrot.slane %v7095_v17, 5  ;;  %v7192_v2 = vld [vmem:[#allocation4 + $0x1c] sm:$0xf] }
 0x3a4   : > { %v6591_v34 = vpack.c.bf16 %v6527_v47, %v6527_v47  ;;  %v6592_v21 = vpack.c.bf16 %v6528_v43, %v6528_v43  ;;  %v7108_v33 = vrot.slane %v7106_v26, 4  ;;  %v7109_v4 = vshll.u32 %v7053_v32, 16  ;;  %v7194_v47 = vld [vmem:[#allocation4 + $0x30] sm:$0xf] }
 0x3a5   : > { %v6530_v23 = vmax.f32 %v6466_v22, 0.0  ;;  %v6593_v46 = vpack.c.bf16 %v6529_v0, %v6529_v0  ;;  %v7098_v31 = vor.u32 %v7097_v52, %v7094_v25  ;;  %v7103_v14 = vrot.slane %v7101_v7, 5  ;;  %v7193_v0 = vld [vmem:[#allocation4 + $0x2c] sm:$0x8] }
 0x3a6   : > { %v6720_v45 = vunpack.c.l.b16 %v6592_v21  ;;  %v7111_v57 = vrot.slane %v7109_v4, 5  ;;  %v7115_v16 = vshll.u32 %v7054_v11, 16  ;;  %v5818_v51 = vadd.f32 %v5817_v35, %v12280_v15 }
 0x3a7   : > { %v12614_v36 = vadd.f32 %v12575_v12, %v12443_v56  ;;  %v12618_v40 = vadd.f32 %v12592_v60, %v12447_v48  ;;  %v12620_v41 = vpack.c.bf16 %v6530_v23, %v6530_v23  ;;  %v7099_v55 = vrot.slane %v7098_v31, 4  ;;  %v12630_v60 = vpop.f32.mrf.mxu0 }
 0x3a8   : > { %v12623_v24 = vadd.f32 %v5751_v20, %v12461_v39  ;;  %v7112_v63 = vor.u32 %v7111_v57, %v7108_v33  ;;  %v7117_v53 = vrot.slane %v7115_v16, 5  ;;  %v5859_v10 = vmax.f32 %v5813_v49, %v5818_v51 }
 0x3a9   : > { %v12626_v15 = vadd.f32 %v5664_v18, %v12467_v62  ;;  %v6721_v56 = vunpack.c.l.b16 %v6593_v46  ;;  %v6814_v12 = vrot.slane %v6720_v45, 7  ;;  %v7104_v48 = vsel %vm11204_vm5, %v7099_v55, %v7103_v14 }
 0x3aa   : > { %v12633_v5 = vadd.f32 %v5667_v54, %v12551_v37  ;;  %v6719_v39 = vunpack.c.l.b16 %v6591_v34  ;;  %v10609_v32 = vld [vmem:[#allocation3 + $0x68] sm:$0xf0]  ;;  %v7113_v35 = vrot.slane %v7112_v63, 4  ;;  %7185 = vst [vmem:[#allocation3 + $0x50] sm:$0xf] %v7104_v48  ;;  %v5909_v20 = vrot.slane %v5859_v10, 2  ;;  %v5756_v48 = vpop.f32.mrf.mxu3 }
 0x3ab   : > { %v6722_v62 = vunpack.c.l.b16 %v12620_v41  ;;  %v9980_v18 = vor.u32 %v10609_v32, %v9979_v44  ;;  %v5910_v50 = vrot.slane %v5859_v10, 4  ;;  %v7208_v30 = vshrl.u32 %v7191_v27, 16  ;;  %v7343_v54 = vld [vmem:[#allocation4 + $0x1c] sm:$0xf] }
 0x3ac   : > { %v7118_v25 = vsel %vm11204_vm5, %v7113_v35, %v7117_v53  ;;  %v5911_v6 = vrot.slane %v5859_v10, 6  ;;  %v6231_v58 = vsel %vm5978_vm6, %v5859_v10, -inf  ;;  %v6238_v37 = vsel %vm5978_vm6, %v5909_v20, -inf }
 0x3ad   : > { %v6816_v17 = vrot.slane %v6721_v56, 6  ;;  %8597 = vmatmul.bf16.gmra.mxu1 %v9980_v18  ;;  %7186 = vst [vmem:[#allocation3 + $0x74] sm:$0xf] %v7118_v25  ;;  %v6232_v43 = vrot.slane %v6231_v58, 4  ;;  %v6239_v13 = vrot.slane %v6238_v37, 4  ;;  %v6245_v7 = vsel %vm5978_vm6, %v5910_v50, -inf }
 0x3ae   : > { %v6815_v26 = vsel %vm6752_vm7, %v6814_v12, %v6719_v39  ;;  %v6246_v49 = vrot.slane %v6245_v7, 4  ;;  %v6252_v22 = vsel %vm5978_vm6, %v5911_v6, -inf  ;;  %v7213_v11 = vshrl.u32 %v7192_v2, 16 }
 0x3af   : > { %v6233_v52 = vmax.f32 %v6231_v58, %v6232_v43  ;;  %v6240_v34 = vmax.f32 %v6238_v37, %v6239_v13  ;;  %v6253_v21 = vrot.slane %v6252_v22, 4  ;;  %v9925_v33 = vrot.slane %v7208_v30, 11  ;;  %v5822_v16 = vpop.f32.mrf.mxu0 }
 0x3b0   : > { %v6247_v4 = vmax.f32 %v6245_v7, %v6246_v49  ;;  %v7215_v23 = vrot.slane %v7213_v11, 7  ;;  %v7216_v46 = vshll.u32 %v7192_v2, 16  ;;  %v7226_v31 = vshrl.u32 %v7194_v47, 16  ;;  %v5580_v7 = vpop.f32.mrf.mxu1 }
 0x3b1   : > { %v6234_v14 = vrot.slane %v6233_v52, 2  ;;  %v6241_v45 = vrot.slane %v6240_v34, 2  ;;  %v6254_v57 = vmax.f32 %v6252_v22, %v6253_v21  ;;  %v7221_v51 = vshrl.u32 %v7193_v0, 16  ;;  %v9987_v39 = vld [vmem:[#allocation3 + $0x50] sm:$0xf] }
 0x3b2   : > { %v6248_v55 = vrot.slane %v6247_v4, 2  ;;  %v7218_v63 = vor.u32 %v7216_v46, %v7215_v23  ;;  %v7228_v53 = vrot.slane %v7226_v31, 7  ;;  %v7229_v10 = vshll.u32 %v7194_v47, 16 }
 0x3b3   : > { %v6235_v27 = vmax.f32 %v6233_v52, %v6234_v14  ;;  %v6242_v56 = vmax.f32 %v6240_v34, %v6241_v45  ;;  %v6255_v12 = vrot.slane %v6254_v57, 2  ;;  %v9926_v44 = vrot.slane %v7221_v51, 11 }
 0x3b4   : > { %v10610_v32 = vld [vmem:[#allocation3 + $0x70] sm:$0xf0]  ;;  %v6249_v35 = vmax.f32 %v6247_v4, %v6248_v55  ;;  %v7219_v20 = vsel %vm11094_vm2, %v9925_v33, %v7218_v63  ;;  %v7231_v18 = vor.u32 %v7229_v10, %v7228_v53  ;;  %v7360_v50 = vshrl.u32 %v7343_v54, 16  ;;  %v7344_v4 = vld [vmem:[#allocation4 + $0x20] sm:$0x1] }
 0x3b5   : > { %v9988_v2 = vor.u32 %v10610_v32, %v9987_v39  ;;  %v6236_v30 = vrot.slane %v6235_v27, 1  ;;  %v6243_v25 = vrot.slane %v6242_v56, 1  ;;  %v6256_v6 = vmax.f32 %v6254_v57, %v6255_v12  ;;  %7319 = vst [vmem:[#allocation3 + $0xc] sm:$0xf] %v7219_v20 }
 0x3b6   : > { %v12646_v58 = vadd.f32 %v5753_v42, %v12626_v15  ;;  %v6250_v37 = vrot.slane %v6249_v35, 1  ;;  %v7232_v47 = vsel %vm11094_vm2, %v9926_v44, %v7231_v18  ;;  %v7363_v43 = vshll.u32 %v7343_v54, 16 }
 0x3b7   : > { %v12651_v13 = vadd.f32 %v5756_v48, %v12633_v5  ;;  %8655 = vmatmul.bf16.gmra.mxu3 %v9988_v2  ;;  %v6237_v49 = vmax.f32 %v6235_v27, %v6236_v30  ;;  %v6244_v22 = vmax.f32 %v6242_v56, %v6243_v25  ;;  %v6257_v0 = vrot.slane %v6256_v6, 1  ;;  %7320 = vst [vmem:[#allocation3 + $0x30] sm:$0xf] %v7232_v47  ;;  %v5825_v33 = vpop.f32.mrf.mxu0 }
 0x3b8   : > { %v6817_v11 = vsel %vm6755_vm8, %v6816_v17, %v6815_v26  ;;  %v6818_v15 = vrot.slane %v6722_v62, 5  ;;  %v6251_v42 = vmax.f32 %v6249_v35, %v6250_v37  ;;  %v12656_v52 = vrot.slane %v7360_v50, 4  ;;  %v7035_v35 = vld [vmem:[#allocation4 + $0x58] sm:$0xf] }
 0x3b9   : > { %v6258_v34 = vmax.f32 %v6256_v6, %v6257_v0  ;;  %v6467_v21 = vadd.f32 %v12544_v3, %v6237_v49  ;;  %v6468_v5 = vadd.f32 %v12544_v3, %v6244_v22  ;;  %v7365_v23 = vrot.slane %v7363_v43, 5  ;;  %7043 = vst [vmem:[#allocation3 + $0x94] sm:$0xf] %v7035_v35 }
 0x3ba   : > { %v12661_v46 = vadd.f32 %v5580_v7, %v12291_v61  ;;  %v6469_v31 = vadd.f32 %v12544_v3, %v6251_v42  ;;  %v5821_v41 = vadd.f32 %v12630_v60, %v12287_v1  ;;  %v5826_v62 = vadd.f32 %v5825_v33, %v12305_v9 }
 0x3bb   : > { %v6819_v17 = vsel %vm6758_vm9, %v6818_v15, %v6817_v11  ;;  %v6470_v26 = vadd.f32 %v12544_v3, %v6258_v34  ;;  %v6531_v14 = vmax.f32 %v6467_v21, 0.0  ;;  %v6532_v45 = vmax.f32 %v6468_v5, 0.0 }
 0x3bc   : > { %v6533_v57 = vmax.f32 %v6469_v31, 0.0  ;;  %v5823_v51 = vadd.f32 %v5822_v16, %v12299_v59  ;;  %v5860_v54 = vmax.f32 %v5821_v41, %v5826_v62  ;;  %v7369_v55 = vshll.u32 %v7344_v4, 16 }
 0x3bd   : > { %v6534_v61 = vmax.f32 %v6470_v26, 0.0  ;;  %v6595_v63 = vpack.c.bf16 %v6531_v14, %v6531_v14  ;;  %v6596_v53 = vpack.c.bf16 %v6532_v45, %v6532_v45  ;;  %v7366_v10 = vor.u32 %v7365_v23, %v12656_v52 }
 0x3be   : > { %v6597_v27 = vpack.c.bf16 %v6533_v57, %v6533_v57  ;;  %v5912_v1 = vrot.slane %v5860_v54, 2  ;;  %v5913_v60 = vrot.slane %v5860_v54, 4  ;;  %v5914_v9 = vrot.slane %v5860_v54, 6 }
 0x3bf   : > { %v6598_v56 = vpack.c.bf16 %v6534_v61, %v6534_v61  ;;  %v6723_v12 = vunpack.c.l.b16 %v6595_v63  ;;  %v6724_v44 = vunpack.c.l.b16 %v6596_v53  ;;  %v6259_v48 = vsel %vm5978_vm6, %v5860_v54, -inf  ;;  %v5827_v30 = vpop.f32.mrf.mxu0 }
 0x3c0   : > { %v6725_v39 = vunpack.c.l.b16 %v6597_v27  ;;  %v6260_v32 = vrot.slane %v6259_v48, 4  ;;  %v6266_v59 = vsel %vm5978_vm6, %v5912_v1, -inf  ;;  %v6273_v16 = vsel %vm5978_vm6, %v5913_v60, -inf }
 0x3c1   : > { %v6726_v20 = vunpack.c.l.b16 %v6598_v56  ;;  %v6820_v18 = vrot.slane %v6723_v12, 4  ;;  %v6822_v50 = vrot.slane %v6724_v44, 3  ;;  %v6267_v2 = vrot.slane %v6266_v59, 4 }
 0x3c2   : > { %v6824_v25 = vrot.slane %v6725_v39, 2  ;;  %v6261_v6 = vmax.f32 %v6259_v48, %v6260_v32  ;;  %v6274_v37 = vrot.slane %v6273_v16, 4  ;;  %v6280_v47 = vsel %vm5978_vm6, %v5914_v9, -inf }
 0x3c3   : > { %v6821_v43 = vsel %vm6761_vm10, %v6820_v18, %v6819_v17  ;;  %v6826_v7 = vrot.slane %v6726_v20, 1  ;;  %v6268_v49 = vmax.f32 %v6266_v59, %v6267_v2  ;;  %v6281_v22 = vrot.slane %v6280_v47, 4 }
 0x3c4   : > { %v6823_v0 = vsel %vm6764_vm11, %v6822_v50, %v6821_v43  ;;  %v6262_v11 = vrot.slane %v6261_v6, 2  ;;  %v6275_v15 = vmax.f32 %v6273_v16, %v6274_v37  ;;  %v5828_v42 = vadd.f32 %v5827_v30, %v12309_v8 }
 0x3c5   : > { %v6825_v52 = vsel %vm6767_vm12, %v6824_v25, %v6823_v0  ;;  %v6269_v34 = vrot.slane %v6268_v49, 2  ;;  %v6282_v21 = vmax.f32 %v6280_v47, %v6281_v22  ;;  %v12679_v5 = vrot.slane %v7369_v55, 5  ;;  %v6903_v47 = vld [vmem:[#allocation4 + $0x54] sm:$0x8] }
 0x3c6   : > { %v6827_v33 = vsel %vm6770_vm13, %v6826_v7, %v6825_v52  ;;  %v6263_v4 = vmax.f32 %v6261_v6, %v6262_v11  ;;  %v6276_v23 = vrot.slane %v6275_v15, 2  ;;  %v5861_v31 = vmax.f32 %v5823_v51, %v5828_v42 }
 0x3c7   : > { %v6874_v41 = vpack.c.b16 %v6827_v33, %v6827_v33  ;;  %v6270_v62 = vmax.f32 %v6268_v49, %v6269_v34  ;;  %v6283_v17 = vrot.slane %v6282_v21, 2  ;;  %v12682_v26 = vrot.slane %v7366_v10, 4 }
 0x3c8   : > { %v6264_v14 = vrot.slane %v6263_v4, 1  ;;  %v6277_v45 = vmax.f32 %v6275_v15, %v6276_v23  ;;  %v5915_v57 = vrot.slane %v5861_v31, 2  ;;  %v5916_v8 = vrot.slane %v5861_v31, 4 }
 0x3c9   : > { %6891 = vst [vmem:[#allocation4 + $0x6c] sm:$0xf] %v6874_v41  ;;  %v6271_v54 = vrot.slane %v6270_v62, 1  ;;  %v6284_v61 = vmax.f32 %v6282_v21, %v6283_v17  ;;  %v5917_v63 = vrot.slane %v5861_v31, 6  ;;  %v6287_v55 = vsel %vm5978_vm6, %v5861_v31, -inf }
 0x3ca   : > { %v6265_v53 = vmax.f32 %v6263_v4, %v6264_v14  ;;  %v6278_v27 = vrot.slane %v6277_v45, 1  ;;  %v6288_v1 = vrot.slane %v6287_v55, 4  ;;  %v6294_v51 = vsel %vm5978_vm6, %v5915_v57, -inf  ;;  %v6904_v14 = vld [vmem:[#allocation4 + $0x58] sm:$0xf] }
 0x3cb   : > { %v6272_v60 = vmax.f32 %v6270_v62, %v6271_v54  ;;  %v6285_v9 = vrot.slane %v6284_v61, 1  ;;  %v6295_v56 = vrot.slane %v6294_v51, 4  ;;  %v6301_v10 = vsel %vm5978_vm6, %v5916_v8, -inf }
 0x3cc   : > { %v6279_v12 = vmax.f32 %v6277_v45, %v6278_v27  ;;  %v6471_v44 = vadd.f32 %v12544_v3, %v6265_v53  ;;  %v6289_v48 = vmax.f32 %v6287_v55, %v6288_v1  ;;  %v6302_v39 = vrot.slane %v6301_v10, 4 }
 0x3cd   : > { %v6286_v32 = vmax.f32 %v6284_v61, %v6285_v9  ;;  %v6472_v59 = vadd.f32 %v12544_v3, %v6272_v60  ;;  %v6296_v16 = vmax.f32 %v6294_v51, %v6295_v56  ;;  %v6308_v35 = vsel %vm5978_vm6, %v5917_v63, -inf }
 0x3ce   : > { %v6473_v20 = vadd.f32 %v12544_v3, %v6279_v12  ;;  %v6535_v18 = vmax.f32 %v6471_v44, 0.0  ;;  %v6290_v50 = vrot.slane %v6289_v48, 2  ;;  %v6303_v2 = vmax.f32 %v6301_v10, %v6302_v39  ;;  %v7055_v44 = vld [vmem:[#allocation4 + $0x58] sm:$0xf] }
 0x3cf   : > { %v6474_v30 = vadd.f32 %v12544_v3, %v6286_v32  ;;  %v6536_v25 = vmax.f32 %v6472_v59, 0.0  ;;  %v6297_v6 = vrot.slane %v6296_v16, 2  ;;  %v6309_v37 = vrot.slane %v6308_v35, 4  ;;  %v10614_v59 = vld [vmem:[#allocation3 + $0x94] sm:$0xf] }
 0x3d0   : > { %v6537_v43 = vmax.f32 %v6473_v20, 0.0  ;;  %v6599_v7 = vpack.c.bf16 %v6535_v18, %v6535_v18  ;;  %v6291_v49 = vmax.f32 %v6289_v48, %v6290_v50  ;;  %v6304_v22 = vrot.slane %v6303_v2, 2  ;;  %v7036_v0 = vld [vmem:[#allocation4 + $0x6c] sm:$0xf]  ;;  %v5830_v34 = vpop.f32.mrf.mxu0  ;;  %v12699_v20 = vpop.f32.mrf.mxu2 }
 0x3d1   : > { %v6538_v11 = vmax.f32 %v6474_v30, 0.0  ;;  %v6600_v15 = vpack.c.bf16 %v6536_v25, %v6536_v25  ;;  %v6298_v42 = vmax.f32 %v6296_v16, %v6297_v6  ;;  %v6310_v52 = vmax.f32 %v6308_v35, %v6309_v37  ;;  %7044 = vst [vmem:[#allocation3 + $0xb8] sm:$0xf] %v7036_v0  ;;  %v7056_v6 = vld [vmem:[#allocation4 + $0x5c] sm:$0x1] }
 0x3d2   : > { %v6601_v21 = vpack.c.bf16 %v6537_v43, %v6537_v43  ;;  %v6292_v33 = vrot.slane %v6291_v49, 1  ;;  %v6305_v4 = vmax.f32 %v6303_v2, %v6304_v22  ;;  %v6964_v23 = vshrl.u32 %v6903_v47, 16 }
 0x3d3   : > { %v6602_v31 = vpack.c.bf16 %v6538_v11, %v6538_v11  ;;  %v6728_v41 = vunpack.c.l.b16 %v6600_v15  ;;  %v6299_v62 = vrot.slane %v6298_v42, 1  ;;  %v6311_v17 = vrot.slane %v6310_v52, 2 }
 0x3d4   : > { %v6727_v45 = vunpack.c.l.b16 %v6599_v7  ;;  %v6729_v57 = vunpack.c.l.b16 %v6601_v21  ;;  %v6293_v8 = vmax.f32 %v6291_v49, %v6292_v33  ;;  %v6306_v54 = vrot.slane %v6305_v4, 1 }
 0x3d5   : > { %v6730_v61 = vunpack.c.l.b16 %v6602_v31  ;;  %v6828_v63 = vrot.slane %v6728_v41, 7  ;;  %v6300_v55 = vmax.f32 %v6298_v42, %v6299_v62  ;;  %v6312_v53 = vmax.f32 %v6310_v52, %v6311_v17 }
 0x3d6   : > { %v6830_v27 = vrot.slane %v6729_v57, 6  ;;  %v6307_v1 = vmax.f32 %v6305_v4, %v6306_v54  ;;  %v6475_v51 = vadd.f32 %v12544_v3, %v6293_v8  ;;  %v6969_v60 = vshrl.u32 %v6904_v14, 16 }
 0x3d7   : > { %v6829_v9 = vsel %vm6752_vm7, %v6828_v63, %v6727_v45  ;;  %v6313_v56 = vrot.slane %v6312_v53, 1  ;;  %v6476_v10 = vadd.f32 %v12544_v3, %v6300_v55  ;;  %v9921_v12 = vrot.slane %v6964_v23, 11  ;;  %v12705_v23 = vld [vmem:[#allocation4 + $0x30] sm:$0xf]  ;;  %v7057_v63 = vld [vmem:[#allocation4 + $0x6c] sm:$0xf] }
 0x3d8   : > { %v6477_v48 = vadd.f32 %v12544_v3, %v6307_v1  ;;  %v6539_v39 = vmax.f32 %v6475_v51, 0.0  ;;  %v12697_v32 = vadd.f32 %v5830_v34, %v12367_v28  ;;  %v10017_v16 = vld [vmem:[#allocation3 + $0xb4] sm:$0xf0]  ;;  %v6971_v35 = vrot.slane %v6969_v60, 7  ;;  %v12701_v30 = vpop.f32.mrf.mxu0  ;;  %v8622_v60 = vpop.f32.mrf.mxu2 }
 0x3d9   : > { %v6832_v18 = vrot.slane %v6730_v61, 5  ;;  %v6314_v50 = vmax.f32 %v6312_v53, %v6313_v56  ;;  %v6540_v2 = vmax.f32 %v6476_v10, 0.0  ;;  %v10020_v25 = vor.u32 %v10614_v59, %v10017_v16  ;;  %v6906_v61 = vld [vmem:[#allocation4 + $0x6c] sm:$0xf]  ;;  %v7058_v59 = vld [vmem:[#allocation4 + $0x70] sm:$0x1] }
 0x3da   : > { %v6831_v37 = vsel %vm6755_vm8, %v6830_v27, %v6829_v9  ;;  %v6541_v47 = vmax.f32 %v6477_v48, 0.0  ;;  %v6603_v43 = vpack.c.bf16 %v6539_v39, %v6539_v39  ;;  %v6972_v7 = vshll.u32 %v6904_v14, 16  ;;  %v6905_v9 = vld [vmem:[#allocation4 + $0x68] sm:$0x8] }
 0x3db   : > { %v6478_v28 = vadd.f32 %v12544_v3, %v6314_v50  ;;  %v6604_v49 = vpack.c.bf16 %v6540_v2, %v6540_v2  ;;  %8631 = vmatmul.bf16.gmra.mxu2 %v10020_v25  ;;  %v7120_v22 = vshrl.u32 %v7055_v44, 16  ;;  %v7123_v0 = vshll.u32 %v7055_v44, 16  ;;  %v7624_v50 = vld [vmem:[#allocation4 + $0x30] sm:$0xf] }
 0x3dc   : > { %v6605_v11 = vpack.c.bf16 %v6541_v47, %v6541_v47  ;;  %v6731_v15 = vunpack.c.l.b16 %v6603_v43  ;;  %v6974_v42 = vor.u32 %v6972_v7, %v6971_v35  ;;  %v7129_v52 = vshll.u32 %v7056_v6, 16  ;;  %7632 = vst [vmem:[#allocation3 + $0x1c] sm:$0xf] %v7624_v50 }
 0x3dd   : > { %v6542_v34 = vmax.f32 %v6478_v28, 0.0  ;;  %v6732_v21 = vunpack.c.l.b16 %v6604_v49  ;;  %v7122_v33 = vrot.slane %v7120_v22, 4  ;;  %v7125_v4 = vrot.slane %v7123_v0, 5 }
 0x3de   : > { %v6833_v31 = vsel %vm6758_vm9, %v6832_v18, %v6831_v37  ;;  %v6733_v41 = vunpack.c.l.b16 %v6605_v11  ;;  %v6834_v62 = vrot.slane %v6731_v15, 4  ;;  %v6975_v3 = vsel %vm11094_vm2, %v9921_v12, %v6974_v42  ;;  %v8593_v48 = vpop.f32.mrf.mxu1 }
 0x3df   : > { %v6606_v17 = vpack.c.bf16 %v6542_v34, %v6542_v34  ;;  %v6836_v14 = vrot.slane %v6732_v21, 3  ;;  %7027 = vst [vmem:[#allocation3 + $0x90] sm:$0xf] %v6975_v3  ;;  %v7126_v45 = vor.u32 %v7125_v4, %v7122_v33  ;;  %v7131_v57 = vrot.slane %v7129_v52, 5 }
 0x3e0   : > { %v6835_v8 = vsel %vm6761_vm10, %v6834_v62, %v6833_v31  ;;  %v6838_v54 = vrot.slane %v6733_v41, 2  ;;  %v7372_v55 = vsel %vm11204_vm5, %v12682_v26, %v12679_v5  ;;  %v7374_v53 = vshrl.u32 %v12705_v23, 16  ;;  %v5835_v51 = vpop.f32.mrf.mxu0 }
 0x3e1   : > { %v6734_v27 = vunpack.c.l.b16 %v6606_v17  ;;  %v6837_v1 = vsel %vm6764_vm11, %v6836_v14, %v6835_v8  ;;  %v6982_v56 = vshrl.u32 %v6906_v61, 16  ;;  %v6985_v10 = vshll.u32 %v6906_v61, 16  ;;  %7479 = vst [vmem:[#allocation3 + $0x14] sm:$0xf] %v7372_v55  ;;  %v12731_v17 = vpop.f32.mrf.mxu3 }
 0x3e2   : > { %v6839_v12 = vsel %vm6767_vm12, %v6838_v54, %v6837_v1  ;;  %v5836_v44 = vadd.f32 %v5835_v51, %v12614_v36  ;;  %v6977_v39 = vshrl.u32 %v6905_v9, 16  ;;  %v7127_v16 = vrot.slane %v7126_v45, 4 }
 0x3e3   : > { %v6840_v5 = vrot.slane %v6734_v27, 1  ;;  %v12719_v26 = vadd.f32 %v8622_v60, %v8593_v48  ;;  %v6984_v35 = vrot.slane %v6982_v56, 7  ;;  %v7134_v18 = vshrl.u32 %v7057_v63, 16 }
 0x3e4   : > { %v5862_v2 = vmax.f32 %v12697_v32, %v5836_v44  ;;  %v9922_v25 = vrot.slane %v6977_v39, 11  ;;  %v7132_v6 = vsel %vm11204_vm5, %v7127_v16, %v7131_v57  ;;  %v7137_v37 = vshll.u32 %v7057_v63, 16  ;;  %v10671_v16 = vld [vmem:[%s13143_s3 + $0x138] sm:$0xff] }
 0x3e5   : > { %v6841_v36 = vsel %vm6770_vm13, %v6840_v5, %v6839_v12  ;;  %v6987_v47 = vor.u32 %v6985_v10, %v6984_v35  ;;  %v7136_v43 = vrot.slane %v7134_v18, 4  ;;  %v7143_v7 = vshll.u32 %v7058_v59, 16  ;;  %7187 = vst [vmem:[#allocation3 + $0x98] sm:$0xf] %v7132_v6  ;;  %v10679_v5 = vld [vmem:[%s13143_s3 + $0x178] sm:$0xff]  ;;  %8700 = vmatpush.bf16.msra.mxu2 %v10671_v16 }
 0x3e6   : > { %v6875_v28 = vpack.c.b16 %v6841_v36, %v6841_v36  ;;  %v5918_v49 = vrot.slane %v5862_v2, 2  ;;  %v5919_v22 = vrot.slane %v5862_v2, 4  ;;  %v5920_v0 = vrot.slane %v5862_v2, 6  ;;  %v10663_v35 = vld [vmem:[%s13143_s3 + $0xf8] sm:$0xff]  ;;  %8729 = vmatpush.bf16.msrb.mxu3 %v10679_v5  ;;  %v8595_v16 = vpop.f32.mrf.mxu1 }
 0x3e7   : > { %v6315_v11 = vsel %vm5978_vm6, %v5862_v2, -inf  ;;  %v6988_v32 = vsel %vm11094_vm2, %v9922_v25, %v6987_v47  ;;  %v7139_v15 = vrot.slane %v7137_v37, 5  ;;  %v7145_v42 = vrot.slane %v7143_v7, 5  ;;  %v10670_v7 = vld [vmem:[%s13143_s3 + $0x130] sm:$0xff]  ;;  %8671 = vmatpush.bf16.msra.mxu1 %v10663_v35 }
 0x3e8   : > { %6892 = vst [vmem:[#allocation4 + $0x80] sm:$0xf] %v6875_v28  ;;  %v6316_v52 = vrot.slane %v6315_v11, 4  ;;  %v6322_v34 = vsel %vm5978_vm6, %v5918_v49, -inf  ;;  %v6329_v21 = vsel %vm5978_vm6, %v5919_v22, -inf  ;;  %v6336_v33 = vsel %vm5978_vm6, %v5920_v0, -inf  ;;  %v5837_v3 = vpop.f32.mrf.mxu0 }
 0x3e9   : > { %v6323_v4 = vrot.slane %v6322_v34, 4  ;;  %v6330_v31 = vrot.slane %v6329_v21, 4  ;;  %v6337_v41 = vrot.slane %v6336_v33, 4  ;;  %7028 = vst [vmem:[#allocation3 + $0xb4] sm:$0xf] %v6988_v32  ;;  %v7140_v62 = vor.u32 %v7139_v15, %v7136_v43  ;;  %v10678_v28 = vld [vmem:[%s13143_s3 + $0x170] sm:$0xff]  ;;  %8701 = vmatpush.bf16.msra.mxu2 %v10670_v7 }
 0x3ea   : > { %v5833_v14 = vadd.f32 %v12701_v30, %v12374_v29  ;;  %v6317_v45 = vmax.f32 %v6315_v11, %v6316_v52  ;;  %v5838_v57 = vadd.f32 %v5837_v3, %v12618_v40  ;;  %v7377_v8 = vshll.u32 %v12705_v23, 16  ;;  %v10015_v40 = vld [vmem:[#allocation3 + $0x90] sm:$0xf]  ;;  %v8651_v32 = vpop.f32.mrf.mxu3  ;;  %8730 = vmatpush.bf16.msrb.mxu3 %v10678_v28 }
 0x3eb   : > { %v6324_v54 = vmax.f32 %v6322_v34, %v6323_v4  ;;  %v6331_v61 = vmax.f32 %v6329_v21, %v6330_v31  ;;  %v6338_v63 = vmax.f32 %v6336_v33, %v6337_v41  ;;  %v7141_v55 = vrot.slane %v7140_v62, 4  ;;  %v12765_v21 = vld [vmem:[%s13142_s2] ss:$0 sm:$0xff] }
 0x3ec   : > { %v6318_v27 = vrot.slane %v6317_v45, 2  ;;  %v5863_v1 = vmax.f32 %v5833_v14, %v5838_v57  ;;  %v12737_v51 = vrot.slane %v7374_v53, 4  ;;  %v12739_v60 = vrot.slane %v7377_v8, 5 }
 0x3ed   : > { %v6325_v9 = vrot.slane %v6324_v54, 2  ;;  %v6332_v56 = vrot.slane %v6331_v61, 2  ;;  %v6339_v10 = vrot.slane %v6338_v63, 2  ;;  %v7146_v29 = vsel %vm11204_vm5, %v7141_v55, %v7145_v42 }
 0x3ee   : > { %v6319_v30 = vmax.f32 %v6317_v45, %v6318_v27  ;;  %7188 = vst [vmem:[#allocation3 + $0xbc] sm:$0xf] %v7146_v29  ;;  %v5921_v23 = vrot.slane %v5863_v1, 2  ;;  %v5922_v12 = vrot.slane %v5863_v1, 4  ;;  %v5923_v44 = vrot.slane %v5863_v1, 6 }
 0x3ef   : > { %v6326_v48 = vmax.f32 %v6324_v54, %v6325_v9  ;;  %v6333_v39 = vmax.f32 %v6331_v61, %v6332_v56  ;;  %v6340_v59 = vmax.f32 %v6338_v63, %v6339_v10  ;;  %v6343_v53 = vsel %vm5978_vm6, %v5863_v1, -inf  ;;  %v10023_v45 = vld [vmem:[#allocation3 + $0x98] sm:$0xf]  ;;  %v12771_v10 = vld [vmem:[#allocation4 + $0x34] sm:$0x1] }
 0x3f0   : > { %v6320_v18 = vrot.slane %v6319_v30, 1  ;;  %v10618_v50 = vld [vmem:[#allocation3 + $0xb0] sm:$0xf0]  ;;  %v6344_v2 = vrot.slane %v6343_v53, 4  ;;  %v6350_v25 = vsel %vm5978_vm6, %v5921_v23, -inf  ;;  %v6357_v6 = vsel %vm5978_vm6, %v5922_v12, -inf }
 0x3f1   : > { %v6327_v37 = vrot.slane %v6326_v48, 1  ;;  %v6334_v36 = vrot.slane %v6333_v39, 1  ;;  %v6341_v47 = vrot.slane %v6340_v59, 1  ;;  %v10016_v43 = vor.u32 %v10618_v50, %v10015_v40 }
 0x3f2   : > { %v6321_v49 = vmax.f32 %v6319_v30, %v6320_v18  ;;  %v6345_v22 = vmax.f32 %v6343_v53, %v6344_v2  ;;  %v6351_v0 = vrot.slane %v6350_v25, 4  ;;  %v6358_v11 = vrot.slane %v6357_v6, 4  ;;  %v8624_v53 = vpop.f32.mrf.mxu2  ;;  %v8653_v28 = vpop.f32.mrf.mxu3 }
 0x3f3   : > { %v6328_v15 = vmax.f32 %v6326_v48, %v6327_v37  ;;  %v6335_v42 = vmax.f32 %v6333_v39, %v6334_v36  ;;  %v6342_v52 = vmax.f32 %v6340_v59, %v6341_v47  ;;  %8602 = vmatmul.bf16.gmra.mxu1 %v10016_v43  ;;  %v6364_v34 = vsel %vm5978_vm6, %v5923_v44, -inf }
 0x3f4   : > { %v6479_v33 = vadd.f32 %v12765_v21, %v6321_v49  ;;  %v6346_v4 = vrot.slane %v6345_v22, 2  ;;  %v6352_v31 = vmax.f32 %v6350_v25, %v6351_v0  ;;  %v6359_v41 = vmax.f32 %v6357_v6, %v6358_v11 }
 0x3f5   : > { %v6480_v62 = vadd.f32 %v12765_v21, %v6328_v15  ;;  %v6481_v3 = vadd.f32 %v12765_v21, %v6335_v42  ;;  %v6482_v14 = vadd.f32 %v12765_v21, %v6342_v52  ;;  %v10619_v57 = vld [vmem:[#allocation3 + $0xb8] sm:$0xf0]  ;;  %v6365_v8 = vrot.slane %v6364_v34, 4 }
 0x3f6   : > { %v6543_v54 = vmax.f32 %v6479_v33, 0.0  ;;  %v10024_v61 = vor.u32 %v10619_v57, %v10023_v45  ;;  %v6347_v63 = vmax.f32 %v6345_v22, %v6346_v4  ;;  %v6353_v55 = vrot.slane %v6352_v31, 2  ;;  %v7037_v57 = vld [vmem:[#allocation4 + $0x80] sm:$0xf] }
 0x3f7   : > { %v6544_v27 = vmax.f32 %v6480_v62, 0.0  ;;  %v6545_v1 = vmax.f32 %v6481_v3, 0.0  ;;  %v6546_v9 = vmax.f32 %v6482_v14, 0.0  ;;  %v6360_v56 = vrot.slane %v6359_v41, 2  ;;  %7045 = vst [vmem:[#allocation3 + $0xdc] sm:$0xf] %v7037_v57 }
 0x3f8   : > { %v6607_v29 = vpack.c.bf16 %v6543_v54, %v6543_v54  ;;  %8660 = vmatmul.bf16.gmra.mxu3 %v10024_v61  ;;  %v6348_v30 = vrot.slane %v6347_v63, 1  ;;  %v6354_v40 = vmax.f32 %v6352_v31, %v6353_v55  ;;  %v6366_v23 = vmax.f32 %v6364_v34, %v6365_v8  ;;  %v12773_v12 = vpop.f32.mrf.mxu0  ;;  %v6908_v8 = vld [vmem:[#allocation4 + $0x80] sm:$0xf]  ;;  %v7488_v57 = vld [vmem:[#allocation4 + $0x2c] sm:$0x8] }
 0x3f9   : > { %v6608_v44 = vpack.c.bf16 %v6544_v27, %v6544_v27  ;;  %v6609_v48 = vpack.c.bf16 %v6545_v1, %v6545_v1  ;;  %v6610_v39 = vpack.c.bf16 %v6546_v9, %v6546_v9  ;;  %v6361_v59 = vmax.f32 %v6359_v41, %v6360_v56  ;;  %v6907_v56 = vld [vmem:[#allocation4 + $0x7c] sm:$0x8] }
 0x3fa   : > { %v6349_v5 = vmax.f32 %v6347_v63, %v6348_v30  ;;  %v6355_v35 = vrot.slane %v6354_v40, 1  ;;  %v6367_v18 = vrot.slane %v6366_v23, 2  ;;  %v7383_v50 = vshll.u32 %v12771_v10, 16  ;;  %v7059_v63 = vld [vmem:[#allocation4 + $0x80] sm:$0xf] }
 0x3fb   : > { %v6736_v2 = vunpack.c.l.b16 %v6608_v44  ;;  %v6737_v25 = vunpack.c.l.b16 %v6609_v48  ;;  %v6738_v6 = vunpack.c.l.b16 %v6610_v39  ;;  %v6362_v37 = vrot.slane %v6361_v59, 1 }
 0x3fc   : > { %v6356_v36 = vmax.f32 %v6354_v40, %v6355_v35  ;;  %v6368_v47 = vmax.f32 %v6366_v23, %v6367_v18  ;;  %v6483_v43 = vadd.f32 %v12765_v21, %v6349_v5  ;;  %v8625_v7 = vadd.f32 %v8624_v53, %v8595_v16 }
 0x3fd   : > { %v6735_v49 = vunpack.c.l.b16 %v6607_v29  ;;  %v6842_v22 = vrot.slane %v6736_v2, 7  ;;  %v6844_v0 = vrot.slane %v6737_v25, 6  ;;  %v6363_v11 = vmax.f32 %v6361_v59, %v6362_v37  ;;  %v7060_v59 = vld [vmem:[#allocation4 + $0x84] sm:$0x1] }
 0x3fe   : > { %v6369_v15 = vrot.slane %v6368_v47, 1  ;;  %v6484_v42 = vadd.f32 %v12765_v21, %v6356_v36  ;;  %v6547_v52 = vmax.f32 %v6483_v43, 0.0  ;;  %v12779_v34 = vadd.f32 %v8651_v32, %v12719_v26  ;;  %v7195_v36 = vld [vmem:[#allocation4 + $0x40] sm:$0x8] }
 0x3ff   : > { %v6843_v33 = vsel %vm6752_vm7, %v6842_v22, %v6735_v49  ;;  %v6846_v4 = vrot.slane %v6738_v6, 5  ;;  %v6485_v31 = vadd.f32 %v12765_v21, %v6363_v11  ;;  %v12783_v41 = vadd.f32 %v8653_v28, %v8625_v7  ;;  %v7196_v49 = vld [vmem:[#allocation4 + $0x44] sm:$0xf] }
 0x400   : > { %v6845_v62 = vsel %vm6755_vm8, %v6844_v0, %v6843_v33  ;;  %v6370_v3 = vmax.f32 %v6368_v47, %v6369_v15  ;;  %v6548_v14 = vmax.f32 %v6484_v42, 0.0  ;;  %v6611_v45 = vpack.c.bf16 %v6547_v52, %v6547_v52  ;;  %v12792_v9 = vpop.f32.mrf.mxu0  ;;  %v7625_v22 = vld [vmem:[#allocation4 + $0x44] sm:$0xf] }
 0x401   : > { %v12788_v54 = vadd.f32 %v12699_v20, %v12661_v46  ;;  %v6847_v26 = vsel %vm6758_vm9, %v6846_v4, %v6845_v62  ;;  %v6549_v32 = vmax.f32 %v6485_v31, 0.0  ;;  %v6995_v61 = vshrl.u32 %v6908_v8, 16  ;;  %v7329_v46 = vld [vmem:[#allocation4 + $0x44] sm:$0xf]  ;;  %7633 = vst [vmem:[#allocation3 + $0x40] sm:$0xf] %v7625_v22 }
 0x402   : > { %v6486_v55 = vadd.f32 %v12765_v21, %v6370_v3  ;;  %v6612_v27 = vpack.c.bf16 %v6548_v14, %v6548_v14  ;;  %v6739_v1 = vunpack.c.l.b16 %v6611_v45  ;;  %v6998_v29 = vshll.u32 %v6908_v8, 16  ;;  %7337 = vst [vmem:[#allocation3 + $0x58] sm:$0xf] %v7329_v46  ;;  %v7347_v52 = vld [vmem:[#allocation4 + $0x44] sm:$0xf] }
 0x403   : > { %v6613_v30 = vpack.c.bf16 %v6549_v32, %v6549_v32  ;;  %v6990_v40 = vshrl.u32 %v6907_v56, 16  ;;  %v6997_v23 = vrot.slane %v6995_v61, 7  ;;  %v7148_v44 = vshrl.u32 %v7059_v63, 16  ;;  %v7489_v3 = vld [vmem:[#allocation4 + $0x30] sm:$0xf]  ;;  %v10677_v56 = vld [vmem:[%s13143_s3 + $0x168] sm:$0xff] }
 0x404   : > { %v6550_v20 = vmax.f32 %v6486_v55, 0.0  ;;  %v6740_v48 = vunpack.c.l.b16 %v6612_v27  ;;  %v6848_v39 = vrot.slane %v6739_v1, 4  ;;  %v7151_v53 = vshll.u32 %v7059_v63, 16  ;;  %v7348_v32 = vld [vmem:[#allocation4 + $0x48] sm:$0x1]  ;;  %v10662_v27 = vld [vmem:[%s13143_s3 + $0xf0] sm:$0xff]  ;;  %8731 = vmatpush.bf16.msrb.mxu3 %v10677_v56 }
 0x405   : > { %v6741_v16 = vunpack.c.l.b16 %v6613_v30  ;;  %v9923_v5 = vrot.slane %v6990_v40, 11  ;;  %v7000_v35 = vor.u32 %v6998_v29, %v6997_v23  ;;  %v7150_v18 = vrot.slane %v7148_v44, 4  ;;  %v10669_v1 = vld [vmem:[%s13143_s3 + $0x128] sm:$0xff]  ;;  %8672 = vmatpush.bf16.msra.mxu1 %v10662_v27  ;;  %v10668_v27 = vld [vmem:[%s13143_s3 + $0x120] sm:$0xff] }
 0x406   : > { %v6614_v2 = vpack.c.bf16 %v6550_v20, %v6550_v20  ;;  %v6849_v25 = vsel %vm6761_vm10, %v6848_v39, %v6847_v26  ;;  %v6850_v6 = vrot.slane %v6740_v48, 3  ;;  %v7153_v37 = vrot.slane %v7151_v53, 5  ;;  %8702 = vmatpush.bf16.msra.mxu2 %v10669_v1  ;;  %v10676_v1 = vld [vmem:[%s13143_s3 + $0x160] sm:$0xff] }
 0x407   : > { %v6852_v47 = vrot.slane %v6741_v16, 2  ;;  %v7001_v43 = vsel %vm11094_vm2, %v9923_v5, %v7000_v35  ;;  %v7157_v7 = vshll.u32 %v7060_v59, 16  ;;  %v7380_v28 = vor.u32 %v12739_v60, %v12737_v51  ;;  %v12822_v16 = vld [vmem:[#allocation4 + $0x44] sm:$0xf] }
 0x408   : > { %v6742_v0 = vunpack.c.l.b16 %v6614_v2  ;;  %v6851_v11 = vsel %vm6764_vm11, %v6850_v6, %v6849_v25  ;;  %7029 = vst [vmem:[#allocation3 + $0xd8] sm:$0xf] %v7001_v43  ;;  %v7154_v15 = vor.u32 %v7153_v37, %v7150_v18  ;;  %v7385_v42 = vrot.slane %v7383_v50, 5  ;;  %v7490_v18 = vld [vmem:[#allocation4 + $0x40] sm:$0x8]  ;;  %8732 = vmatpush.bf16.msrb.mxu3 %v10676_v1 }
 0x409   : > { %v6853_v33 = vsel %vm6767_vm12, %v6852_v47, %v6851_v11  ;;  %v7159_v4 = vrot.slane %v7157_v7, 5  ;;  %v7381_v31 = vrot.slane %v7380_v28, 4  ;;  %v7234_v62 = vshrl.u32 %v7195_v36, 16 }
 0x40a   : > { %v6854_v14 = vrot.slane %v6742_v0, 1  ;;  %v7155_v51 = vrot.slane %v7154_v15, 4  ;;  %v7239_v60 = vshrl.u32 %v7196_v49, 16  ;;  %v7242_v45 = vshll.u32 %v7196_v49, 16  ;;  %8703 = vmatpush.bf16.msra.mxu2 %v10668_v27 }
 0x40b   : > { %v7386_v8 = vsel %vm11204_vm5, %v7381_v31, %v7385_v42  ;;  %v9927_v26 = vrot.slane %v7234_v62, 11  ;;  %v7388_v10 = vshrl.u32 %v7347_v52, 16  ;;  %v7391_v50 = vshll.u32 %v7347_v52, 16 }
 0x40c   : > { %v6855_v61 = vsel %vm6770_vm13, %v6854_v14, %v6853_v33  ;;  %v5841_v63 = vadd.f32 %v12773_v12, %v12623_v24  ;;  %v5845_v55 = vpop.f32.mrf.mxu0  ;;  %v7160_v29 = vsel %vm11204_vm5, %v7155_v51, %v7159_v4  ;;  %7480 = vst [vmem:[#allocation3 + $0x38] sm:$0xf] %v7386_v8  ;;  %v7241_v30 = vrot.slane %v7239_v60, 7  ;;  %v12831_v4 = vld [vmem:[#allocation3 + $0x30] sm:$0xf0] }
 0x40d   : > { %v6876_v40 = vpack.c.b16 %v6855_v61, %v6855_v61  ;;  %v5846_v24 = vadd.f32 %v5845_v55, %v12651_v13  ;;  %7189 = vst [vmem:[#allocation3 + $0xe0] sm:$0xf] %v7160_v29  ;;  %v7390_v12 = vrot.slane %v7388_v10, 4  ;;  %v7393_v23 = vrot.slane %v7391_v50, 5  ;;  %v12839_v8 = vld [vmem:[#allocation3 + $0x10] sm:$0xf] }
 0x40e   : > { %v7244_v44 = vor.u32 %v7242_v45, %v7241_v30  ;;  %v7397_v46 = vshll.u32 %v7348_v32, 16  ;;  %v7505_v20 = vshrl.u32 %v7488_v57, 16  ;;  %v7510_v48 = vshrl.u32 %v7489_v3, 16  ;;  %v10661_v55 = vld [vmem:[%s13143_s3 + $0xe8] sm:$0xff] }
 0x40f   : > { %v5759_v39 = vadd.f32 %v12731_v17, %v12788_v54  ;;  %6893 = vst [vmem:[#allocation4 + $0x94] sm:$0xf] %v6876_v40  ;;  %v5864_v59 = vmax.f32 %v5841_v63, %v5846_v24  ;;  %v7394_v53 = vor.u32 %v7393_v23, %v7390_v12  ;;  %v7513_v5 = vshll.u32 %v7489_v3, 16  ;;  %8673 = vmatpush.bf16.msra.mxu1 %v10661_v55 }
 0x410   : > { %v7245_v13 = vsel %vm11094_vm2, %v9927_v26, %v7244_v44  ;;  %v7399_v35 = vrot.slane %v7397_v46, 5  ;;  %v9933_v2 = vrot.slane %v7505_v20, 11  ;;  %v7512_v25 = vrot.slane %v7510_v48, 7  ;;  %v10660_v46 = vld [vmem:[%s13143_s3 + $0xe0] sm:$0xff]  ;;  %v10667_v20 = vld [vmem:[%s13143_s3 + $0x118] sm:$0xff] }
 0x411   : > { %v5924_v6 = vrot.slane %v5864_v59, 2  ;;  %v5925_v37 = vrot.slane %v5864_v59, 4  ;;  %v5926_v36 = vrot.slane %v5864_v59, 6  ;;  %v6371_v47 = vsel %vm5978_vm6, %v5864_v59, -inf  ;;  %7321 = vst [vmem:[#allocation3 + $0x54] sm:$0xf] %v7245_v13  ;;  %8704 = vmatpush.bf16.msra.mxu2 %v10667_v20 }
 0x412   : > { %v6372_v17 = vrot.slane %v6371_v47, 4  ;;  %v7395_v54 = vrot.slane %v7394_v53, 4  ;;  %v7515_v43 = vor.u32 %v7513_v5, %v7512_v25  ;;  %v7523_v7 = vshrl.u32 %v12822_v16, 16  ;;  %v10675_v48 = vld [vmem:[%s13143_s3 + $0x158] sm:$0xff] }
 0x413   : > { %v6378_v28 = vsel %vm5978_vm6, %v5924_v6, -inf  ;;  %v6385_v49 = vsel %vm5978_vm6, %v5925_v37, -inf  ;;  %v6392_v22 = vsel %vm5978_vm6, %v5926_v36, -inf  ;;  %v7518_v0 = vshrl.u32 %v7490_v18, 16  ;;  %8674 = vmatpush.bf16.msra.mxu1 %v10660_v46  ;;  %8733 = vmatpush.bf16.msrb.mxu3 %v10675_v48 }
 0x414   : > { %v6373_v11 = vmax.f32 %v6371_v47, %v6372_v17  ;;  %v6379_v15 = vrot.slane %v6378_v28, 4  ;;  %v6386_v42 = vrot.slane %v6385_v49, 4  ;;  %v6393_v52 = vrot.slane %v6392_v22, 4  ;;  %v5847_v33 = vpop.f32.mrf.mxu0 }
 0x415   : > { %v5843_v31 = vadd.f32 %v12792_v9, %v12646_v58  ;;  %v5848_v62 = vadd.f32 %v5847_v33, %v5759_v39  ;;  %v7400_v3 = vsel %vm11204_vm5, %v7395_v54, %v7399_v35  ;;  %v7516_v14 = vsel %vm11094_vm2, %v9933_v2, %v7515_v43 }
 0x416   : > { %v6374_v51 = vrot.slane %v6373_v11, 2  ;;  %v6380_v60 = vmax.f32 %v6378_v28, %v6379_v15  ;;  %v6387_v45 = vmax.f32 %v6385_v49, %v6386_v42  ;;  %v6394_v57 = vmax.f32 %v6392_v22, %v6393_v52  ;;  %7481 = vst [vmem:[#allocation3 + $0x5c] sm:$0xf] %v7400_v3  ;;  %v7038_v13 = vld [vmem:[#allocation4 + $0x94] sm:$0xf]  ;;  %v10659_v28 = vld [vmem:[%s13143_s3 + $0xd8] sm:$0xff] }
 0x417   : > { %v5865_v26 = vmax.f32 %v5843_v31, %v5848_v62  ;;  %v9960_v32 = vor.u32 %v12831_v4, %v12839_v8  ;;  %v12843_v10 = vrot.slane %v7518_v0, 11  ;;  %v12845_v58 = vrot.slane %v7523_v7, 7  ;;  %7616 = vst [vmem:[#allocation3 + $0x18] sm:$0xf] %v7516_v14  ;;  %v10666_v15 = vld [vmem:[%s13143_s3 + $0x110] sm:$0xff]  ;;  %8675 = vmatpush.bf16.msra.mxu1 %v10659_v28 }
 0x418   : > { %v6375_v9 = vmax.f32 %v6373_v11, %v6374_v51  ;;  %v6381_v50 = vrot.slane %v6380_v60, 2  ;;  %v6388_v61 = vrot.slane %v6387_v45, 2  ;;  %v6395_v63 = vrot.slane %v6394_v57, 2  ;;  %7046 = vst [vmem:[#allocation3 + $0x100] sm:$0xf] %v7038_v13  ;;  %v10674_v42 = vld [vmem:[%s13143_s3 + $0x150] sm:$0xff]  ;;  %8705 = vmatpush.bf16.msra.mxu2 %v10666_v15 }
 0x419   : > { %v5927_v56 = vrot.slane %v5865_v26, 2  ;;  %v5928_v29 = vrot.slane %v5865_v26, 4  ;;  %v5929_v30 = vrot.slane %v5865_v26, 6  ;;  %v6399_v40 = vsel %vm5978_vm6, %v5865_v26, -inf  ;;  %8734 = vmatpush.bf16.msrb.mxu3 %v10674_v42  ;;  %v7061_v42 = vld [vmem:[#allocation4 + $0x94] sm:$0xf] }
 0x41a   : > { %v6376_v24 = vrot.slane %v6375_v9, 1  ;;  %v6382_v12 = vmax.f32 %v6380_v60, %v6381_v50  ;;  %v6389_v23 = vmax.f32 %v6387_v45, %v6388_v61  ;;  %v6396_v44 = vmax.f32 %v6394_v57, %v6395_v63 }
 0x41b   : > { %v6400_v39 = vrot.slane %v6399_v40, 4  ;;  %v6406_v59 = vsel %vm5978_vm6, %v5927_v56, -inf  ;;  %v6413_v53 = vsel %vm5978_vm6, %v5928_v29, -inf  ;;  %v6420_v5 = vsel %vm5978_vm6, %v5929_v30, -inf  ;;  %v10665_v56 = vld [vmem:[%s13143_s3 + $0x108] sm:$0xff] }
 0x41c   : > { %v6377_v35 = vmax.f32 %v6375_v9, %v6376_v24  ;;  %v6383_v18 = vrot.slane %v6382_v12, 1  ;;  %v6390_v2 = vrot.slane %v6389_v23, 1  ;;  %v6397_v25 = vrot.slane %v6396_v44, 1  ;;  %v10658_v9 = vld [vmem:[%s13143_s3 + $0xd0] sm:$0xff]  ;;  %v7330_v29 = vld [vmem:[#allocation4 + $0x58] sm:$0xf]  ;;  %8706 = vmatpush.bf16.msra.mxu2 %v10665_v56 }
 0x41d   : > { %v6401_v6 = vmax.f32 %v6399_v40, %v6400_v39  ;;  %v6407_v37 = vrot.slane %v6406_v59, 4  ;;  %v6414_v36 = vrot.slane %v6413_v53, 4  ;;  %v6421_v47 = vrot.slane %v6420_v5, 4  ;;  %7338 = vst [vmem:[#allocation3 + $0x7c] sm:$0xf] %v7330_v29  ;;  %8676 = vmatpush.bf16.msra.mxu1 %v10658_v9 }
 0x41e   : > { %v6384_v17 = vmax.f32 %v6382_v12, %v6383_v18  ;;  %v6391_v54 = vmax.f32 %v6389_v23, %v6390_v2  ;;  %v6398_v43 = vmax.f32 %v6396_v44, %v6397_v25  ;;  %v6487_v7 = vadd.f32 %v12765_v21, %v6377_v35  ;;  %v10623_v23 = vld [vmem:[#allocation3 + $0xdc] sm:$0xf]  ;;  %v8627_v18 = vpop.f32.mrf.mxu2 }
 0x41f   : > { %v6402_v49 = vrot.slane %v6401_v6, 2  ;;  %v6408_v22 = vmax.f32 %v6406_v59, %v6407_v37  ;;  %v6415_v0 = vmax.f32 %v6413_v53, %v6414_v36  ;;  %v6422_v11 = vmax.f32 %v6420_v5, %v6421_v47  ;;  %v10053_v1 = vld [vmem:[#allocation3 + $0xfc] sm:$0xf0]  ;;  %v10673_v44 = vld [vmem:[%s13143_s3 + $0x148] sm:$0xff]  ;;  %v6909_v59 = vld [vmem:[#allocation4 + $0x90] sm:$0x8] }
 0x420   : > { %v6488_v52 = vadd.f32 %v12765_v21, %v6384_v17  ;;  %v6489_v33 = vadd.f32 %v12765_v21, %v6391_v54  ;;  %v6490_v31 = vadd.f32 %v12765_v21, %v6398_v43  ;;  %v6551_v62 = vmax.f32 %v6487_v7, 0.0  ;;  %v10657_v2 = vld [vmem:[%s13143_s3 + $0xc8] sm:$0xff]  ;;  %v6910_v47 = vld [vmem:[#allocation4 + $0x94] sm:$0xf]  ;;  %8735 = vmatpush.bf16.msrb.mxu3 %v10673_v44 }
 0x421   : > { %v6403_v3 = vmax.f32 %v6401_v6, %v6402_v49  ;;  %v6409_v14 = vrot.slane %v6408_v22, 2  ;;  %v6416_v51 = vrot.slane %v6415_v0, 2  ;;  %v6423_v60 = vrot.slane %v6422_v11, 2  ;;  %v10664_v17 = vld [vmem:[%s13143_s3 + $0x100] sm:$0xff]  ;;  %8677 = vmatpush.bf16.msra.mxu1 %v10657_v2 }
 0x422   : > { %v6552_v45 = vmax.f32 %v6488_v52, 0.0  ;;  %v6553_v57 = vmax.f32 %v6489_v33, 0.0  ;;  %v6554_v26 = vmax.f32 %v6490_v31, 0.0  ;;  %v7526_v50 = vshll.u32 %v12822_v16, 16  ;;  %v10672_v49 = vld [vmem:[%s13143_s3 + $0x140] sm:$0xff]  ;;  %8707 = vmatpush.bf16.msra.mxu2 %v10664_v17 }
 0x423   : > { %v6404_v61 = vrot.slane %v6403_v3, 1  ;;  %v6410_v63 = vmax.f32 %v6408_v22, %v6409_v14  ;;  %v6417_v55 = vmax.f32 %v6415_v0, %v6416_v51  ;;  %v6424_v27 = vmax.f32 %v6422_v11, %v6423_v60  ;;  %v7062_v14 = vld [vmem:[#allocation4 + $0x98] sm:$0x1]  ;;  %v10656_v51 = vld [vmem:[%s13143_s3 + $0xc0] sm:$0xff] }
 0x424   : > { %v6615_v30 = vpack.c.bf16 %v6551_v62, %v6551_v62  ;;  %v6616_v40 = vpack.c.bf16 %v6552_v45, %v6552_v45  ;;  %v6617_v24 = vpack.c.bf16 %v6553_v57, %v6553_v57  ;;  %v6618_v12 = vpack.c.bf16 %v6554_v26, %v6554_v26  ;;  %8736 = vmatpush.bf16.msrb.mxu3 %v10672_v49 }
 0x425   : > { %v6405_v46 = vmax.f32 %v6403_v3, %v6404_v61  ;;  %v6411_v20 = vrot.slane %v6410_v63, 1  ;;  %v6418_v48 = vrot.slane %v6417_v55, 1  ;;  %v6425_v39 = vrot.slane %v6424_v27, 1  ;;  %8678 = vmatpush.bf16.msra.mxu1 %v10656_v51 }
 0x426   : > { %v6744_v53 = vunpack.c.l.b16 %v6616_v40  ;;  %v6745_v5 = vunpack.c.l.b16 %v6617_v24  ;;  %v6746_v13 = vunpack.c.l.b16 %v6618_v12  ;;  %v10056_v35 = vor.u32 %v10623_v23, %v10053_v1 }
 0x427   : > { %v6412_v25 = vmax.f32 %v6410_v63, %v6411_v20  ;;  %v6419_v6 = vmax.f32 %v6417_v55, %v6418_v48  ;;  %v6426_v37 = vmax.f32 %v6424_v27, %v6425_v39  ;;  %v6491_v36 = vadd.f32 %v12765_v21, %v6405_v46  ;;  %v7197_v48 = vld [vmem:[#allocation4 + $0x54] sm:$0x8]  ;;  %v7198_v39 = vld [vmem:[#allocation4 + $0x58] sm:$0xf] }
 0x428   : > { %v6743_v54 = vunpack.c.l.b16 %v6615_v30  ;;  %v6856_v43 = vrot.slane %v6744_v53, 7  ;;  %v6858_v7 = vrot.slane %v6745_v5, 6  ;;  %8636 = vmatmul.bf16.gmra.mxu2 %v10056_v35  ;;  %v7003_v28 = vshrl.u32 %v6909_v59, 16  ;;  %v8629_v35 = vpop.f32.mrf.mxu2 }
 0x429   : > { %v6492_v22 = vadd.f32 %v12765_v21, %v6412_v25  ;;  %v6493_v0 = vadd.f32 %v12765_v21, %v6419_v6  ;;  %v6494_v11 = vadd.f32 %v12765_v21, %v6426_v37  ;;  %v6555_v15 = vmax.f32 %v6491_v36, 0.0  ;;  %v10695_v21 = vld [vmem:[%s13143_s3 + $0x1f8] sm:$0xff] }
 0x42a   : > { %v6857_v52 = vsel %vm6752_vm7, %v6856_v43, %v6743_v54  ;;  %v6860_v33 = vrot.slane %v6746_v13, 5  ;;  %v8598_v31 = vpop.f32.mrf.mxu1  ;;  %v9924_v62 = vrot.slane %v7003_v28, 11  ;;  %v7008_v3 = vshrl.u32 %v6910_v47, 16  ;;  %8787 = vmatpush.bf16.msrb.mxu2 %v10695_v21  ;;  %v10703_v36 = vld [vmem:[%s13143_s3 + $0x238] sm:$0xff] }
 0x42b   : > { %v6556_v60 = vmax.f32 %v6492_v22, 0.0  ;;  %v6557_v45 = vmax.f32 %v6493_v0, 0.0  ;;  %v6558_v57 = vmax.f32 %v6494_v11, 0.0  ;;  %v7011_v26 = vshll.u32 %v6910_v47, 16  ;;  %v10687_v43 = vld [vmem:[%s13143_s3 + $0x1b8] sm:$0xff]  ;;  %8816 = vmatpush.bf16.msra.mxu3 %v10703_v36 }
 0x42c   : > { %v6859_v9 = vsel %vm6755_vm8, %v6858_v7, %v6857_v52  ;;  %v6619_v61 = vpack.c.bf16 %v6555_v15, %v6555_v15  ;;  %v12913_v63 = vadd.f32 %v8627_v18, %v8598_v31  ;;  %v7010_v55 = vrot.slane %v7008_v3, 7  ;;  %v7349_v18 = vld [vmem:[#allocation4 + $0x58] sm:$0xf]  ;;  %v10694_v7 = vld [vmem:[%s13143_s3 + $0x1f0] sm:$0xff]  ;;  %v7350_v22 = vld [vmem:[#allocation4 + $0x5c] sm:$0x1]  ;;  %8758 = vmatpush.bf16.msrb.mxu1 %v10687_v43 }
 0x42d   : > { %v6620_v27 = vpack.c.bf16 %v6556_v60, %v6556_v60  ;;  %v6621_v1 = vpack.c.bf16 %v6557_v45, %v6557_v45  ;;  %v6622_v56 = vpack.c.bf16 %v6558_v57, %v6558_v57  ;;  %v7162_v29 = vshrl.u32 %v7061_v42, 16  ;;  %v10702_v15 = vld [vmem:[%s13143_s3 + $0x230] sm:$0xff]  ;;  %v7641_v60 = vld [vmem:[#allocation4 + $0x34] sm:$0x1]  ;;  %v10685_v43 = vld [vmem:[%s13143_s3 + $0x1a8] sm:$0xff] }
 0x42e   : > { %v6747_v30 = vunpack.c.l.b16 %v6619_v61  ;;  %v7013_v40 = vor.u32 %v7011_v26, %v7010_v55  ;;  %v7165_v24 = vshll.u32 %v7061_v42, 16  ;;  %v7171_v12 = vshll.u32 %v7062_v14, 16  ;;  %8788 = vmatpush.bf16.msrb.mxu2 %v10694_v7  ;;  %v10686_v3 = vld [vmem:[%s13143_s3 + $0x1b0] sm:$0xff]  ;;  %v10051_v55 = vld [vmem:[#allocation3 + $0xd8] sm:$0xf]  ;;  %v10692_v7 = vld [vmem:[%s13143_s3 + $0x1e0] sm:$0xff] }
 0x42f   : > { %v6748_v23 = vunpack.c.l.b16 %v6620_v27  ;;  %v6749_v44 = vunpack.c.l.b16 %v6621_v1  ;;  %v6750_v46 = vunpack.c.l.b16 %v6622_v56  ;;  %v7164_v20 = vrot.slane %v7162_v29, 4  ;;  %8817 = vmatpush.bf16.msra.mxu3 %v10702_v15 }
 0x430   : > { %v6862_v59 = vrot.slane %v6747_v30, 4  ;;  %v7014_v53 = vsel %vm11094_vm2, %v9924_v62, %v7013_v40  ;;  %v7167_v5 = vrot.slane %v7165_v24, 5  ;;  %v7173_v13 = vrot.slane %v7171_v12, 5  ;;  %8759 = vmatpush.bf16.msrb.mxu1 %v10686_v3  ;;  %v7200_v3 = vld [vmem:[#allocation4 + $0x6c] sm:$0xf] }
 0x431   : > { %v6861_v2 = vsel %vm6758_vm9, %v6860_v33, %v6859_v9  ;;  %v6864_v25 = vrot.slane %v6748_v23, 3  ;;  %v6866_v6 = vrot.slane %v6749_v44, 2  ;;  %v6868_v37 = vrot.slane %v6750_v46, 1  ;;  %7030 = vst [vmem:[#allocation3 + $0xfc] sm:$0xf] %v7014_v53 }
 0x432   : > { %v6863_v47 = vsel %vm6761_vm10, %v6862_v59, %v6861_v2  ;;  %v7168_v17 = vor.u32 %v7167_v5, %v7164_v20  ;;  %v8600_v54 = vpop.f32.mrf.mxu1  ;;  %v7247_v28 = vshrl.u32 %v7197_v48, 16  ;;  %v7252_v49 = vshrl.u32 %v7198_v39, 16  ;;  %v7640_v33 = vld [vmem:[#allocation4 + $0x30] sm:$0xf]  ;;  %v7642_v9 = vld [vmem:[#allocation4 + $0x44] sm:$0xf] }
 0x433   : > { %v6865_v0 = vsel %vm6764_vm11, %v6864_v25, %v6863_v47  ;;  %v12929_v11 = vadd.f32 %v8629_v35, %v8600_v54  ;;  %v7255_v42 = vshll.u32 %v7198_v39, 16  ;;  %v7402_v52 = vshrl.u32 %v7349_v18, 16  ;;  %v7643_v53 = vld [vmem:[#allocation4 + $0x48] sm:$0x1]  ;;  %v10701_v54 = vld [vmem:[%s13143_s3 + $0x228] sm:$0xff] }
 0x434   : > { %v6867_v31 = vsel %vm6767_vm12, %v6866_v6, %v6865_v0  ;;  %v7169_v62 = vrot.slane %v7168_v17, 4  ;;  %v9928_v14 = vrot.slane %v7247_v28, 11  ;;  %v7254_v51 = vrot.slane %v7252_v49, 7  ;;  %v10611_v17 = vld [vmem:[#allocation3 + $0x78] sm:$0xf0]  ;;  %8818 = vmatpush.bf16.msra.mxu3 %v10701_v54  ;;  %8760 = vmatpush.bf16.msrb.mxu1 %v10685_v43  ;;  %v10699_v54 = vld [vmem:[%s13143_s3 + $0x218] sm:$0xff] }
 0x435   : > { %v6869_v45 = vsel %vm6770_vm13, %v6868_v37, %v6867_v31  ;;  %v7404_v57 = vrot.slane %v7402_v52, 4  ;;  %v7405_v26 = vshll.u32 %v7349_v18, 16  ;;  %v7411_v21 = vshll.u32 %v7350_v22, 16  ;;  %v10059_v18 = vld [vmem:[#allocation3 + $0xe0] sm:$0xf]  ;;  %v10684_v31 = vld [vmem:[%s13143_s3 + $0x1a0] sm:$0xff] }
 0x436   : > { %v6877_v61 = vpack.c.b16 %v6869_v45, %v6869_v45  ;;  %v7174_v27 = vsel %vm11204_vm5, %v7169_v62, %v7173_v13  ;;  %v7257_v1 = vor.u32 %v7255_v42, %v7254_v51  ;;  %v7528_v56 = vor.u32 %v7526_v50, %v12845_v58  ;;  %v9995_v49 = vld [vmem:[#allocation3 + $0x58] sm:$0xf]  ;;  %v7331_v22 = vld [vmem:[#allocation4 + $0x6c] sm:$0xf]  ;;  %v7332_v0 = vld [vmem:[#allocation4 + $0x80] sm:$0xf] }
 0x437   : > { %7190 = vst [vmem:[#allocation3 + $0x104] sm:$0xf] %v7174_v27  ;;  %v7407_v29 = vrot.slane %v7405_v26, 5  ;;  %v7413_v30 = vrot.slane %v7411_v21, 5  ;;  %v7657_v40 = vshrl.u32 %v7640_v33, 16  ;;  %v7660_v24 = vshll.u32 %v7640_v33, 16 }
 0x438   : > { %6894 = vst [vmem:[#allocation4 + $0xa8] sm:$0xf] %v6877_v61  ;;  %v10627_v12 = vld [vmem:[#allocation3 + $0xf8] sm:$0xf0]  ;;  %8708 = vmatmul.bf16.vlgmr.msra.gmra.mxu2 %v9960_v32  ;;  %v7258_v23 = vsel %vm11094_vm2, %v9928_v14, %v7257_v1  ;;  %v7529_v16 = vsel %vm11094_vm2, %v12843_v10, %v7528_v56  ;;  %v7666_v58 = vshll.u32 %v7641_v60, 16  ;;  %v7671_v50 = vshrl.u32 %v7642_v9, 16  ;;  %8761 = vmatpush.bf16.msrb.mxu1 %v10684_v31 }
 0x439   : > { %v10052_v44 = vor.u32 %v10627_v12, %v10051_v55  ;;  %7322 = vst [vmem:[#allocation3 + $0x78] sm:$0xf] %v7258_v23  ;;  %v7408_v46 = vor.u32 %v7407_v29, %v7404_v57  ;;  %v7659_v20 = vrot.slane %v7657_v40, 4  ;;  %v7662_v48 = vrot.slane %v7660_v24, 5  ;;  %v10693_v32 = vld [vmem:[%s13143_s3 + $0x1e8] sm:$0xff]  ;;  %v10700_v33 = vld [vmem:[%s13143_s3 + $0x220] sm:$0xff] }
 0x43a   : > { %v8656_v39 = vpop.f32.mrf.mxu3  ;;  %7617 = vst [vmem:[#allocation3 + $0x3c] sm:$0xf] %v7529_v16  ;;  %v7673_v59 = vrot.slane %v7671_v50, 4  ;;  %v7674_v4 = vshll.u32 %v7642_v9, 16  ;;  %v7668_v13 = vrot.slane %v7666_v58, 5  ;;  %8789 = vmatpush.bf16.msrb.mxu2 %v10693_v32  ;;  %v9996_v60 = vor.u32 %v10611_v17, %v9995_v49  ;;  %8819 = vmatpush.bf16.msra.mxu3 %v10700_v33  ;;  %v10683_v43 = vld [vmem:[%s13143_s3 + $0x198] sm:$0xff] }
 0x43b   : > { %8607 = vmatmul.bf16.gmra.mxu1 %v10052_v44  ;;  %v12953_v8 = vadd.f32 %v8656_v39, %v12913_v63  ;;  %v7409_v10 = vrot.slane %v7408_v46, 4  ;;  %v7663_v5 = vor.u32 %v7662_v48, %v7659_v20  ;;  %v7680_v63 = vshll.u32 %v7643_v53, 16  ;;  %7339 = vst [vmem:[#allocation3 + $0xa0] sm:$0xf] %v7331_v22  ;;  %v7199_v62 = vld [vmem:[#allocation4 + $0x68] sm:$0x8] }
 0x43c   : > { %v7676_v35 = vrot.slane %v7674_v4, 5  ;;  %7340 = vst [vmem:[#allocation3 + $0xc4] sm:$0xf] %v7332_v0  ;;  %v7201_v14 = vld [vmem:[#allocation4 + $0x7c] sm:$0x8]  ;;  %v7260_v45 = vshrl.u32 %v7199_v62, 16  ;;  %8762 = vmatpush.bf16.msrb.mxu1 %v10683_v43 }
 0x43d   : > { %v7414_v2 = vsel %vm11204_vm5, %v7409_v10, %v7413_v30  ;;  %v7664_v25 = vrot.slane %v7663_v5, 4  ;;  %v7682_v42 = vrot.slane %v7680_v63, 5  ;;  %v9953_v51 = vld [vmem:[#allocation3 + $0x2c] sm:$0xf0]  ;;  %v7265_v57 = vshrl.u32 %v7200_v3, 16 }
 0x43e   : > { %v10628_v6 = vld [vmem:[#allocation3 + $0x100] sm:$0xf0]  ;;  %7482 = vst [vmem:[#allocation3 + $0x80] sm:$0xf] %v7414_v2  ;;  %v7677_v37 = vor.u32 %v7676_v35, %v7673_v59  ;;  %8790 = vmatpush.bf16.msrb.mxu2 %v10692_v7  ;;  %v7268_v26 = vshll.u32 %v7200_v3, 16  ;;  %v7273_v21 = vshrl.u32 %v7201_v14, 16  ;;  %8820 = vmatpush.bf16.msra.mxu3 %v10699_v54 }
 0x43f   : > { %v10060_v36 = vor.u32 %v10628_v6, %v10059_v18  ;;  %v7669_v47 = vsel %vm11204_vm5, %v7664_v25, %v7668_v13  ;;  %v7351_v61 = vld [vmem:[#allocation4 + $0x6c] sm:$0xf]  ;;  %v9929_v27 = vrot.slane %v7260_v45, 11  ;;  %v7267_v1 = vrot.slane %v7265_v57, 7  ;;  %v7352_v29 = vld [vmem:[#allocation4 + $0x70] sm:$0x1] }
 0x440   : > { %7776 = vst [vmem:[#allocation3 + $0x20] sm:$0xf] %v7669_v47  ;;  %v7678_v15 = vrot.slane %v7677_v37, 4  ;;  %v7416_v30 = vshrl.u32 %v7351_v61, 16  ;;  %v10597_v40 = vld [vmem:[#allocation3 + $0xc] sm:$0xf] }
 0x441   : > { %8665 = vmatmul.bf16.gmra.mxu3 %v10060_v36  ;;  %v9930_v24 = vrot.slane %v7273_v21, 11  ;;  %v7419_v23 = vshll.u32 %v7351_v61, 16  ;;  %v7425_v16 = vshll.u32 %v7352_v29, 16  ;;  %v9956_v58 = vor.u32 %v10597_v40, %v9953_v51  ;;  %v9961_v48 = vld [vmem:[#allocation3 + $0x34] sm:$0xf0]  ;;  %v10691_v59 = vld [vmem:[%s13143_s3 + $0x1d8] sm:$0xff] }
 0x442   : > { %v8658_v28 = vpop.f32.mrf.mxu3  ;;  %v7683_v55 = vsel %vm11204_vm5, %v7678_v15, %v7682_v42  ;;  %v7270_v50 = vor.u32 %v7268_v26, %v7267_v1  ;;  %v7418_v44 = vrot.slane %v7416_v30, 4  ;;  %v7353_v4 = vld [vmem:[#allocation4 + $0x80] sm:$0xf]  ;;  %v7354_v10 = vld [vmem:[#allocation4 + $0x84] sm:$0x1]  ;;  %8791 = vmatpush.bf16.msrb.mxu2 %v10691_v59 }
 0x443   : > { %v12972_v52 = vadd.f32 %v8658_v28, %v12929_v11  ;;  %v7202_v11 = vld [vmem:[#allocation4 + $0x80] sm:$0xf]  ;;  %7777 = vst [vmem:[#allocation3 + $0x44] sm:$0xf] %v7683_v55  ;;  %v7421_v20 = vrot.slane %v7419_v23, 5  ;;  %v7427_v5 = vrot.slane %v7425_v16, 5 }
 0x444   : > { %v7278_v9 = vshrl.u32 %v7202_v11, 16  ;;  %v7281_v56 = vshll.u32 %v7202_v11, 16  ;;  %v7271_v39 = vsel %vm11094_vm2, %v9929_v27, %v7270_v50  ;;  %v7430_v13 = vshrl.u32 %v7353_v4, 16  ;;  %v10598_v2 = vld [vmem:[#allocation3 + $0x14] sm:$0xf]  ;;  %v10690_v7 = vld [vmem:[%s13143_s3 + $0x1d0] sm:$0xff] }
 0x445   : > { %7323 = vst [vmem:[#allocation3 + $0x9c] sm:$0xf] %v7271_v39  ;;  %v7422_v53 = vor.u32 %v7421_v20, %v7418_v44  ;;  %v7433_v35 = vshll.u32 %v7353_v4, 16  ;;  %v7439_v18 = vshll.u32 %v7354_v10, 16  ;;  %v9964_v37 = vor.u32 %v10598_v2, %v9961_v48  ;;  %v10620_v28 = vld [vmem:[#allocation3 + $0xc0] sm:$0xf0] }
 0x446   : > { %v7280_v12 = vrot.slane %v7278_v9, 7  ;;  %v7432_v6 = vrot.slane %v7430_v13, 4  ;;  %v7333_v49 = vld [vmem:[#allocation4 + $0x94] sm:$0xf]  ;;  %v7334_v22 = vld [vmem:[#allocation4 + $0xa8] sm:$0xf]  ;;  %8792 = vmatpush.bf16.msrb.mxu2 %v10690_v7 }
 0x447   : > { %v7423_v25 = vrot.slane %v7422_v53, 4  ;;  %v7435_v63 = vrot.slane %v7433_v35, 5  ;;  %v7441_v17 = vrot.slane %v7439_v18, 5  ;;  %7341 = vst [vmem:[#allocation3 + $0xe8] sm:$0xf] %v7333_v49  ;;  %v10698_v15 = vld [vmem:[%s13143_s3 + $0x210] sm:$0xff] }
 0x448   : > { %8713 = vmatmul.bf16.gmra.mxu2 %v9996_v60  ;;  %v7283_v46 = vor.u32 %v7281_v56, %v7280_v12  ;;  %v10682_v42 = vld [vmem:[%s13143_s3 + $0x190] sm:$0xff]  ;;  %v9989_v33 = vld [vmem:[#allocation3 + $0x74] sm:$0xf0]  ;;  %7342 = vst [vmem:[#allocation3 + $0x10c] sm:$0xf] %v7334_v22  ;;  %8821 = vmatpush.bf16.msra.mxu3 %v10698_v15 }
 0x449   : > { %v7428_v36 = vsel %vm11204_vm5, %v7423_v25, %v7427_v5  ;;  %v7436_v47 = vor.u32 %v7435_v63, %v7432_v6  ;;  %v10031_v31 = vld [vmem:[#allocation3 + $0xa0] sm:$0xf]  ;;  %v7203_v62 = vld [vmem:[#allocation4 + $0x90] sm:$0x8]  ;;  %v7204_v14 = vld [vmem:[#allocation4 + $0x94] sm:$0xf]  ;;  %8763 = vmatpush.bf16.msrb.mxu1 %v10682_v42 }
 0x44a   : > { %v7284_v32 = vsel %vm11094_vm2, %v9930_v24, %v7283_v46  ;;  %7483 = vst [vmem:[#allocation3 + $0xa4] sm:$0xf] %v7428_v36  ;;  %v7205_v51 = vld [vmem:[#allocation4 + $0xa4] sm:$0x8]  ;;  %v7206_v60 = vld [vmem:[#allocation4 + $0xa8] sm:$0xf]  ;;  %v10032_v11 = vor.u32 %v10620_v28, %v10031_v31 }
 0x44b   : > { %8679 = vmatmul.bf16.vlgmr.msra.gmra.mxu1 %v9956_v58  ;;  %7324 = vst [vmem:[#allocation3 + $0xc0] sm:$0xf] %v7284_v32  ;;  %v7437_v0 = vrot.slane %v7436_v47, 4  ;;  %v7286_v45 = vshrl.u32 %v7203_v62, 16  ;;  %v7291_v57 = vshrl.u32 %v7204_v14, 16  ;;  %v7299_v26 = vshrl.u32 %v7205_v51, 16 }
 0x44c   : > { %v7304_v21 = vshrl.u32 %v7206_v60, 16  ;;  %v10606_v9 = vld [vmem:[#allocation3 + $0x54] sm:$0xf]  ;;  %v7294_v27 = vshll.u32 %v7204_v14, 16  ;;  %v7307_v30 = vshll.u32 %v7206_v60, 16  ;;  %v10689_v58 = vld [vmem:[%s13143_s3 + $0x1c8] sm:$0xff] }
 0x44d   : > { %v7442_v3 = vsel %vm11204_vm5, %v7437_v0, %v7441_v17  ;;  %v9931_v61 = vrot.slane %v7286_v45, 11  ;;  %v7293_v55 = vrot.slane %v7291_v57, 7  ;;  %v9992_v1 = vor.u32 %v10606_v9, %v9989_v33  ;;  %v7626_v40 = vld [vmem:[#allocation4 + $0x58] sm:$0xf]  ;;  %v7492_v12 = vld [vmem:[#allocation4 + $0x54] sm:$0x8]  ;;  %8793 = vmatpush.bf16.msrb.mxu2 %v10689_v58 }
 0x44e   : > { %7484 = vst [vmem:[#allocation3 + $0xc8] sm:$0xf] %v7442_v3  ;;  %v9932_v56 = vrot.slane %v7299_v26, 11  ;;  %v7306_v29 = vrot.slane %v7304_v21, 7  ;;  %v9997_v23 = vld [vmem:[#allocation3 + $0x7c] sm:$0xf0] }
 0x44f   : > { %v7296_v24 = vor.u32 %v7294_v27, %v7293_v55  ;;  %7634 = vst [vmem:[#allocation3 + $0x64] sm:$0xf] %v7626_v40  ;;  %v7355_v50 = vld [vmem:[#allocation4 + $0x94] sm:$0xf]  ;;  %v7531_v44 = vshrl.u32 %v7492_v12, 16  ;;  %v10697_v49 = vld [vmem:[%s13143_s3 + $0x208] sm:$0xff] }
 0x450   : > { %v7309_v16 = vor.u32 %v7307_v30, %v7306_v29  ;;  %v10607_v46 = vld [vmem:[#allocation3 + $0x5c] sm:$0xf]  ;;  %v7356_v48 = vld [vmem:[#allocation4 + $0x98] sm:$0x1]  ;;  %v7357_v39 = vld [vmem:[#allocation4 + $0xa8] sm:$0xf]  ;;  %8822 = vmatpush.bf16.msra.mxu3 %v10697_v49 }
 0x451   : > { %8737 = vmatmul.bf16.vlgmr.msrb.gmra.mxu3 %v9964_v37  ;;  %v7297_v20 = vsel %vm11094_vm2, %v9931_v61, %v7296_v24  ;;  %v7358_v59 = vld [vmem:[#allocation4 + $0xac] sm:$0x1]  ;;  %v7444_v32 = vshrl.u32 %v7355_v50, 16  ;;  %v7447_v10 = vshll.u32 %v7355_v50, 16  ;;  %v7493_v53 = vld [vmem:[#allocation4 + $0x58] sm:$0xf]  ;;  %v10000_v18 = vor.u32 %v10607_v46, %v9997_v23 }
 0x452   : > { %v7310_v4 = vsel %vm11094_vm2, %v9932_v56, %v7309_v16  ;;  %7325 = vst [vmem:[#allocation3 + $0xe4] sm:$0xf] %v7297_v20  ;;  %v7453_v5 = vshll.u32 %v7356_v48, 16  ;;  %v7458_v13 = vshrl.u32 %v7357_v39, 16  ;;  %v7461_v35 = vshll.u32 %v7357_v39, 16  ;;  %v10681_v22 = vld [vmem:[%s13143_s3 + $0x188] sm:$0xff] }
 0x453   : > { %7326 = vst [vmem:[#allocation3 + $0x108] sm:$0xf] %v7310_v4  ;;  %v7446_v2 = vrot.slane %v7444_v32, 4  ;;  %v7449_v25 = vrot.slane %v7447_v10, 5  ;;  %v7467_v6 = vshll.u32 %v7358_v59, 16  ;;  %v9935_v47 = vrot.slane %v7531_v44, 11  ;;  %8764 = vmatpush.bf16.msrb.mxu1 %v10681_v22 }
 0x454   : > { %v7644_v37 = vld [vmem:[#allocation4 + $0x58] sm:$0xf]  ;;  %v7460_v63 = vrot.slane %v7458_v13, 4  ;;  %v7463_v36 = vrot.slane %v7461_v35, 5  ;;  %v7536_v17 = vshrl.u32 %v7493_v53, 16  ;;  %v7455_v7 = vrot.slane %v7453_v5, 5 }
 0x455   : > { %v7645_v54 = vld [vmem:[#allocation4 + $0x5c] sm:$0x1]  ;;  %v7450_v43 = vor.u32 %v7449_v25, %v7446_v2  ;;  %v7469_v28 = vrot.slane %v7467_v6, 5  ;;  %v10688_v0 = vld [vmem:[%s13143_s3 + $0x1c0] sm:$0xff]  ;;  %v7685_v15 = vshrl.u32 %v7644_v37, 16  ;;  %v7539_v62 = vshll.u32 %v7493_v53, 16 }
 0x456   : > { %v10629_v42 = vld [vmem:[#allocation3 + $0x108] sm:$0xf0]  ;;  %v7464_v33 = vor.u32 %v7463_v36, %v7460_v63  ;;  %v7538_v31 = vrot.slane %v7536_v17, 7  ;;  %v7688_v3 = vshll.u32 %v7644_v37, 16  ;;  %v10696_v51 = vld [vmem:[%s13143_s3 + $0x200] sm:$0xff]  ;;  %v7694_v45 = vshll.u32 %v7645_v54, 16  ;;  %8794 = vmatpush.bf16.msrb.mxu2 %v10688_v0 }
 0x457   : > { %v7451_v14 = vrot.slane %v7450_v43, 4  ;;  %v10680_v60 = vld [vmem:[%s13143_s3 + $0x180] sm:$0xff]  ;;  %v10067_v57 = vld [vmem:[#allocation3 + $0xe8] sm:$0xf]  ;;  %v10025_v27 = vld [vmem:[#allocation3 + $0xbc] sm:$0xf0]  ;;  %8823 = vmatpush.bf16.msra.mxu3 %v10696_v51 }
 0x458   : > { %8718 = vmatmul.bf16.gmra.mxu2 %v10032_v11  ;;  %v7687_v11 = vrot.slane %v7685_v15, 4  ;;  %v7465_v26 = vrot.slane %v7464_v33, 4  ;;  %v7541_v21 = vor.u32 %v7539_v62, %v7538_v31  ;;  %v7690_v9 = vrot.slane %v7688_v3, 5  ;;  %8765 = vmatpush.bf16.msrb.mxu1 %v10680_v60  ;;  %v10615_v40 = vld [vmem:[#allocation3 + $0x9c] sm:$0xf] }
 0x459   : > { %v10068_v61 = vor.u32 %v10629_v42, %v10067_v57  ;;  %v7456_v55 = vsel %vm11204_vm5, %v7451_v14, %v7455_v7  ;;  %v7696_v30 = vrot.slane %v7694_v45, 5  ;;  %v10028_v12 = vor.u32 %v10615_v40, %v10025_v27  ;;  %v10033_v16 = vld [vmem:[#allocation3 + $0xc4] sm:$0xf0]  ;;  %v10616_v50 = vld [vmem:[#allocation3 + $0xa4] sm:$0xf] }
 0x45a   : > { %7485 = vst [vmem:[#allocation3 + $0xec] sm:$0xf] %v7456_v55  ;;  %v7542_v56 = vsel %vm11094_vm2, %v9935_v47, %v7541_v21  ;;  %v7691_v29 = vor.u32 %v7690_v9, %v7687_v11  ;;  %v10036_v44 = vor.u32 %v10616_v50, %v10033_v16  ;;  %v7627_v48 = vld [vmem:[#allocation4 + $0x6c] sm:$0xf]  ;;  %v7494_v39 = vld [vmem:[#allocation4 + $0x68] sm:$0x8] }
 0x45b   : > { %8684 = vmatmul.bf16.gmra.mxu1 %v9992_v1  ;;  %v7470_v1 = vsel %vm11204_vm5, %v7465_v26, %v7469_v28  ;;  %7618 = vst [vmem:[#allocation3 + $0x60] sm:$0xf] %v7542_v56  ;;  %v7495_v59 = vld [vmem:[#allocation4 + $0x6c] sm:$0xf]  ;;  %v7544_v4 = vshrl.u32 %v7494_v39, 16 }
 0x45c   : > { %7486 = vst [vmem:[#allocation3 + $0x110] sm:$0xf] %v7470_v1  ;;  %v7692_v24 = vrot.slane %v7691_v29, 4  ;;  %v7549_v32 = vshrl.u32 %v7495_v59, 16  ;;  %v9969_v10 = vld [vmem:[#allocation3 + $0x3c] sm:$0xf0] }
 0x45d   : > { %7635 = vst [vmem:[#allocation3 + $0x88] sm:$0xf] %v7627_v48  ;;  %v9936_v53 = vrot.slane %v7544_v4, 11  ;;  %v7552_v13 = vshll.u32 %v7495_v59, 16  ;;  %v10599_v35 = vld [vmem:[#allocation3 + $0x1c] sm:$0xf] }
 0x45e   : > { %v7697_v23 = vsel %vm11204_vm5, %v7692_v24, %v7696_v30  ;;  %v8632_v58 = vpop.f32.mrf.mxu2  ;;  %v7551_v5 = vrot.slane %v7549_v32, 7  ;;  %v9972_v25 = vor.u32 %v10599_v35, %v9969_v10  ;;  %v10624_v37 = vld [vmem:[#allocation3 + $0xe4] sm:$0xf]  ;;  %v7646_v47 = vld [vmem:[#allocation4 + $0x6c] sm:$0xf] }
 0x45f   : > { %7778 = vst [vmem:[#allocation3 + $0x68] sm:$0xf] %v7697_v23  ;;  %v7699_v43 = vshrl.u32 %v7646_v47, 16  ;;  %v7702_v7 = vshll.u32 %v7646_v47, 16  ;;  %v7647_v49 = vld [vmem:[#allocation4 + $0x70] sm:$0x1] }
 0x460   : > { %v7554_v6 = vor.u32 %v7552_v13, %v7551_v5  ;;  %v7708_v33 = vshll.u32 %v7647_v49, 16  ;;  %v7628_v45 = vld [vmem:[#allocation4 + $0x80] sm:$0xf]  ;;  %v7629_v57 = vld [vmem:[#allocation4 + $0x94] sm:$0xf] }
 0x461   : > { %8742 = vmatmul.bf16.gmra.mxu3 %v10000_v18  ;;  %v10061_v18 = vld [vmem:[#allocation3 + $0x104] sm:$0xf0]  ;;  %v7701_v22 = vrot.slane %v7699_v43, 4  ;;  %v7704_v0 = vrot.slane %v7702_v7, 5  ;;  %v10625_v62 = vld [vmem:[#allocation3 + $0xec] sm:$0xf] }
 0x462   : > { %v7555_v36 = vsel %vm11094_vm2, %v9936_v53, %v7554_v6  ;;  %v10064_v17 = vor.u32 %v10624_v37, %v10061_v18  ;;  %v7710_v3 = vrot.slane %v7708_v33, 5  ;;  %v7496_v26 = vld [vmem:[#allocation4 + $0x7c] sm:$0x8]  ;;  %v7497_v21 = vld [vmem:[#allocation4 + $0x80] sm:$0xf] }
 0x463   : > { %7619 = vst [vmem:[#allocation3 + $0x84] sm:$0xf] %v7555_v36  ;;  %v10069_v15 = vld [vmem:[#allocation3 + $0x10c] sm:$0xf0]  ;;  %v7705_v31 = vor.u32 %v7704_v0, %v7701_v22  ;;  %v7499_v55 = vld [vmem:[#allocation4 + $0x94] sm:$0xf] }
 0x464   : > { %v10072_v14 = vor.u32 %v10625_v62, %v10069_v15  ;;  %v10005_v60 = vld [vmem:[#allocation3 + $0x84] sm:$0xf0]  ;;  %v7498_v9 = vld [vmem:[#allocation4 + $0x90] sm:$0x8]  ;;  %7636 = vst [vmem:[#allocation3 + $0xac] sm:$0xf] %v7628_v45 }
 0x465   : > { %v7706_v51 = vrot.slane %v7705_v31, 4  ;;  %v7557_v27 = vshrl.u32 %v7496_v26, 16  ;;  %v7562_v1 = vshrl.u32 %v7497_v21, 16  ;;  %7637 = vst [vmem:[#allocation3 + $0xd0] sm:$0xf] %v7629_v57  ;;  %v7570_v29 = vshrl.u32 %v7498_v9, 16 }
 0x466   : > { %v8634_v2 = vpop.f32.mrf.mxu2  ;;  %v7575_v30 = vshrl.u32 %v7499_v55, 16  ;;  %v10608_v40 = vld [vmem:[#allocation3 + $0x64] sm:$0xf]  ;;  %v7565_v23 = vshll.u32 %v7497_v21, 16  ;;  %v10603_v16 = vld [vmem:[#allocation3 + $0x38] sm:$0xf0] }
 0x467   : > { %v7711_v11 = vsel %vm11204_vm5, %v7706_v51, %v7710_v3  ;;  %v9937_v24 = vrot.slane %v7557_v27, 11  ;;  %v9938_v50 = vrot.slane %v7570_v29, 11  ;;  %v9967_v48 = vld [vmem:[#allocation3 + $0x18] sm:$0xf]  ;;  %v10604_v10 = vld [vmem:[#allocation3 + $0x40] sm:$0xf0] }
 0x468   : > { %8723 = vmatmul.bf16.gmra.mxu2 %v10068_v61  ;;  %7779 = vst [vmem:[#allocation3 + $0x8c] sm:$0xf] %v7711_v11  ;;  %v9968_v59 = vor.u32 %v10603_v16, %v9967_v48  ;;  %v7648_v53 = vld [vmem:[#allocation4 + $0x80] sm:$0xf]  ;;  %v7649_v5 = vld [vmem:[#allocation4 + $0x84] sm:$0x1] }
 0x469   : > { %v7650_v13 = vld [vmem:[#allocation4 + $0x94] sm:$0xf]  ;;  %v7651_v35 = vld [vmem:[#allocation4 + $0x98] sm:$0x1]  ;;  %v7713_v18 = vshrl.u32 %v7648_v53, 16 }
 0x46a   : > { %v7727_v6 = vshrl.u32 %v7650_v13, 16  ;;  %v9975_v37 = vld [vmem:[#allocation3 + $0x20] sm:$0xf]  ;;  %v7736_v36 = vshll.u32 %v7651_v35, 16  ;;  %v7630_v22 = vld [vmem:[#allocation4 + $0xa8] sm:$0xf] }
 0x46b   : > { %8689 = vmatmul.bf16.gmra.mxu1 %v10028_v12  ;;  %v7564_v12 = vrot.slane %v7562_v1, 7  ;;  %v9976_v47 = vor.u32 %v10604_v10, %v9975_v37  ;;  %7638 = vst [vmem:[#allocation3 + $0xf4] sm:$0xf] %v7630_v22  ;;  %v10617_v3 = vld [vmem:[#allocation3 + $0xac] sm:$0xf] }
 0x46c   : > { %v7729_v43 = vrot.slane %v7727_v6, 4  ;;  %v7738_v15 = vrot.slane %v7736_v36, 5  ;;  %v10041_v33 = vld [vmem:[#allocation3 + $0xcc] sm:$0xf0]  ;;  %v10612_v51 = vld [vmem:[#allocation3 + $0x80] sm:$0xf0] }
 0x46d   : > { %v10003_v45 = vld [vmem:[#allocation3 + $0x60] sm:$0xf]  ;;  %v7500_v26 = vld [vmem:[#allocation4 + $0xa4] sm:$0x8]  ;;  %v7501_v21 = vld [vmem:[#allocation4 + $0xa8] sm:$0xf] }
 0x46e   : > { %v10004_v57 = vor.u32 %v10612_v51, %v10003_v45  ;;  %v7583_v9 = vshrl.u32 %v7500_v26, 16  ;;  %v7652_v27 = vld [vmem:[#allocation4 + $0xa8] sm:$0xf]  ;;  %v7653_v1 = vld [vmem:[#allocation4 + $0xac] sm:$0x1] }
 0x46f   : > { %v10613_v29 = vld [vmem:[#allocation3 + $0x88] sm:$0xf0]  ;;  %v10011_v16 = vld [vmem:[#allocation3 + $0x68] sm:$0xf] }
 0x470   : > { %v8603_v46 = vpop.f32.mrf.mxu1 }
 0x471   : > { %8747 = vmatmul.bf16.gmra.mxu3 %v10036_v44  ;;  %v8633_v20 = vadd.f32 %v8632_v58, %v8603_v46  ;;  %v10008_v58 = vor.u32 %v10608_v40, %v10005_v60  ;;  %v7577_v44 = vrot.slane %v7575_v30, 7  ;;  %v7578_v46 = vshll.u32 %v7499_v55, 16 }
 0x472   : > { %v10044_v60 = vor.u32 %v10617_v3, %v10041_v33  ;;  %v7591_v55 = vshll.u32 %v7501_v21, 16  ;;  %v9939_v30 = vrot.slane %v7583_v9, 11 }
 0x473   : > { %v7580_v39 = vor.u32 %v7578_v46, %v7577_v44  ;;  %v10012_v46 = vor.u32 %v10613_v29, %v10011_v16 }
 0x475   : > { %v7581_v32 = vsel %vm11094_vm2, %v9938_v50, %v7580_v39 }
 0x476   : > { %7621 = vst [vmem:[#allocation3 + $0xcc] sm:$0xf] %v7581_v32  ;;  %v10077_v32 = vld [vmem:[#allocation3 + $0x114] sm:$0xf0] }
 0x478   : > { %v8605_v63 = vpop.f32.mrf.mxu1  ;;  %8795 = vmatmul.bf16.vlgmr.msrb.gmra.mxu2 %v9972_v25  ;;  %v7722_v25 = vshll.u32 %v7649_v5, 16 }
 0x479   : > { %v8635_v54 = vadd.f32 %v8634_v2, %v8605_v63  ;;  %v7716_v2 = vshll.u32 %v7648_v53, 16  ;;  %v7730_v63 = vshll.u32 %v7650_v13, 16 }
 0x47a   : > { %v7724_v49 = vrot.slane %v7722_v25, 5 }
 0x47b   : > { %8694 = vmatmul.bf16.gmra.mxu1 %v10064_v17  ;;  %v8661_v28 = vpop.f32.mrf.mxu3  ;;  %v7715_v17 = vrot.slane %v7713_v18, 4  ;;  %v7732_v7 = vrot.slane %v7730_v63, 5  ;;  %v10630_v63 = vld [vmem:[#allocation3 + $0x110] sm:$0xf0] }
 0x47c   : > { %v13040_v42 = vadd.f32 %v8661_v28, %v8633_v20  ;;  %v7567_v20 = vor.u32 %v7565_v23, %v7564_v12  ;;  %v7744_v12 = vshll.u32 %v7652_v27, 16  ;;  %v7750_v23 = vshll.u32 %v7653_v1, 16 }
 0x47d   : > { %v7733_v0 = vor.u32 %v7732_v7, %v7729_v43  ;;  %v10621_v53 = vld [vmem:[#allocation3 + $0xc8] sm:$0xf0]  ;;  %v10631_v43 = vld [vmem:[#allocation3 + $0x118] sm:$0xf0] }
 0x47e   : > { %v7568_v4 = vsel %vm11094_vm2, %v9937_v24, %v7567_v20  ;;  %v7741_v24 = vshrl.u32 %v7652_v27, 16  ;;  %v7746_v44 = vrot.slane %v7744_v12, 5  ;;  %v7752_v39 = vrot.slane %v7750_v23, 5 }
 0x47f   : > { %7620 = vst [vmem:[#allocation3 + $0xa8] sm:$0xf] %v7568_v4  ;;  %v7734_v62 = vrot.slane %v7733_v0, 4  ;;  %v10626_v4 = vld [vmem:[#allocation3 + $0xf4] sm:$0xf] }
 0x480   : > { %v7743_v50 = vrot.slane %v7741_v24, 4  ;;  %v10080_v5 = vor.u32 %v10626_v4, %v10077_v32 }
 0x481   : > { %8752 = vmatmul.bf16.gmra.mxu3 %v10072_v14  ;;  %v7739_v11 = vsel %vm11204_vm5, %v7734_v62, %v7738_v15 }
 0x482   : > { %7781 = vst [vmem:[#allocation3 + $0xd4] sm:$0xf] %v7739_v11  ;;  %v7747_v48 = vor.u32 %v7746_v44, %v7743_v50 }
 0x483   : > { %v8663_v61 = vpop.f32.mrf.mxu3 }
 0x484   : > { %v13044_v56 = vadd.f32 %v8663_v61, %v8635_v54  ;;  %v7718_v54 = vrot.slane %v7716_v2, 5  ;;  %v7588_v61 = vshrl.u32 %v7501_v21, 16 }
 0x486   : > { %v7719_v28 = vor.u32 %v7718_v54, %v7715_v17  ;;  %v7590_v40 = vrot.slane %v7588_v61, 7  ;;  %v10039_v13 = vld [vmem:[#allocation3 + $0xa8] sm:$0xf] }
 0x487   : > { %v10040_v35 = vor.u32 %v10621_v53, %v10039_v13 }
 0x488   : > { %8800 = vmatmul.bf16.gmra.mxu2 %v10008_v58  ;;  %v7720_v31 = vrot.slane %v7719_v28, 4  ;;  %v7593_v58 = vor.u32 %v7591_v55, %v7590_v40 }
 0x489   : > { %v10622_v38 = vld [vmem:[#allocation3 + $0xd0] sm:$0xf0] }
 0x48a   : > { %v7725_v14 = vsel %vm11204_vm5, %v7720_v31, %v7724_v49  ;;  %v7594_v20 = vsel %vm11094_vm2, %v9939_v30, %v7593_v58 }
 0x48b   : > { %8766 = vmatmul.bf16.vlgmr.msrb.gmra.mxu1 %v9968_v59  ;;  %7780 = vst [vmem:[#allocation3 + $0xb0] sm:$0xf] %v7725_v14  ;;  %v7748_v59 = vrot.slane %v7747_v48, 4 }
 0x48c   : > { %7622 = vst [vmem:[#allocation3 + $0xf0] sm:$0xf] %v7594_v20 }
 0x48d   : > { %v7753_v10 = vsel %vm11204_vm5, %v7748_v59, %v7752_v39 }
 0x48e   : > { %7782 = vst [vmem:[#allocation3 + $0xf8] sm:$0xf] %v7753_v10 }
 0x491   : > { %8824 = vmatmul.bf16.vlgmr.msra.gmra.mxu3 %v9976_v47 }
 0x492   : > { %v10047_v2 = vld [vmem:[#allocation3 + $0xb0] sm:$0xf] }
 0x493   : > { %v10048_v25 = vor.u32 %v10622_v38, %v10047_v2  ;;  %v10075_v37 = vld [vmem:[#allocation3 + $0xf0] sm:$0xf] }
 0x494   : > { %v10076_v17 = vor.u32 %v10630_v63, %v10075_v37  ;;  %v13079_v63 = vld [vmem:[%s13144_s4] ss:$0 sm:$0xff] }
 0x495   : > { %v10083_v54 = vld [vmem:[#allocation3 + $0xf8] sm:$0xf] }
 0x496   : > { %v10084_v7 = vor.u32 %v10631_v43, %v10083_v54 }
 0x498   : > { %8805 = vmatmul.bf16.gmra.mxu2 %v10044_v60 }
 0x49b   : > { %8771 = vmatmul.bf16.gmra.mxu1 %v10004_v57 }
 0x4a1   : > { %8829 = vmatmul.bf16.gmra.mxu3 %v10012_v46 }
 0x4a8   : > { %8810 = vmatmul.bf16.gmra.mxu2 %v10080_v5 }
 0x4ab   : > { %8776 = vmatmul.bf16.gmra.mxu1 %v10040_v35  ;;  %v8637_v18 = vpop.f32.mrf.mxu2 }
 0x4b1   : > { %8834 = vmatmul.bf16.gmra.mxu3 %v10048_v25 }
 0x4b3   : > { %v8639_v6 = vpop.f32.mrf.mxu2 }
 0x4b8   : > { %v8608_v36 = vpop.f32.mrf.mxu1 }
 0x4b9   : > { %v8638_v47 = vadd.f32 %v8637_v18, %v8608_v36  ;;  %v10706_v36 = vld [vmem:[%s10972_s19] sm:$0xff]  }
 0x4ba   : > { %v10707_v54 = vunpack.c.l.bf16 %v10706_v36 }
 0x4bb   : > { %8781 = vmatmul.bf16.gmra.mxu1 %v10076_v17  ;;  %v8709_v19 = vpop.f32.mrf.mxu2 }
 0x4c0   : > { %v8610_v28 = vpop.f32.mrf.mxu1 }
 0x4c1   : > { %8839 = vmatmul.bf16.gmra.mxu3 %v10084_v7  ;;  %v8640_v49 = vadd.f32 %v8639_v6, %v8610_v28  ;;  %v10708_v28 = vunpack.c.h.bf16 %v10706_v36 }
 0x4c3   : > { %v8711_v22 = vpop.f32.mrf.mxu2 }
 0x4c4   : > { %v8666_v0 = vpop.f32.mrf.mxu3 }
 0x4c5   : > { %v8667_v15 = vadd.f32 %v8666_v0, %v8638_v47 }
 0x4c8   : > { %v8680_v33 = vpop.f32.mrf.mxu1 }
 0x4c9   : > { %v8681_v31 = vadd.f32 %v8680_v33, %v12779_v34 }
 0x4cb   : > { %v8710_v62 = vadd.f32 %v8709_v19, %v8681_v31  ;;  %v8714_v3 = vpop.f32.mrf.mxu2 }
 0x4cc   : > { %v8668_v14 = vpop.f32.mrf.mxu3 }
 0x4cd   : > { %v13059_v51 = vadd.f32 %v8668_v14, %v8640_v49 }
 0x4d0   : > { %v8682_v60 = vpop.f32.mrf.mxu1 }
 0x4d1   : > { %v8683_v5 = vadd.f32 %v8682_v60, %v12783_v41 }
 0x4d3   : > { %v8716_v11 = vpop.f32.mrf.mxu2  ;;  %v8712_v18 = vadd.f32 %v8711_v22, %v8683_v5 }
 0x4d4   : > { %v8738_v45 = vpop.f32.mrf.mxu3 }
 0x4d5   : > { %v8739_v57 = vadd.f32 %v8738_v45, %v8710_v62 }
 0x4d8   : > { %v8685_v26 = vpop.f32.mrf.mxu1 }
 0x4d9   : > { %v8686_v21 = vadd.f32 %v8685_v26, %v12953_v8 }
 0x4db   : > { %v8715_v9 = vadd.f32 %v8714_v3, %v8686_v21  ;;  %v8719_v55 = vpop.f32.mrf.mxu2 }
 0x4dc   : > { %v8740_v61 = vpop.f32.mrf.mxu3 }
 0x4dd   : > { %v8741_v2 = vadd.f32 %v8740_v61, %v8712_v18 }
 0x4e0   : > { %v8687_v27 = vpop.f32.mrf.mxu1 }
 0x4e1   : > { %v8688_v49 = vadd.f32 %v8687_v27, %v12972_v52 }
 0x4e3   : > { %v13062_v30 = vpop.f32.mrf.mxu2  ;;  %v8717_v3 = vadd.f32 %v8716_v11, %v8688_v49 }
 0x4e4   : > { %v8743_v1 = vpop.f32.mrf.mxu3 }
 0x4e5   : > { %v8744_v29 = vadd.f32 %v8743_v1, %v8715_v9 }
 0x4e8   : > { %v8690_v34 = vpop.f32.mrf.mxu1 }
 0x4e9   : > { %v8691_v40 = vadd.f32 %v8690_v34, %v13040_v42 }
 0x4eb   : > { %v8720_v24 = vadd.f32 %v8719_v55, %v8691_v40  ;;  %v8724_v16 = vpop.f32.mrf.mxu2  ;;  %v10741_v55 = vld [vmem:[%s10972_s19 + $0x8] sm:$0xff]  }
 0x4ec   : > { %v8745_v12 = vpop.f32.mrf.mxu3  ;;  %v10711_v1 = vunpack.c.l.bf16 %v10741_v55  ;;  %v10712_v11 = vunpack.c.h.bf16 %v10741_v55 }
 0x4f0   : > { %v8692_v23 = vpop.f32.mrf.mxu1 }
 0x4f3   : > { %v13065_v8 = vpop.f32.mrf.mxu2 }
 0x4f4   : > { %v8748_v58 = vpop.f32.mrf.mxu3 }
 0x4f5   : > { %v8749_v50 = vadd.f32 %v8748_v58, %v8720_v24 }
 0x4f8   : > { %v8695_v44 = vpop.f32.mrf.mxu1 }
 0x4f9   : > { %v8696_v46 = vadd.f32 %v8695_v44, %v8667_v15 }
 0x4fb   : > { %v8725_v20 = vadd.f32 %v8724_v16, %v8696_v46  ;;  %v8796_v4 = vpop.f32.mrf.mxu2  ;;  %v8693_v16 = vadd.f32 %v8692_v23, %v13044_v56  ;;  %v10742_v23 = vld [vmem:[%s10972_s19 + $0x10] sm:$0xff]  }
 0x4fc   : > { %v13067_v48 = vpop.f32.mrf.mxu3 }
 0x500   : > { %v13069_v39 = vpop.f32.mrf.mxu1 }
 0x503   : > { %v8798_v53 = vpop.f32.mrf.mxu2 }
 0x504   : > { %v8753_v59 = vpop.f32.mrf.mxu3 }
 0x505   : > { %v13071_v32 = vadd.f32 %v8753_v59, %v8725_v20  ;;  %v8722_v59 = vadd.f32 %v13062_v30, %v8693_v16  ;;  %v10716_v30 = vunpack.c.h.bf16 %v10742_v23 }
 0x507   : > { %v8751_v5 = vadd.f32 %v13067_v48, %v8722_v59 }
 0x508   : > { %v8767_v42 = vpop.f32.mrf.mxu1 }
 0x509   : > { %v8768_v35 = vadd.f32 %v8767_v42, %v8739_v57  ;;  %v8746_v57 = vadd.f32 %v8745_v12, %v8717_v3 }
 0x50b   : > { %v8797_v25 = vadd.f32 %v8796_v4, %v8768_v35  ;;  %v8801_v47 = vpop.f32.mrf.mxu2 }
 0x50c   : > { %v13073_v10 = vpop.f32.mrf.mxu3 }
 0x510   : > { %v8769_v13 = vpop.f32.mrf.mxu1 }
 0x511   : > { %v8770_v6 = vadd.f32 %v8769_v13, %v8741_v2 }
 0x513   : > { %v8799_v41 = vadd.f32 %v8798_v53, %v8770_v6  ;;  %v8803_v62 = vpop.f32.mrf.mxu2  ;;  %v10715_v6 = vunpack.c.l.bf16 %v10742_v23 }
 0x514   : > { %v8825_v38 = vpop.f32.mrf.mxu3 }
 0x515   : > { %v8826_v37 = vadd.f32 %v8825_v38, %v8797_v25 }
 0x517   : > { %v8849_v19 = vadd.f32 %v13079_v63, %v8826_v37 }
 0x518   : > { %v8772_v17 = vpop.f32.mrf.mxu1 }
 0x519   : > { %v8873_v22 = vadd.f32 %v10707_v54, %v8849_v19  ;;  %v8773_v33 = vadd.f32 %v8772_v17, %v8744_v29 }
 0x51b   : > { %v8881_v14 = vmax.f32 %v8873_v22, 0.0  ;;  %v8802_v21 = vadd.f32 %v8801_v47, %v8773_v33  ;;  %v8806_v40 = vpop.f32.mrf.mxu2  ;;  %v8698_v47 = vadd.f32 %v13069_v39, %v13059_v51 }
 0x51c   : > { %v8827_v43 = vpop.f32.mrf.mxu3 }
 0x51d   : > { %v8828_v7 = vadd.f32 %v8827_v43, %v8799_v41  ;;  %v8727_v43 = vadd.f32 %v13065_v8, %v8698_v47 }
 0x51f   : > { %v8850_v0 = vadd.f32 %v13079_v63, %v8828_v7 }
 0x520   : > { %v8774_v15 = vpop.f32.mrf.mxu1 }
 0x521   : > { %v8874_v31 = vadd.f32 %v10708_v28, %v8850_v0  ;;  %v8775_v9 = vadd.f32 %v8774_v15, %v8746_v57  ;;  %v8756_v0 = vadd.f32 %v13073_v10, %v8727_v43 }
 0x523   : > { %v8882_v60 = vmax.f32 %v8874_v31, 0.0  ;;  %v8804_v34 = vadd.f32 %v8803_v62, %v8775_v9  ;;  %v8808_v18 = vpop.f32.mrf.mxu2  ;;  %v10743_v31 = vld [vmem:[%s10972_s19 + $0x18] sm:$0xff]   ;;  %s8918_s19 = sshll.u32 %s10974_s20, 4  ;;  %s8919_s19 = int_to_ptr.vmem [resolvable:$true] %s8918_s19 }
 0x524   : > { %v8830_v45 = vpop.f32.mrf.mxu3  ;;  %v10719_v3 = vunpack.c.l.bf16 %v10743_v31 }
 0x525   : > { %v10724_v26 = vpack.c.bf16 %v8882_v60, %v8881_v14  ;;  %v8831_v61 = vadd.f32 %v8830_v45, %v8802_v21  ;;  %v10720_v45 = vunpack.c.h.bf16 %v10743_v31 }
 0x527   : > { %10725 = vst [vmem:[%s10974_s20] sm:$0xff] %v10724_v26   ;;  %v8851_v27 = vadd.f32 %v13079_v63, %v8831_v61 }
 0x528   : > { %v8777_v52 = vpop.f32.mrf.mxu1 }
 0x529   : > { %v8875_v58 = vadd.f32 %v10711_v1, %v8851_v27  ;;  %v8778_v46 = vadd.f32 %v8777_v52, %v8749_v50 }
 0x52b   : > { %v8883_v4 = vmax.f32 %v8875_v58, 0.0  ;;  %v8807_v35 = vadd.f32 %v8806_v40, %v8778_v46  ;;  %v8811_v19 = vpop.f32.mrf.mxu2 }
 0x52c   : > { %v8832_v29 = vpop.f32.mrf.mxu3 }
 0x52d   : > { %v8833_v24 = vadd.f32 %v8832_v29, %v8804_v34 }
 0x52f   : > { %v8852_v12 = vadd.f32 %v13079_v63, %v8833_v24 }
 0x530   : > { %v8779_v44 = vpop.f32.mrf.mxu1 }
 0x531   : > { %v8876_v20 = vadd.f32 %v10712_v11, %v8852_v12  ;;  %v8780_v38 = vadd.f32 %v8779_v44, %v8751_v5 }
 0x533   : > { %v8884_v42 = vmax.f32 %v8876_v20, 0.0  ;;  %v8809_v50 = vadd.f32 %v8808_v18, %v8780_v38  ;;  %v8813_v62 = vpop.f32.mrf.mxu2 }
 0x534   : > { %v8835_v53 = vpop.f32.mrf.mxu3 }
 0x535   : > { %v10729_v13 = vpack.c.bf16 %v8884_v42, %v8883_v4  ;;  %v8836_v56 = vadd.f32 %v8835_v53, %v8807_v35 }
 0x537   : > { %10744 = vst [vmem:[%s10974_s20 + $0x8] sm:$0xff] %v10729_v13   ;;  %v8853_v25 = vadd.f32 %v13079_v63, %v8836_v56 }
 0x538   : > { %v8782_v2 = vpop.f32.mrf.mxu1 }
 0x539   : > { %v8877_v48 = vadd.f32 %v10715_v6, %v8853_v25  ;;  %v8783_v54 = vadd.f32 %v8782_v2, %v13071_v32 }
 0x53b   : > { %v8885_v7 = vmax.f32 %v8877_v48, 0.0  ;;  %v8812_v33 = vadd.f32 %v8811_v19, %v8783_v54 }
 0x53c   : > { %v8837_v37 = vpop.f32.mrf.mxu3 }
 0x53d   : > { %v8838_v36 = vadd.f32 %v8837_v37, %v8809_v50 }
 0x53f   : > { %v8854_v17 = vadd.f32 %v13079_v63, %v8838_v36 }
 0x540   : > { %v8784_v49 = vpop.f32.mrf.mxu1 }
 0x541   : > { %v8878_v41 = vadd.f32 %v10716_v30, %v8854_v17  ;;  %v8785_v51 = vadd.f32 %v8784_v49, %v8756_v0 }
 0x543   : > { %v8886_v28 = vmax.f32 %v8878_v41, 0.0  ;;  %v8814_v14 = vadd.f32 %v8813_v62, %v8785_v51 }
 0x544   : > { %v8840_v22 = vpop.f32.mrf.mxu3 }
 0x545   : > { %v10734_v15 = vpack.c.bf16 %v8886_v28, %v8885_v7  ;;  %v8841_v39 = vadd.f32 %v8840_v22, %v8812_v33 }
 0x547   : > { %10745 = vst [vmem:[%s10974_s20 + $0x10] sm:$0xff] %v10734_v15   ;;  %v8855_v32 = vadd.f32 %v13079_v63, %v8841_v39 }
 0x549   : > { %v8879_v10 = vadd.f32 %v10719_v3, %v8855_v32 }
 0x54b   : > { %v8887_v21 = vmax.f32 %v8879_v10, 0.0 }
 0x54c   : > { %v8842_v8 = vpop.f32.mrf.mxu3 }
 0x54d   : > { %v8843_v60 = vadd.f32 %v8842_v8, %v8814_v14 }
 0x54f   : > { %v8856_v57 = vadd.f32 %v13079_v63, %v8843_v60 }
 0x551   : > { %v8880_v26 = vadd.f32 %v10720_v45, %v8856_v57 }
 0x553   : > { %v8888_v9 = vmax.f32 %v8880_v26, 0.0 }
 0x555   : > { %v10739_v61 = vpack.c.bf16 %v8888_v9, %v8887_v21 }
 0x557   : > { %10746 = vst [vmem:[%s10974_s20 + $0x18] sm:$0xff] %v10739_v61  }
 0x558   : > { %10836 = shalt.err (!%p10833_p4)
}
 0x559   : > { %s10874_s9 = smov 64   ;;  %s10875_s20 = smov 4  }
 0x55a   : > { %10763 = dma.vmem_to_hbm [thread:$0]  (%p10949_p5), %s8919_s19, 512, %s8921_s16, %s8906_s25, %s10874_s9, %s10874_s9, %s10875_s20  }
 0x55b PF: > { %p10769_p7 = scmp.ge.s32.totalorder %s10871_s24, 2  ;;  %s8935_s11 = sand.u32 1, %s10859_s21  }
 0x55c   : > { %s8936_s12 = scalar_lea.sflag [#allocation6], %s8935_s11 }
 0x55d   : > { %p10766_p8 = pnand %p10769_p7, %p10953_p6 }
 0x55f   : > { %p10767_p9 = pneg %p10766_p8 }
 0x561   : > { %10854 = dma.done.wait (%p10767_p9), %s8936_s12, 512  }
 0x562   : > { %10856 = vsyncadd (%p10767_p9), %s8936_s12, 4294966784  ;;  %p16_p10 = scmp.ge.s32.totalorder %s10936_s27, 4   ;;  %s13223_s21 = smov %s10863_s22 }
 0x563   : > { %s13224_s22 = smov %s10867_s23  ;;  %s13225_s23 = smov %s10947_s30 }
 0x564   : > { %s13226_s24 = smov %s10936_s27  ;;  %18 = sbr.rel (!%p16_p10) target bundleno = 3 (0x3), region = 90 }
 0x569   :  { %8942 = vsyncpa [#allocation6], 1 }
 0x56a   :  { %8944 = vsyncpa [#allocation6 + $0x1], 1 }

</bundles_post_ra>
